<compile_context>
chip_gen: v6e
topology: v6e:2x2x1
jax: 0.10.0
libtpu: 0.0.40
codegen_flags: <defaults>
</compile_context>

<pallas_src>
import math
import functools

import jax
import jax.numpy as jnp
from jax.experimental import pallas as pl
from jax.experimental.pallas import tpu as pltpu

# ---- model hyper-params (defaults of SetModel_ablation) ----
EMBED_SIZE = 64
HIDDEN = 128
NUM_HEADS = 4
NUM_INDS = 6
NUM_OUTPUTS = 6
K4KMER = 3
VOCAB_SIZE = 22  # stands in for len(vocab)

assert NUM_INDS == NUM_OUTPUTS  # seeds are stacked into one (3, NUM_INDS, HIDDEN) tensor


# =====================  fused model kernel  =====================
# grid=(2,): step 0 = para branch, step 1 = epi branch + output head.
# Per-branch packed weights (all MABs in order [isab1.mab0, isab1.mab1, isab2.mab0,
# isab2.mab1, pma.mab, sab1, sab2]):
#   Wq    : (7, 128, 128)  bf16   fc_q   (zero-row-padded where in_dim == 64)
#   bq    : (7, 1, 128)    f32
#   Wkv   : (7, 128, 256)  bf16   [fc_k | fc_v] fused along the output lanes
#   bkv   : (7, 1, 256)    f32
#   Wo    : (7, 128, 128)  bf16   fc_o
#   bo    : (7, 1, 128)    f32
#   qseed : (3, 6, 128)    f32    fc_q(I1), fc_q(I2), fc_q(S) precomputed at pack time
#   dec_w : (128, 64) bf16, dec_b : (1, 64) f32   final Linear(hidden, embed) of the decoder
# Shared head weights: w1 (64,32), b1 (1,32), w2 (32,1), b2 (1,1), all f32.

def _setmodel_kernel(x_ref, wq_ref, bq_ref, wkv_ref, bkv_ref, wo_ref, bo_ref,
                     qseed_ref, dw_ref, db_ref,
                     w1_ref, b1_ref, w2_ref, b2_ref,
                     out_ref, acc_ref, *, num_heads):
    g = pl.program_id(0)
    D = HIDDEN
    dh = D // num_heads
    scale = 1.0 / math.sqrt(D)          # torch divides by sqrt(dim_V)
    _, B, S, _ = x_ref.shape

    def proj(x2_bf, w_r, b_r, idx):
        # bf16 x bf16 MXU matmul, fp32 accumulation, fp32 bias add.
        y = jnp.dot(x2_bf, w_r[0, idx], preferred_element_type=jnp.float32)
        return y + b_r[0, idx]

    def attn_and_out(qp, kp, vp, idx):
        # qp: (B, Lq, 128) f32 (projected Q), kp/vp: (B, Lk, 128) f32 -> (B, Lq, 128) f32
        Bq, Lq, _ = qp.shape
        qb = qp.astype(jnp.bfloat16)
        kb = kp.astype(jnp.bfloat16)
        vb = vp.astype(jnp.bfloat16)
        heads = []
        for h in range(num_heads):                  # static unroll; heads = 32-lane slices
            sl = slice(h * dh, (h + 1) * dh)
            sc = jnp.einsum('bqd,bkd->bqk', qb[:, :, sl], kb[:, :, sl],
                            preferred_element_type=jnp.float32) * scale
            sc = sc - jnp.max(sc, axis=-1, keepdims=True)
            e = jnp.exp(sc)
            inv = pl.reciprocal(jnp.sum(e, axis=-1, keepdims=True), approx=True)
            a = (e * inv).astype(jnp.bfloat16)      # softmax over keys
            heads.append(qp[:, :, sl] +
                         jnp.einsum('bqk,bkd->bqd', a, vb[:, :, sl],
                                    preferred_element_type=jnp.float32))
        o = jnp.concatenate(heads, axis=-1).reshape(Bq * Lq, D)     # (B*Lq, 128)
        o = o + jnp.maximum(proj(o.astype(jnp.bfloat16), wo_ref, bo_ref, idx), 0.0)
        return o.reshape(Bq, Lq, D)                                 # O + relu(fc_o(O))

    def kv_split(k2_bf, Bk, Lk, idx):
        kv = proj(k2_bf, wkv_ref, bkv_ref, idx)                     # (Bk*Lk, 256) f32
        return kv[:, :D].reshape(Bk, Lk, D), kv[:, D:].reshape(Bk, Lk, D)

    def mab_seedq(qp3, k3, idx):
        # Q already projected (precomputed seed projection); fused K/V projection only.
        Bk, Lk, _ = k3.shape
        kp, vp = kv_split(k3.reshape(Bk * Lk, D).astype(jnp.bfloat16), Bk, Lk, idx)
        return attn_and_out(qp3, kp, vp, idx)

    def mab_cross(q3, k3, idx):
        Bq, Lq, _ = q3.shape
        Lk = k3.shape[1]
        qp = proj(q3.reshape(Bq * Lq, D).astype(jnp.bfloat16),
                  wq_ref, bq_ref, idx).reshape(Bq, Lq, D)
        kp, vp = kv_split(k3.reshape(Bq * Lk, D).astype(jnp.bfloat16), Bq, Lk, idx)
        return attn_and_out(qp, kp, vp, idx)

    def mab_self(x3, idx):
        Bq, L, _ = x3.shape
        x2 = x3.reshape(Bq * L, D).astype(jnp.bfloat16)             # cast once, reuse
        qp = proj(x2, wq_ref, bq_ref, idx).reshape(Bq, L, D)
        kp, vp = kv_split(x2, Bq, L, idx)
        return attn_and_out(qp, kp, vp, idx)

    x = x_ref[0]                                                    # (B, S, 128) f32
    qs1 = jnp.broadcast_to(qseed_ref[0, 0], (B, NUM_INDS, D))
    qs2 = jnp.broadcast_to(qseed_ref[0, 1], (B, NUM_INDS, D))
    qsd = jnp.broadcast_to(qseed_ref[0, 2], (B, NUM_OUTPUTS, D))

    h1 = mab_seedq(qs1, x, 0)       # ISAB1.mab0  (inducing points attend to the set)
    x = mab_cross(x, h1, 1)         # ISAB1.mab1
    h2 = mab_seedq(qs2, x, 2)       # ISAB2.mab0
    x = mab_cross(x, h2, 3)         # ISAB2.mab1
    s = mab_seedq(qsd, x, 4)        # PMA          -> (B, NUM_OUTPUTS, 128)
    s = mab_self(s, 5)              # SAB1
    s = mab_self(s, 6)              # SAB2

    # final decoder Linear(hidden -> embed) and mean over the seed/output set
    y = jnp.dot(s.reshape(B * NUM_OUTPUTS, D).astype(jnp.bfloat16), dw_ref[0],
                preferred_element_type=jnp.float32) + db_ref[0]
    br = jnp.mean(y.reshape(B, NUM_OUTPUTS, EMBED_SIZE), axis=1)    # (B, 64)

    @pl.when(g == 0)
    def _():                        # persist para branch output across grid steps
        acc_ref[...] = br

    @pl.when(g == pl.num_programs(0) - 1)
    def _():                        # output head fused into the last grid step
        xh = acc_ref[...] * br                                      # para * epi, (B, 64)
        h = jnp.dot(xh, w1_ref[...], preferred_element_type=jnp.float32) + b1_ref[...]
        h = jnp.where(h > 0, h, 0.01 * h)   # LeakyReLU(0.01); Dropout = eval identity
        yo = jnp.dot(h, w2_ref[...], preferred_element_type=jnp.float32) + b2_ref[...]
        out_ref[...] = jax.nn.sigmoid(yo).astype(out_ref.dtype)


def setmodel_pallas(x_sets, packed, num_heads=NUM_HEADS):
    # x_sets: (2, B, S, HIDDEN) f32 (E=64 zero-padded to 128 lanes)
    n_br, B, S, D = x_sets.shape
    kernel = functools.partial(_setmodel_kernel, num_heads=num_heads)

    def br_spec(shape):             # per-branch blocks (whole per-branch slab in VMEM)
        return pl.BlockSpec((1,) + shape, lambda g, _s=shape: (g,) + (0,) * len(_s))

    def full_spec(shape):           # shared (branch-independent) blocks
        return pl.BlockSpec(shape, lambda g, _s=shape: (0,) * len(_s))

    return pl.pallas_call(
        kernel,
        out_shape=jax.ShapeDtypeStruct((B, 1), jnp.float32),
        grid=(n_br,),
        in_specs=[
            br_spec((B, S, D)),                         # x_sets
            br_spec((7, D, D)),                         # Wq   bf16
            br_spec((7, 1, D)),                         # bq
            br_spec((7, D, 2 * D)),                     # Wkv  bf16 (fused K|V)
            br_spec((7, 1, 2 * D)),                     # bkv
            br_spec((7, D, D)),                         # Wo   bf16
            br_spec((7, 1, D)),                         # bo
            br_spec((3, NUM_INDS, D)),                  # qseed (precomputed fc_q(seeds))
            br_spec((D, EMBED_SIZE)),                   # dec_w bf16
            br_spec((1, EMBED_SIZE)),                   # dec_b
            full_spec((EMBED_SIZE, EMBED_SIZE // 2)),   # head w1
            full_spec((1, EMBED_SIZE // 2)),            # head b1
            full_spec((EMBED_SIZE // 2, 1)),            # head w2
            full_spec((1, 1)),                          # head b2
        ],
        out_specs=pl.BlockSpec((B, 1), lambda g: (0, 0)),
        scratch_shapes=[pltpu.VMEM((B, EMBED_SIZE), jnp.float32)],
        compiler_params=pltpu.CompilerParams(
            dimension_semantics=("arbitrary",)),        # step 1 consumes step-0 scratch
    )(x_sets, packed['Wq'], packed['bq'], packed['Wkv'], packed['bkv'],
      packed['Wo'], packed['bo'], packed['qseed'], packed['dec_w'], packed['dec_b'],
      packed['w1'], packed['b1'], packed['w2'], packed['b2'])


# =====================  parameter init (deterministic, torch-structured)  =====================

def init_linear(key, d_in, d_out):
    k_w, k_b = jax.random.split(key)
    bound = 1.0 / math.sqrt(d_in)
    w = jax.random.uniform(k_w, (d_in, d_out), jnp.float32, -bound, bound)
    b = jax.random.uniform(k_b, (1, d_out), jnp.float32, -bound, bound)
    return w, b


def init_mab(key, d_q, d_k, d_v):
    ks = jax.random.split(key, 4)
    wq, bq = init_linear(ks[0], d_q, d_v)
    wk, bk = init_linear(ks[1], d_k, d_v)
    wv, bv = init_linear(ks[2], d_k, d_v)
    wo, bo = init_linear(ks[3], d_v, d_v)
    return dict(wq=wq, bq=bq, wk=wk, bk=bk, wv=wv, bv=bv, wo=wo, bo=bo)


def init_isab(key, d_in, d_out, num_inds):
    k_i, k0, k1 = jax.random.split(key, 3)
    bound = math.sqrt(6.0 / (num_inds + d_out))              # xavier_uniform-like
    I = jax.random.uniform(k_i, (1, num_inds, d_out), jnp.float32, -bound, bound)
    return dict(I=I,
                mab0=init_mab(k0, d_out, d_in, d_out),
                mab1=init_mab(k1, d_in, d_out, d_out))


def init_pma(key, dim, num_seeds):
    k_s, k_m = jax.random.split(key)
    bound = math.sqrt(6.0 / (num_seeds + dim))
    S = jax.random.uniform(k_s, (1, num_seeds, dim), jnp.float32, -bound, bound)
    return dict(S=S, mab=init_mab(k_m, dim, dim, dim))


def init_model(key):
    ks = jax.random.split(key, 15)
    params = {}
    params['embedding'] = 0.1 * jax.random.normal(ks[0], (VOCAB_SIZE, EMBED_SIZE), jnp.float32)
    params['para_enc'] = dict(isab1=init_isab(ks[1], EMBED_SIZE, HIDDEN, NUM_INDS),
                              isab2=init_isab(ks[2], HIDDEN, HIDDEN, NUM_INDS))
    params['para_dec'] = dict(pma=init_pma(ks[3], HIDDEN, NUM_OUTPUTS),
                              sab1=init_mab(ks[4], HIDDEN, HIDDEN, HIDDEN),
                              sab2=init_mab(ks[5], HIDDEN, HIDDEN, HIDDEN))
    params['epi_enc'] = dict(isab1=init_isab(ks[6], EMBED_SIZE, HIDDEN, NUM_INDS),
                             isab2=init_isab(ks[7], HIDDEN, HIDDEN, NUM_INDS))
    params['epi_dec'] = dict(pma=init_pma(ks[8], HIDDEN, NUM_OUTPUTS),
                             sab1=init_mab(ks[9], HIDDEN, HIDDEN, HIDDEN),
                             sab2=init_mab(ks[10], HIDDEN, HIDDEN, HIDDEN))
    wdp, bdp = init_linear(ks[11], HIDDEN, EMBED_SIZE)   # final Linear of para_dec
    wde, bde = init_linear(ks[12], HIDDEN, EMBED_SIZE)   # final Linear of epi_dec
    w1, b1 = init_linear(ks[13], EMBED_SIZE, EMBED_SIZE // 2)
    w2, b2 = init_linear(ks[14], EMBED_SIZE // 2, 1)
    params['head'] = dict(wdp=wdp, bdp=bdp, wde=wde, bde=bde, w1=w1, b1=b1, w2=w2, b2=b2)
    return params


# =====================  weight packing for the fused kernel  =====================

def _pad_rows(w, rows=HIDDEN):
    pad = rows - w.shape[0]
    return jnp.pad(w, ((0, pad), (0, 0))) if pad else w


def _pack_branch(enc, dec, dec_w, dec_b):
    mabs = [enc['isab1']['mab0'], enc['isab1']['mab1'],
            enc['isab2']['mab0'], enc['isab2']['mab1'],
            dec['pma']['mab'], dec['sab1'], dec['sab2']]
    Wq = jnp.stack([_pad_rows(m['wq']) for m in mabs])                          # (7,128,128)
    bq = jnp.stack([m['bq'] for m in mabs])                                     # (7,1,128)
    Wkv = jnp.stack([jnp.concatenate([_pad_rows(m['wk']), _pad_rows(m['wv'])], axis=1)
                     for m in mabs])                                            # (7,128,256)
    bkv = jnp.stack([jnp.concatenate([m['bk'], m['bv']], axis=1) for m in mabs])  # (7,1,256)
    Wo = jnp.stack([m['wo'] for m in mabs])                                     # (7,128,128)
    bo = jnp.stack([m['bo'] for m in mabs])                                     # (7,1,128)
    # precompute fc_q(seeds) in fp32 (seeds and weights are static)
    qseed = jnp.stack([
        enc['isab1']['I'][0] @ enc['isab1']['mab0']['wq'] + enc['isab1']['mab0']['bq'],
        enc['isab2']['I'][0] @ enc['isab2']['mab0']['wq'] + enc['isab2']['mab0']['bq'],
        dec['pma']['S'][0] @ dec['pma']['mab']['wq'] + dec['pma']['mab']['bq'],
    ])                                                                          # (3,6,128)
    return Wq, bq, Wkv, bkv, Wo, bo, qseed, dec_w, dec_b


def pack_params(params):
    p = _pack_branch(params['para_enc'], params['para_dec'],
                     params['head']['wdp'], params['head']['bdp'])
    e = _pack_branch(params['epi_enc'], params['epi_dec'],
                     params['head']['wde'], params['head']['bde'])
    st = lambda i: jnp.stack([p[i], e[i]])
    return dict(
        emb=params['embedding'],
        Wq=st(0).astype(jnp.bfloat16),   bq=st(1),       # (2,7,128,128) / (2,7,1,128)
        Wkv=st(2).astype(jnp.bfloat16),  bkv=st(3),      # (2,7,128,256) / (2,7,1,256)
        Wo=st(4).astype(jnp.bfloat16),   bo=st(5),       # (2,7,128,128) / (2,7,1,128)
        qseed=st(6),                                     # (2,3,6,128) f32
        dec_w=st(7).astype(jnp.bfloat16), dec_b=st(8),   # (2,128,64) / (2,1,64)
        w1=params['head']['w1'], b1=params['head']['b1'],
        w2=params['head']['w2'], b2=params['head']['b2'],
    )


# =====================  forward (tiny glue in JAX, everything else Pallas)  =====================

def kmer_embed_mean(x, k):
    # x: (B, L, E) -> (B, L-k+1, E): each k-mer = mean of its k token embeddings
    S = x.shape[1] - k + 1
    acc = x[:, 0:S, :]
    for i in range(1, k):
        acc = acc + x[:, i:i + S, :]
    return acc / float(k)


@jax.jit
def forward(packed, para_tokens, epi_tokens):
    emb = packed['emb']

    def prep(tok):
        x = emb[tok]                                     # (B, L, E) embedding lookup
        x = kmer_embed_mean(x, K4KMER)                   # (B, S, E)
        return jnp.pad(x, ((0, 0), (0, 0), (0, HIDDEN - EMBED_SIZE)))   # pad E -> 128 lanes

    # both branches stacked along a leading 'branch' axis -> one fused pallas_call
    x_sets = jnp.stack([prep(para_tokens), prep(epi_tokens)], axis=0)   # (2, B, S, 128)
    return setmodel_pallas(x_sets, packed)                              # (B, 1), sigmoid


# =====================  main  =====================

if __name__ == "__main__":
    key = jax.random.PRNGKey(0)
    k_para, k_epi, k_params = jax.random.split(key, 3)

    B, L = 2, 16                      # 2 sequences of 16 tokens each (same length per branch)
    para_tokens = jax.random.randint(k_para, (B, L), 0, VOCAB_SIZE, dtype=jnp.int32)
    epi_tokens = jax.random.randint(k_epi, (B, L), 0, VOCAB_SIZE, dtype=jnp.int32)

    params = init_model(k_params)
    packed = pack_params(params)

    out = forward(packed, para_tokens, epi_tokens)
    out = jax.block_until_ready(out)
    assert out.shape == (B, 1)
    assert bool(jnp.all(jnp.isfinite(out)))
    assert bool(jnp.all((out >= 0.0) & (out <= 1.0)))   # sigmoid range
    print("KERNEL_OK")
</pallas_src>

<mosaic_0001>
module attributes {stable_mosaic.version = 11 : i64} {
  func.func @_setmodel_kernel(%arg0: i32, %arg1: memref<1x2x14x128xf32, #tpu.memory_space<vmem>>, %arg2: memref<1x7x128x128xbf16, #tpu.memory_space<vmem>>, %arg3: memref<1x7x1x128xf32, #tpu.memory_space<vmem>>, %arg4: memref<1x7x128x256xbf16, #tpu.memory_space<vmem>>, %arg5: memref<1x7x1x256xf32, #tpu.memory_space<vmem>>, %arg6: memref<1x7x128x128xbf16, #tpu.memory_space<vmem>>, %arg7: memref<1x7x1x128xf32, #tpu.memory_space<vmem>>, %arg8: memref<1x3x6x128xf32, #tpu.memory_space<vmem>>, %arg9: memref<1x128x64xbf16, #tpu.memory_space<vmem>>, %arg10: memref<1x1x64xf32, #tpu.memory_space<vmem>>, %arg11: memref<64x32xf32, #tpu.memory_space<vmem>>, %arg12: memref<1x32xf32, #tpu.memory_space<vmem>>, %arg13: memref<32x1xf32, #tpu.memory_space<vmem>>, %arg14: memref<1x1xf32, #tpu.memory_space<vmem>>, %arg15: memref<2x1xf32, #tpu.memory_space<vmem>>, %arg16: memref<2x64xf32, #tpu.memory_space<vmem>>) attributes {dimension_semantics = [#tpu.dimension_semantics<arbitrary>], iteration_bounds = array<i64: 2>, scalar_prefetch = 0 : i64, scratch_operands = 1 : i64, tpu.core_type = #tpu.core_type<tc>, window_params = [{transform_indices = @transform_0, window_bounds = array<i64: 1, 2, 14, 128>}, {transform_indices = @transform_1, window_bounds = array<i64: 1, 7, 128, 128>}, {transform_indices = @transform_2, window_bounds = array<i64: 1, 7, 1, 128>}, {transform_indices = @transform_3, window_bounds = array<i64: 1, 7, 128, 256>}, {transform_indices = @transform_4, window_bounds = array<i64: 1, 7, 1, 256>}, {transform_indices = @transform_5, window_bounds = array<i64: 1, 7, 128, 128>}, {transform_indices = @transform_6, window_bounds = array<i64: 1, 7, 1, 128>}, {transform_indices = @transform_7, window_bounds = array<i64: 1, 3, 6, 128>}, {transform_indices = @transform_8, window_bounds = array<i64: 1, 128, 64>}, {transform_indices = @transform_9, window_bounds = array<i64: 1, 1, 64>}, {pipeline_mode = #tpu.pipeline_mode<synchronous>, transform_indices = @transform_10, window_bounds = array<i64: 64, 32>}, {pipeline_mode = #tpu.pipeline_mode<synchronous>, transform_indices = @transform_11, window_bounds = array<i64: 1, 32>}, {pipeline_mode = #tpu.pipeline_mode<synchronous>, transform_indices = @transform_12, window_bounds = array<i64: 32, 1>}, {pipeline_mode = #tpu.pipeline_mode<synchronous>, transform_indices = @transform_13, window_bounds = array<i64: 1, 1>}, {pipeline_mode = #tpu.pipeline_mode<synchronous>, transform_indices = @transform_14, window_bounds = array<i64: 2, 1>}]} {
    %c0 = arith.constant 0 : index
    %c0_0 = arith.constant 0 : index
    %c0_1 = arith.constant 0 : index
    %c0_2 = arith.constant 0 : index
    %0 = vector.load %arg1[%c0, %c0_0, %c0_1, %c0_2] : memref<1x2x14x128xf32, #tpu.memory_space<vmem>>, vector<1x2x14x128xf32>
    %1 = vector.shape_cast %0 : vector<1x2x14x128xf32> to vector<2x14x128xf32>
    %c0_3 = arith.constant 0 : index
    %c0_4 = arith.constant 0 : index
    %c0_5 = arith.constant 0 : index
    %c0_6 = arith.constant 0 : index
    %2 = vector.load %arg8[%c0_3, %c0_4, %c0_5, %c0_6] : memref<1x3x6x128xf32, #tpu.memory_space<vmem>>, vector<1x1x6x128xf32>
    %3 = vector.shape_cast %2 : vector<1x1x6x128xf32> to vector<6x128xf32>
    %4 = vector.shape_cast %3 : vector<6x128xf32> to vector<1x6x128xf32>
    %5 = vector.broadcast %4 : vector<1x6x128xf32> to vector<2x6x128xf32>
    %c0_7 = arith.constant 0 : index
    %c1 = arith.constant 1 : index
    %c0_8 = arith.constant 0 : index
    %c0_9 = arith.constant 0 : index
    %6 = vector.load %arg8[%c0_7, %c1, %c0_8, %c0_9] : memref<1x3x6x128xf32, #tpu.memory_space<vmem>>, vector<1x1x6x128xf32>
    %7 = vector.shape_cast %6 : vector<1x1x6x128xf32> to vector<6x128xf32>
    %8 = vector.shape_cast %7 : vector<6x128xf32> to vector<1x6x128xf32>
    %9 = vector.broadcast %8 : vector<1x6x128xf32> to vector<2x6x128xf32>
    %c0_10 = arith.constant 0 : index
    %c2 = arith.constant 2 : index
    %c0_11 = arith.constant 0 : index
    %c0_12 = arith.constant 0 : index
    %10 = vector.load %arg8[%c0_10, %c2, %c0_11, %c0_12] : memref<1x3x6x128xf32, #tpu.memory_space<vmem>>, vector<1x1x6x128xf32>
    %11 = vector.shape_cast %10 : vector<1x1x6x128xf32> to vector<6x128xf32>
    %12 = vector.shape_cast %11 : vector<6x128xf32> to vector<1x6x128xf32>
    %13 = vector.broadcast %12 : vector<1x6x128xf32> to vector<2x6x128xf32>
    %14 = vector.shape_cast %1 : vector<2x14x128xf32> to vector<28x128xf32>
    %15 = arith.truncf %14 : vector<28x128xf32> to vector<28x128xbf16>
    %c0_13 = arith.constant 0 : index
    %c0_14 = arith.constant 0 : index
    %c0_15 = arith.constant 0 : index
    %c0_16 = arith.constant 0 : index
    %16 = vector.load %arg4[%c0_13, %c0_14, %c0_15, %c0_16] : memref<1x7x128x256xbf16, #tpu.memory_space<vmem>>, vector<1x1x128x256xbf16>
    %17 = vector.shape_cast %16 : vector<1x1x128x256xbf16> to vector<128x256xbf16>
    %cst = arith.constant dense<0.000000e+00> : vector<28x256xf32>
    %18 = tpu.matmul %15, %17, %cst {dimension_numbers = #tpu.dot_dimension_numbers<[1], [0], [0], [1], [0, 0, 1, 1], [], []>} : vector<28x128xbf16>, vector<128x256xbf16>, vector<28x256xf32> -> vector<28x256xf32>
    %c0_17 = arith.constant 0 : index
    %c0_18 = arith.constant 0 : index
    %c0_19 = arith.constant 0 : index
    %c0_20 = arith.constant 0 : index
    %19 = vector.load %arg5[%c0_17, %c0_18, %c0_19, %c0_20] : memref<1x7x1x256xf32, #tpu.memory_space<vmem>>, vector<1x1x1x256xf32>
    %20 = vector.shape_cast %19 : vector<1x1x1x256xf32> to vector<1x256xf32>
    %21 = vector.broadcast %20 : vector<1x256xf32> to vector<28x256xf32>
    %22 = arith.addf %18, %21 : vector<28x256xf32>
    %23 = vector.extract_strided_slice %22 {offsets = [0, 0], sizes = [28, 128], strides = [1, 1]} : vector<28x256xf32> to vector<28x128xf32>
    %24 = vector.shape_cast %23 : vector<28x128xf32> to vector<2x14x128xf32>
    %25 = vector.extract_strided_slice %22 {offsets = [0, 128], sizes = [28, 128], strides = [1, 1]} : vector<28x256xf32> to vector<28x128xf32>
    %26 = vector.shape_cast %25 : vector<28x128xf32> to vector<2x14x128xf32>
    %27 = arith.truncf %5 : vector<2x6x128xf32> to vector<2x6x128xbf16>
    %28 = arith.truncf %24 : vector<2x14x128xf32> to vector<2x14x128xbf16>
    %29 = arith.truncf %26 : vector<2x14x128xf32> to vector<2x14x128xbf16>
    %30 = vector.extract_strided_slice %27 {offsets = [0, 0, 0], sizes = [2, 6, 32], strides = [1, 1, 1]} : vector<2x6x128xbf16> to vector<2x6x32xbf16>
    %31 = vector.extract_strided_slice %28 {offsets = [0, 0, 0], sizes = [2, 14, 32], strides = [1, 1, 1]} : vector<2x14x128xbf16> to vector<2x14x32xbf16>
    "tpu.trace_start"() <{level = 10 : i32, message = "bqd,bkd->bqk"}> : () -> ()
    %cst_21 = arith.constant dense<0.000000e+00> : vector<2x6x14xf32>
    %32 = tpu.matmul %30, %31, %cst_21 {dimension_numbers = #tpu.dot_dimension_numbers<[2], [2], [1], [1], [0, 0, 0, 1, 1, 1], [0], [0]>} : vector<2x6x32xbf16>, vector<2x14x32xbf16>, vector<2x6x14xf32> -> vector<2x6x14xf32>
    "tpu.trace_stop"() : () -> ()
    %cst_22 = arith.constant 0.0883883461 : f32
    %33 = vector.broadcast %cst_22 : f32 to vector<2x6x14xf32>
    %34 = arith.mulf %32, %33 : vector<2x6x14xf32>
    %cst_23 = arith.constant dense<0xFF800000> : vector<2x6xf32>
    %35 = vector.multi_reduction <maximumf>, %34, %cst_23 [2] : vector<2x6x14xf32> to vector<2x6xf32>
    %36 = vector.shape_cast %35 : vector<2x6xf32> to vector<2x6x1xf32>
    %37 = vector.broadcast %36 : vector<2x6x1xf32> to vector<2x6x14xf32>
    %38 = arith.subf %34, %37 : vector<2x6x14xf32>
    %39 = math.exp %38 : vector<2x6x14xf32>
    %cst_24 = arith.constant dense<0.000000e+00> : vector<2x6xf32>
    %40 = vector.multi_reduction <add>, %39, %cst_24 [2] : vector<2x6x14xf32> to vector<2x6xf32>
    %41 = vector.shape_cast %40 : vector<2x6xf32> to vector<2x6x1xf32>
    %42 = tpu.reciprocal %41 {approx = true} : vector<2x6x1xf32> -> vector<2x6x1xf32>
    %43 = vector.broadcast %42 : vector<2x6x1xf32> to vector<2x6x14xf32>
    %44 = arith.mulf %39, %43 : vector<2x6x14xf32>
    %45 = arith.truncf %44 : vector<2x6x14xf32> to vector<2x6x14xbf16>
    %46 = vector.extract_strided_slice %5 {offsets = [0, 0, 0], sizes = [2, 6, 32], strides = [1, 1, 1]} : vector<2x6x128xf32> to vector<2x6x32xf32>
    %47 = vector.extract_strided_slice %29 {offsets = [0, 0, 0], sizes = [2, 14, 32], strides = [1, 1, 1]} : vector<2x14x128xbf16> to vector<2x14x32xbf16>
    "tpu.trace_start"() <{level = 10 : i32, message = "bqk,bkd->bqd"}> : () -> ()
    %cst_25 = arith.constant dense<0.000000e+00> : vector<2x6x32xf32>
    %48 = tpu.matmul %45, %47, %cst_25 {dimension_numbers = #tpu.dot_dimension_numbers<[2], [1], [1], [2], [0, 0, 0, 1, 1, 2], [0], [0]>} : vector<2x6x14xbf16>, vector<2x14x32xbf16>, vector<2x6x32xf32> -> vector<2x6x32xf32>
    "tpu.trace_stop"() : () -> ()
    %49 = arith.addf %46, %48 : vector<2x6x32xf32>
    %50 = vector.extract_strided_slice %27 {offsets = [0, 0, 32], sizes = [2, 6, 32], strides = [1, 1, 1]} : vector<2x6x128xbf16> to vector<2x6x32xbf16>
    %51 = vector.extract_strided_slice %28 {offsets = [0, 0, 32], sizes = [2, 14, 32], strides = [1, 1, 1]} : vector<2x14x128xbf16> to vector<2x14x32xbf16>
    "tpu.trace_start"() <{level = 10 : i32, message = "bqd,bkd->bqk"}> : () -> ()
    %cst_26 = arith.constant dense<0.000000e+00> : vector<2x6x14xf32>
    %52 = tpu.matmul %50, %51, %cst_26 {dimension_numbers = #tpu.dot_dimension_numbers<[2], [2], [1], [1], [0, 0, 0, 1, 1, 1], [0], [0]>} : vector<2x6x32xbf16>, vector<2x14x32xbf16>, vector<2x6x14xf32> -> vector<2x6x14xf32>
    "tpu.trace_stop"() : () -> ()
    %cst_27 = arith.constant 0.0883883461 : f32
    %53 = vector.broadcast %cst_27 : f32 to vector<2x6x14xf32>
    %54 = arith.mulf %52, %53 : vector<2x6x14xf32>
    %cst_28 = arith.constant dense<0xFF800000> : vector<2x6xf32>
    %55 = vector.multi_reduction <maximumf>, %54, %cst_28 [2] : vector<2x6x14xf32> to vector<2x6xf32>
    %56 = vector.shape_cast %55 : vector<2x6xf32> to vector<2x6x1xf32>
    %57 = vector.broadcast %56 : vector<2x6x1xf32> to vector<2x6x14xf32>
    %58 = arith.subf %54, %57 : vector<2x6x14xf32>
    %59 = math.exp %58 : vector<2x6x14xf32>
    %cst_29 = arith.constant dense<0.000000e+00> : vector<2x6xf32>
    %60 = vector.multi_reduction <add>, %59, %cst_29 [2] : vector<2x6x14xf32> to vector<2x6xf32>
    %61 = vector.shape_cast %60 : vector<2x6xf32> to vector<2x6x1xf32>
    %62 = tpu.reciprocal %61 {approx = true} : vector<2x6x1xf32> -> vector<2x6x1xf32>
    %63 = vector.broadcast %62 : vector<2x6x1xf32> to vector<2x6x14xf32>
    %64 = arith.mulf %59, %63 : vector<2x6x14xf32>
    %65 = arith.truncf %64 : vector<2x6x14xf32> to vector<2x6x14xbf16>
    %66 = vector.extract_strided_slice %5 {offsets = [0, 0, 32], sizes = [2, 6, 32], strides = [1, 1, 1]} : vector<2x6x128xf32> to vector<2x6x32xf32>
    %67 = vector.extract_strided_slice %29 {offsets = [0, 0, 32], sizes = [2, 14, 32], strides = [1, 1, 1]} : vector<2x14x128xbf16> to vector<2x14x32xbf16>
    "tpu.trace_start"() <{level = 10 : i32, message = "bqk,bkd->bqd"}> : () -> ()
    %cst_30 = arith.constant dense<0.000000e+00> : vector<2x6x32xf32>
    %68 = tpu.matmul %65, %67, %cst_30 {dimension_numbers = #tpu.dot_dimension_numbers<[2], [1], [1], [2], [0, 0, 0, 1, 1, 2], [0], [0]>} : vector<2x6x14xbf16>, vector<2x14x32xbf16>, vector<2x6x32xf32> -> vector<2x6x32xf32>
    "tpu.trace_stop"() : () -> ()
    %69 = arith.addf %66, %68 : vector<2x6x32xf32>
    %70 = vector.extract_strided_slice %27 {offsets = [0, 0, 64], sizes = [2, 6, 32], strides = [1, 1, 1]} : vector<2x6x128xbf16> to vector<2x6x32xbf16>
    %71 = vector.extract_strided_slice %28 {offsets = [0, 0, 64], sizes = [2, 14, 32], strides = [1, 1, 1]} : vector<2x14x128xbf16> to vector<2x14x32xbf16>
    "tpu.trace_start"() <{level = 10 : i32, message = "bqd,bkd->bqk"}> : () -> ()
    %cst_31 = arith.constant dense<0.000000e+00> : vector<2x6x14xf32>
    %72 = tpu.matmul %70, %71, %cst_31 {dimension_numbers = #tpu.dot_dimension_numbers<[2], [2], [1], [1], [0, 0, 0, 1, 1, 1], [0], [0]>} : vector<2x6x32xbf16>, vector<2x14x32xbf16>, vector<2x6x14xf32> -> vector<2x6x14xf32>
    "tpu.trace_stop"() : () -> ()
    %cst_32 = arith.constant 0.0883883461 : f32
    %73 = vector.broadcast %cst_32 : f32 to vector<2x6x14xf32>
    %74 = arith.mulf %72, %73 : vector<2x6x14xf32>
    %cst_33 = arith.constant dense<0xFF800000> : vector<2x6xf32>
    %75 = vector.multi_reduction <maximumf>, %74, %cst_33 [2] : vector<2x6x14xf32> to vector<2x6xf32>
    %76 = vector.shape_cast %75 : vector<2x6xf32> to vector<2x6x1xf32>
    %77 = vector.broadcast %76 : vector<2x6x1xf32> to vector<2x6x14xf32>
    %78 = arith.subf %74, %77 : vector<2x6x14xf32>
    %79 = math.exp %78 : vector<2x6x14xf32>
    %cst_34 = arith.constant dense<0.000000e+00> : vector<2x6xf32>
    %80 = vector.multi_reduction <add>, %79, %cst_34 [2] : vector<2x6x14xf32> to vector<2x6xf32>
    %81 = vector.shape_cast %80 : vector<2x6xf32> to vector<2x6x1xf32>
    %82 = tpu.reciprocal %81 {approx = true} : vector<2x6x1xf32> -> vector<2x6x1xf32>
    %83 = vector.broadcast %82 : vector<2x6x1xf32> to vector<2x6x14xf32>
    %84 = arith.mulf %79, %83 : vector<2x6x14xf32>
    %85 = arith.truncf %84 : vector<2x6x14xf32> to vector<2x6x14xbf16>
    %86 = vector.extract_strided_slice %5 {offsets = [0, 0, 64], sizes = [2, 6, 32], strides = [1, 1, 1]} : vector<2x6x128xf32> to vector<2x6x32xf32>
    %87 = vector.extract_strided_slice %29 {offsets = [0, 0, 64], sizes = [2, 14, 32], strides = [1, 1, 1]} : vector<2x14x128xbf16> to vector<2x14x32xbf16>
    "tpu.trace_start"() <{level = 10 : i32, message = "bqk,bkd->bqd"}> : () -> ()
    %cst_35 = arith.constant dense<0.000000e+00> : vector<2x6x32xf32>
    %88 = tpu.matmul %85, %87, %cst_35 {dimension_numbers = #tpu.dot_dimension_numbers<[2], [1], [1], [2], [0, 0, 0, 1, 1, 2], [0], [0]>} : vector<2x6x14xbf16>, vector<2x14x32xbf16>, vector<2x6x32xf32> -> vector<2x6x32xf32>
    "tpu.trace_stop"() : () -> ()
    %89 = arith.addf %86, %88 : vector<2x6x32xf32>
    %90 = vector.extract_strided_slice %27 {offsets = [0, 0, 96], sizes = [2, 6, 32], strides = [1, 1, 1]} : vector<2x6x128xbf16> to vector<2x6x32xbf16>
    %91 = vector.extract_strided_slice %28 {offsets = [0, 0, 96], sizes = [2, 14, 32], strides = [1, 1, 1]} : vector<2x14x128xbf16> to vector<2x14x32xbf16>
    "tpu.trace_start"() <{level = 10 : i32, message = "bqd,bkd->bqk"}> : () -> ()
    %cst_36 = arith.constant dense<0.000000e+00> : vector<2x6x14xf32>
    %92 = tpu.matmul %90, %91, %cst_36 {dimension_numbers = #tpu.dot_dimension_numbers<[2], [2], [1], [1], [0, 0, 0, 1, 1, 1], [0], [0]>} : vector<2x6x32xbf16>, vector<2x14x32xbf16>, vector<2x6x14xf32> -> vector<2x6x14xf32>
    "tpu.trace_stop"() : () -> ()
    %cst_37 = arith.constant 0.0883883461 : f32
    %93 = vector.broadcast %cst_37 : f32 to vector<2x6x14xf32>
    %94 = arith.mulf %92, %93 : vector<2x6x14xf32>
    %cst_38 = arith.constant dense<0xFF800000> : vector<2x6xf32>
    %95 = vector.multi_reduction <maximumf>, %94, %cst_38 [2] : vector<2x6x14xf32> to vector<2x6xf32>
    %96 = vector.shape_cast %95 : vector<2x6xf32> to vector<2x6x1xf32>
    %97 = vector.broadcast %96 : vector<2x6x1xf32> to vector<2x6x14xf32>
    %98 = arith.subf %94, %97 : vector<2x6x14xf32>
    %99 = math.exp %98 : vector<2x6x14xf32>
    %cst_39 = arith.constant dense<0.000000e+00> : vector<2x6xf32>
    %100 = vector.multi_reduction <add>, %99, %cst_39 [2] : vector<2x6x14xf32> to vector<2x6xf32>
    %101 = vector.shape_cast %100 : vector<2x6xf32> to vector<2x6x1xf32>
    %102 = tpu.reciprocal %101 {approx = true} : vector<2x6x1xf32> -> vector<2x6x1xf32>
    %103 = vector.broadcast %102 : vector<2x6x1xf32> to vector<2x6x14xf32>
    %104 = arith.mulf %99, %103 : vector<2x6x14xf32>
    %105 = arith.truncf %104 : vector<2x6x14xf32> to vector<2x6x14xbf16>
    %106 = vector.extract_strided_slice %5 {offsets = [0, 0, 96], sizes = [2, 6, 32], strides = [1, 1, 1]} : vector<2x6x128xf32> to vector<2x6x32xf32>
    %107 = vector.extract_strided_slice %29 {offsets = [0, 0, 96], sizes = [2, 14, 32], strides = [1, 1, 1]} : vector<2x14x128xbf16> to vector<2x14x32xbf16>
    "tpu.trace_start"() <{level = 10 : i32, message = "bqk,bkd->bqd"}> : () -> ()
    %cst_40 = arith.constant dense<0.000000e+00> : vector<2x6x32xf32>
    %108 = tpu.matmul %105, %107, %cst_40 {dimension_numbers = #tpu.dot_dimension_numbers<[2], [1], [1], [2], [0, 0, 0, 1, 1, 2], [0], [0]>} : vector<2x6x14xbf16>, vector<2x14x32xbf16>, vector<2x6x32xf32> -> vector<2x6x32xf32>
    "tpu.trace_stop"() : () -> ()
    %109 = arith.addf %106, %108 : vector<2x6x32xf32>
    %110 = tpu.concatenate %49, %69, %89, %109 in 2 : vector<2x6x32xf32>, vector<2x6x32xf32>, vector<2x6x32xf32>, vector<2x6x32xf32> -> vector<2x6x128xf32>
    %111 = vector.shape_cast %110 : vector<2x6x128xf32> to vector<12x128xf32>
    %112 = arith.truncf %111 : vector<12x128xf32> to vector<12x128xbf16>
    %c0_41 = arith.constant 0 : index
    %c0_42 = arith.constant 0 : index
    %c0_43 = arith.constant 0 : index
    %c0_44 = arith.constant 0 : index
    %113 = vector.load %arg6[%c0_41, %c0_42, %c0_43, %c0_44] : memref<1x7x128x128xbf16, #tpu.memory_space<vmem>>, vector<1x1x128x128xbf16>
    %114 = vector.shape_cast %113 : vector<1x1x128x128xbf16> to vector<128x128xbf16>
    %cst_45 = arith.constant dense<0.000000e+00> : vector<12x128xf32>
    %115 = tpu.matmul %112, %114, %cst_45 {dimension_numbers = #tpu.dot_dimension_numbers<[1], [0], [0], [1], [0, 0, 1, 1], [], []>} : vector<12x128xbf16>, vector<128x128xbf16>, vector<12x128xf32> -> vector<12x128xf32>
    %c0_46 = arith.constant 0 : index
    %c0_47 = arith.constant 0 : index
    %c0_48 = arith.constant 0 : index
    %c0_49 = arith.constant 0 : index
    %116 = vector.load %arg7[%c0_46, %c0_47, %c0_48, %c0_49] : memref<1x7x1x128xf32, #tpu.memory_space<vmem>>, vector<1x1x1x128xf32>
    %117 = vector.shape_cast %116 : vector<1x1x1x128xf32> to vector<1x128xf32>
    %118 = vector.broadcast %117 : vector<1x128xf32> to vector<12x128xf32>
    %119 = arith.addf %115, %118 : vector<12x128xf32>
    %cst_50 = arith.constant 0.000000e+00 : f32
    %120 = vector.broadcast %cst_50 : f32 to vector<12x128xf32>
    %121 = arith.maximumf %119, %120 : vector<12x128xf32>
    %122 = arith.addf %111, %121 : vector<12x128xf32>
    %123 = vector.shape_cast %122 : vector<12x128xf32> to vector<2x6x128xf32>
    %124 = vector.shape_cast %1 : vector<2x14x128xf32> to vector<28x128xf32>
    %125 = arith.truncf %124 : vector<28x128xf32> to vector<28x128xbf16>
    %c0_51 = arith.constant 0 : index
    %c1_52 = arith.constant 1 : index
    %c0_53 = arith.constant 0 : index
    %c0_54 = arith.constant 0 : index
    %126 = vector.load %arg2[%c0_51, %c1_52, %c0_53, %c0_54] : memref<1x7x128x128xbf16, #tpu.memory_space<vmem>>, vector<1x1x128x128xbf16>
    %127 = vector.shape_cast %126 : vector<1x1x128x128xbf16> to vector<128x128xbf16>
    %cst_55 = arith.constant dense<0.000000e+00> : vector<28x128xf32>
    %128 = tpu.matmul %125, %127, %cst_55 {dimension_numbers = #tpu.dot_dimension_numbers<[1], [0], [0], [1], [0, 0, 1, 1], [], []>} : vector<28x128xbf16>, vector<128x128xbf16>, vector<28x128xf32> -> vector<28x128xf32>
    %c0_56 = arith.constant 0 : index
    %c1_57 = arith.constant 1 : index
    %c0_58 = arith.constant 0 : index
    %c0_59 = arith.constant 0 : index
    %129 = vector.load %arg3[%c0_56, %c1_57, %c0_58, %c0_59] : memref<1x7x1x128xf32, #tpu.memory_space<vmem>>, vector<1x1x1x128xf32>
    %130 = vector.shape_cast %129 : vector<1x1x1x128xf32> to vector<1x128xf32>
    %131 = vector.broadcast %130 : vector<1x128xf32> to vector<28x128xf32>
    %132 = arith.addf %128, %131 : vector<28x128xf32>
    %133 = vector.shape_cast %132 : vector<28x128xf32> to vector<2x14x128xf32>
    %134 = vector.shape_cast %123 : vector<2x6x128xf32> to vector<12x128xf32>
    %135 = arith.truncf %134 : vector<12x128xf32> to vector<12x128xbf16>
    %c0_60 = arith.constant 0 : index
    %c1_61 = arith.constant 1 : index
    %c0_62 = arith.constant 0 : index
    %c0_63 = arith.constant 0 : index
    %136 = vector.load %arg4[%c0_60, %c1_61, %c0_62, %c0_63] : memref<1x7x128x256xbf16, #tpu.memory_space<vmem>>, vector<1x1x128x256xbf16>
    %137 = vector.shape_cast %136 : vector<1x1x128x256xbf16> to vector<128x256xbf16>
    %cst_64 = arith.constant dense<0.000000e+00> : vector<12x256xf32>
    %138 = tpu.matmul %135, %137, %cst_64 {dimension_numbers = #tpu.dot_dimension_numbers<[1], [0], [0], [1], [0, 0, 1, 1], [], []>} : vector<12x128xbf16>, vector<128x256xbf16>, vector<12x256xf32> -> vector<12x256xf32>
    %c0_65 = arith.constant 0 : index
    %c1_66 = arith.constant 1 : index
    %c0_67 = arith.constant 0 : index
    %c0_68 = arith.constant 0 : index
    %139 = vector.load %arg5[%c0_65, %c1_66, %c0_67, %c0_68] : memref<1x7x1x256xf32, #tpu.memory_space<vmem>>, vector<1x1x1x256xf32>
    %140 = vector.shape_cast %139 : vector<1x1x1x256xf32> to vector<1x256xf32>
    %141 = vector.broadcast %140 : vector<1x256xf32> to vector<12x256xf32>
    %142 = arith.addf %138, %141 : vector<12x256xf32>
    %143 = vector.extract_strided_slice %142 {offsets = [0, 0], sizes = [12, 128], strides = [1, 1]} : vector<12x256xf32> to vector<12x128xf32>
    %144 = vector.shape_cast %143 : vector<12x128xf32> to vector<2x6x128xf32>
    %145 = vector.extract_strided_slice %142 {offsets = [0, 128], sizes = [12, 128], strides = [1, 1]} : vector<12x256xf32> to vector<12x128xf32>
    %146 = vector.shape_cast %145 : vector<12x128xf32> to vector<2x6x128xf32>
    %147 = arith.truncf %133 : vector<2x14x128xf32> to vector<2x14x128xbf16>
    %148 = arith.truncf %144 : vector<2x6x128xf32> to vector<2x6x128xbf16>
    %149 = arith.truncf %146 : vector<2x6x128xf32> to vector<2x6x128xbf16>
    %150 = vector.extract_strided_slice %147 {offsets = [0, 0, 0], sizes = [2, 14, 32], strides = [1, 1, 1]} : vector<2x14x128xbf16> to vector<2x14x32xbf16>
    %151 = vector.extract_strided_slice %148 {offsets = [0, 0, 0], sizes = [2, 6, 32], strides = [1, 1, 1]} : vector<2x6x128xbf16> to vector<2x6x32xbf16>
    "tpu.trace_start"() <{level = 10 : i32, message = "bqd,bkd->bqk"}> : () -> ()
    %cst_69 = arith.constant dense<0.000000e+00> : vector<2x14x6xf32>
    %152 = tpu.matmul %150, %151, %cst_69 {dimension_numbers = #tpu.dot_dimension_numbers<[2], [2], [1], [1], [0, 0, 0, 1, 1, 1], [0], [0]>} : vector<2x14x32xbf16>, vector<2x6x32xbf16>, vector<2x14x6xf32> -> vector<2x14x6xf32>
    "tpu.trace_stop"() : () -> ()
    %cst_70 = arith.constant 0.0883883461 : f32
    %153 = vector.broadcast %cst_70 : f32 to vector<2x14x6xf32>
    %154 = arith.mulf %152, %153 : vector<2x14x6xf32>
    %cst_71 = arith.constant dense<0xFF800000> : vector<2x14xf32>
    %155 = vector.multi_reduction <maximumf>, %154, %cst_71 [2] : vector<2x14x6xf32> to vector<2x14xf32>
    %156 = vector.shape_cast %155 : vector<2x14xf32> to vector<2x14x1xf32>
    %157 = vector.broadcast %156 : vector<2x14x1xf32> to vector<2x14x6xf32>
    %158 = arith.subf %154, %157 : vector<2x14x6xf32>
    %159 = math.exp %158 : vector<2x14x6xf32>
    %cst_72 = arith.constant dense<0.000000e+00> : vector<2x14xf32>
    %160 = vector.multi_reduction <add>, %159, %cst_72 [2] : vector<2x14x6xf32> to vector<2x14xf32>
    %161 = vector.shape_cast %160 : vector<2x14xf32> to vector<2x14x1xf32>
    %162 = tpu.reciprocal %161 {approx = true} : vector<2x14x1xf32> -> vector<2x14x1xf32>
    %163 = vector.broadcast %162 : vector<2x14x1xf32> to vector<2x14x6xf32>
    %164 = arith.mulf %159, %163 : vector<2x14x6xf32>
    %165 = arith.truncf %164 : vector<2x14x6xf32> to vector<2x14x6xbf16>
    %166 = vector.extract_strided_slice %133 {offsets = [0, 0, 0], sizes = [2, 14, 32], strides = [1, 1, 1]} : vector<2x14x128xf32> to vector<2x14x32xf32>
    %167 = vector.extract_strided_slice %149 {offsets = [0, 0, 0], sizes = [2, 6, 32], strides = [1, 1, 1]} : vector<2x6x128xbf16> to vector<2x6x32xbf16>
    "tpu.trace_start"() <{level = 10 : i32, message = "bqk,bkd->bqd"}> : () -> ()
    %cst_73 = arith.constant dense<0.000000e+00> : vector<2x14x32xf32>
    %168 = tpu.matmul %165, %167, %cst_73 {dimension_numbers = #tpu.dot_dimension_numbers<[2], [1], [1], [2], [0, 0, 0, 1, 1, 2], [0], [0]>} : vector<2x14x6xbf16>, vector<2x6x32xbf16>, vector<2x14x32xf32> -> vector<2x14x32xf32>
    "tpu.trace_stop"() : () -> ()
    %169 = arith.addf %166, %168 : vector<2x14x32xf32>
    %170 = vector.extract_strided_slice %147 {offsets = [0, 0, 32], sizes = [2, 14, 32], strides = [1, 1, 1]} : vector<2x14x128xbf16> to vector<2x14x32xbf16>
    %171 = vector.extract_strided_slice %148 {offsets = [0, 0, 32], sizes = [2, 6, 32], strides = [1, 1, 1]} : vector<2x6x128xbf16> to vector<2x6x32xbf16>
    "tpu.trace_start"() <{level = 10 : i32, message = "bqd,bkd->bqk"}> : () -> ()
    %cst_74 = arith.constant dense<0.000000e+00> : vector<2x14x6xf32>
    %172 = tpu.matmul %170, %171, %cst_74 {dimension_numbers = #tpu.dot_dimension_numbers<[2], [2], [1], [1], [0, 0, 0, 1, 1, 1], [0], [0]>} : vector<2x14x32xbf16>, vector<2x6x32xbf16>, vector<2x14x6xf32> -> vector<2x14x6xf32>
    "tpu.trace_stop"() : () -> ()
    %cst_75 = arith.constant 0.0883883461 : f32
    %173 = vector.broadcast %cst_75 : f32 to vector<2x14x6xf32>
    %174 = arith.mulf %172, %173 : vector<2x14x6xf32>
    %cst_76 = arith.constant dense<0xFF800000> : vector<2x14xf32>
    %175 = vector.multi_reduction <maximumf>, %174, %cst_76 [2] : vector<2x14x6xf32> to vector<2x14xf32>
    %176 = vector.shape_cast %175 : vector<2x14xf32> to vector<2x14x1xf32>
    %177 = vector.broadcast %176 : vector<2x14x1xf32> to vector<2x14x6xf32>
    %178 = arith.subf %174, %177 : vector<2x14x6xf32>
    %179 = math.exp %178 : vector<2x14x6xf32>
    %cst_77 = arith.constant dense<0.000000e+00> : vector<2x14xf32>
    %180 = vector.multi_reduction <add>, %179, %cst_77 [2] : vector<2x14x6xf32> to vector<2x14xf32>
    %181 = vector.shape_cast %180 : vector<2x14xf32> to vector<2x14x1xf32>
    %182 = tpu.reciprocal %181 {approx = true} : vector<2x14x1xf32> -> vector<2x14x1xf32>
    %183 = vector.broadcast %182 : vector<2x14x1xf32> to vector<2x14x6xf32>
    %184 = arith.mulf %179, %183 : vector<2x14x6xf32>
    %185 = arith.truncf %184 : vector<2x14x6xf32> to vector<2x14x6xbf16>
    %186 = vector.extract_strided_slice %133 {offsets = [0, 0, 32], sizes = [2, 14, 32], strides = [1, 1, 1]} : vector<2x14x128xf32> to vector<2x14x32xf32>
    %187 = vector.extract_strided_slice %149 {offsets = [0, 0, 32], sizes = [2, 6, 32], strides = [1, 1, 1]} : vector<2x6x128xbf16> to vector<2x6x32xbf16>
    "tpu.trace_start"() <{level = 10 : i32, message = "bqk,bkd->bqd"}> : () -> ()
    %cst_78 = arith.constant dense<0.000000e+00> : vector<2x14x32xf32>
    %188 = tpu.matmul %185, %187, %cst_78 {dimension_numbers = #tpu.dot_dimension_numbers<[2], [1], [1], [2], [0, 0, 0, 1, 1, 2], [0], [0]>} : vector<2x14x6xbf16>, vector<2x6x32xbf16>, vector<2x14x32xf32> -> vector<2x14x32xf32>
    "tpu.trace_stop"() : () -> ()
    %189 = arith.addf %186, %188 : vector<2x14x32xf32>
    %190 = vector.extract_strided_slice %147 {offsets = [0, 0, 64], sizes = [2, 14, 32], strides = [1, 1, 1]} : vector<2x14x128xbf16> to vector<2x14x32xbf16>
    %191 = vector.extract_strided_slice %148 {offsets = [0, 0, 64], sizes = [2, 6, 32], strides = [1, 1, 1]} : vector<2x6x128xbf16> to vector<2x6x32xbf16>
    "tpu.trace_start"() <{level = 10 : i32, message = "bqd,bkd->bqk"}> : () -> ()
    %cst_79 = arith.constant dense<0.000000e+00> : vector<2x14x6xf32>
    %192 = tpu.matmul %190, %191, %cst_79 {dimension_numbers = #tpu.dot_dimension_numbers<[2], [2], [1], [1], [0, 0, 0, 1, 1, 1], [0], [0]>} : vector<2x14x32xbf16>, vector<2x6x32xbf16>, vector<2x14x6xf32> -> vector<2x14x6xf32>
    "tpu.trace_stop"() : () -> ()
    %cst_80 = arith.constant 0.0883883461 : f32
    %193 = vector.broadcast %cst_80 : f32 to vector<2x14x6xf32>
    %194 = arith.mulf %192, %193 : vector<2x14x6xf32>
    %cst_81 = arith.constant dense<0xFF800000> : vector<2x14xf32>
    %195 = vector.multi_reduction <maximumf>, %194, %cst_81 [2] : vector<2x14x6xf32> to vector<2x14xf32>
    %196 = vector.shape_cast %195 : vector<2x14xf32> to vector<2x14x1xf32>
    %197 = vector.broadcast %196 : vector<2x14x1xf32> to vector<2x14x6xf32>
    %198 = arith.subf %194, %197 : vector<2x14x6xf32>
    %199 = math.exp %198 : vector<2x14x6xf32>
    %cst_82 = arith.constant dense<0.000000e+00> : vector<2x14xf32>
    %200 = vector.multi_reduction <add>, %199, %cst_82 [2] : vector<2x14x6xf32> to vector<2x14xf32>
    %201 = vector.shape_cast %200 : vector<2x14xf32> to vector<2x14x1xf32>
    %202 = tpu.reciprocal %201 {approx = true} : vector<2x14x1xf32> -> vector<2x14x1xf32>
    %203 = vector.broadcast %202 : vector<2x14x1xf32> to vector<2x14x6xf32>
    %204 = arith.mulf %199, %203 : vector<2x14x6xf32>
    %205 = arith.truncf %204 : vector<2x14x6xf32> to vector<2x14x6xbf16>
    %206 = vector.extract_strided_slice %133 {offsets = [0, 0, 64], sizes = [2, 14, 32], strides = [1, 1, 1]} : vector<2x14x128xf32> to vector<2x14x32xf32>
    %207 = vector.extract_strided_slice %149 {offsets = [0, 0, 64], sizes = [2, 6, 32], strides = [1, 1, 1]} : vector<2x6x128xbf16> to vector<2x6x32xbf16>
    "tpu.trace_start"() <{level = 10 : i32, message = "bqk,bkd->bqd"}> : () -> ()
    %cst_83 = arith.constant dense<0.000000e+00> : vector<2x14x32xf32>
    %208 = tpu.matmul %205, %207, %cst_83 {dimension_numbers = #tpu.dot_dimension_numbers<[2], [1], [1], [2], [0, 0, 0, 1, 1, 2], [0], [0]>} : vector<2x14x6xbf16>, vector<2x6x32xbf16>, vector<2x14x32xf32> -> vector<2x14x32xf32>
    "tpu.trace_stop"() : () -> ()
    %209 = arith.addf %206, %208 : vector<2x14x32xf32>
    %210 = vector.extract_strided_slice %147 {offsets = [0, 0, 96], sizes = [2, 14, 32], strides = [1, 1, 1]} : vector<2x14x128xbf16> to vector<2x14x32xbf16>
    %211 = vector.extract_strided_slice %148 {offsets = [0, 0, 96], sizes = [2, 6, 32], strides = [1, 1, 1]} : vector<2x6x128xbf16> to vector<2x6x32xbf16>
    "tpu.trace_start"() <{level = 10 : i32, message = "bqd,bkd->bqk"}> : () -> ()
    %cst_84 = arith.constant dense<0.000000e+00> : vector<2x14x6xf32>
    %212 = tpu.matmul %210, %211, %cst_84 {dimension_numbers = #tpu.dot_dimension_numbers<[2], [2], [1], [1], [0, 0, 0, 1, 1, 1], [0], [0]>} : vector<2x14x32xbf16>, vector<2x6x32xbf16>, vector<2x14x6xf32> -> vector<2x14x6xf32>
    "tpu.trace_stop"() : () -> ()
    %cst_85 = arith.constant 0.0883883461 : f32
    %213 = vector.broadcast %cst_85 : f32 to vector<2x14x6xf32>
    %214 = arith.mulf %212, %213 : vector<2x14x6xf32>
    %cst_86 = arith.constant dense<0xFF800000> : vector<2x14xf32>
    %215 = vector.multi_reduction <maximumf>, %214, %cst_86 [2] : vector<2x14x6xf32> to vector<2x14xf32>
    %216 = vector.shape_cast %215 : vector<2x14xf32> to vector<2x14x1xf32>
    %217 = vector.broadcast %216 : vector<2x14x1xf32> to vector<2x14x6xf32>
    %218 = arith.subf %214, %217 : vector<2x14x6xf32>
    %219 = math.exp %218 : vector<2x14x6xf32>
    %cst_87 = arith.constant dense<0.000000e+00> : vector<2x14xf32>
    %220 = vector.multi_reduction <add>, %219, %cst_87 [2] : vector<2x14x6xf32> to vector<2x14xf32>
    %221 = vector.shape_cast %220 : vector<2x14xf32> to vector<2x14x1xf32>
    %222 = tpu.reciprocal %221 {approx = true} : vector<2x14x1xf32> -> vector<2x14x1xf32>
    %223 = vector.broadcast %222 : vector<2x14x1xf32> to vector<2x14x6xf32>
    %224 = arith.mulf %219, %223 : vector<2x14x6xf32>
    %225 = arith.truncf %224 : vector<2x14x6xf32> to vector<2x14x6xbf16>
    %226 = vector.extract_strided_slice %133 {offsets = [0, 0, 96], sizes = [2, 14, 32], strides = [1, 1, 1]} : vector<2x14x128xf32> to vector<2x14x32xf32>
    %227 = vector.extract_strided_slice %149 {offsets = [0, 0, 96], sizes = [2, 6, 32], strides = [1, 1, 1]} : vector<2x6x128xbf16> to vector<2x6x32xbf16>
    "tpu.trace_start"() <{level = 10 : i32, message = "bqk,bkd->bqd"}> : () -> ()
    %cst_88 = arith.constant dense<0.000000e+00> : vector<2x14x32xf32>
    %228 = tpu.matmul %225, %227, %cst_88 {dimension_numbers = #tpu.dot_dimension_numbers<[2], [1], [1], [2], [0, 0, 0, 1, 1, 2], [0], [0]>} : vector<2x14x6xbf16>, vector<2x6x32xbf16>, vector<2x14x32xf32> -> vector<2x14x32xf32>
    "tpu.trace_stop"() : () -> ()
    %229 = arith.addf %226, %228 : vector<2x14x32xf32>
    %230 = tpu.concatenate %169, %189, %209, %229 in 2 : vector<2x14x32xf32>, vector<2x14x32xf32>, vector<2x14x32xf32>, vector<2x14x32xf32> -> vector<2x14x128xf32>
    %231 = vector.shape_cast %230 : vector<2x14x128xf32> to vector<28x128xf32>
    %232 = arith.truncf %231 : vector<28x128xf32> to vector<28x128xbf16>
    %c0_89 = arith.constant 0 : index
    %c1_90 = arith.constant 1 : index
    %c0_91 = arith.constant 0 : index
    %c0_92 = arith.constant 0 : index
    %233 = vector.load %arg6[%c0_89, %c1_90, %c0_91, %c0_92] : memref<1x7x128x128xbf16, #tpu.memory_space<vmem>>, vector<1x1x128x128xbf16>
    %234 = vector.shape_cast %233 : vector<1x1x128x128xbf16> to vector<128x128xbf16>
    %cst_93 = arith.constant dense<0.000000e+00> : vector<28x128xf32>
    %235 = tpu.matmul %232, %234, %cst_93 {dimension_numbers = #tpu.dot_dimension_numbers<[1], [0], [0], [1], [0, 0, 1, 1], [], []>} : vector<28x128xbf16>, vector<128x128xbf16>, vector<28x128xf32> -> vector<28x128xf32>
    %c0_94 = arith.constant 0 : index
    %c1_95 = arith.constant 1 : index
    %c0_96 = arith.constant 0 : index
    %c0_97 = arith.constant 0 : index
    %236 = vector.load %arg7[%c0_94, %c1_95, %c0_96, %c0_97] : memref<1x7x1x128xf32, #tpu.memory_space<vmem>>, vector<1x1x1x128xf32>
    %237 = vector.shape_cast %236 : vector<1x1x1x128xf32> to vector<1x128xf32>
    %238 = vector.broadcast %237 : vector<1x128xf32> to vector<28x128xf32>
    %239 = arith.addf %235, %238 : vector<28x128xf32>
    %cst_98 = arith.constant 0.000000e+00 : f32
    %240 = vector.broadcast %cst_98 : f32 to vector<28x128xf32>
    %241 = arith.maximumf %239, %240 : vector<28x128xf32>
    %242 = arith.addf %231, %241 : vector<28x128xf32>
    %243 = vector.shape_cast %242 : vector<28x128xf32> to vector<2x14x128xf32>
    %244 = vector.shape_cast %243 : vector<2x14x128xf32> to vector<28x128xf32>
    %245 = arith.truncf %244 : vector<28x128xf32> to vector<28x128xbf16>
    %c0_99 = arith.constant 0 : index
    %c2_100 = arith.constant 2 : index
    %c0_101 = arith.constant 0 : index
    %c0_102 = arith.constant 0 : index
    %246 = vector.load %arg4[%c0_99, %c2_100, %c0_101, %c0_102] : memref<1x7x128x256xbf16, #tpu.memory_space<vmem>>, vector<1x1x128x256xbf16>
    %247 = vector.shape_cast %246 : vector<1x1x128x256xbf16> to vector<128x256xbf16>
    %cst_103 = arith.constant dense<0.000000e+00> : vector<28x256xf32>
    %248 = tpu.matmul %245, %247, %cst_103 {dimension_numbers = #tpu.dot_dimension_numbers<[1], [0], [0], [1], [0, 0, 1, 1], [], []>} : vector<28x128xbf16>, vector<128x256xbf16>, vector<28x256xf32> -> vector<28x256xf32>
    %c0_104 = arith.constant 0 : index
    %c2_105 = arith.constant 2 : index
    %c0_106 = arith.constant 0 : index
    %c0_107 = arith.constant 0 : index
    %249 = vector.load %arg5[%c0_104, %c2_105, %c0_106, %c0_107] : memref<1x7x1x256xf32, #tpu.memory_space<vmem>>, vector<1x1x1x256xf32>
    %250 = vector.shape_cast %249 : vector<1x1x1x256xf32> to vector<1x256xf32>
    %251 = vector.broadcast %250 : vector<1x256xf32> to vector<28x256xf32>
    %252 = arith.addf %248, %251 : vector<28x256xf32>
    %253 = vector.extract_strided_slice %252 {offsets = [0, 0], sizes = [28, 128], strides = [1, 1]} : vector<28x256xf32> to vector<28x128xf32>
    %254 = vector.shape_cast %253 : vector<28x128xf32> to vector<2x14x128xf32>
    %255 = vector.extract_strided_slice %252 {offsets = [0, 128], sizes = [28, 128], strides = [1, 1]} : vector<28x256xf32> to vector<28x128xf32>
    %256 = vector.shape_cast %255 : vector<28x128xf32> to vector<2x14x128xf32>
    %257 = arith.truncf %9 : vector<2x6x128xf32> to vector<2x6x128xbf16>
    %258 = arith.truncf %254 : vector<2x14x128xf32> to vector<2x14x128xbf16>
    %259 = arith.truncf %256 : vector<2x14x128xf32> to vector<2x14x128xbf16>
    %260 = vector.extract_strided_slice %257 {offsets = [0, 0, 0], sizes = [2, 6, 32], strides = [1, 1, 1]} : vector<2x6x128xbf16> to vector<2x6x32xbf16>
    %261 = vector.extract_strided_slice %258 {offsets = [0, 0, 0], sizes = [2, 14, 32], strides = [1, 1, 1]} : vector<2x14x128xbf16> to vector<2x14x32xbf16>
    "tpu.trace_start"() <{level = 10 : i32, message = "bqd,bkd->bqk"}> : () -> ()
    %cst_108 = arith.constant dense<0.000000e+00> : vector<2x6x14xf32>
    %262 = tpu.matmul %260, %261, %cst_108 {dimension_numbers = #tpu.dot_dimension_numbers<[2], [2], [1], [1], [0, 0, 0, 1, 1, 1], [0], [0]>} : vector<2x6x32xbf16>, vector<2x14x32xbf16>, vector<2x6x14xf32> -> vector<2x6x14xf32>
    "tpu.trace_stop"() : () -> ()
    %cst_109 = arith.constant 0.0883883461 : f32
    %263 = vector.broadcast %cst_109 : f32 to vector<2x6x14xf32>
    %264 = arith.mulf %262, %263 : vector<2x6x14xf32>
    %cst_110 = arith.constant dense<0xFF800000> : vector<2x6xf32>
    %265 = vector.multi_reduction <maximumf>, %264, %cst_110 [2] : vector<2x6x14xf32> to vector<2x6xf32>
    %266 = vector.shape_cast %265 : vector<2x6xf32> to vector<2x6x1xf32>
    %267 = vector.broadcast %266 : vector<2x6x1xf32> to vector<2x6x14xf32>
    %268 = arith.subf %264, %267 : vector<2x6x14xf32>
    %269 = math.exp %268 : vector<2x6x14xf32>
    %cst_111 = arith.constant dense<0.000000e+00> : vector<2x6xf32>
    %270 = vector.multi_reduction <add>, %269, %cst_111 [2] : vector<2x6x14xf32> to vector<2x6xf32>
    %271 = vector.shape_cast %270 : vector<2x6xf32> to vector<2x6x1xf32>
    %272 = tpu.reciprocal %271 {approx = true} : vector<2x6x1xf32> -> vector<2x6x1xf32>
    %273 = vector.broadcast %272 : vector<2x6x1xf32> to vector<2x6x14xf32>
    %274 = arith.mulf %269, %273 : vector<2x6x14xf32>
    %275 = arith.truncf %274 : vector<2x6x14xf32> to vector<2x6x14xbf16>
    %276 = vector.extract_strided_slice %9 {offsets = [0, 0, 0], sizes = [2, 6, 32], strides = [1, 1, 1]} : vector<2x6x128xf32> to vector<2x6x32xf32>
    %277 = vector.extract_strided_slice %259 {offsets = [0, 0, 0], sizes = [2, 14, 32], strides = [1, 1, 1]} : vector<2x14x128xbf16> to vector<2x14x32xbf16>
    "tpu.trace_start"() <{level = 10 : i32, message = "bqk,bkd->bqd"}> : () -> ()
    %cst_112 = arith.constant dense<0.000000e+00> : vector<2x6x32xf32>
    %278 = tpu.matmul %275, %277, %cst_112 {dimension_numbers = #tpu.dot_dimension_numbers<[2], [1], [1], [2], [0, 0, 0, 1, 1, 2], [0], [0]>} : vector<2x6x14xbf16>, vector<2x14x32xbf16>, vector<2x6x32xf32> -> vector<2x6x32xf32>
    "tpu.trace_stop"() : () -> ()
    %279 = arith.addf %276, %278 : vector<2x6x32xf32>
    %280 = vector.extract_strided_slice %257 {offsets = [0, 0, 32], sizes = [2, 6, 32], strides = [1, 1, 1]} : vector<2x6x128xbf16> to vector<2x6x32xbf16>
    %281 = vector.extract_strided_slice %258 {offsets = [0, 0, 32], sizes = [2, 14, 32], strides = [1, 1, 1]} : vector<2x14x128xbf16> to vector<2x14x32xbf16>
    "tpu.trace_start"() <{level = 10 : i32, message = "bqd,bkd->bqk"}> : () -> ()
    %cst_113 = arith.constant dense<0.000000e+00> : vector<2x6x14xf32>
    %282 = tpu.matmul %280, %281, %cst_113 {dimension_numbers = #tpu.dot_dimension_numbers<[2], [2], [1], [1], [0, 0, 0, 1, 1, 1], [0], [0]>} : vector<2x6x32xbf16>, vector<2x14x32xbf16>, vector<2x6x14xf32> -> vector<2x6x14xf32>
    "tpu.trace_stop"() : () -> ()
    %cst_114 = arith.constant 0.0883883461 : f32
    %283 = vector.broadcast %cst_114 : f32 to vector<2x6x14xf32>
    %284 = arith.mulf %282, %283 : vector<2x6x14xf32>
    %cst_115 = arith.constant dense<0xFF800000> : vector<2x6xf32>
    %285 = vector.multi_reduction <maximumf>, %284, %cst_115 [2] : vector<2x6x14xf32> to vector<2x6xf32>
    %286 = vector.shape_cast %285 : vector<2x6xf32> to vector<2x6x1xf32>
    %287 = vector.broadcast %286 : vector<2x6x1xf32> to vector<2x6x14xf32>
    %288 = arith.subf %284, %287 : vector<2x6x14xf32>
    %289 = math.exp %288 : vector<2x6x14xf32>
    %cst_116 = arith.constant dense<0.000000e+00> : vector<2x6xf32>
    %290 = vector.multi_reduction <add>, %289, %cst_116 [2] : vector<2x6x14xf32> to vector<2x6xf32>
    %291 = vector.shape_cast %290 : vector<2x6xf32> to vector<2x6x1xf32>
    %292 = tpu.reciprocal %291 {approx = true} : vector<2x6x1xf32> -> vector<2x6x1xf32>
    %293 = vector.broadcast %292 : vector<2x6x1xf32> to vector<2x6x14xf32>
    %294 = arith.mulf %289, %293 : vector<2x6x14xf32>
    %295 = arith.truncf %294 : vector<2x6x14xf32> to vector<2x6x14xbf16>
    %296 = vector.extract_strided_slice %9 {offsets = [0, 0, 32], sizes = [2, 6, 32], strides = [1, 1, 1]} : vector<2x6x128xf32> to vector<2x6x32xf32>
    %297 = vector.extract_strided_slice %259 {offsets = [0, 0, 32], sizes = [2, 14, 32], strides = [1, 1, 1]} : vector<2x14x128xbf16> to vector<2x14x32xbf16>
    "tpu.trace_start"() <{level = 10 : i32, message = "bqk,bkd->bqd"}> : () -> ()
    %cst_117 = arith.constant dense<0.000000e+00> : vector<2x6x32xf32>
    %298 = tpu.matmul %295, %297, %cst_117 {dimension_numbers = #tpu.dot_dimension_numbers<[2], [1], [1], [2], [0, 0, 0, 1, 1, 2], [0], [0]>} : vector<2x6x14xbf16>, vector<2x14x32xbf16>, vector<2x6x32xf32> -> vector<2x6x32xf32>
    "tpu.trace_stop"() : () -> ()
    %299 = arith.addf %296, %298 : vector<2x6x32xf32>
    %300 = vector.extract_strided_slice %257 {offsets = [0, 0, 64], sizes = [2, 6, 32], strides = [1, 1, 1]} : vector<2x6x128xbf16> to vector<2x6x32xbf16>
    %301 = vector.extract_strided_slice %258 {offsets = [0, 0, 64], sizes = [2, 14, 32], strides = [1, 1, 1]} : vector<2x14x128xbf16> to vector<2x14x32xbf16>
    "tpu.trace_start"() <{level = 10 : i32, message = "bqd,bkd->bqk"}> : () -> ()
    %cst_118 = arith.constant dense<0.000000e+00> : vector<2x6x14xf32>
    %302 = tpu.matmul %300, %301, %cst_118 {dimension_numbers = #tpu.dot_dimension_numbers<[2], [2], [1], [1], [0, 0, 0, 1, 1, 1], [0], [0]>} : vector<2x6x32xbf16>, vector<2x14x32xbf16>, vector<2x6x14xf32> -> vector<2x6x14xf32>
    "tpu.trace_stop"() : () -> ()
    %cst_119 = arith.constant 0.0883883461 : f32
    %303 = vector.broadcast %cst_119 : f32 to vector<2x6x14xf32>
    %304 = arith.mulf %302, %303 : vector<2x6x14xf32>
    %cst_120 = arith.constant dense<0xFF800000> : vector<2x6xf32>
    %305 = vector.multi_reduction <maximumf>, %304, %cst_120 [2] : vector<2x6x14xf32> to vector<2x6xf32>
    %306 = vector.shape_cast %305 : vector<2x6xf32> to vector<2x6x1xf32>
    %307 = vector.broadcast %306 : vector<2x6x1xf32> to vector<2x6x14xf32>
    %308 = arith.subf %304, %307 : vector<2x6x14xf32>
    %309 = math.exp %308 : vector<2x6x14xf32>
    %cst_121 = arith.constant dense<0.000000e+00> : vector<2x6xf32>
    %310 = vector.multi_reduction <add>, %309, %cst_121 [2] : vector<2x6x14xf32> to vector<2x6xf32>
    %311 = vector.shape_cast %310 : vector<2x6xf32> to vector<2x6x1xf32>
    %312 = tpu.reciprocal %311 {approx = true} : vector<2x6x1xf32> -> vector<2x6x1xf32>
    %313 = vector.broadcast %312 : vector<2x6x1xf32> to vector<2x6x14xf32>
    %314 = arith.mulf %309, %313 : vector<2x6x14xf32>
    %315 = arith.truncf %314 : vector<2x6x14xf32> to vector<2x6x14xbf16>
    %316 = vector.extract_strided_slice %9 {offsets = [0, 0, 64], sizes = [2, 6, 32], strides = [1, 1, 1]} : vector<2x6x128xf32> to vector<2x6x32xf32>
    %317 = vector.extract_strided_slice %259 {offsets = [0, 0, 64], sizes = [2, 14, 32], strides = [1, 1, 1]} : vector<2x14x128xbf16> to vector<2x14x32xbf16>
    "tpu.trace_start"() <{level = 10 : i32, message = "bqk,bkd->bqd"}> : () -> ()
    %cst_122 = arith.constant dense<0.000000e+00> : vector<2x6x32xf32>
    %318 = tpu.matmul %315, %317, %cst_122 {dimension_numbers = #tpu.dot_dimension_numbers<[2], [1], [1], [2], [0, 0, 0, 1, 1, 2], [0], [0]>} : vector<2x6x14xbf16>, vector<2x14x32xbf16>, vector<2x6x32xf32> -> vector<2x6x32xf32>
    "tpu.trace_stop"() : () -> ()
    %319 = arith.addf %316, %318 : vector<2x6x32xf32>
    %320 = vector.extract_strided_slice %257 {offsets = [0, 0, 96], sizes = [2, 6, 32], strides = [1, 1, 1]} : vector<2x6x128xbf16> to vector<2x6x32xbf16>
    %321 = vector.extract_strided_slice %258 {offsets = [0, 0, 96], sizes = [2, 14, 32], strides = [1, 1, 1]} : vector<2x14x128xbf16> to vector<2x14x32xbf16>
    "tpu.trace_start"() <{level = 10 : i32, message = "bqd,bkd->bqk"}> : () -> ()
    %cst_123 = arith.constant dense<0.000000e+00> : vector<2x6x14xf32>
    %322 = tpu.matmul %320, %321, %cst_123 {dimension_numbers = #tpu.dot_dimension_numbers<[2], [2], [1], [1], [0, 0, 0, 1, 1, 1], [0], [0]>} : vector<2x6x32xbf16>, vector<2x14x32xbf16>, vector<2x6x14xf32> -> vector<2x6x14xf32>
    "tpu.trace_stop"() : () -> ()
    %cst_124 = arith.constant 0.0883883461 : f32
    %323 = vector.broadcast %cst_124 : f32 to vector<2x6x14xf32>
    %324 = arith.mulf %322, %323 : vector<2x6x14xf32>
    %cst_125 = arith.constant dense<0xFF800000> : vector<2x6xf32>
    %325 = vector.multi_reduction <maximumf>, %324, %cst_125 [2] : vector<2x6x14xf32> to vector<2x6xf32>
    %326 = vector.shape_cast %325 : vector<2x6xf32> to vector<2x6x1xf32>
    %327 = vector.broadcast %326 : vector<2x6x1xf32> to vector<2x6x14xf32>
    %328 = arith.subf %324, %327 : vector<2x6x14xf32>
    %329 = math.exp %328 : vector<2x6x14xf32>
    %cst_126 = arith.constant dense<0.000000e+00> : vector<2x6xf32>
    %330 = vector.multi_reduction <add>, %329, %cst_126 [2] : vector<2x6x14xf32> to vector<2x6xf32>
    %331 = vector.shape_cast %330 : vector<2x6xf32> to vector<2x6x1xf32>
    %332 = tpu.reciprocal %331 {approx = true} : vector<2x6x1xf32> -> vector<2x6x1xf32>
    %333 = vector.broadcast %332 : vector<2x6x1xf32> to vector<2x6x14xf32>
    %334 = arith.mulf %329, %333 : vector<2x6x14xf32>
    %335 = arith.truncf %334 : vector<2x6x14xf32> to vector<2x6x14xbf16>
    %336 = vector.extract_strided_slice %9 {offsets = [0, 0, 96], sizes = [2, 6, 32], strides = [1, 1, 1]} : vector<2x6x128xf32> to vector<2x6x32xf32>
    %337 = vector.extract_strided_slice %259 {offsets = [0, 0, 96], sizes = [2, 14, 32], strides = [1, 1, 1]} : vector<2x14x128xbf16> to vector<2x14x32xbf16>
    "tpu.trace_start"() <{level = 10 : i32, message = "bqk,bkd->bqd"}> : () -> ()
    %cst_127 = arith.constant dense<0.000000e+00> : vector<2x6x32xf32>
    %338 = tpu.matmul %335, %337, %cst_127 {dimension_numbers = #tpu.dot_dimension_numbers<[2], [1], [1], [2], [0, 0, 0, 1, 1, 2], [0], [0]>} : vector<2x6x14xbf16>, vector<2x14x32xbf16>, vector<2x6x32xf32> -> vector<2x6x32xf32>
    "tpu.trace_stop"() : () -> ()
    %339 = arith.addf %336, %338 : vector<2x6x32xf32>
    %340 = tpu.concatenate %279, %299, %319, %339 in 2 : vector<2x6x32xf32>, vector<2x6x32xf32>, vector<2x6x32xf32>, vector<2x6x32xf32> -> vector<2x6x128xf32>
    %341 = vector.shape_cast %340 : vector<2x6x128xf32> to vector<12x128xf32>
    %342 = arith.truncf %341 : vector<12x128xf32> to vector<12x128xbf16>
    %c0_128 = arith.constant 0 : index
    %c2_129 = arith.constant 2 : index
    %c0_130 = arith.constant 0 : index
    %c0_131 = arith.constant 0 : index
    %343 = vector.load %arg6[%c0_128, %c2_129, %c0_130, %c0_131] : memref<1x7x128x128xbf16, #tpu.memory_space<vmem>>, vector<1x1x128x128xbf16>
    %344 = vector.shape_cast %343 : vector<1x1x128x128xbf16> to vector<128x128xbf16>
    %cst_132 = arith.constant dense<0.000000e+00> : vector<12x128xf32>
    %345 = tpu.matmul %342, %344, %cst_132 {dimension_numbers = #tpu.dot_dimension_numbers<[1], [0], [0], [1], [0, 0, 1, 1], [], []>} : vector<12x128xbf16>, vector<128x128xbf16>, vector<12x128xf32> -> vector<12x128xf32>
    %c0_133 = arith.constant 0 : index
    %c2_134 = arith.constant 2 : index
    %c0_135 = arith.constant 0 : index
    %c0_136 = arith.constant 0 : index
    %346 = vector.load %arg7[%c0_133, %c2_134, %c0_135, %c0_136] : memref<1x7x1x128xf32, #tpu.memory_space<vmem>>, vector<1x1x1x128xf32>
    %347 = vector.shape_cast %346 : vector<1x1x1x128xf32> to vector<1x128xf32>
    %348 = vector.broadcast %347 : vector<1x128xf32> to vector<12x128xf32>
    %349 = arith.addf %345, %348 : vector<12x128xf32>
    %cst_137 = arith.constant 0.000000e+00 : f32
    %350 = vector.broadcast %cst_137 : f32 to vector<12x128xf32>
    %351 = arith.maximumf %349, %350 : vector<12x128xf32>
    %352 = arith.addf %341, %351 : vector<12x128xf32>
    %353 = vector.shape_cast %352 : vector<12x128xf32> to vector<2x6x128xf32>
    %354 = vector.shape_cast %243 : vector<2x14x128xf32> to vector<28x128xf32>
    %355 = arith.truncf %354 : vector<28x128xf32> to vector<28x128xbf16>
    %c0_138 = arith.constant 0 : index
    %c3 = arith.constant 3 : index
    %c0_139 = arith.constant 0 : index
    %c0_140 = arith.constant 0 : index
    %356 = vector.load %arg2[%c0_138, %c3, %c0_139, %c0_140] : memref<1x7x128x128xbf16, #tpu.memory_space<vmem>>, vector<1x1x128x128xbf16>
    %357 = vector.shape_cast %356 : vector<1x1x128x128xbf16> to vector<128x128xbf16>
    %cst_141 = arith.constant dense<0.000000e+00> : vector<28x128xf32>
    %358 = tpu.matmul %355, %357, %cst_141 {dimension_numbers = #tpu.dot_dimension_numbers<[1], [0], [0], [1], [0, 0, 1, 1], [], []>} : vector<28x128xbf16>, vector<128x128xbf16>, vector<28x128xf32> -> vector<28x128xf32>
    %c0_142 = arith.constant 0 : index
    %c3_143 = arith.constant 3 : index
    %c0_144 = arith.constant 0 : index
    %c0_145 = arith.constant 0 : index
    %359 = vector.load %arg3[%c0_142, %c3_143, %c0_144, %c0_145] : memref<1x7x1x128xf32, #tpu.memory_space<vmem>>, vector<1x1x1x128xf32>
    %360 = vector.shape_cast %359 : vector<1x1x1x128xf32> to vector<1x128xf32>
    %361 = vector.broadcast %360 : vector<1x128xf32> to vector<28x128xf32>
    %362 = arith.addf %358, %361 : vector<28x128xf32>
    %363 = vector.shape_cast %362 : vector<28x128xf32> to vector<2x14x128xf32>
    %364 = vector.shape_cast %353 : vector<2x6x128xf32> to vector<12x128xf32>
    %365 = arith.truncf %364 : vector<12x128xf32> to vector<12x128xbf16>
    %c0_146 = arith.constant 0 : index
    %c3_147 = arith.constant 3 : index
    %c0_148 = arith.constant 0 : index
    %c0_149 = arith.constant 0 : index
    %366 = vector.load %arg4[%c0_146, %c3_147, %c0_148, %c0_149] : memref<1x7x128x256xbf16, #tpu.memory_space<vmem>>, vector<1x1x128x256xbf16>
    %367 = vector.shape_cast %366 : vector<1x1x128x256xbf16> to vector<128x256xbf16>
    %cst_150 = arith.constant dense<0.000000e+00> : vector<12x256xf32>
    %368 = tpu.matmul %365, %367, %cst_150 {dimension_numbers = #tpu.dot_dimension_numbers<[1], [0], [0], [1], [0, 0, 1, 1], [], []>} : vector<12x128xbf16>, vector<128x256xbf16>, vector<12x256xf32> -> vector<12x256xf32>
    %c0_151 = arith.constant 0 : index
    %c3_152 = arith.constant 3 : index
    %c0_153 = arith.constant 0 : index
    %c0_154 = arith.constant 0 : index
    %369 = vector.load %arg5[%c0_151, %c3_152, %c0_153, %c0_154] : memref<1x7x1x256xf32, #tpu.memory_space<vmem>>, vector<1x1x1x256xf32>
    %370 = vector.shape_cast %369 : vector<1x1x1x256xf32> to vector<1x256xf32>
    %371 = vector.broadcast %370 : vector<1x256xf32> to vector<12x256xf32>
    %372 = arith.addf %368, %371 : vector<12x256xf32>
    %373 = vector.extract_strided_slice %372 {offsets = [0, 0], sizes = [12, 128], strides = [1, 1]} : vector<12x256xf32> to vector<12x128xf32>
    %374 = vector.shape_cast %373 : vector<12x128xf32> to vector<2x6x128xf32>
    %375 = vector.extract_strided_slice %372 {offsets = [0, 128], sizes = [12, 128], strides = [1, 1]} : vector<12x256xf32> to vector<12x128xf32>
    %376 = vector.shape_cast %375 : vector<12x128xf32> to vector<2x6x128xf32>
    %377 = arith.truncf %363 : vector<2x14x128xf32> to vector<2x14x128xbf16>
    %378 = arith.truncf %374 : vector<2x6x128xf32> to vector<2x6x128xbf16>
    %379 = arith.truncf %376 : vector<2x6x128xf32> to vector<2x6x128xbf16>
    %380 = vector.extract_strided_slice %377 {offsets = [0, 0, 0], sizes = [2, 14, 32], strides = [1, 1, 1]} : vector<2x14x128xbf16> to vector<2x14x32xbf16>
    %381 = vector.extract_strided_slice %378 {offsets = [0, 0, 0], sizes = [2, 6, 32], strides = [1, 1, 1]} : vector<2x6x128xbf16> to vector<2x6x32xbf16>
    "tpu.trace_start"() <{level = 10 : i32, message = "bqd,bkd->bqk"}> : () -> ()
    %cst_155 = arith.constant dense<0.000000e+00> : vector<2x14x6xf32>
    %382 = tpu.matmul %380, %381, %cst_155 {dimension_numbers = #tpu.dot_dimension_numbers<[2], [2], [1], [1], [0, 0, 0, 1, 1, 1], [0], [0]>} : vector<2x14x32xbf16>, vector<2x6x32xbf16>, vector<2x14x6xf32> -> vector<2x14x6xf32>
    "tpu.trace_stop"() : () -> ()
    %cst_156 = arith.constant 0.0883883461 : f32
    %383 = vector.broadcast %cst_156 : f32 to vector<2x14x6xf32>
    %384 = arith.mulf %382, %383 : vector<2x14x6xf32>
    %cst_157 = arith.constant dense<0xFF800000> : vector<2x14xf32>
    %385 = vector.multi_reduction <maximumf>, %384, %cst_157 [2] : vector<2x14x6xf32> to vector<2x14xf32>
    %386 = vector.shape_cast %385 : vector<2x14xf32> to vector<2x14x1xf32>
    %387 = vector.broadcast %386 : vector<2x14x1xf32> to vector<2x14x6xf32>
    %388 = arith.subf %384, %387 : vector<2x14x6xf32>
    %389 = math.exp %388 : vector<2x14x6xf32>
    %cst_158 = arith.constant dense<0.000000e+00> : vector<2x14xf32>
    %390 = vector.multi_reduction <add>, %389, %cst_158 [2] : vector<2x14x6xf32> to vector<2x14xf32>
    %391 = vector.shape_cast %390 : vector<2x14xf32> to vector<2x14x1xf32>
    %392 = tpu.reciprocal %391 {approx = true} : vector<2x14x1xf32> -> vector<2x14x1xf32>
    %393 = vector.broadcast %392 : vector<2x14x1xf32> to vector<2x14x6xf32>
    %394 = arith.mulf %389, %393 : vector<2x14x6xf32>
    %395 = arith.truncf %394 : vector<2x14x6xf32> to vector<2x14x6xbf16>
    %396 = vector.extract_strided_slice %363 {offsets = [0, 0, 0], sizes = [2, 14, 32], strides = [1, 1, 1]} : vector<2x14x128xf32> to vector<2x14x32xf32>
    %397 = vector.extract_strided_slice %379 {offsets = [0, 0, 0], sizes = [2, 6, 32], strides = [1, 1, 1]} : vector<2x6x128xbf16> to vector<2x6x32xbf16>
    "tpu.trace_start"() <{level = 10 : i32, message = "bqk,bkd->bqd"}> : () -> ()
    %cst_159 = arith.constant dense<0.000000e+00> : vector<2x14x32xf32>
    %398 = tpu.matmul %395, %397, %cst_159 {dimension_numbers = #tpu.dot_dimension_numbers<[2], [1], [1], [2], [0, 0, 0, 1, 1, 2], [0], [0]>} : vector<2x14x6xbf16>, vector<2x6x32xbf16>, vector<2x14x32xf32> -> vector<2x14x32xf32>
    "tpu.trace_stop"() : () -> ()
    %399 = arith.addf %396, %398 : vector<2x14x32xf32>
    %400 = vector.extract_strided_slice %377 {offsets = [0, 0, 32], sizes = [2, 14, 32], strides = [1, 1, 1]} : vector<2x14x128xbf16> to vector<2x14x32xbf16>
    %401 = vector.extract_strided_slice %378 {offsets = [0, 0, 32], sizes = [2, 6, 32], strides = [1, 1, 1]} : vector<2x6x128xbf16> to vector<2x6x32xbf16>
    "tpu.trace_start"() <{level = 10 : i32, message = "bqd,bkd->bqk"}> : () -> ()
    %cst_160 = arith.constant dense<0.000000e+00> : vector<2x14x6xf32>
    %402 = tpu.matmul %400, %401, %cst_160 {dimension_numbers = #tpu.dot_dimension_numbers<[2], [2], [1], [1], [0, 0, 0, 1, 1, 1], [0], [0]>} : vector<2x14x32xbf16>, vector<2x6x32xbf16>, vector<2x14x6xf32> -> vector<2x14x6xf32>
    "tpu.trace_stop"() : () -> ()
    %cst_161 = arith.constant 0.0883883461 : f32
    %403 = vector.broadcast %cst_161 : f32 to vector<2x14x6xf32>
    %404 = arith.mulf %402, %403 : vector<2x14x6xf32>
    %cst_162 = arith.constant dense<0xFF800000> : vector<2x14xf32>
    %405 = vector.multi_reduction <maximumf>, %404, %cst_162 [2] : vector<2x14x6xf32> to vector<2x14xf32>
    %406 = vector.shape_cast %405 : vector<2x14xf32> to vector<2x14x1xf32>
    %407 = vector.broadcast %406 : vector<2x14x1xf32> to vector<2x14x6xf32>
    %408 = arith.subf %404, %407 : vector<2x14x6xf32>
    %409 = math.exp %408 : vector<2x14x6xf32>
    %cst_163 = arith.constant dense<0.000000e+00> : vector<2x14xf32>
    %410 = vector.multi_reduction <add>, %409, %cst_163 [2] : vector<2x14x6xf32> to vector<2x14xf32>
    %411 = vector.shape_cast %410 : vector<2x14xf32> to vector<2x14x1xf32>
    %412 = tpu.reciprocal %411 {approx = true} : vector<2x14x1xf32> -> vector<2x14x1xf32>
    %413 = vector.broadcast %412 : vector<2x14x1xf32> to vector<2x14x6xf32>
    %414 = arith.mulf %409, %413 : vector<2x14x6xf32>
    %415 = arith.truncf %414 : vector<2x14x6xf32> to vector<2x14x6xbf16>
    %416 = vector.extract_strided_slice %363 {offsets = [0, 0, 32], sizes = [2, 14, 32], strides = [1, 1, 1]} : vector<2x14x128xf32> to vector<2x14x32xf32>
    %417 = vector.extract_strided_slice %379 {offsets = [0, 0, 32], sizes = [2, 6, 32], strides = [1, 1, 1]} : vector<2x6x128xbf16> to vector<2x6x32xbf16>
    "tpu.trace_start"() <{level = 10 : i32, message = "bqk,bkd->bqd"}> : () -> ()
    %cst_164 = arith.constant dense<0.000000e+00> : vector<2x14x32xf32>
    %418 = tpu.matmul %415, %417, %cst_164 {dimension_numbers = #tpu.dot_dimension_numbers<[2], [1], [1], [2], [0, 0, 0, 1, 1, 2], [0], [0]>} : vector<2x14x6xbf16>, vector<2x6x32xbf16>, vector<2x14x32xf32> -> vector<2x14x32xf32>
    "tpu.trace_stop"() : () -> ()
    %419 = arith.addf %416, %418 : vector<2x14x32xf32>
    %420 = vector.extract_strided_slice %377 {offsets = [0, 0, 64], sizes = [2, 14, 32], strides = [1, 1, 1]} : vector<2x14x128xbf16> to vector<2x14x32xbf16>
    %421 = vector.extract_strided_slice %378 {offsets = [0, 0, 64], sizes = [2, 6, 32], strides = [1, 1, 1]} : vector<2x6x128xbf16> to vector<2x6x32xbf16>
    "tpu.trace_start"() <{level = 10 : i32, message = "bqd,bkd->bqk"}> : () -> ()
    %cst_165 = arith.constant dense<0.000000e+00> : vector<2x14x6xf32>
    %422 = tpu.matmul %420, %421, %cst_165 {dimension_numbers = #tpu.dot_dimension_numbers<[2], [2], [1], [1], [0, 0, 0, 1, 1, 1], [0], [0]>} : vector<2x14x32xbf16>, vector<2x6x32xbf16>, vector<2x14x6xf32> -> vector<2x14x6xf32>
    "tpu.trace_stop"() : () -> ()
    %cst_166 = arith.constant 0.0883883461 : f32
    %423 = vector.broadcast %cst_166 : f32 to vector<2x14x6xf32>
    %424 = arith.mulf %422, %423 : vector<2x14x6xf32>
    %cst_167 = arith.constant dense<0xFF800000> : vector<2x14xf32>
    %425 = vector.multi_reduction <maximumf>, %424, %cst_167 [2] : vector<2x14x6xf32> to vector<2x14xf32>
    %426 = vector.shape_cast %425 : vector<2x14xf32> to vector<2x14x1xf32>
    %427 = vector.broadcast %426 : vector<2x14x1xf32> to vector<2x14x6xf32>
    %428 = arith.subf %424, %427 : vector<2x14x6xf32>
    %429 = math.exp %428 : vector<2x14x6xf32>
    %cst_168 = arith.constant dense<0.000000e+00> : vector<2x14xf32>
    %430 = vector.multi_reduction <add>, %429, %cst_168 [2] : vector<2x14x6xf32> to vector<2x14xf32>
    %431 = vector.shape_cast %430 : vector<2x14xf32> to vector<2x14x1xf32>
    %432 = tpu.reciprocal %431 {approx = true} : vector<2x14x1xf32> -> vector<2x14x1xf32>
    %433 = vector.broadcast %432 : vector<2x14x1xf32> to vector<2x14x6xf32>
    %434 = arith.mulf %429, %433 : vector<2x14x6xf32>
    %435 = arith.truncf %434 : vector<2x14x6xf32> to vector<2x14x6xbf16>
    %436 = vector.extract_strided_slice %363 {offsets = [0, 0, 64], sizes = [2, 14, 32], strides = [1, 1, 1]} : vector<2x14x128xf32> to vector<2x14x32xf32>
    %437 = vector.extract_strided_slice %379 {offsets = [0, 0, 64], sizes = [2, 6, 32], strides = [1, 1, 1]} : vector<2x6x128xbf16> to vector<2x6x32xbf16>
    "tpu.trace_start"() <{level = 10 : i32, message = "bqk,bkd->bqd"}> : () -> ()
    %cst_169 = arith.constant dense<0.000000e+00> : vector<2x14x32xf32>
    %438 = tpu.matmul %435, %437, %cst_169 {dimension_numbers = #tpu.dot_dimension_numbers<[2], [1], [1], [2], [0, 0, 0, 1, 1, 2], [0], [0]>} : vector<2x14x6xbf16>, vector<2x6x32xbf16>, vector<2x14x32xf32> -> vector<2x14x32xf32>
    "tpu.trace_stop"() : () -> ()
    %439 = arith.addf %436, %438 : vector<2x14x32xf32>
    %440 = vector.extract_strided_slice %377 {offsets = [0, 0, 96], sizes = [2, 14, 32], strides = [1, 1, 1]} : vector<2x14x128xbf16> to vector<2x14x32xbf16>
    %441 = vector.extract_strided_slice %378 {offsets = [0, 0, 96], sizes = [2, 6, 32], strides = [1, 1, 1]} : vector<2x6x128xbf16> to vector<2x6x32xbf16>
    "tpu.trace_start"() <{level = 10 : i32, message = "bqd,bkd->bqk"}> : () -> ()
    %cst_170 = arith.constant dense<0.000000e+00> : vector<2x14x6xf32>
    %442 = tpu.matmul %440, %441, %cst_170 {dimension_numbers = #tpu.dot_dimension_numbers<[2], [2], [1], [1], [0, 0, 0, 1, 1, 1], [0], [0]>} : vector<2x14x32xbf16>, vector<2x6x32xbf16>, vector<2x14x6xf32> -> vector<2x14x6xf32>
    "tpu.trace_stop"() : () -> ()
    %cst_171 = arith.constant 0.0883883461 : f32
    %443 = vector.broadcast %cst_171 : f32 to vector<2x14x6xf32>
    %444 = arith.mulf %442, %443 : vector<2x14x6xf32>
    %cst_172 = arith.constant dense<0xFF800000> : vector<2x14xf32>
    %445 = vector.multi_reduction <maximumf>, %444, %cst_172 [2] : vector<2x14x6xf32> to vector<2x14xf32>
    %446 = vector.shape_cast %445 : vector<2x14xf32> to vector<2x14x1xf32>
    %447 = vector.broadcast %446 : vector<2x14x1xf32> to vector<2x14x6xf32>
    %448 = arith.subf %444, %447 : vector<2x14x6xf32>
    %449 = math.exp %448 : vector<2x14x6xf32>
    %cst_173 = arith.constant dense<0.000000e+00> : vector<2x14xf32>
    %450 = vector.multi_reduction <add>, %449, %cst_173 [2] : vector<2x14x6xf32> to vector<2x14xf32>
    %451 = vector.shape_cast %450 : vector<2x14xf32> to vector<2x14x1xf32>
    %452 = tpu.reciprocal %451 {approx = true} : vector<2x14x1xf32> -> vector<2x14x1xf32>
    %453 = vector.broadcast %452 : vector<2x14x1xf32> to vector<2x14x6xf32>
    %454 = arith.mulf %449, %453 : vector<2x14x6xf32>
    %455 = arith.truncf %454 : vector<2x14x6xf32> to vector<2x14x6xbf16>
    %456 = vector.extract_strided_slice %363 {offsets = [0, 0, 96], sizes = [2, 14, 32], strides = [1, 1, 1]} : vector<2x14x128xf32> to vector<2x14x32xf32>
    %457 = vector.extract_strided_slice %379 {offsets = [0, 0, 96], sizes = [2, 6, 32], strides = [1, 1, 1]} : vector<2x6x128xbf16> to vector<2x6x32xbf16>
    "tpu.trace_start"() <{level = 10 : i32, message = "bqk,bkd->bqd"}> : () -> ()
    %cst_174 = arith.constant dense<0.000000e+00> : vector<2x14x32xf32>
    %458 = tpu.matmul %455, %457, %cst_174 {dimension_numbers = #tpu.dot_dimension_numbers<[2], [1], [1], [2], [0, 0, 0, 1, 1, 2], [0], [0]>} : vector<2x14x6xbf16>, vector<2x6x32xbf16>, vector<2x14x32xf32> -> vector<2x14x32xf32>
    "tpu.trace_stop"() : () -> ()
    %459 = arith.addf %456, %458 : vector<2x14x32xf32>
    %460 = tpu.concatenate %399, %419, %439, %459 in 2 : vector<2x14x32xf32>, vector<2x14x32xf32>, vector<2x14x32xf32>, vector<2x14x32xf32> -> vector<2x14x128xf32>
    %461 = vector.shape_cast %460 : vector<2x14x128xf32> to vector<28x128xf32>
    %462 = arith.truncf %461 : vector<28x128xf32> to vector<28x128xbf16>
    %c0_175 = arith.constant 0 : index
    %c3_176 = arith.constant 3 : index
    %c0_177 = arith.constant 0 : index
    %c0_178 = arith.constant 0 : index
    %463 = vector.load %arg6[%c0_175, %c3_176, %c0_177, %c0_178] : memref<1x7x128x128xbf16, #tpu.memory_space<vmem>>, vector<1x1x128x128xbf16>
    %464 = vector.shape_cast %463 : vector<1x1x128x128xbf16> to vector<128x128xbf16>
    %cst_179 = arith.constant dense<0.000000e+00> : vector<28x128xf32>
    %465 = tpu.matmul %462, %464, %cst_179 {dimension_numbers = #tpu.dot_dimension_numbers<[1], [0], [0], [1], [0, 0, 1, 1], [], []>} : vector<28x128xbf16>, vector<128x128xbf16>, vector<28x128xf32> -> vector<28x128xf32>
    %c0_180 = arith.constant 0 : index
    %c3_181 = arith.constant 3 : index
    %c0_182 = arith.constant 0 : index
    %c0_183 = arith.constant 0 : index
    %466 = vector.load %arg7[%c0_180, %c3_181, %c0_182, %c0_183] : memref<1x7x1x128xf32, #tpu.memory_space<vmem>>, vector<1x1x1x128xf32>
    %467 = vector.shape_cast %466 : vector<1x1x1x128xf32> to vector<1x128xf32>
    %468 = vector.broadcast %467 : vector<1x128xf32> to vector<28x128xf32>
    %469 = arith.addf %465, %468 : vector<28x128xf32>
    %cst_184 = arith.constant 0.000000e+00 : f32
    %470 = vector.broadcast %cst_184 : f32 to vector<28x128xf32>
    %471 = arith.maximumf %469, %470 : vector<28x128xf32>
    %472 = arith.addf %461, %471 : vector<28x128xf32>
    %473 = vector.shape_cast %472 : vector<28x128xf32> to vector<2x14x128xf32>
    %474 = vector.shape_cast %473 : vector<2x14x128xf32> to vector<28x128xf32>
    %475 = arith.truncf %474 : vector<28x128xf32> to vector<28x128xbf16>
    %c0_185 = arith.constant 0 : index
    %c4 = arith.constant 4 : index
    %c0_186 = arith.constant 0 : index
    %c0_187 = arith.constant 0 : index
    %476 = vector.load %arg4[%c0_185, %c4, %c0_186, %c0_187] : memref<1x7x128x256xbf16, #tpu.memory_space<vmem>>, vector<1x1x128x256xbf16>
    %477 = vector.shape_cast %476 : vector<1x1x128x256xbf16> to vector<128x256xbf16>
    %cst_188 = arith.constant dense<0.000000e+00> : vector<28x256xf32>
    %478 = tpu.matmul %475, %477, %cst_188 {dimension_numbers = #tpu.dot_dimension_numbers<[1], [0], [0], [1], [0, 0, 1, 1], [], []>} : vector<28x128xbf16>, vector<128x256xbf16>, vector<28x256xf32> -> vector<28x256xf32>
    %c0_189 = arith.constant 0 : index
    %c4_190 = arith.constant 4 : index
    %c0_191 = arith.constant 0 : index
    %c0_192 = arith.constant 0 : index
    %479 = vector.load %arg5[%c0_189, %c4_190, %c0_191, %c0_192] : memref<1x7x1x256xf32, #tpu.memory_space<vmem>>, vector<1x1x1x256xf32>
    %480 = vector.shape_cast %479 : vector<1x1x1x256xf32> to vector<1x256xf32>
    %481 = vector.broadcast %480 : vector<1x256xf32> to vector<28x256xf32>
    %482 = arith.addf %478, %481 : vector<28x256xf32>
    %483 = vector.extract_strided_slice %482 {offsets = [0, 0], sizes = [28, 128], strides = [1, 1]} : vector<28x256xf32> to vector<28x128xf32>
    %484 = vector.shape_cast %483 : vector<28x128xf32> to vector<2x14x128xf32>
    %485 = vector.extract_strided_slice %482 {offsets = [0, 128], sizes = [28, 128], strides = [1, 1]} : vector<28x256xf32> to vector<28x128xf32>
    %486 = vector.shape_cast %485 : vector<28x128xf32> to vector<2x14x128xf32>
    %487 = arith.truncf %13 : vector<2x6x128xf32> to vector<2x6x128xbf16>
    %488 = arith.truncf %484 : vector<2x14x128xf32> to vector<2x14x128xbf16>
    %489 = arith.truncf %486 : vector<2x14x128xf32> to vector<2x14x128xbf16>
    %490 = vector.extract_strided_slice %487 {offsets = [0, 0, 0], sizes = [2, 6, 32], strides = [1, 1, 1]} : vector<2x6x128xbf16> to vector<2x6x32xbf16>
    %491 = vector.extract_strided_slice %488 {offsets = [0, 0, 0], sizes = [2, 14, 32], strides = [1, 1, 1]} : vector<2x14x128xbf16> to vector<2x14x32xbf16>
    "tpu.trace_start"() <{level = 10 : i32, message = "bqd,bkd->bqk"}> : () -> ()
    %cst_193 = arith.constant dense<0.000000e+00> : vector<2x6x14xf32>
    %492 = tpu.matmul %490, %491, %cst_193 {dimension_numbers = #tpu.dot_dimension_numbers<[2], [2], [1], [1], [0, 0, 0, 1, 1, 1], [0], [0]>} : vector<2x6x32xbf16>, vector<2x14x32xbf16>, vector<2x6x14xf32> -> vector<2x6x14xf32>
    "tpu.trace_stop"() : () -> ()
    %cst_194 = arith.constant 0.0883883461 : f32
    %493 = vector.broadcast %cst_194 : f32 to vector<2x6x14xf32>
    %494 = arith.mulf %492, %493 : vector<2x6x14xf32>
    %cst_195 = arith.constant dense<0xFF800000> : vector<2x6xf32>
    %495 = vector.multi_reduction <maximumf>, %494, %cst_195 [2] : vector<2x6x14xf32> to vector<2x6xf32>
    %496 = vector.shape_cast %495 : vector<2x6xf32> to vector<2x6x1xf32>
    %497 = vector.broadcast %496 : vector<2x6x1xf32> to vector<2x6x14xf32>
    %498 = arith.subf %494, %497 : vector<2x6x14xf32>
    %499 = math.exp %498 : vector<2x6x14xf32>
    %cst_196 = arith.constant dense<0.000000e+00> : vector<2x6xf32>
    %500 = vector.multi_reduction <add>, %499, %cst_196 [2] : vector<2x6x14xf32> to vector<2x6xf32>
    %501 = vector.shape_cast %500 : vector<2x6xf32> to vector<2x6x1xf32>
    %502 = tpu.reciprocal %501 {approx = true} : vector<2x6x1xf32> -> vector<2x6x1xf32>
    %503 = vector.broadcast %502 : vector<2x6x1xf32> to vector<2x6x14xf32>
    %504 = arith.mulf %499, %503 : vector<2x6x14xf32>
    %505 = arith.truncf %504 : vector<2x6x14xf32> to vector<2x6x14xbf16>
    %506 = vector.extract_strided_slice %13 {offsets = [0, 0, 0], sizes = [2, 6, 32], strides = [1, 1, 1]} : vector<2x6x128xf32> to vector<2x6x32xf32>
    %507 = vector.extract_strided_slice %489 {offsets = [0, 0, 0], sizes = [2, 14, 32], strides = [1, 1, 1]} : vector<2x14x128xbf16> to vector<2x14x32xbf16>
    "tpu.trace_start"() <{level = 10 : i32, message = "bqk,bkd->bqd"}> : () -> ()
    %cst_197 = arith.constant dense<0.000000e+00> : vector<2x6x32xf32>
    %508 = tpu.matmul %505, %507, %cst_197 {dimension_numbers = #tpu.dot_dimension_numbers<[2], [1], [1], [2], [0, 0, 0, 1, 1, 2], [0], [0]>} : vector<2x6x14xbf16>, vector<2x14x32xbf16>, vector<2x6x32xf32> -> vector<2x6x32xf32>
    "tpu.trace_stop"() : () -> ()
    %509 = arith.addf %506, %508 : vector<2x6x32xf32>
    %510 = vector.extract_strided_slice %487 {offsets = [0, 0, 32], sizes = [2, 6, 32], strides = [1, 1, 1]} : vector<2x6x128xbf16> to vector<2x6x32xbf16>
    %511 = vector.extract_strided_slice %488 {offsets = [0, 0, 32], sizes = [2, 14, 32], strides = [1, 1, 1]} : vector<2x14x128xbf16> to vector<2x14x32xbf16>
    "tpu.trace_start"() <{level = 10 : i32, message = "bqd,bkd->bqk"}> : () -> ()
    %cst_198 = arith.constant dense<0.000000e+00> : vector<2x6x14xf32>
    %512 = tpu.matmul %510, %511, %cst_198 {dimension_numbers = #tpu.dot_dimension_numbers<[2], [2], [1], [1], [0, 0, 0, 1, 1, 1], [0], [0]>} : vector<2x6x32xbf16>, vector<2x14x32xbf16>, vector<2x6x14xf32> -> vector<2x6x14xf32>
    "tpu.trace_stop"() : () -> ()
    %cst_199 = arith.constant 0.0883883461 : f32
    %513 = vector.broadcast %cst_199 : f32 to vector<2x6x14xf32>
    %514 = arith.mulf %512, %513 : vector<2x6x14xf32>
    %cst_200 = arith.constant dense<0xFF800000> : vector<2x6xf32>
    %515 = vector.multi_reduction <maximumf>, %514, %cst_200 [2] : vector<2x6x14xf32> to vector<2x6xf32>
    %516 = vector.shape_cast %515 : vector<2x6xf32> to vector<2x6x1xf32>
    %517 = vector.broadcast %516 : vector<2x6x1xf32> to vector<2x6x14xf32>
    %518 = arith.subf %514, %517 : vector<2x6x14xf32>
    %519 = math.exp %518 : vector<2x6x14xf32>
    %cst_201 = arith.constant dense<0.000000e+00> : vector<2x6xf32>
    %520 = vector.multi_reduction <add>, %519, %cst_201 [2] : vector<2x6x14xf32> to vector<2x6xf32>
    %521 = vector.shape_cast %520 : vector<2x6xf32> to vector<2x6x1xf32>
    %522 = tpu.reciprocal %521 {approx = true} : vector<2x6x1xf32> -> vector<2x6x1xf32>
    %523 = vector.broadcast %522 : vector<2x6x1xf32> to vector<2x6x14xf32>
    %524 = arith.mulf %519, %523 : vector<2x6x14xf32>
    %525 = arith.truncf %524 : vector<2x6x14xf32> to vector<2x6x14xbf16>
    %526 = vector.extract_strided_slice %13 {offsets = [0, 0, 32], sizes = [2, 6, 32], strides = [1, 1, 1]} : vector<2x6x128xf32> to vector<2x6x32xf32>
    %527 = vector.extract_strided_slice %489 {offsets = [0, 0, 32], sizes = [2, 14, 32], strides = [1, 1, 1]} : vector<2x14x128xbf16> to vector<2x14x32xbf16>
    "tpu.trace_start"() <{level = 10 : i32, message = "bqk,bkd->bqd"}> : () -> ()
    %cst_202 = arith.constant dense<0.000000e+00> : vector<2x6x32xf32>
    %528 = tpu.matmul %525, %527, %cst_202 {dimension_numbers = #tpu.dot_dimension_numbers<[2], [1], [1], [2], [0, 0, 0, 1, 1, 2], [0], [0]>} : vector<2x6x14xbf16>, vector<2x14x32xbf16>, vector<2x6x32xf32> -> vector<2x6x32xf32>
    "tpu.trace_stop"() : () -> ()
    %529 = arith.addf %526, %528 : vector<2x6x32xf32>
    %530 = vector.extract_strided_slice %487 {offsets = [0, 0, 64], sizes = [2, 6, 32], strides = [1, 1, 1]} : vector<2x6x128xbf16> to vector<2x6x32xbf16>
    %531 = vector.extract_strided_slice %488 {offsets = [0, 0, 64], sizes = [2, 14, 32], strides = [1, 1, 1]} : vector<2x14x128xbf16> to vector<2x14x32xbf16>
    "tpu.trace_start"() <{level = 10 : i32, message = "bqd,bkd->bqk"}> : () -> ()
    %cst_203 = arith.constant dense<0.000000e+00> : vector<2x6x14xf32>
    %532 = tpu.matmul %530, %531, %cst_203 {dimension_numbers = #tpu.dot_dimension_numbers<[2], [2], [1], [1], [0, 0, 0, 1, 1, 1], [0], [0]>} : vector<2x6x32xbf16>, vector<2x14x32xbf16>, vector<2x6x14xf32> -> vector<2x6x14xf32>
    "tpu.trace_stop"() : () -> ()
    %cst_204 = arith.constant 0.0883883461 : f32
    %533 = vector.broadcast %cst_204 : f32 to vector<2x6x14xf32>
    %534 = arith.mulf %532, %533 : vector<2x6x14xf32>
    %cst_205 = arith.constant dense<0xFF800000> : vector<2x6xf32>
    %535 = vector.multi_reduction <maximumf>, %534, %cst_205 [2] : vector<2x6x14xf32> to vector<2x6xf32>
    %536 = vector.shape_cast %535 : vector<2x6xf32> to vector<2x6x1xf32>
    %537 = vector.broadcast %536 : vector<2x6x1xf32> to vector<2x6x14xf32>
    %538 = arith.subf %534, %537 : vector<2x6x14xf32>
    %539 = math.exp %538 : vector<2x6x14xf32>
    %cst_206 = arith.constant dense<0.000000e+00> : vector<2x6xf32>
    %540 = vector.multi_reduction <add>, %539, %cst_206 [2] : vector<2x6x14xf32> to vector<2x6xf32>
    %541 = vector.shape_cast %540 : vector<2x6xf32> to vector<2x6x1xf32>
    %542 = tpu.reciprocal %541 {approx = true} : vector<2x6x1xf32> -> vector<2x6x1xf32>
    %543 = vector.broadcast %542 : vector<2x6x1xf32> to vector<2x6x14xf32>
    %544 = arith.mulf %539, %543 : vector<2x6x14xf32>
    %545 = arith.truncf %544 : vector<2x6x14xf32> to vector<2x6x14xbf16>
    %546 = vector.extract_strided_slice %13 {offsets = [0, 0, 64], sizes = [2, 6, 32], strides = [1, 1, 1]} : vector<2x6x128xf32> to vector<2x6x32xf32>
    %547 = vector.extract_strided_slice %489 {offsets = [0, 0, 64], sizes = [2, 14, 32], strides = [1, 1, 1]} : vector<2x14x128xbf16> to vector<2x14x32xbf16>
    "tpu.trace_start"() <{level = 10 : i32, message = "bqk,bkd->bqd"}> : () -> ()
    %cst_207 = arith.constant dense<0.000000e+00> : vector<2x6x32xf32>
    %548 = tpu.matmul %545, %547, %cst_207 {dimension_numbers = #tpu.dot_dimension_numbers<[2], [1], [1], [2], [0, 0, 0, 1, 1, 2], [0], [0]>} : vector<2x6x14xbf16>, vector<2x14x32xbf16>, vector<2x6x32xf32> -> vector<2x6x32xf32>
    "tpu.trace_stop"() : () -> ()
    %549 = arith.addf %546, %548 : vector<2x6x32xf32>
    %550 = vector.extract_strided_slice %487 {offsets = [0, 0, 96], sizes = [2, 6, 32], strides = [1, 1, 1]} : vector<2x6x128xbf16> to vector<2x6x32xbf16>
    %551 = vector.extract_strided_slice %488 {offsets = [0, 0, 96], sizes = [2, 14, 32], strides = [1, 1, 1]} : vector<2x14x128xbf16> to vector<2x14x32xbf16>
    "tpu.trace_start"() <{level = 10 : i32, message = "bqd,bkd->bqk"}> : () -> ()
    %cst_208 = arith.constant dense<0.000000e+00> : vector<2x6x14xf32>
    %552 = tpu.matmul %550, %551, %cst_208 {dimension_numbers = #tpu.dot_dimension_numbers<[2], [2], [1], [1], [0, 0, 0, 1, 1, 1], [0], [0]>} : vector<2x6x32xbf16>, vector<2x14x32xbf16>, vector<2x6x14xf32> -> vector<2x6x14xf32>
    "tpu.trace_stop"() : () -> ()
    %cst_209 = arith.constant 0.0883883461 : f32
    %553 = vector.broadcast %cst_209 : f32 to vector<2x6x14xf32>
    %554 = arith.mulf %552, %553 : vector<2x6x14xf32>
    %cst_210 = arith.constant dense<0xFF800000> : vector<2x6xf32>
    %555 = vector.multi_reduction <maximumf>, %554, %cst_210 [2] : vector<2x6x14xf32> to vector<2x6xf32>
    %556 = vector.shape_cast %555 : vector<2x6xf32> to vector<2x6x1xf32>
    %557 = vector.broadcast %556 : vector<2x6x1xf32> to vector<2x6x14xf32>
    %558 = arith.subf %554, %557 : vector<2x6x14xf32>
    %559 = math.exp %558 : vector<2x6x14xf32>
    %cst_211 = arith.constant dense<0.000000e+00> : vector<2x6xf32>
    %560 = vector.multi_reduction <add>, %559, %cst_211 [2] : vector<2x6x14xf32> to vector<2x6xf32>
    %561 = vector.shape_cast %560 : vector<2x6xf32> to vector<2x6x1xf32>
    %562 = tpu.reciprocal %561 {approx = true} : vector<2x6x1xf32> -> vector<2x6x1xf32>
    %563 = vector.broadcast %562 : vector<2x6x1xf32> to vector<2x6x14xf32>
    %564 = arith.mulf %559, %563 : vector<2x6x14xf32>
    %565 = arith.truncf %564 : vector<2x6x14xf32> to vector<2x6x14xbf16>
    %566 = vector.extract_strided_slice %13 {offsets = [0, 0, 96], sizes = [2, 6, 32], strides = [1, 1, 1]} : vector<2x6x128xf32> to vector<2x6x32xf32>
    %567 = vector.extract_strided_slice %489 {offsets = [0, 0, 96], sizes = [2, 14, 32], strides = [1, 1, 1]} : vector<2x14x128xbf16> to vector<2x14x32xbf16>
    "tpu.trace_start"() <{level = 10 : i32, message = "bqk,bkd->bqd"}> : () -> ()
    %cst_212 = arith.constant dense<0.000000e+00> : vector<2x6x32xf32>
    %568 = tpu.matmul %565, %567, %cst_212 {dimension_numbers = #tpu.dot_dimension_numbers<[2], [1], [1], [2], [0, 0, 0, 1, 1, 2], [0], [0]>} : vector<2x6x14xbf16>, vector<2x14x32xbf16>, vector<2x6x32xf32> -> vector<2x6x32xf32>
    "tpu.trace_stop"() : () -> ()
    %569 = arith.addf %566, %568 : vector<2x6x32xf32>
    %570 = tpu.concatenate %509, %529, %549, %569 in 2 : vector<2x6x32xf32>, vector<2x6x32xf32>, vector<2x6x32xf32>, vector<2x6x32xf32> -> vector<2x6x128xf32>
    %571 = vector.shape_cast %570 : vector<2x6x128xf32> to vector<12x128xf32>
    %572 = arith.truncf %571 : vector<12x128xf32> to vector<12x128xbf16>
    %c0_213 = arith.constant 0 : index
    %c4_214 = arith.constant 4 : index
    %c0_215 = arith.constant 0 : index
    %c0_216 = arith.constant 0 : index
    %573 = vector.load %arg6[%c0_213, %c4_214, %c0_215, %c0_216] : memref<1x7x128x128xbf16, #tpu.memory_space<vmem>>, vector<1x1x128x128xbf16>
    %574 = vector.shape_cast %573 : vector<1x1x128x128xbf16> to vector<128x128xbf16>
    %cst_217 = arith.constant dense<0.000000e+00> : vector<12x128xf32>
    %575 = tpu.matmul %572, %574, %cst_217 {dimension_numbers = #tpu.dot_dimension_numbers<[1], [0], [0], [1], [0, 0, 1, 1], [], []>} : vector<12x128xbf16>, vector<128x128xbf16>, vector<12x128xf32> -> vector<12x128xf32>
    %c0_218 = arith.constant 0 : index
    %c4_219 = arith.constant 4 : index
    %c0_220 = arith.constant 0 : index
    %c0_221 = arith.constant 0 : index
    %576 = vector.load %arg7[%c0_218, %c4_219, %c0_220, %c0_221] : memref<1x7x1x128xf32, #tpu.memory_space<vmem>>, vector<1x1x1x128xf32>
    %577 = vector.shape_cast %576 : vector<1x1x1x128xf32> to vector<1x128xf32>
    %578 = vector.broadcast %577 : vector<1x128xf32> to vector<12x128xf32>
    %579 = arith.addf %575, %578 : vector<12x128xf32>
    %cst_222 = arith.constant 0.000000e+00 : f32
    %580 = vector.broadcast %cst_222 : f32 to vector<12x128xf32>
    %581 = arith.maximumf %579, %580 : vector<12x128xf32>
    %582 = arith.addf %571, %581 : vector<12x128xf32>
    %583 = vector.shape_cast %582 : vector<12x128xf32> to vector<2x6x128xf32>
    %584 = vector.shape_cast %583 : vector<2x6x128xf32> to vector<12x128xf32>
    %585 = arith.truncf %584 : vector<12x128xf32> to vector<12x128xbf16>
    %c0_223 = arith.constant 0 : index
    %c5 = arith.constant 5 : index
    %c0_224 = arith.constant 0 : index
    %c0_225 = arith.constant 0 : index
    %586 = vector.load %arg2[%c0_223, %c5, %c0_224, %c0_225] : memref<1x7x128x128xbf16, #tpu.memory_space<vmem>>, vector<1x1x128x128xbf16>
    %587 = vector.shape_cast %586 : vector<1x1x128x128xbf16> to vector<128x128xbf16>
    %cst_226 = arith.constant dense<0.000000e+00> : vector<12x128xf32>
    %588 = tpu.matmul %585, %587, %cst_226 {dimension_numbers = #tpu.dot_dimension_numbers<[1], [0], [0], [1], [0, 0, 1, 1], [], []>} : vector<12x128xbf16>, vector<128x128xbf16>, vector<12x128xf32> -> vector<12x128xf32>
    %c0_227 = arith.constant 0 : index
    %c5_228 = arith.constant 5 : index
    %c0_229 = arith.constant 0 : index
    %c0_230 = arith.constant 0 : index
    %589 = vector.load %arg3[%c0_227, %c5_228, %c0_229, %c0_230] : memref<1x7x1x128xf32, #tpu.memory_space<vmem>>, vector<1x1x1x128xf32>
    %590 = vector.shape_cast %589 : vector<1x1x1x128xf32> to vector<1x128xf32>
    %591 = vector.broadcast %590 : vector<1x128xf32> to vector<12x128xf32>
    %592 = arith.addf %588, %591 : vector<12x128xf32>
    %593 = vector.shape_cast %592 : vector<12x128xf32> to vector<2x6x128xf32>
    %c0_231 = arith.constant 0 : index
    %c5_232 = arith.constant 5 : index
    %c0_233 = arith.constant 0 : index
    %c0_234 = arith.constant 0 : index
    %594 = vector.load %arg4[%c0_231, %c5_232, %c0_233, %c0_234] : memref<1x7x128x256xbf16, #tpu.memory_space<vmem>>, vector<1x1x128x256xbf16>
    %595 = vector.shape_cast %594 : vector<1x1x128x256xbf16> to vector<128x256xbf16>
    %cst_235 = arith.constant dense<0.000000e+00> : vector<12x256xf32>
    %596 = tpu.matmul %585, %595, %cst_235 {dimension_numbers = #tpu.dot_dimension_numbers<[1], [0], [0], [1], [0, 0, 1, 1], [], []>} : vector<12x128xbf16>, vector<128x256xbf16>, vector<12x256xf32> -> vector<12x256xf32>
    %c0_236 = arith.constant 0 : index
    %c5_237 = arith.constant 5 : index
    %c0_238 = arith.constant 0 : index
    %c0_239 = arith.constant 0 : index
    %597 = vector.load %arg5[%c0_236, %c5_237, %c0_238, %c0_239] : memref<1x7x1x256xf32, #tpu.memory_space<vmem>>, vector<1x1x1x256xf32>
    %598 = vector.shape_cast %597 : vector<1x1x1x256xf32> to vector<1x256xf32>
    %599 = vector.broadcast %598 : vector<1x256xf32> to vector<12x256xf32>
    %600 = arith.addf %596, %599 : vector<12x256xf32>
    %601 = vector.extract_strided_slice %600 {offsets = [0, 0], sizes = [12, 128], strides = [1, 1]} : vector<12x256xf32> to vector<12x128xf32>
    %602 = vector.shape_cast %601 : vector<12x128xf32> to vector<2x6x128xf32>
    %603 = vector.extract_strided_slice %600 {offsets = [0, 128], sizes = [12, 128], strides = [1, 1]} : vector<12x256xf32> to vector<12x128xf32>
    %604 = vector.shape_cast %603 : vector<12x128xf32> to vector<2x6x128xf32>
    %605 = arith.truncf %593 : vector<2x6x128xf32> to vector<2x6x128xbf16>
    %606 = arith.truncf %602 : vector<2x6x128xf32> to vector<2x6x128xbf16>
    %607 = arith.truncf %604 : vector<2x6x128xf32> to vector<2x6x128xbf16>
    %608 = vector.extract_strided_slice %605 {offsets = [0, 0, 0], sizes = [2, 6, 32], strides = [1, 1, 1]} : vector<2x6x128xbf16> to vector<2x6x32xbf16>
    %609 = vector.extract_strided_slice %606 {offsets = [0, 0, 0], sizes = [2, 6, 32], strides = [1, 1, 1]} : vector<2x6x128xbf16> to vector<2x6x32xbf16>
    "tpu.trace_start"() <{level = 10 : i32, message = "bqd,bkd->bqk"}> : () -> ()
    %cst_240 = arith.constant dense<0.000000e+00> : vector<2x6x6xf32>
    %610 = tpu.matmul %608, %609, %cst_240 {dimension_numbers = #tpu.dot_dimension_numbers<[2], [2], [1], [1], [0, 0, 0, 1, 1, 1], [0], [0]>} : vector<2x6x32xbf16>, vector<2x6x32xbf16>, vector<2x6x6xf32> -> vector<2x6x6xf32>
    "tpu.trace_stop"() : () -> ()
    %cst_241 = arith.constant 0.0883883461 : f32
    %611 = vector.broadcast %cst_241 : f32 to vector<2x6x6xf32>
    %612 = arith.mulf %610, %611 : vector<2x6x6xf32>
    %cst_242 = arith.constant dense<0xFF800000> : vector<2x6xf32>
    %613 = vector.multi_reduction <maximumf>, %612, %cst_242 [2] : vector<2x6x6xf32> to vector<2x6xf32>
    %614 = vector.shape_cast %613 : vector<2x6xf32> to vector<2x6x1xf32>
    %615 = vector.broadcast %614 : vector<2x6x1xf32> to vector<2x6x6xf32>
    %616 = arith.subf %612, %615 : vector<2x6x6xf32>
    %617 = math.exp %616 : vector<2x6x6xf32>
    %cst_243 = arith.constant dense<0.000000e+00> : vector<2x6xf32>
    %618 = vector.multi_reduction <add>, %617, %cst_243 [2] : vector<2x6x6xf32> to vector<2x6xf32>
    %619 = vector.shape_cast %618 : vector<2x6xf32> to vector<2x6x1xf32>
    %620 = tpu.reciprocal %619 {approx = true} : vector<2x6x1xf32> -> vector<2x6x1xf32>
    %621 = vector.broadcast %620 : vector<2x6x1xf32> to vector<2x6x6xf32>
    %622 = arith.mulf %617, %621 : vector<2x6x6xf32>
    %623 = arith.truncf %622 : vector<2x6x6xf32> to vector<2x6x6xbf16>
    %624 = vector.extract_strided_slice %593 {offsets = [0, 0, 0], sizes = [2, 6, 32], strides = [1, 1, 1]} : vector<2x6x128xf32> to vector<2x6x32xf32>
    %625 = vector.extract_strided_slice %607 {offsets = [0, 0, 0], sizes = [2, 6, 32], strides = [1, 1, 1]} : vector<2x6x128xbf16> to vector<2x6x32xbf16>
    "tpu.trace_start"() <{level = 10 : i32, message = "bqk,bkd->bqd"}> : () -> ()
    %cst_244 = arith.constant dense<0.000000e+00> : vector<2x6x32xf32>
    %626 = tpu.matmul %623, %625, %cst_244 {dimension_numbers = #tpu.dot_dimension_numbers<[2], [1], [1], [2], [0, 0, 0, 1, 1, 2], [0], [0]>} : vector<2x6x6xbf16>, vector<2x6x32xbf16>, vector<2x6x32xf32> -> vector<2x6x32xf32>
    "tpu.trace_stop"() : () -> ()
    %627 = arith.addf %624, %626 : vector<2x6x32xf32>
    %628 = vector.extract_strided_slice %605 {offsets = [0, 0, 32], sizes = [2, 6, 32], strides = [1, 1, 1]} : vector<2x6x128xbf16> to vector<2x6x32xbf16>
    %629 = vector.extract_strided_slice %606 {offsets = [0, 0, 32], sizes = [2, 6, 32], strides = [1, 1, 1]} : vector<2x6x128xbf16> to vector<2x6x32xbf16>
    "tpu.trace_start"() <{level = 10 : i32, message = "bqd,bkd->bqk"}> : () -> ()
    %cst_245 = arith.constant dense<0.000000e+00> : vector<2x6x6xf32>
    %630 = tpu.matmul %628, %629, %cst_245 {dimension_numbers = #tpu.dot_dimension_numbers<[2], [2], [1], [1], [0, 0, 0, 1, 1, 1], [0], [0]>} : vector<2x6x32xbf16>, vector<2x6x32xbf16>, vector<2x6x6xf32> -> vector<2x6x6xf32>
    "tpu.trace_stop"() : () -> ()
    %cst_246 = arith.constant 0.0883883461 : f32
    %631 = vector.broadcast %cst_246 : f32 to vector<2x6x6xf32>
    %632 = arith.mulf %630, %631 : vector<2x6x6xf32>
    %cst_247 = arith.constant dense<0xFF800000> : vector<2x6xf32>
    %633 = vector.multi_reduction <maximumf>, %632, %cst_247 [2] : vector<2x6x6xf32> to vector<2x6xf32>
    %634 = vector.shape_cast %633 : vector<2x6xf32> to vector<2x6x1xf32>
    %635 = vector.broadcast %634 : vector<2x6x1xf32> to vector<2x6x6xf32>
    %636 = arith.subf %632, %635 : vector<2x6x6xf32>
    %637 = math.exp %636 : vector<2x6x6xf32>
    %cst_248 = arith.constant dense<0.000000e+00> : vector<2x6xf32>
    %638 = vector.multi_reduction <add>, %637, %cst_248 [2] : vector<2x6x6xf32> to vector<2x6xf32>
    %639 = vector.shape_cast %638 : vector<2x6xf32> to vector<2x6x1xf32>
    %640 = tpu.reciprocal %639 {approx = true} : vector<2x6x1xf32> -> vector<2x6x1xf32>
    %641 = vector.broadcast %640 : vector<2x6x1xf32> to vector<2x6x6xf32>
    %642 = arith.mulf %637, %641 : vector<2x6x6xf32>
    %643 = arith.truncf %642 : vector<2x6x6xf32> to vector<2x6x6xbf16>
    %644 = vector.extract_strided_slice %593 {offsets = [0, 0, 32], sizes = [2, 6, 32], strides = [1, 1, 1]} : vector<2x6x128xf32> to vector<2x6x32xf32>
    %645 = vector.extract_strided_slice %607 {offsets = [0, 0, 32], sizes = [2, 6, 32], strides = [1, 1, 1]} : vector<2x6x128xbf16> to vector<2x6x32xbf16>
    "tpu.trace_start"() <{level = 10 : i32, message = "bqk,bkd->bqd"}> : () -> ()
    %cst_249 = arith.constant dense<0.000000e+00> : vector<2x6x32xf32>
    %646 = tpu.matmul %643, %645, %cst_249 {dimension_numbers = #tpu.dot_dimension_numbers<[2], [1], [1], [2], [0, 0, 0, 1, 1, 2], [0], [0]>} : vector<2x6x6xbf16>, vector<2x6x32xbf16>, vector<2x6x32xf32> -> vector<2x6x32xf32>
    "tpu.trace_stop"() : () -> ()
    %647 = arith.addf %644, %646 : vector<2x6x32xf32>
    %648 = vector.extract_strided_slice %605 {offsets = [0, 0, 64], sizes = [2, 6, 32], strides = [1, 1, 1]} : vector<2x6x128xbf16> to vector<2x6x32xbf16>
    %649 = vector.extract_strided_slice %606 {offsets = [0, 0, 64], sizes = [2, 6, 32], strides = [1, 1, 1]} : vector<2x6x128xbf16> to vector<2x6x32xbf16>
    "tpu.trace_start"() <{level = 10 : i32, message = "bqd,bkd->bqk"}> : () -> ()
    %cst_250 = arith.constant dense<0.000000e+00> : vector<2x6x6xf32>
    %650 = tpu.matmul %648, %649, %cst_250 {dimension_numbers = #tpu.dot_dimension_numbers<[2], [2], [1], [1], [0, 0, 0, 1, 1, 1], [0], [0]>} : vector<2x6x32xbf16>, vector<2x6x32xbf16>, vector<2x6x6xf32> -> vector<2x6x6xf32>
    "tpu.trace_stop"() : () -> ()
    %cst_251 = arith.constant 0.0883883461 : f32
    %651 = vector.broadcast %cst_251 : f32 to vector<2x6x6xf32>
    %652 = arith.mulf %650, %651 : vector<2x6x6xf32>
    %cst_252 = arith.constant dense<0xFF800000> : vector<2x6xf32>
    %653 = vector.multi_reduction <maximumf>, %652, %cst_252 [2] : vector<2x6x6xf32> to vector<2x6xf32>
    %654 = vector.shape_cast %653 : vector<2x6xf32> to vector<2x6x1xf32>
    %655 = vector.broadcast %654 : vector<2x6x1xf32> to vector<2x6x6xf32>
    %656 = arith.subf %652, %655 : vector<2x6x6xf32>
    %657 = math.exp %656 : vector<2x6x6xf32>
    %cst_253 = arith.constant dense<0.000000e+00> : vector<2x6xf32>
    %658 = vector.multi_reduction <add>, %657, %cst_253 [2] : vector<2x6x6xf32> to vector<2x6xf32>
    %659 = vector.shape_cast %658 : vector<2x6xf32> to vector<2x6x1xf32>
    %660 = tpu.reciprocal %659 {approx = true} : vector<2x6x1xf32> -> vector<2x6x1xf32>
    %661 = vector.broadcast %660 : vector<2x6x1xf32> to vector<2x6x6xf32>
    %662 = arith.mulf %657, %661 : vector<2x6x6xf32>
    %663 = arith.truncf %662 : vector<2x6x6xf32> to vector<2x6x6xbf16>
    %664 = vector.extract_strided_slice %593 {offsets = [0, 0, 64], sizes = [2, 6, 32], strides = [1, 1, 1]} : vector<2x6x128xf32> to vector<2x6x32xf32>
    %665 = vector.extract_strided_slice %607 {offsets = [0, 0, 64], sizes = [2, 6, 32], strides = [1, 1, 1]} : vector<2x6x128xbf16> to vector<2x6x32xbf16>
    "tpu.trace_start"() <{level = 10 : i32, message = "bqk,bkd->bqd"}> : () -> ()
    %cst_254 = arith.constant dense<0.000000e+00> : vector<2x6x32xf32>
    %666 = tpu.matmul %663, %665, %cst_254 {dimension_numbers = #tpu.dot_dimension_numbers<[2], [1], [1], [2], [0, 0, 0, 1, 1, 2], [0], [0]>} : vector<2x6x6xbf16>, vector<2x6x32xbf16>, vector<2x6x32xf32> -> vector<2x6x32xf32>
    "tpu.trace_stop"() : () -> ()
    %667 = arith.addf %664, %666 : vector<2x6x32xf32>
    %668 = vector.extract_strided_slice %605 {offsets = [0, 0, 96], sizes = [2, 6, 32], strides = [1, 1, 1]} : vector<2x6x128xbf16> to vector<2x6x32xbf16>
    %669 = vector.extract_strided_slice %606 {offsets = [0, 0, 96], sizes = [2, 6, 32], strides = [1, 1, 1]} : vector<2x6x128xbf16> to vector<2x6x32xbf16>
    "tpu.trace_start"() <{level = 10 : i32, message = "bqd,bkd->bqk"}> : () -> ()
    %cst_255 = arith.constant dense<0.000000e+00> : vector<2x6x6xf32>
    %670 = tpu.matmul %668, %669, %cst_255 {dimension_numbers = #tpu.dot_dimension_numbers<[2], [2], [1], [1], [0, 0, 0, 1, 1, 1], [0], [0]>} : vector<2x6x32xbf16>, vector<2x6x32xbf16>, vector<2x6x6xf32> -> vector<2x6x6xf32>
    "tpu.trace_stop"() : () -> ()
    %cst_256 = arith.constant 0.0883883461 : f32
    %671 = vector.broadcast %cst_256 : f32 to vector<2x6x6xf32>
    %672 = arith.mulf %670, %671 : vector<2x6x6xf32>
    %cst_257 = arith.constant dense<0xFF800000> : vector<2x6xf32>
    %673 = vector.multi_reduction <maximumf>, %672, %cst_257 [2] : vector<2x6x6xf32> to vector<2x6xf32>
    %674 = vector.shape_cast %673 : vector<2x6xf32> to vector<2x6x1xf32>
    %675 = vector.broadcast %674 : vector<2x6x1xf32> to vector<2x6x6xf32>
    %676 = arith.subf %672, %675 : vector<2x6x6xf32>
    %677 = math.exp %676 : vector<2x6x6xf32>
    %cst_258 = arith.constant dense<0.000000e+00> : vector<2x6xf32>
    %678 = vector.multi_reduction <add>, %677, %cst_258 [2] : vector<2x6x6xf32> to vector<2x6xf32>
    %679 = vector.shape_cast %678 : vector<2x6xf32> to vector<2x6x1xf32>
    %680 = tpu.reciprocal %679 {approx = true} : vector<2x6x1xf32> -> vector<2x6x1xf32>
    %681 = vector.broadcast %680 : vector<2x6x1xf32> to vector<2x6x6xf32>
    %682 = arith.mulf %677, %681 : vector<2x6x6xf32>
    %683 = arith.truncf %682 : vector<2x6x6xf32> to vector<2x6x6xbf16>
    %684 = vector.extract_strided_slice %593 {offsets = [0, 0, 96], sizes = [2, 6, 32], strides = [1, 1, 1]} : vector<2x6x128xf32> to vector<2x6x32xf32>
    %685 = vector.extract_strided_slice %607 {offsets = [0, 0, 96], sizes = [2, 6, 32], strides = [1, 1, 1]} : vector<2x6x128xbf16> to vector<2x6x32xbf16>
    "tpu.trace_start"() <{level = 10 : i32, message = "bqk,bkd->bqd"}> : () -> ()
    %cst_259 = arith.constant dense<0.000000e+00> : vector<2x6x32xf32>
    %686 = tpu.matmul %683, %685, %cst_259 {dimension_numbers = #tpu.dot_dimension_numbers<[2], [1], [1], [2], [0, 0, 0, 1, 1, 2], [0], [0]>} : vector<2x6x6xbf16>, vector<2x6x32xbf16>, vector<2x6x32xf32> -> vector<2x6x32xf32>
    "tpu.trace_stop"() : () -> ()
    %687 = arith.addf %684, %686 : vector<2x6x32xf32>
    %688 = tpu.concatenate %627, %647, %667, %687 in 2 : vector<2x6x32xf32>, vector<2x6x32xf32>, vector<2x6x32xf32>, vector<2x6x32xf32> -> vector<2x6x128xf32>
    %689 = vector.shape_cast %688 : vector<2x6x128xf32> to vector<12x128xf32>
    %690 = arith.truncf %689 : vector<12x128xf32> to vector<12x128xbf16>
    %c0_260 = arith.constant 0 : index
    %c5_261 = arith.constant 5 : index
    %c0_262 = arith.constant 0 : index
    %c0_263 = arith.constant 0 : index
    %691 = vector.load %arg6[%c0_260, %c5_261, %c0_262, %c0_263] : memref<1x7x128x128xbf16, #tpu.memory_space<vmem>>, vector<1x1x128x128xbf16>
    %692 = vector.shape_cast %691 : vector<1x1x128x128xbf16> to vector<128x128xbf16>
    %cst_264 = arith.constant dense<0.000000e+00> : vector<12x128xf32>
    %693 = tpu.matmul %690, %692, %cst_264 {dimension_numbers = #tpu.dot_dimension_numbers<[1], [0], [0], [1], [0, 0, 1, 1], [], []>} : vector<12x128xbf16>, vector<128x128xbf16>, vector<12x128xf32> -> vector<12x128xf32>
    %c0_265 = arith.constant 0 : index
    %c5_266 = arith.constant 5 : index
    %c0_267 = arith.constant 0 : index
    %c0_268 = arith.constant 0 : index
    %694 = vector.load %arg7[%c0_265, %c5_266, %c0_267, %c0_268] : memref<1x7x1x128xf32, #tpu.memory_space<vmem>>, vector<1x1x1x128xf32>
    %695 = vector.shape_cast %694 : vector<1x1x1x128xf32> to vector<1x128xf32>
    %696 = vector.broadcast %695 : vector<1x128xf32> to vector<12x128xf32>
    %697 = arith.addf %693, %696 : vector<12x128xf32>
    %cst_269 = arith.constant 0.000000e+00 : f32
    %698 = vector.broadcast %cst_269 : f32 to vector<12x128xf32>
    %699 = arith.maximumf %697, %698 : vector<12x128xf32>
    %700 = arith.addf %689, %699 : vector<12x128xf32>
    %701 = vector.shape_cast %700 : vector<12x128xf32> to vector<2x6x128xf32>
    %702 = vector.shape_cast %701 : vector<2x6x128xf32> to vector<12x128xf32>
    %703 = arith.truncf %702 : vector<12x128xf32> to vector<12x128xbf16>
    %c0_270 = arith.constant 0 : index
    %c6 = arith.constant 6 : index
    %c0_271 = arith.constant 0 : index
    %c0_272 = arith.constant 0 : index
    %704 = vector.load %arg2[%c0_270, %c6, %c0_271, %c0_272] : memref<1x7x128x128xbf16, #tpu.memory_space<vmem>>, vector<1x1x128x128xbf16>
    %705 = vector.shape_cast %704 : vector<1x1x128x128xbf16> to vector<128x128xbf16>
    %cst_273 = arith.constant dense<0.000000e+00> : vector<12x128xf32>
    %706 = tpu.matmul %703, %705, %cst_273 {dimension_numbers = #tpu.dot_dimension_numbers<[1], [0], [0], [1], [0, 0, 1, 1], [], []>} : vector<12x128xbf16>, vector<128x128xbf16>, vector<12x128xf32> -> vector<12x128xf32>
    %c0_274 = arith.constant 0 : index
    %c6_275 = arith.constant 6 : index
    %c0_276 = arith.constant 0 : index
    %c0_277 = arith.constant 0 : index
    %707 = vector.load %arg3[%c0_274, %c6_275, %c0_276, %c0_277] : memref<1x7x1x128xf32, #tpu.memory_space<vmem>>, vector<1x1x1x128xf32>
    %708 = vector.shape_cast %707 : vector<1x1x1x128xf32> to vector<1x128xf32>
    %709 = vector.broadcast %708 : vector<1x128xf32> to vector<12x128xf32>
    %710 = arith.addf %706, %709 : vector<12x128xf32>
    %711 = vector.shape_cast %710 : vector<12x128xf32> to vector<2x6x128xf32>
    %c0_278 = arith.constant 0 : index
    %c6_279 = arith.constant 6 : index
    %c0_280 = arith.constant 0 : index
    %c0_281 = arith.constant 0 : index
    %712 = vector.load %arg4[%c0_278, %c6_279, %c0_280, %c0_281] : memref<1x7x128x256xbf16, #tpu.memory_space<vmem>>, vector<1x1x128x256xbf16>
    %713 = vector.shape_cast %712 : vector<1x1x128x256xbf16> to vector<128x256xbf16>
    %cst_282 = arith.constant dense<0.000000e+00> : vector<12x256xf32>
    %714 = tpu.matmul %703, %713, %cst_282 {dimension_numbers = #tpu.dot_dimension_numbers<[1], [0], [0], [1], [0, 0, 1, 1], [], []>} : vector<12x128xbf16>, vector<128x256xbf16>, vector<12x256xf32> -> vector<12x256xf32>
    %c0_283 = arith.constant 0 : index
    %c6_284 = arith.constant 6 : index
    %c0_285 = arith.constant 0 : index
    %c0_286 = arith.constant 0 : index
    %715 = vector.load %arg5[%c0_283, %c6_284, %c0_285, %c0_286] : memref<1x7x1x256xf32, #tpu.memory_space<vmem>>, vector<1x1x1x256xf32>
    %716 = vector.shape_cast %715 : vector<1x1x1x256xf32> to vector<1x256xf32>
    %717 = vector.broadcast %716 : vector<1x256xf32> to vector<12x256xf32>
    %718 = arith.addf %714, %717 : vector<12x256xf32>
    %719 = vector.extract_strided_slice %718 {offsets = [0, 0], sizes = [12, 128], strides = [1, 1]} : vector<12x256xf32> to vector<12x128xf32>
    %720 = vector.shape_cast %719 : vector<12x128xf32> to vector<2x6x128xf32>
    %721 = vector.extract_strided_slice %718 {offsets = [0, 128], sizes = [12, 128], strides = [1, 1]} : vector<12x256xf32> to vector<12x128xf32>
    %722 = vector.shape_cast %721 : vector<12x128xf32> to vector<2x6x128xf32>
    %723 = arith.truncf %711 : vector<2x6x128xf32> to vector<2x6x128xbf16>
    %724 = arith.truncf %720 : vector<2x6x128xf32> to vector<2x6x128xbf16>
    %725 = arith.truncf %722 : vector<2x6x128xf32> to vector<2x6x128xbf16>
    %726 = vector.extract_strided_slice %723 {offsets = [0, 0, 0], sizes = [2, 6, 32], strides = [1, 1, 1]} : vector<2x6x128xbf16> to vector<2x6x32xbf16>
    %727 = vector.extract_strided_slice %724 {offsets = [0, 0, 0], sizes = [2, 6, 32], strides = [1, 1, 1]} : vector<2x6x128xbf16> to vector<2x6x32xbf16>
    "tpu.trace_start"() <{level = 10 : i32, message = "bqd,bkd->bqk"}> : () -> ()
    %cst_287 = arith.constant dense<0.000000e+00> : vector<2x6x6xf32>
    %728 = tpu.matmul %726, %727, %cst_287 {dimension_numbers = #tpu.dot_dimension_numbers<[2], [2], [1], [1], [0, 0, 0, 1, 1, 1], [0], [0]>} : vector<2x6x32xbf16>, vector<2x6x32xbf16>, vector<2x6x6xf32> -> vector<2x6x6xf32>
    "tpu.trace_stop"() : () -> ()
    %cst_288 = arith.constant 0.0883883461 : f32
    %729 = vector.broadcast %cst_288 : f32 to vector<2x6x6xf32>
    %730 = arith.mulf %728, %729 : vector<2x6x6xf32>
    %cst_289 = arith.constant dense<0xFF800000> : vector<2x6xf32>
    %731 = vector.multi_reduction <maximumf>, %730, %cst_289 [2] : vector<2x6x6xf32> to vector<2x6xf32>
    %732 = vector.shape_cast %731 : vector<2x6xf32> to vector<2x6x1xf32>
    %733 = vector.broadcast %732 : vector<2x6x1xf32> to vector<2x6x6xf32>
    %734 = arith.subf %730, %733 : vector<2x6x6xf32>
    %735 = math.exp %734 : vector<2x6x6xf32>
    %cst_290 = arith.constant dense<0.000000e+00> : vector<2x6xf32>
    %736 = vector.multi_reduction <add>, %735, %cst_290 [2] : vector<2x6x6xf32> to vector<2x6xf32>
    %737 = vector.shape_cast %736 : vector<2x6xf32> to vector<2x6x1xf32>
    %738 = tpu.reciprocal %737 {approx = true} : vector<2x6x1xf32> -> vector<2x6x1xf32>
    %739 = vector.broadcast %738 : vector<2x6x1xf32> to vector<2x6x6xf32>
    %740 = arith.mulf %735, %739 : vector<2x6x6xf32>
    %741 = arith.truncf %740 : vector<2x6x6xf32> to vector<2x6x6xbf16>
    %742 = vector.extract_strided_slice %711 {offsets = [0, 0, 0], sizes = [2, 6, 32], strides = [1, 1, 1]} : vector<2x6x128xf32> to vector<2x6x32xf32>
    %743 = vector.extract_strided_slice %725 {offsets = [0, 0, 0], sizes = [2, 6, 32], strides = [1, 1, 1]} : vector<2x6x128xbf16> to vector<2x6x32xbf16>
    "tpu.trace_start"() <{level = 10 : i32, message = "bqk,bkd->bqd"}> : () -> ()
    %cst_291 = arith.constant dense<0.000000e+00> : vector<2x6x32xf32>
    %744 = tpu.matmul %741, %743, %cst_291 {dimension_numbers = #tpu.dot_dimension_numbers<[2], [1], [1], [2], [0, 0, 0, 1, 1, 2], [0], [0]>} : vector<2x6x6xbf16>, vector<2x6x32xbf16>, vector<2x6x32xf32> -> vector<2x6x32xf32>
    "tpu.trace_stop"() : () -> ()
    %745 = arith.addf %742, %744 : vector<2x6x32xf32>
    %746 = vector.extract_strided_slice %723 {offsets = [0, 0, 32], sizes = [2, 6, 32], strides = [1, 1, 1]} : vector<2x6x128xbf16> to vector<2x6x32xbf16>
    %747 = vector.extract_strided_slice %724 {offsets = [0, 0, 32], sizes = [2, 6, 32], strides = [1, 1, 1]} : vector<2x6x128xbf16> to vector<2x6x32xbf16>
    "tpu.trace_start"() <{level = 10 : i32, message = "bqd,bkd->bqk"}> : () -> ()
    %cst_292 = arith.constant dense<0.000000e+00> : vector<2x6x6xf32>
    %748 = tpu.matmul %746, %747, %cst_292 {dimension_numbers = #tpu.dot_dimension_numbers<[2], [2], [1], [1], [0, 0, 0, 1, 1, 1], [0], [0]>} : vector<2x6x32xbf16>, vector<2x6x32xbf16>, vector<2x6x6xf32> -> vector<2x6x6xf32>
    "tpu.trace_stop"() : () -> ()
    %cst_293 = arith.constant 0.0883883461 : f32
    %749 = vector.broadcast %cst_293 : f32 to vector<2x6x6xf32>
    %750 = arith.mulf %748, %749 : vector<2x6x6xf32>
    %cst_294 = arith.constant dense<0xFF800000> : vector<2x6xf32>
    %751 = vector.multi_reduction <maximumf>, %750, %cst_294 [2] : vector<2x6x6xf32> to vector<2x6xf32>
    %752 = vector.shape_cast %751 : vector<2x6xf32> to vector<2x6x1xf32>
    %753 = vector.broadcast %752 : vector<2x6x1xf32> to vector<2x6x6xf32>
    %754 = arith.subf %750, %753 : vector<2x6x6xf32>
    %755 = math.exp %754 : vector<2x6x6xf32>
    %cst_295 = arith.constant dense<0.000000e+00> : vector<2x6xf32>
    %756 = vector.multi_reduction <add>, %755, %cst_295 [2] : vector<2x6x6xf32> to vector<2x6xf32>
    %757 = vector.shape_cast %756 : vector<2x6xf32> to vector<2x6x1xf32>
    %758 = tpu.reciprocal %757 {approx = true} : vector<2x6x1xf32> -> vector<2x6x1xf32>
    %759 = vector.broadcast %758 : vector<2x6x1xf32> to vector<2x6x6xf32>
    %760 = arith.mulf %755, %759 : vector<2x6x6xf32>
    %761 = arith.truncf %760 : vector<2x6x6xf32> to vector<2x6x6xbf16>
    %762 = vector.extract_strided_slice %711 {offsets = [0, 0, 32], sizes = [2, 6, 32], strides = [1, 1, 1]} : vector<2x6x128xf32> to vector<2x6x32xf32>
    %763 = vector.extract_strided_slice %725 {offsets = [0, 0, 32], sizes = [2, 6, 32], strides = [1, 1, 1]} : vector<2x6x128xbf16> to vector<2x6x32xbf16>
    "tpu.trace_start"() <{level = 10 : i32, message = "bqk,bkd->bqd"}> : () -> ()
    %cst_296 = arith.constant dense<0.000000e+00> : vector<2x6x32xf32>
    %764 = tpu.matmul %761, %763, %cst_296 {dimension_numbers = #tpu.dot_dimension_numbers<[2], [1], [1], [2], [0, 0, 0, 1, 1, 2], [0], [0]>} : vector<2x6x6xbf16>, vector<2x6x32xbf16>, vector<2x6x32xf32> -> vector<2x6x32xf32>
    "tpu.trace_stop"() : () -> ()
    %765 = arith.addf %762, %764 : vector<2x6x32xf32>
    %766 = vector.extract_strided_slice %723 {offsets = [0, 0, 64], sizes = [2, 6, 32], strides = [1, 1, 1]} : vector<2x6x128xbf16> to vector<2x6x32xbf16>
    %767 = vector.extract_strided_slice %724 {offsets = [0, 0, 64], sizes = [2, 6, 32], strides = [1, 1, 1]} : vector<2x6x128xbf16> to vector<2x6x32xbf16>
    "tpu.trace_start"() <{level = 10 : i32, message = "bqd,bkd->bqk"}> : () -> ()
    %cst_297 = arith.constant dense<0.000000e+00> : vector<2x6x6xf32>
    %768 = tpu.matmul %766, %767, %cst_297 {dimension_numbers = #tpu.dot_dimension_numbers<[2], [2], [1], [1], [0, 0, 0, 1, 1, 1], [0], [0]>} : vector<2x6x32xbf16>, vector<2x6x32xbf16>, vector<2x6x6xf32> -> vector<2x6x6xf32>
    "tpu.trace_stop"() : () -> ()
    %cst_298 = arith.constant 0.0883883461 : f32
    %769 = vector.broadcast %cst_298 : f32 to vector<2x6x6xf32>
    %770 = arith.mulf %768, %769 : vector<2x6x6xf32>
    %cst_299 = arith.constant dense<0xFF800000> : vector<2x6xf32>
    %771 = vector.multi_reduction <maximumf>, %770, %cst_299 [2] : vector<2x6x6xf32> to vector<2x6xf32>
    %772 = vector.shape_cast %771 : vector<2x6xf32> to vector<2x6x1xf32>
    %773 = vector.broadcast %772 : vector<2x6x1xf32> to vector<2x6x6xf32>
    %774 = arith.subf %770, %773 : vector<2x6x6xf32>
    %775 = math.exp %774 : vector<2x6x6xf32>
    %cst_300 = arith.constant dense<0.000000e+00> : vector<2x6xf32>
    %776 = vector.multi_reduction <add>, %775, %cst_300 [2] : vector<2x6x6xf32> to vector<2x6xf32>
    %777 = vector.shape_cast %776 : vector<2x6xf32> to vector<2x6x1xf32>
    %778 = tpu.reciprocal %777 {approx = true} : vector<2x6x1xf32> -> vector<2x6x1xf32>
    %779 = vector.broadcast %778 : vector<2x6x1xf32> to vector<2x6x6xf32>
    %780 = arith.mulf %775, %779 : vector<2x6x6xf32>
    %781 = arith.truncf %780 : vector<2x6x6xf32> to vector<2x6x6xbf16>
    %782 = vector.extract_strided_slice %711 {offsets = [0, 0, 64], sizes = [2, 6, 32], strides = [1, 1, 1]} : vector<2x6x128xf32> to vector<2x6x32xf32>
    %783 = vector.extract_strided_slice %725 {offsets = [0, 0, 64], sizes = [2, 6, 32], strides = [1, 1, 1]} : vector<2x6x128xbf16> to vector<2x6x32xbf16>
    "tpu.trace_start"() <{level = 10 : i32, message = "bqk,bkd->bqd"}> : () -> ()
    %cst_301 = arith.constant dense<0.000000e+00> : vector<2x6x32xf32>
    %784 = tpu.matmul %781, %783, %cst_301 {dimension_numbers = #tpu.dot_dimension_numbers<[2], [1], [1], [2], [0, 0, 0, 1, 1, 2], [0], [0]>} : vector<2x6x6xbf16>, vector<2x6x32xbf16>, vector<2x6x32xf32> -> vector<2x6x32xf32>
    "tpu.trace_stop"() : () -> ()
    %785 = arith.addf %782, %784 : vector<2x6x32xf32>
    %786 = vector.extract_strided_slice %723 {offsets = [0, 0, 96], sizes = [2, 6, 32], strides = [1, 1, 1]} : vector<2x6x128xbf16> to vector<2x6x32xbf16>
    %787 = vector.extract_strided_slice %724 {offsets = [0, 0, 96], sizes = [2, 6, 32], strides = [1, 1, 1]} : vector<2x6x128xbf16> to vector<2x6x32xbf16>
    "tpu.trace_start"() <{level = 10 : i32, message = "bqd,bkd->bqk"}> : () -> ()
    %cst_302 = arith.constant dense<0.000000e+00> : vector<2x6x6xf32>
    %788 = tpu.matmul %786, %787, %cst_302 {dimension_numbers = #tpu.dot_dimension_numbers<[2], [2], [1], [1], [0, 0, 0, 1, 1, 1], [0], [0]>} : vector<2x6x32xbf16>, vector<2x6x32xbf16>, vector<2x6x6xf32> -> vector<2x6x6xf32>
    "tpu.trace_stop"() : () -> ()
    %cst_303 = arith.constant 0.0883883461 : f32
    %789 = vector.broadcast %cst_303 : f32 to vector<2x6x6xf32>
    %790 = arith.mulf %788, %789 : vector<2x6x6xf32>
    %cst_304 = arith.constant dense<0xFF800000> : vector<2x6xf32>
    %791 = vector.multi_reduction <maximumf>, %790, %cst_304 [2] : vector<2x6x6xf32> to vector<2x6xf32>
    %792 = vector.shape_cast %791 : vector<2x6xf32> to vector<2x6x1xf32>
    %793 = vector.broadcast %792 : vector<2x6x1xf32> to vector<2x6x6xf32>
    %794 = arith.subf %790, %793 : vector<2x6x6xf32>
    %795 = math.exp %794 : vector<2x6x6xf32>
    %cst_305 = arith.constant dense<0.000000e+00> : vector<2x6xf32>
    %796 = vector.multi_reduction <add>, %795, %cst_305 [2] : vector<2x6x6xf32> to vector<2x6xf32>
    %797 = vector.shape_cast %796 : vector<2x6xf32> to vector<2x6x1xf32>
    %798 = tpu.reciprocal %797 {approx = true} : vector<2x6x1xf32> -> vector<2x6x1xf32>
    %799 = vector.broadcast %798 : vector<2x6x1xf32> to vector<2x6x6xf32>
    %800 = arith.mulf %795, %799 : vector<2x6x6xf32>
    %801 = arith.truncf %800 : vector<2x6x6xf32> to vector<2x6x6xbf16>
    %802 = vector.extract_strided_slice %711 {offsets = [0, 0, 96], sizes = [2, 6, 32], strides = [1, 1, 1]} : vector<2x6x128xf32> to vector<2x6x32xf32>
    %803 = vector.extract_strided_slice %725 {offsets = [0, 0, 96], sizes = [2, 6, 32], strides = [1, 1, 1]} : vector<2x6x128xbf16> to vector<2x6x32xbf16>
    "tpu.trace_start"() <{level = 10 : i32, message = "bqk,bkd->bqd"}> : () -> ()
    %cst_306 = arith.constant dense<0.000000e+00> : vector<2x6x32xf32>
    %804 = tpu.matmul %801, %803, %cst_306 {dimension_numbers = #tpu.dot_dimension_numbers<[2], [1], [1], [2], [0, 0, 0, 1, 1, 2], [0], [0]>} : vector<2x6x6xbf16>, vector<2x6x32xbf16>, vector<2x6x32xf32> -> vector<2x6x32xf32>
    "tpu.trace_stop"() : () -> ()
    %805 = arith.addf %802, %804 : vector<2x6x32xf32>
    %806 = tpu.concatenate %745, %765, %785, %805 in 2 : vector<2x6x32xf32>, vector<2x6x32xf32>, vector<2x6x32xf32>, vector<2x6x32xf32> -> vector<2x6x128xf32>
    %807 = vector.shape_cast %806 : vector<2x6x128xf32> to vector<12x128xf32>
    %808 = arith.truncf %807 : vector<12x128xf32> to vector<12x128xbf16>
    %c0_307 = arith.constant 0 : index
    %c6_308 = arith.constant 6 : index
    %c0_309 = arith.constant 0 : index
    %c0_310 = arith.constant 0 : index
    %809 = vector.load %arg6[%c0_307, %c6_308, %c0_309, %c0_310] : memref<1x7x128x128xbf16, #tpu.memory_space<vmem>>, vector<1x1x128x128xbf16>
    %810 = vector.shape_cast %809 : vector<1x1x128x128xbf16> to vector<128x128xbf16>
    %cst_311 = arith.constant dense<0.000000e+00> : vector<12x128xf32>
    %811 = tpu.matmul %808, %810, %cst_311 {dimension_numbers = #tpu.dot_dimension_numbers<[1], [0], [0], [1], [0, 0, 1, 1], [], []>} : vector<12x128xbf16>, vector<128x128xbf16>, vector<12x128xf32> -> vector<12x128xf32>
    %c0_312 = arith.constant 0 : index
    %c6_313 = arith.constant 6 : index
    %c0_314 = arith.constant 0 : index
    %c0_315 = arith.constant 0 : index
    %812 = vector.load %arg7[%c0_312, %c6_313, %c0_314, %c0_315] : memref<1x7x1x128xf32, #tpu.memory_space<vmem>>, vector<1x1x1x128xf32>
    %813 = vector.shape_cast %812 : vector<1x1x1x128xf32> to vector<1x128xf32>
    %814 = vector.broadcast %813 : vector<1x128xf32> to vector<12x128xf32>
    %815 = arith.addf %811, %814 : vector<12x128xf32>
    %cst_316 = arith.constant 0.000000e+00 : f32
    %816 = vector.broadcast %cst_316 : f32 to vector<12x128xf32>
    %817 = arith.maximumf %815, %816 : vector<12x128xf32>
    %818 = arith.addf %807, %817 : vector<12x128xf32>
    %819 = vector.shape_cast %818 : vector<12x128xf32> to vector<2x6x128xf32>
    %820 = vector.shape_cast %819 : vector<2x6x128xf32> to vector<12x128xf32>
    %821 = arith.truncf %820 : vector<12x128xf32> to vector<12x128xbf16>
    %c0_317 = arith.constant 0 : index
    %c0_318 = arith.constant 0 : index
    %c0_319 = arith.constant 0 : index
    %822 = vector.load %arg9[%c0_317, %c0_318, %c0_319] : memref<1x128x64xbf16, #tpu.memory_space<vmem>>, vector<1x128x64xbf16>
    %823 = vector.shape_cast %822 : vector<1x128x64xbf16> to vector<128x64xbf16>
    %cst_320 = arith.constant dense<0.000000e+00> : vector<12x64xf32>
    %824 = tpu.matmul %821, %823, %cst_320 {dimension_numbers = #tpu.dot_dimension_numbers<[1], [0], [0], [1], [0, 0, 1, 1], [], []>} : vector<12x128xbf16>, vector<128x64xbf16>, vector<12x64xf32> -> vector<12x64xf32>
    %c0_321 = arith.constant 0 : index
    %c0_322 = arith.constant 0 : index
    %c0_323 = arith.constant 0 : index
    %825 = vector.load %arg10[%c0_321, %c0_322, %c0_323] : memref<1x1x64xf32, #tpu.memory_space<vmem>>, vector<1x1x64xf32>
    %826 = vector.shape_cast %825 : vector<1x1x64xf32> to vector<1x64xf32>
    %827 = vector.broadcast %826 : vector<1x64xf32> to vector<12x64xf32>
    %828 = arith.addf %824, %827 : vector<12x64xf32>
    %829 = vector.shape_cast %828 : vector<12x64xf32> to vector<2x6x64xf32>
    %cst_324 = arith.constant dense<0.000000e+00> : vector<2x64xf32>
    %830 = vector.multi_reduction <add>, %829, %cst_324 [1] : vector<2x6x64xf32> to vector<2x64xf32>
    %cst_325 = arith.constant 6.000000e+00 : f32
    %831 = vector.broadcast %cst_325 : f32 to vector<2x64xf32>
    %832 = arith.divf %830, %831 : vector<2x64xf32>
    %c0_i32 = arith.constant 0 : i32
    %833 = arith.cmpi eq, %arg0, %c0_i32 : i32
    %834 = arith.extui %833 : i1 to i32
    %c0_i32_326 = arith.constant 0 : i32
    %835 = arith.cmpi ne, %834, %c0_i32_326 : i32
    scf.if %835 {
      %c0_328 = arith.constant 0 : index
      %c0_329 = arith.constant 0 : index
      %839 = vector.load %arg16[%c0_328, %c0_329] : memref<2x64xf32, #tpu.memory_space<vmem>>, vector<2x64xf32>
      tpu.vector_store %arg16[%c0_328, %c0_329], %832 {strides = array<i32>} : memref<2x64xf32, #tpu.memory_space<vmem>>, vector<2x64xf32>,
    } else {
    }
    %c1_i32 = arith.constant 1 : i32
    %836 = arith.cmpi eq, %arg0, %c1_i32 : i32
    %837 = arith.extui %836 : i1 to i32
    %c0_i32_327 = arith.constant 0 : i32
    %838 = arith.cmpi ne, %837, %c0_i32_327 : i32
    scf.if %838 {
      %c0_328 = arith.constant 0 : index
      %c0_329 = arith.constant 0 : index
      %839 = vector.load %arg16[%c0_328, %c0_329] : memref<2x64xf32, #tpu.memory_space<vmem>>, vector<2x64xf32>
      %840 = arith.mulf %839, %832 : vector<2x64xf32>
      %c0_330 = arith.constant 0 : index
      %c0_331 = arith.constant 0 : index
      %841 = vector.load %arg11[%c0_330, %c0_331] : memref<64x32xf32, #tpu.memory_space<vmem>>, vector<64x32xf32>
      %cst_332 = arith.constant dense<0.000000e+00> : vector<2x32xf32>
      %842 = tpu.matmul %840, %841, %cst_332 {dimension_numbers = #tpu.dot_dimension_numbers<[1], [0], [0], [1], [0, 0, 1, 1], [], []>} : vector<2x64xf32>, vector<64x32xf32>, vector<2x32xf32> -> vector<2x32xf32>
      %c0_333 = arith.constant 0 : index
      %c0_334 = arith.constant 0 : index
      %843 = vector.load %arg12[%c0_333, %c0_334] : memref<1x32xf32, #tpu.memory_space<vmem>>, vector<1x32xf32>
      %844 = vector.broadcast %843 : vector<1x32xf32> to vector<2x32xf32>
      %845 = arith.addf %842, %844 : vector<2x32xf32>
      %cst_335 = arith.constant 0.000000e+00 : f32
      %846 = vector.broadcast %cst_335 : f32 to vector<2x32xf32>
      %847 = arith.cmpf ogt, %845, %846 : vector<2x32xf32>
      %cst_336 = arith.constant 0.00999999977 : f32
      %848 = vector.broadcast %cst_336 : f32 to vector<2x32xf32>
      %849 = arith.mulf %848, %845 : vector<2x32xf32>
      %850 = arith.select %847, %845, %849 : vector<2x32xi1>, vector<2x32xf32>
      %c0_337 = arith.constant 0 : index
      %c0_338 = arith.constant 0 : index
      %851 = vector.load %arg13[%c0_337, %c0_338] : memref<32x1xf32, #tpu.memory_space<vmem>>, vector<32x1xf32>
      %cst_339 = arith.constant dense<0.000000e+00> : vector<2x1xf32>
      %852 = tpu.matmul %850, %851, %cst_339 {dimension_numbers = #tpu.dot_dimension_numbers<[1], [0], [0], [1], [0, 0, 1, 1], [], []>} : vector<2x32xf32>, vector<32x1xf32>, vector<2x1xf32> -> vector<2x1xf32>
      %c0_340 = arith.constant 0 : index
      %c0_341 = arith.constant 0 : index
      %853 = vector.load %arg14[%c0_340, %c0_341] : memref<1x1xf32, #tpu.memory_space<vmem>>, vector<1x1xf32>
      %854 = vector.broadcast %853 : vector<1x1xf32> to vector<2x1xf32>
      %855 = arith.addf %852, %854 : vector<2x1xf32>
      %856 = arith.negf %855 : vector<2x1xf32>
      %857 = math.exp %856 : vector<2x1xf32>
      %cst_342 = arith.constant 1.000000e+00 : f32
      %858 = vector.broadcast %cst_342 : f32 to vector<2x1xf32>
      %859 = arith.addf %858, %857 : vector<2x1xf32>
      %860 = arith.divf %858, %859 : vector<2x1xf32>
      %c0_343 = arith.constant 0 : index
      %c0_344 = arith.constant 0 : index
      %861 = vector.load %arg15[%c0_343, %c0_344] : memref<2x1xf32, #tpu.memory_space<vmem>>, vector<2x1xf32>
      tpu.vector_store %arg15[%c0_343, %c0_344], %860 {strides = array<i32>} : memref<2x1xf32, #tpu.memory_space<vmem>>, vector<2x1xf32>,
    } else {
    }
    return
  }
  func.func @transform_0(%arg0: i32) -> (i32, i32, i32, i32) {
    %c0_i32 = arith.constant 0 : i32
    %c0_i32_0 = arith.constant 0 : i32
    %c0_i32_1 = arith.constant 0 : i32
    %c0_i32_2 = arith.constant 0 : i32
    return %arg0, %c0_i32, %c0_i32_0, %c0_i32_1 : i32, i32, i32, i32
  }
  func.func @transform_1(%arg0: i32) -> (i32, i32, i32, i32) {
    %c0_i32 = arith.constant 0 : i32
    %c0_i32_0 = arith.constant 0 : i32
    %c0_i32_1 = arith.constant 0 : i32
    %c0_i32_2 = arith.constant 0 : i32
    return %arg0, %c0_i32, %c0_i32_0, %c0_i32_1 : i32, i32, i32, i32
  }
  func.func @transform_2(%arg0: i32) -> (i32, i32, i32, i32) {
    %c0_i32 = arith.constant 0 : i32
    %c0_i32_0 = arith.constant 0 : i32
    %c0_i32_1 = arith.constant 0 : i32
    %c0_i32_2 = arith.constant 0 : i32
    return %arg0, %c0_i32, %c0_i32_0, %c0_i32_1 : i32, i32, i32, i32
  }
  func.func @transform_3(%arg0: i32) -> (i32, i32, i32, i32) {
    %c0_i32 = arith.constant 0 : i32
    %c0_i32_0 = arith.constant 0 : i32
    %c0_i32_1 = arith.constant 0 : i32
    %c0_i32_2 = arith.constant 0 : i32
    return %arg0, %c0_i32, %c0_i32_0, %c0_i32_1 : i32, i32, i32, i32
  }
  func.func @transform_4(%arg0: i32) -> (i32, i32, i32, i32) {
    %c0_i32 = arith.constant 0 : i32
    %c0_i32_0 = arith.constant 0 : i32
    %c0_i32_1 = arith.constant 0 : i32
    %c0_i32_2 = arith.constant 0 : i32
    return %arg0, %c0_i32, %c0_i32_0, %c0_i32_1 : i32, i32, i32, i32
  }
  func.func @transform_5(%arg0: i32) -> (i32, i32, i32, i32) {
    %c0_i32 = arith.constant 0 : i32
    %c0_i32_0 = arith.constant 0 : i32
    %c0_i32_1 = arith.constant 0 : i32
    %c0_i32_2 = arith.constant 0 : i32
    return %arg0, %c0_i32, %c0_i32_0, %c0_i32_1 : i32, i32, i32, i32
  }
  func.func @transform_6(%arg0: i32) -> (i32, i32, i32, i32) {
    %c0_i32 = arith.constant 0 : i32
    %c0_i32_0 = arith.constant 0 : i32
    %c0_i32_1 = arith.constant 0 : i32
    %c0_i32_2 = arith.constant 0 : i32
    return %arg0, %c0_i32, %c0_i32_0, %c0_i32_1 : i32, i32, i32, i32
  }
  func.func @transform_7(%arg0: i32) -> (i32, i32, i32, i32) {
    %c0_i32 = arith.constant 0 : i32
    %c0_i32_0 = arith.constant 0 : i32
    %c0_i32_1 = arith.constant 0 : i32
    %c0_i32_2 = arith.constant 0 : i32
    return %arg0, %c0_i32, %c0_i32_0, %c0_i32_1 : i32, i32, i32, i32
  }
  func.func @transform_8(%arg0: i32) -> (i32, i32, i32) {
    %c0_i32 = arith.constant 0 : i32
    %c0_i32_0 = arith.constant 0 : i32
    %c0_i32_1 = arith.constant 0 : i32
    return %arg0, %c0_i32, %c0_i32_0 : i32, i32, i32
  }
  func.func @transform_9(%arg0: i32) -> (i32, i32, i32) {
    %c0_i32 = arith.constant 0 : i32
    %c0_i32_0 = arith.constant 0 : i32
    %c0_i32_1 = arith.constant 0 : i32
    return %arg0, %c0_i32, %c0_i32_0 : i32, i32, i32
  }
  func.func @transform_10(%arg0: i32) -> (i32, i32) {
    %c0_i32 = arith.constant 0 : i32
    %c0_i32_0 = arith.constant 0 : i32
    %c0_i32_1 = arith.constant 0 : i32
    return %c0_i32, %c0_i32_0 : i32, i32
  }
  func.func @transform_11(%arg0: i32) -> (i32, i32) {
    %c0_i32 = arith.constant 0 : i32
    %c0_i32_0 = arith.constant 0 : i32
    %c0_i32_1 = arith.constant 0 : i32
    return %c0_i32, %c0_i32_0 : i32, i32
  }
  func.func @transform_12(%arg0: i32) -> (i32, i32) {
    %c0_i32 = arith.constant 0 : i32
    %c0_i32_0 = arith.constant 0 : i32
    %c0_i32_1 = arith.constant 0 : i32
    return %c0_i32, %c0_i32_0 : i32, i32
  }
  func.func @transform_13(%arg0: i32) -> (i32, i32) {
    %c0_i32 = arith.constant 0 : i32
    %c0_i32_0 = arith.constant 0 : i32
    %c0_i32_1 = arith.constant 0 : i32
    return %c0_i32, %c0_i32_0 : i32, i32
  }
  func.func @transform_14(%arg0: i32) -> (i32, i32) {
    %c0_i32 = arith.constant 0 : i32
    %c0_i32_0 = arith.constant 0 : i32
    %c0_i32_1 = arith.constant 0 : i32
    return %c0_i32, %c0_i32_0 : i32, i32
  }
}

</mosaic_0001>

<bundles_post_ra>
// kernel: forward.1
= control target key start
LH: loop header
LB: loop body
LE: loop exit
PB: predicated region body
PF: predicated region fallthrough
CT: control target
= control target key end

     0   :  { %s21887_s0 = inlined_call_operand.vmem [shape: f32[2,2,14,128], index: 0, kind: input, shape index: {}]   ;;  %s21888_s1 = inlined_call_operand.vmem [shape: bf16[2,7,128,128], index: 1, kind: input, shape index: {}]   ;;  %s21889_s2 = inlined_call_operand.vmem [shape: f32[2,7,1,128], index: 2, kind: input, shape index: {}]   ;;  %s21890_s3 = inlined_call_operand.hbm [shape: bf16[2,7,128,256], index: 3, kind: input, shape index: {}]   ;;  %s21891_s4 = inlined_call_operand.vmem [shape: f32[2,7,1,256], index: 4, kind: input, shape index: {}]   ;;  %s21892_s5 = inlined_call_operand.hbm [shape: bf16[2,7,128,128], index: 5, kind: input, shape index: {}]   ;;  %s21893_s6 = inlined_call_operand.vmem [shape: f32[2,7,1,128], index: 6, kind: input, shape index: {}]   ;;  %s21894_s7 = inlined_call_operand.vmem [shape: f32[2,3,6,128], index: 7, kind: input, shape index: {}]   ;;  %s21895_s8 = inlined_call_operand.vmem [shape: bf16[2,128,64], index: 8, kind: input, shape index: {}]   ;;  %s21896_s9 = inlined_call_operand.vmem [shape: f32[2,1,64], index: 9, kind: input, shape index: {}]   ;;  %s21897_s10 = inlined_call_operand.vmem [shape: f32[64,32], index: 10, kind: input, shape index: {}]   ;;  %s21898_s11 = inlined_call_operand.vmem [shape: f32[1,32], index: 11, kind: input, shape index: {}]   ;;  %s21899_s12 = inlined_call_operand.vmem [shape: f32[32,1], index: 12, kind: input, shape index: {}]   ;;  %s21900_s13 = inlined_call_operand.<no memory space> [shape: f32[1,1], index: 13, kind: input, shape index: {}]   ;;  %s21901_s14 = inlined_call_operand.vmem [shape: f32[2,1], index: 14, kind: output, shape index: {}]  }
   0x1   :  { %21912 = sst [smem:[#allocation14_spill]] %s21890_s3  ;;  %v19_v0 = vstv %s21900_s13 }
   0x2   :  { %21913 = sst [smem:[#allocation15_spill]] %s21901_s14  ;;  %20 = vst [vmem:[#allocation3] sm:$0x1] %v19_v0 }
   0x3   :  { %21 = vsyncpa [#allocation5], 0 }
   0x4   :  { %23 = vsyncpa [#allocation5 + $0x1], 0 }
   0x5   :  { %24 = vsyncpa [#allocation7], 0 }
   0x6   :  { %26 = vsyncpa [#allocation7 + $0x1], 0  ;;  %s18474_s15 = smov 0   ;;  %s18476_s16 = smov 0  }
   0x7   :  { %s18478_s17 = smov 0   ;;  %s18480_s18 = smov 0  }
   0x8 LB: > { %21914 = sst [smem:[#allocation10_spill]] %s18375_s17  ;;  %s18493_s13 = sadd.s32 4294967295, %s18379_s18   ;;  %s18379_s18 = sphi %s18480_s18, %s21929_s18   ;;  %s18375_s17 = sphi %s18478_s17, %s21931_s17   ;;  %s18371_s16 = sphi %s18476_s16, %s21933_s16   ;;  %s18367_s15 = sphi %s18474_s15, %s21932_s15  }
   0x9   : > { %s18496_s19 = sadd.s32 1, %s18379_s18   ;;  %s117_s21 = sadd.s32 1, %s18375_s17 }
   0xa   : > { %21915 = sst [smem:[#allocation11_spill]] %s18496_s19  ;;  %s114_s20 = ssub.s32 %s18379_s18, %s18496_s19 }
   0xb   : > { %p115_p0 = scmp.eq.s32.totalorder %s114_s20, 0  ;;  %p124_p1 = scmp.ne.s32.totalorder %s18375_s17, %s18371_s16 }
   0xc   : > { %p125_p2 = scmp.eq.s32.totalorder %s18379_s18, 0  ;;  %p130_p3 = scmp.ne.s32.totalorder %s18371_s16, %s18367_s15 }
   0xd   : > { %s18506_s22 = scalar_select %p115_p0, %s18375_s17, %s117_s21  }
   0xe   : > { %p126_p4 = por %p125_p2, %p124_p1  ;;  %p131_p5 = scmp.eq.s32.totalorder %s18493_s13, 0 }
   0xf   : > { %21916 = sst [smem:[#allocation12_spill]] %s18506_s22  ;;  %p17679_p6 = scmp.lt.s32.totalorder %s18379_s18, 2 }
  0x10   : > { %p18510_p7 = por %p131_p5, %p130_p3  ;;  %s18515_s24 = sand.u32 1, %s18375_s17  }
  0x11   : > { %s17658_s25 = smul.u32 896, %s18515_s24  ;;  %p18519_p8 = pnand %p17679_p6, %p126_p4 }
  0x12   : > { %s21917_s23 = scalar_select %p18510_p7, 1, 0 }
  0x13   : > { %s17659_s26 = smul.u32 14336, %s18379_s18  ;;  %s21919_s3 = sld [smem:[#allocation14_spill]] }
  0x14   : > { %s454_s15 = scalar_lea.vmem [#allocation4], %s17658_s25  ;;  %s451_s21 = scalar_lea.sflag [#allocation5], %s18515_s24 }
  0x15   : > { %s461_s20 = sshll.u32 %s454_s15, 4  ;;  %p18287_p11 = pneg %p18519_p8  ;;  %s18528_s20 = int_to_ptr.vmem [resolvable:$true] %s461_s20 }
  0x19   : > { %s18526_s30 = scalar_lea.hbm %s21919_s3, %s17659_s26  ;;  %s18290_s29 = scalar_lea.hbm %s21919_s3, 28672 }
  0x1a   : > { %s18285_s22 = scalar_lea.hbm %s18526_s30, 14336  ;;  %p18291_p0 = scmp.lt.s32.totalorder %s18526_s30, %s21919_s3 }
  0x1b   : > { %p18286_p10 = scmp.ne.s32.totalorder %s18526_s30, %s18285_s22  ;;  %p18292_p1 = scmp.lt.s32.totalorder %s18290_s29, %s18285_s22 }
  0x1d   : > { %p18288_p12 = pnand %p18287_p11, %p18286_p10  ;;  %p18293_p2 = por %p18292_p1, %p18291_p0 }
  0x1f   : > { %p18289_p13 = pneg %p18288_p12 }
  0x21   : > { %p18294_p3 = pnand %p18293_p2, %p18289_p13 }
  0x23   : > { %18297 = shalt.err (!%p18294_p3)
}
  0x24   : > { %s18298_s25 = scalar_lea.vmem %s18528_s20, 14336  ;;  %s18381_s15 = smov [#allocation4]  }
  0x25   : > { %p18299_p4 = scmp.ne.s32.totalorder %s18528_s20, %s18298_s25  ;;  %s18303_s28 = sshll.u32 %s18381_s15, 4  ;;  %s18304_s28 = int_to_ptr.vmem [resolvable:$false] %s18303_s28 }
  0x26   : > { %s18305_s26 = scalar_lea.vmem %s18304_s28, 28672  ;;  %p18306_p10 = scmp.lt.s32.totalorder %s18528_s20, %s18304_s28 }
  0x27   : > { %p18301_p5 = pnand %p18299_p4, %p18287_p11  ;;  %p18307_p12 = scmp.lt.s32.totalorder %s18305_s26, %s18298_s25 }
  0x29   : > { %p18302_p6 = pneg %p18301_p5  ;;  %p18308_p9 = por %p18307_p12, %p18306_p10 }
  0x2b   : > { %p18309_p0 = pnand %p18308_p9, %p18302_p6 }
  0x2d   : > { %18312 = shalt.err (!%p18309_p0)
}
  0x2e   : > { %s18382_s17 = smov 128   ;;  %s18383_s19 = smov 8  }
  0x2f   : > { %17675 = dma.hbm_to_vmem [thread:$0]  (!%p18519_p8), %s18526_s30, 14336, %s18528_s20, %s451_s21, %s18382_s17, %s18382_s17, %s18383_s19  }
  0x30   : > { %p526_p13 = scmp.lt.s32.totalorder %s18379_s18, 3  ;;  %s17660_s22 = smul.u32 448, %s18515_s24 }
  0x31   : > { %p21920_p1 = scmp.ge.s32.totalorder %s18379_s18, 1  ;;  %s17661_s25 = smul.u32 7168, %s18379_s18 }
  0x32   : > { %s482_s3 = scalar_lea.vmem [#allocation6], %s17660_s22  ;;  %s479_s30 = scalar_lea.sflag [#allocation7], %s18515_s24 }
  0x33   : > { %p18562_p9 = pnand %p21920_p1, %p526_p13  ;;  %s18570_s26 = scalar_lea.hbm %s21892_s5, %s17661_s25 }
  0x34   : > { %s489_s14 = sshll.u32 %s482_s3, 4  ;;  %s18313_s20 = scalar_lea.hbm %s18570_s26, 7168  ;;  %s18572_s14 = int_to_ptr.vmem [resolvable:$true] %s489_s14 }
  0x35   : > { %p18314_p2 = scmp.ne.s32.totalorder %s18570_s26, %s18313_s20  ;;  %s18318_s17 = scalar_lea.hbm %s21892_s5, 14336 }
  0x36   : > { %p18319_p5 = scmp.lt.s32.totalorder %s18570_s26, %s21892_s5  ;;  %p18320_p6 = scmp.lt.s32.totalorder %s18318_s17, %s18313_s20 }
  0x37   : > { %p18316_p3 = pnand %p18314_p2, %p18287_p11 }
  0x38   : > { %p18321_p10 = por %p18320_p6, %p18319_p5 }
  0x39   : > { %p18317_p4 = pneg %p18316_p3 }
  0x3b   : > { %p18322_p12 = pnand %p18321_p10, %p18317_p4 }
  0x3d   : > { %18325 = shalt.err (!%p18322_p12)
}
  0x3e   : > { %s18326_s3 = scalar_lea.vmem %s18572_s14, 7168  ;;  %s18384_s22 = smov [#allocation6]  }
  0x3f   : > { %p18327_p0 = scmp.ne.s32.totalorder %s18572_s14, %s18326_s3  ;;  %s18331_s15 = sshll.u32 %s18384_s22, 4  ;;  %s18332_s15 = int_to_ptr.vmem [resolvable:$false] %s18331_s15 }
  0x40   : > { %s18333_s28 = scalar_lea.vmem %s18332_s15, 14336  ;;  %p18334_p2 = scmp.lt.s32.totalorder %s18572_s14, %s18332_s15 }
  0x41   : > { %p18329_p13 = pnand %p18327_p0, %p18287_p11  ;;  %p18335_p3 = scmp.lt.s32.totalorder %s18333_s28, %s18326_s3 }
  0x43   : > { %p18330_p1 = pneg %p18329_p13  ;;  %p18336_p7 = por %p18335_p3, %p18334_p2 }
  0x45   : > { %p18337_p5 = pnand %p18336_p7, %p18330_p1 }
  0x47   : > { %18340 = shalt.err (!%p18337_p5)
}
  0x48   : > { %s18385_s20 = smov 64   ;;  %s18386_s18 = smov 4  }
  0x49   : > { %17678 = dma.hbm_to_vmem [thread:$0]  (!%p18519_p8), %s18570_s26, 7168, %s18572_s14, %s479_s30, %s18385_s20, %s18385_s20, %s18386_s18  }
  0x4a   : > { %530 = sbr.rel (%p18562_p9) target bundleno = 20869 (0x5185), region = 76 }
  0x4f   : > { %s532_s21 = sand.u32 1, %s18371_s16   ;;  %p21922_p7 = scmp.ne.s32.totalorder %s21917_s23, 0 }
  0x50   : > { %s17662_s17 = smul.u32 896, %s532_s21  ;;  %s533_s19 = scalar_lea.sflag [#allocation5], %s532_s21 }
  0x52   : > { %s18602_s25 = scalar_lea.vmem [#allocation4], %s17662_s17 }
  0x53   : > { %18358 = dma.done.wait (%p21922_p7), %s533_s19, 14336  }
  0x54   : > { %18360 = vsyncadd (%p21922_p7), %s533_s19, 4294952960  ;;  %s17663_s3 = smul.u32 448, %s532_s21  ;;  %s542_s27 = scalar_lea.sflag [#allocation7], %s532_s21 }
  0x56   : > { %s18608_s24 = scalar_lea.vmem [#allocation6], %s17663_s3 }
  0x57   : > { %18362 = dma.done.wait (%p21922_p7), %s542_s27, 7168  }
  0x58   : > { %18364 = vsyncadd (%p21922_p7), %s542_s27, 4294960128  ;;  %v21906_v1 = vmov 0   ;;  %p625_p8 = scmp.lt.s32.totalorder %s18493_s13, 1  ;;  %v18388_v2 = vmov 1983009808   ;;  %v678_v4 = vlaneseq  ;;  %vm18390_vm0 = vmmov 0  }
  0x59   : > { %945 = vmatprep.mubr.bf16.mxu0 %v21906_v1  ;;  %v676_v3 = vunpack.c.l.s4 %v18388_v2  ;;  %v17725_v5 = vld [vmem:[%s18602_s25 + $0x74] ss:$8 sps:$4 sm:$0xff]   ;;  %v17727_v6 = vld [vmem:[%s18602_s25 + $0x70] ss:$8 sps:$4 sm:$0xff]   ;;  %v17728_v7 = vld [vmem:[%s18602_s25 + $0x64] ss:$8 sps:$4 sm:$0xff]  }
  0x5a   : > { %s18618_s14 = scalar_select %p625_p8, %s18493_s13, 1  ;;  %913 = vmatprep.subr.bf16.mxu0 %v17725_v5  ;;  %v17730_v8 = vld [vmem:[%s18602_s25 + $0x60] ss:$8 sps:$4 sm:$0xff]   ;;  %v18623_v10 = vshrl.u32 %v678_v4, 7  ;;  %v17731_v11 = vld [vmem:[%s18602_s25 + $0x54] ss:$8 sps:$4 sm:$0xff]  }
  0x5b   : > { %914 = vmatpush1.bf16.msra.mxu0 %v17727_v6  ;;  %v677_v9 = vunpack.c.0.s8 %v676_v3  ;;  %v17733_v12 = vld [vmem:[%s18602_s25 + $0x50] ss:$8 sps:$4 sm:$0xff]   ;;  %v17734_v14 = vld [vmem:[%s18602_s25 + $0x44] ss:$8 sps:$4 sm:$0xff]   ;;  %v17736_v16 = vld [vmem:[%s18602_s25 + $0x40] ss:$8 sps:$4 sm:$0xff]  }
  0x5c   : > { %915 = vmatprep.subr.bf16.mxu0 %v17728_v7  ;;  %s16364_s23 = sshll.u32 %s18618_s14, 5  ;;  %s17664_s22 = smul.u32 448, %s18618_s14  ;;  %v17737_v21 = vld [vmem:[%s18602_s25 + $0x34] ss:$8 sps:$4 sm:$0xff]   ;;  %v17739_v24 = vld [vmem:[%s18602_s25 + $0x30] ss:$8 sps:$4 sm:$0xff]  }
  0x5d   : > { %s629_s30 = scalar_lea.vmem %s21887_s0, %s16364_s23  ;;  %v18632_v13 = vsub.s32 %v677_v9, %v18623_v10  ;;  %v17740_v27 = vld [vmem:[%s18602_s25 + $0x24] ss:$8 sps:$4 sm:$0xff]   ;;  %v17742_v34 = vld [vmem:[%s18602_s25 + $0x20] ss:$8 sps:$4 sm:$0xff]   ;;  %v17743_v36 = vld [vmem:[%s18602_s25 + $0x14] ss:$8 sps:$4 sm:$0xff]  }
  0x5e   : > { %v661_v15 = vld [vmem:[%s629_s30] sm:$0xff]  ;;  %v662_v17 = vld [vmem:[%s629_s30 + $0x8] sm:$0x3f]  ;;  %v663_v18 = vld [vmem:[%s629_s30 + $0x10] sm:$0xff]  ;;  %s18648_s20 = scalar_lea.vmem %s21888_s1, %s17664_s22  ;;  %s16365_s18 = sshll.u32 %s18618_s14, 6  ;;  %v21908_v2 = vmov 0.0  }
  0x5f   : > { %916 = vmatpush1.bf16.msra.mxu0 %v17730_v8  ;;  %v674_v19 = vcombine.high %v661_v15, %v661_v15  ;;  %v681_v20 = vrot.slane %v661_v15, %v18632_v13  ;;  %v691_v22 = vcombine.high %v662_v17, %v662_v17  ;;  %v698_v23 = vrot.slane %v662_v17, %v18632_v13  ;;  %v664_v33 = vld [vmem:[%s629_s30 + $0x18] sm:$0x3f]  ;;  %v17746_v46 = vld [vmem:[%s18602_s25 + $0x4] ss:$8 sps:$4 sm:$0xff]   ;;  %v17748_v51 = vld [vmem:[%s18602_s25] ss:$8 sps:$4 sm:$0xff]   ;;  %s18676_s19 = scalar_lea.vmem %s21895_s8, %s16365_s18 }
  0x60   : > { %917 = vmatprep.subr.bf16.mxu0 %v17731_v11  ;;  %v707_v26 = vcombine.high %v663_v18, %v663_v18  ;;  %v714_v31 = vrot.slane %v663_v18, %v18632_v13  ;;  %v17745_v41 = vld [vmem:[%s18602_s25 + $0x10] ss:$8 sps:$4 sm:$0xff]   ;;  %v724_v44 = vcombine.high %v664_v33, %v664_v33  ;;  %v731_v45 = vrot.slane %v664_v33, %v18632_v13  ;;  %s17666_s3 = smul.u32 14, %s18618_s14  ;;  %s18391_s28 = smov 96  }
  0x61   : > { %v688_v25 = vrot.slane %v674_v19, %v18632_v13  ;;  %v689_v28 = vcombine.high %v681_v20, %v681_v20  ;;  %v705_v29 = vrot.slane %v691_v22, %v18632_v13  ;;  %v706_v30 = vcombine.high %v698_v23, %v698_v23  ;;  %16716 = vmatprep.subr.bf16.mxu1 %v21908_v2  ;;  %s17667_s26 = smul.u32 24, %s18618_s14  ;;  %s18392_s18 = smov 64  }
  0x62   : > { %v721_v35 = vrot.slane %v707_v26, %v18632_v13  ;;  %v722_v42 = vcombine.high %v714_v31, %v714_v31  ;;  %v738_v52 = vrot.slane %v724_v44, %v18632_v13  ;;  %v739_v53 = vcombine.high %v731_v45, %v731_v45  ;;  %16718 = vmatprep.mubr.msk.bf16.mxu1 %vm18390_vm0, %v21908_v2  ;;  %s18688_s29 = scalar_lea.vmem %s21891_s4, %s17666_s3  ;;  %s18393_s21 = smov 32  }
  0x63   : > { %918 = vmatpush1.bf16.msra.mxu0 %v17733_v12  ;;  %v690_v32 = vcombine.high %v688_v25, %v688_v25  ;;  %v740_v37 = vcombine.low %v681_v20, %v689_v28  ;;  %v757_v39 = vcombine.low %v698_v23, %v706_v30  ;;  %v758_v40 = vcombine.low %v705_v29, %v714_v31  ;;  %v821_v4 = vld [vmem:[%s18688_s29] sm:$0x3]  ;;  %s18728_s15 = scalar_lea.vmem %s21894_s7, %s17667_s26  ;;  %s17665_s17 = smul.u32 7, %s18618_s14 }
  0x64   : > { %919 = vmatprep.subr.bf16.mxu0 %v17734_v14  ;;  %v723_v43 = vcombine.high %v721_v35, %v721_v35  ;;  %v774_v56 = vcombine.low %v722_v42, %v721_v35  ;;  %v791_v61 = vcombine.low %v739_v53, %v738_v52  ;;  %v18691_v3 = vsub.s32 0, %v18623_v10  ;;  %p16355_p11 = scmp.ne.s32.totalorder %s18493_s13, 0 }
  0x65   : > { %v741_v38 = vcombine.low %v688_v25, %v690_v32  ;;  %v748_v47 = vrot.slane %v740_v37, %v18632_v13  ;;  %v765_v49 = vrot.slane %v757_v39, %v18632_v13  ;;  %v772_v50 = vrot.slane %v758_v40, %v18632_v13  ;;  %s19002_s23 = scalar_lea.vmem %s21893_s6, %s17665_s17  ;;  %s19024_s22 = scalar_lea.vmem %s21889_s2, %s17665_s17 }
  0x66   : > { %v775_v57 = vcombine.low %v723_v43, %v731_v45  ;;  %v782_v59 = vrot.slane %v774_v56, %v18632_v13  ;;  %v798_v63 = vrot.slane %v791_v61, %v18632_v13  ;;  %v826_v5 = vrot.slane %v821_v4, %v18691_v3 }
  0x67   : > { %920 = vmatpush1.bf16.msra.mxu0 %v17736_v16  ;;  %v755_v48 = vrot.slane %v741_v38, %v18632_v13  ;;  %v773_v55 = vcombine.low %v765_v49, %v772_v50  ;;  %v18696_v6 = vsub.s32 1, %v18623_v10  ;;  %vm1237_vm1 = vcmask 261120  }
  0x68   : > { %921 = vmatprep.subr.bf16.mxu0 %v17737_v21  ;;  %v789_v60 = vrot.slane %v775_v57, %v18632_v13  ;;  %vm1358_vm2 = vcmask 1046528   ;;  %vm1329_vm3 = vcmask 111616   ;;  %vm1354_vm4 = vcmask 113664  }
  0x69   : > { %v756_v54 = vcombine.low %v748_v47, %v755_v48  ;;  %21923 = vst [vmem:[#allocation13_spill] sm:$0xff] %v18696_v6  ;;  %v830_v9 = vrot.slane %v821_v4, %v18696_v6  ;;  %vm2138_vm5 = vcmask 523264   ;;  %vm2141_vm6 = vcmask 785408  }
  0x6a   : > { %v790_v62 = vcombine.low %v782_v59, %v789_v60  ;;  %vm3098_vm7 = vcmask 1042432   ;;  %vm3047_vm8 = vcmask 48128   ;;  %vm3051_vm9 = vcmask 46080  }
  0x6b   : > { %922 = vmatpush1.bf16.msra.mxu0 %v17739_v24  ;;  %v18662_v58 = vpack.c.bf16 %v773_v55, %v756_v54  ;;  %vm15359_vm10 = vcmask 521216  }
  0x6c   : > { %923 = vmatprep.subr.bf16.mxu0 %v17740_v27  ;;  %v18669_v0 = vpack.c.bf16 %v798_v63, %v790_v62 }
  0x6f   : > { %924 = vmatpush1.bf16.msra.mxu0 %v17742_v34 }
  0x70   : > { %925 = vmatprep.subr.bf16.mxu0 %v17743_v36 }
  0x73   : > { %926 = vmatpush1.bf16.msra.mxu0 %v17745_v41 }
  0x74   : > { %927 = vmatprep.subr.bf16.mxu0 %v17746_v46 }
  0x77   : > { %928 = vmatpush1.bf16.msra.mxu0 %v17748_v51 }
  0x78   : > { %16746 = vmatprep.subr.bf16.mxu0 %v21908_v2 }
  0x7a   : > { %946 = vmatmul.mubr.bf16.vlgmr.msra.gmra.mxu0 %v18662_v58 }
  0x7b   : > { %955 = vmatprep.mubr.bf16.mxu0 %v21906_v1 }
  0x82   : > { %956 = vmatmul.mubr.bf16.gmra.mxu0 %v18669_v0 }
  0x83   : > { %16748 = vmatprep.mubr.msk.bf16.mxu0 %vm18390_vm0, %v21908_v2 }
 0x13a   : > { %v947_v7 = vpop.f32.mrf.mxu0 }
 0x13b   : > { %v948_v8 = vadd.f32 %v947_v7, %v826_v5 }
 0x13c   : > { %v949_v11 = vpop.f32.mrf.mxu0 }
 0x13d   : > { %v970_v12 = vcombine.high %v948_v8, %v948_v8  ;;  %v977_v14 = vrot.slane %v948_v8, %v18632_v13  ;;  %v950_v17 = vadd.f32 %v949_v11, %v830_v9 }
 0x13e   : > { %v951_v15 = vpop.f32.mrf.mxu0 }
 0x13f   : > { %v984_v16 = vrot.slane %v970_v12, %v18632_v13  ;;  %v952_v18 = vadd.f32 %v951_v15, %v826_v5  ;;  %v985_v21 = vcombine.high %v977_v14, %v977_v14  ;;  %v1033_v25 = vcombine.high %v950_v17, %v950_v17 }
 0x140   : > { %v953_v19 = vpop.f32.mrf.mxu0  ;;  %v18704_v31 = vrot.slane %v950_v17, %v18632_v13 }
 0x141   : > { %v986_v20 = vcombine.high %v984_v16, %v984_v16  ;;  %v987_v22 = vcombine.high %v952_v18, %v952_v18  ;;  %v994_v10 = vrot.slane %v952_v18, %v18632_v13  ;;  %v954_v23 = vadd.f32 %v953_v19, %v830_v9 }
 0x142   : > { %v957_v24 = vpop.f32.mrf.mxu0  ;;  %v1093_v33 = vcombine.low %v977_v14, %v985_v21  ;;  %v1047_v37 = vrot.slane %v1033_v25, %v18632_v13  ;;  %v1048_v44 = vcombine.high %v18704_v31, %v18704_v31  ;;  %v18737_v21 = vld [vmem:[%s18728_s15] sm:$0x3f] }
 0x143   : > { %v1094_v26 = vcombine.low %v984_v16, %v986_v20  ;;  %v1001_v27 = vrot.slane %v987_v22, %v18632_v13  ;;  %v1002_v28 = vcombine.high %v994_v10, %v994_v10  ;;  %v1050_v29 = vcombine.high %v954_v23, %v954_v23 }
 0x144   : > { %v959_v30 = vpop.f32.mrf.mxu0  ;;  %v958_v32 = vadd.f32 %v957_v24, %v826_v5  ;;  %v1057_v38 = vrot.slane %v954_v23, %v18632_v13  ;;  %v1101_v49 = vrot.slane %v1093_v33, %v18632_v13  ;;  %v1049_v8 = vcombine.high %v1047_v37, %v1047_v37 }
 0x145   : > { %v1110_v34 = vcombine.low %v994_v10, %v1002_v28  ;;  %v18707_v35 = vrot.slane %v1050_v29, %v18632_v13  ;;  %v1108_v40 = vrot.slane %v1094_v26, %v18632_v13  ;;  %v1124_v42 = vrot.slane %v1001_v27, %v18632_v13 }
 0x146   : > { %v961_v36 = vpop.f32.mrf.mxu0  ;;  %v1004_v39 = vcombine.high %v958_v32, %v958_v32  ;;  %v1011_v43 = vrot.slane %v958_v32, %v18632_v13  ;;  %v960_v46 = vadd.f32 %v959_v30, %v830_v9  ;;  %v1003_v51 = vcombine.high %v1001_v27, %v1001_v27 }
 0x147   : > { %v1117_v41 = vrot.slane %v1110_v34, %v18632_v13  ;;  %v1066_v47 = vcombine.high %v18707_v35, %v18707_v35  ;;  %v1065_v53 = vcombine.high %v1057_v38, %v1057_v38  ;;  %v962_v56 = vadd.f32 %v961_v36, %v826_v5 }
 0x148   : > { %v1018_v45 = vrot.slane %v1004_v39, %v18632_v13  ;;  %v963_v48 = vpop.f32.mrf.mxu0  ;;  %v1019_v52 = vcombine.high %v1011_v43, %v1011_v43  ;;  %v1067_v54 = vcombine.high %v960_v46, %v960_v46  ;;  %v1074_v55 = vrot.slane %v960_v46, %v18632_v13 }
 0x149   : > { %v1125_v50 = vcombine.low %v1117_v41, %v1124_v42  ;;  %v1109_v57 = vcombine.low %v1101_v49, %v1108_v40  ;;  %v964_v61 = vadd.f32 %v963_v48, %v830_v9  ;;  %v1027_v7 = vrot.slane %v962_v56, %v18632_v13 }
 0x14a   : > { %v1127_v59 = vcombine.low %v1019_v52, %v1018_v45  ;;  %v1020_v60 = vcombine.high %v1018_v45, %v1018_v45  ;;  %v1081_v62 = vrot.slane %v1067_v54, %v18632_v13  ;;  %v1082_v63 = vcombine.high %v1074_v55, %v1074_v55 }
 0x14b   : > { %v1198_v4 = vcombine.low %v1066_v47, %v1074_v55  ;;  %v1126_v11 = vcombine.low %v1003_v51, %v1011_v43  ;;  %v1090_v5 = vrot.slane %v964_v61, %v18632_v13  ;;  %v18731_v12 = vpack.c.bf16 %v1125_v50, %v1109_v57 }
 0x14c   : > { %v1182_v14 = vcombine.low %v1057_v38, %v1065_v53  ;;  %v1083_v9 = vcombine.high %v1081_v62, %v1081_v62  ;;  %v1199_v15 = vcombine.low %v1082_v63, %v1081_v62  ;;  %v1028_v16 = vcombine.high %v1027_v7, %v1027_v7 }
 0x14d   : > { %v1141_v17 = vrot.slane %v1127_v59, %v18632_v13  ;;  %v1143_v18 = vcombine.low %v1020_v60, %v1027_v7  ;;  %v1091_v19 = vcombine.high %v1090_v5, %v1090_v5  ;;  %v1242_v20 = vsel %vm1237_vm1, %v18731_v12, 0 }
 0x14e   : > { %v1206_v22 = vrot.slane %v1198_v4, %v18632_v13  ;;  %v1213_v10 = vrot.slane %v1199_v15, %v18632_v13  ;;  %v1157_v23 = vrot.slane %v1028_v16, %v18632_v13  ;;  %v1215_v24 = vcombine.low %v1083_v9, %v1090_v5  ;;  %16717 = vmatpush3.bf16.xpose.msra.mxu1 %v1242_v20 }
 0x14f   : > { %v1166_v25 = vcombine.low %v1047_v37, %v1049_v8  ;;  %v1134_v26 = vrot.slane %v1126_v11, %v18632_v13  ;;  %v1150_v27 = vrot.slane %v1143_v18, %v18632_v13  ;;  %v1229_v28 = vrot.slane %v1091_v19, %v18632_v13  ;;  %16722 = vmatprep.subr.bf16.mxu1 %v21908_v2 }
 0x150   : > { %v1214_v29 = vcombine.low %v1206_v22, %v1213_v10  ;;  %v1222_v30 = vrot.slane %v1215_v24, %v18632_v13  ;;  %v18749_v32 = vpack.c.bf16 %v18737_v21, %v18737_v21  ;;  %v1165_v33 = vcombine.low %v18704_v31, %v1048_v44 }
 0x151   : > { %v1189_v34 = vrot.slane %v1182_v14, %v18632_v13  ;;  %v1142_v36 = vcombine.low %v1134_v26, %v1141_v17  ;;  %v1158_v37 = vcombine.low %v1150_v27, %v1157_v23  ;;  %v1180_v39 = vrot.slane %v1166_v25, %v18632_v13 }
 0x152   : > { %v1230_v38 = vcombine.low %v1222_v30, %v1229_v28  ;;  %v1196_v40 = vrot.slane %v18707_v35, %v18632_v13  ;;  %v1173_v43 = vrot.slane %v1165_v33, %v18632_v13 }
 0x153   : > { %v18756_v41 = vpack.c.bf16 %v1158_v37, %v1142_v36 }
 0x154   : > { %v18758_v42 = vpack.c.bf16 %v1230_v38, %v1214_v29  ;;  %v1197_v45 = vcombine.low %v1189_v34, %v1196_v40  ;;  %v1181_v44 = vcombine.low %v1173_v43, %v1180_v39 }
 0x155   : > { %16719 = vmatmul.mubr.msk.bf16.vlgmr.msra.gmra.mxu1 %vm1237_vm1, %v18749_v32  ;;  %v1285_v31 = vsel %vm1237_vm1, %v18756_v41, 0 }
 0x156   : > { %16723 = vmatpush3.bf16.xpose.msra.mxu1 %v1285_v31  ;;  %16724 = vmatprep.mubr.msk.bf16.mxu1 %vm18390_vm0, %v21908_v2  ;;  %v18768_v35 = vpack.c.bf16 %v1197_v45, %v1181_v44  ;;  %v1406_v10 = vsel %vm1358_vm2, %v18758_v42, 0 }
 0x157   : > { %16728 = vmatprep.subr.bf16.mxu1 %v21908_v2 }
 0x158   : > { %v1360_v46 = vsel %vm1358_vm2, %v18768_v35, 0 }
 0x15d   : > { %16725 = vmatmul.mubr.msk.bf16.vlgmr.msra.gmra.mxu1 %vm1237_vm1, %v18749_v32 }
 0x15e   : > { %16729 = vmatpush3.bf16.msra.mxu1 %v1360_v46  ;;  %16730 = vmatprep.mubr.msk.bf16.mxu1 %vm18390_vm0, %v21908_v2 }
 0x15f   : > { %16734 = vmatprep.subr.bf16.mxu1 %v21908_v2 }
 0x215   : > { %v1278_v47 = vpop.f32.mrf.mxu1 }
 0x216   : > { %v1327_v48 = vmul.f32 0.088388346, %v1278_v47 }
 0x217   : > { %v16720_v49 = vpop.f32.mrf.mxu1 }
 0x218   : > { %v1330_v50 = vsel %vm1329_vm3, %v1327_v48, -inf }
 0x219   : > { %1331 = vmax.xlane.f32.xlu0 %v1330_v50  ;;  %v1281_v51 = vpop.f32.mrf.mxu1 }
 0x21b   : > { %v16721_v52 = vpop.f32.mrf.mxu1 }
 0x21d   : > { %v1321_v53 = vpop.f32.mrf.mxu1 }
 0x21e   : > { %v1328_v54 = vmul.f32 0.088388346, %v1321_v53 }
 0x21f   : > { %v16726_v55 = vpop.f32.mrf.mxu1 }
 0x220   : > { %v1333_v56 = vsel %vm1329_vm3, %v1328_v54, -inf }
 0x221   : > { %1334 = vmax.xlane.f32.xlu0 %v1333_v56  ;;  %v1324_v57 = vpop.f32.mrf.mxu1 }
 0x223   : > { %v16727_v59 = vpop.f32.mrf.mxu1 }
 0x237   : > { %1454 = vrot.lane.b32.xlu0 %v18731_v12, %s18391_s28 }
 0x2a2   : > { %v1332_v60 = vpop.xlane.xlu0 %1331 }
 0x2a3   : > { %v1336_v61 = vsub.f32 %v1327_v48, %v1332_v60 }
 0x2a5   : > { %v1338_v62 = vmul.f32 1.442695, %v1336_v61 }
 0x2a7   : > { %17993 = vpow2.f32 %v1338_v62 }
 0x2aa   : > { %v1335_v63 = vpop.xlane.xlu0 %1334 }
 0x2ab   : > { %v1337_v4 = vsub.f32 %v1328_v54, %v1335_v63 }
 0x2ad   : > { %v1340_v7 = vmul.f32 1.442695, %v1337_v4 }
 0x2ae   : > { %v1455_v25 = vpop.permute.xlu0 %1454 }
 0x2af   : > { %17995 = vpow2.f32 %v1340_v7  ;;  %v1460_v27 = vsel %vm1237_vm1, %v1455_v25, 0 }
 0x2b4   : > { %v17994_v8 = vpop.eup %17993 }
 0x2b5   : > { %v1342_v11 = vsel %vm1329_vm3, %v17994_v8, 0.0 }
 0x2b6   : > { %1343 = vadd.xlane.f32.xlu1 %v1342_v11 }
 0x2bc   : > { %v17996_v5 = vpop.eup %17995 }
 0x2bd   : > { %v1345_v14 = vsel %vm1329_vm3, %v17996_v5, 0.0 }
 0x2be   : > { %1346 = vadd.xlane.f32.xlu1 %v1345_v14 }
 0x2cf   : > { %1503 = vrot.lane.b32.xlu1 %v18756_v41, %s18391_s28 }
 0x2d3   : > { %1451 = vrot.lane.b32.xlu1 %v18749_v32, %s18391_s28 }
 0x33f   : > { %v1344_v9 = vpop.xlane.xlu1 %1343 }
 0x340   : > { %17997 = vrcp.f32 %v1344_v9 }
 0x347   : > { %v1347_v15 = vpop.xlane.xlu1 %1346 }
 0x348   : > { %17999 = vrcp.f32 %v1347_v15 }
 0x34b   : > { %v1504_v16 = vpop.permute.xlu1 %1503 }
 0x34c   : > { %v1506_v17 = vsel %vm1237_vm1, %v1504_v16, 0 }
 0x34d   : > { %v17998_v18 = vpop.eup %17997  ;;  %16747 = vmatpush3.bf16.xpose.msra.mxu0 %v1506_v17 }
 0x34e   : > { %v1350_v19 = vmul.f32 %v17998_v18, %v17994_v8  ;;  %16758 = vmatprep.subr.bf16.mxu0 %v21908_v2 }
 0x34f   : > { %v1452_v22 = vpop.permute.xlu1 %1451 }
 0x350   : > { %v1352_v20 = vpack.c.bf16 %v1350_v19, %v1350_v19 }
 0x352   : > { %16731 = vmatmul.mubr.msk.bf16.vlgmr.msra.gmra.mxu1 %vm1354_vm4, %v1352_v20 }
 0x353   : > { %16735 = vmatpush3.bf16.msra.mxu1 %v1406_v10  ;;  %16736 = vmatprep.mubr.msk.bf16.mxu1 %vm18390_vm0, %v21908_v2 }
 0x354   : > { %16749 = vmatmul.mubr.msk.bf16.vlgmr.msra.gmra.mxu0 %vm1237_vm1, %v1452_v22  ;;  %16740 = vmatprep.subr.bf16.mxu1 %v21908_v2 }
 0x355   : > { %v18000_v23 = vpop.eup %17999  ;;  %16760 = vmatprep.mubr.msk.bf16.mxu0 %vm18390_vm0, %v21908_v2 }
 0x356   : > { %v1351_v24 = vmul.f32 %v18000_v23, %v17996_v5 }
 0x358   : > { %v1353_v26 = vpack.c.bf16 %v1351_v24, %v1351_v24 }
 0x35a   : > { %16737 = vmatmul.mubr.msk.bf16.vlgmr.msra.gmra.mxu1 %vm1354_vm4, %v1353_v26 }
 0x35b   : > { %16741 = vmatpush3.bf16.xpose.msra.mxu1 %v1460_v27  ;;  %16742 = vmatprep.mubr.msk.bf16.mxu1 %vm18390_vm0, %v21908_v2 }
 0x35c   : > { %16752 = vmatprep.subr.bf16.mxu1 %v21908_v2 }
 0x362   : > { %16743 = vmatmul.mubr.msk.bf16.vlgmr.msra.gmra.mxu1 %vm1237_vm1, %v1452_v22 }
 0x363   : > { %16754 = vmatprep.mubr.msk.bf16.mxu1 %vm18390_vm0, %v21908_v2 }
 0x412   : > { %v18806_v28 = vpop.f32.mrf.mxu1 }
 0x414   : > { %v16732_v29 = vpop.f32.mrf.mxu1  ;;  %v1542_v30 = vpop.f32.mrf.mxu0 }
 0x415   : > { %v1549_v33 = vmul.f32 0.088388346, %v1542_v30 }
 0x416   : > { %v1399_v34 = vpop.f32.mrf.mxu1  ;;  %v16750_v36 = vpop.f32.mrf.mxu0 }
 0x417   : > { %v1553_v37 = vsel %vm1329_vm3, %v1549_v33, -inf }
 0x418   : > { %1554 = vmax.xlane.f32.xlu0 %v1553_v37  ;;  %v16733_v38 = vpop.f32.mrf.mxu1  ;;  %v1545_v39 = vpop.f32.mrf.mxu0 }
 0x41a   : > { %v18809_v40 = vpop.f32.mrf.mxu1  ;;  %v16751_v43 = vpop.f32.mrf.mxu0 }
 0x41c   : > { %v16738_v45 = vpop.f32.mrf.mxu1 }
 0x41e   : > { %v1445_v31 = vpop.f32.mrf.mxu1 }
 0x420   : > { %v16739_v44 = vpop.f32.mrf.mxu1 }
 0x422   : > { %v1496_v46 = vpop.f32.mrf.mxu1 }
 0x423   : > { %v1548_v47 = vmul.f32 0.088388346, %v1496_v46 }
 0x424   : > { %v16744_v48 = vpop.f32.mrf.mxu1 }
 0x425   : > { %v1550_v49 = vsel %vm1329_vm3, %v1548_v47, -inf }
 0x426   : > { %1551 = vmax.xlane.f32.xlu1 %v1550_v49  ;;  %v1499_v50 = vpop.f32.mrf.mxu1 }
 0x428   : > { %v16745_v51 = vpop.f32.mrf.mxu1 }
 0x437   : > { %1575 = vrot.lane.b32.xlu1 %v18768_v35, %s18391_s28 }
 0x43b   : > { %1684 = vrot.lane.b32.xlu1 %v18731_v12, %s18392_s18 }
 0x43f   : > { %1732 = vrot.lane.b32.xlu1 %v18756_v41, %s18392_s18 }
 0x443   : > { %1682 = vrot.lane.b32.xlu1 %v18749_v32, %s18392_s18 }
 0x4a1   : > { %v1555_v52 = vpop.xlane.xlu0 %1554 }
 0x4a2   : > { %v1557_v53 = vsub.f32 %v1549_v33, %v1555_v52 }
 0x4a4   : > { %v1560_v54 = vmul.f32 1.442695, %v1557_v53 }
 0x4a6   : > { %18001 = vpow2.f32 %v1560_v54 }
 0x4af   : > { %v1552_v55 = vpop.xlane.xlu1 %1551 }
 0x4b0   : > { %v1556_v56 = vsub.f32 %v1548_v47, %v1552_v55 }
 0x4b2   : > { %v1558_v57 = vmul.f32 1.442695, %v1556_v56 }
 0x4b3   : > { %v18002_v59 = vpop.eup %18001  ;;  %v1576_v60 = vpop.permute.xlu1 %1575 }
 0x4b4   : > { %18003 = vpow2.f32 %v1558_v57  ;;  %v1581_v61 = vsel %vm1358_vm2, %v1576_v60, 0  ;;  %v1565_v62 = vsel %vm1329_vm3, %v18002_v59, 0.0 }
 0x4b5   : > { %1566 = vadd.xlane.f32.xlu0 %v1565_v62  ;;  %16753 = vmatpush3.bf16.msra.mxu1 %v1581_v61 }
 0x4b6   : > { %16764 = vmatprep.subr.bf16.mxu1 %v21908_v2 }
 0x4b7   : > { %v1685_v11 = vpop.permute.xlu1 %1684 }
 0x4b8   : > { %v1690_v23 = vsel %vm1237_vm1, %v1685_v11, 0 }
 0x4bb   : > { %v1733_v16 = vpop.permute.xlu1 %1732 }
 0x4bc   : > { %v1735_v18 = vsel %vm1237_vm1, %v1733_v16, 0 }
 0x4bf   : > { %v1683_v20 = vpop.permute.xlu1 %1682 }
 0x4c1   : > { %v18004_v63 = vpop.eup %18003 }
 0x4c2   : > { %v1562_v4 = vsel %vm1329_vm3, %v18004_v63, 0.0 }
 0x4c3   : > { %1563 = vadd.xlane.f32.xlu0 %v1562_v4 }
 0x4d9   : > { %1624 = vrot.lane.b32.xlu0 %v18758_v42, %s18391_s28 }
 0x53e   : > { %v1567_v7 = vpop.xlane.xlu0 %1566 }
 0x53f   : > { %18005 = vrcp.f32 %v1567_v7 }
 0x54c   : > { %v18006_v8 = vpop.eup %18005  ;;  %v1564_v5 = vpop.xlane.xlu0 %1563 }
 0x54d   : > { %18007 = vrcp.f32 %v1564_v5  ;;  %v1571_v14 = vmul.f32 %v18006_v8, %v18002_v59 }
 0x54f   : > { %v1573_v17 = vpack.c.bf16 %v1571_v14, %v1571_v14 }
 0x550   : > { %v1625_v9 = vpop.permute.xlu0 %1624 }
 0x551   : > { %v1630_v15 = vsel %vm1358_vm2, %v1625_v9, 0 }
 0x552   : > { %16759 = vmatpush3.bf16.msra.mxu0 %v1630_v15 }
 0x553   : > { %16770 = vmatprep.subr.bf16.mxu0 %v21908_v2 }
 0x555   : > { %16761 = vmatmul.mubr.msk.bf16.vlgmr.msra.gmra.mxu0 %vm1354_vm4, %v1573_v17 }
 0x556   : > { %16771 = vmatpush3.bf16.xpose.msra.mxu0 %v1735_v18  ;;  %16772 = vmatprep.mubr.msk.bf16.mxu0 %vm18390_vm0, %v21908_v2 }
 0x557   : > { %16782 = vmatprep.subr.bf16.mxu0 %v21908_v2 }
 0x55a   : > { %v18008_v19 = vpop.eup %18007 }
 0x55b   : > { %v1570_v22 = vmul.f32 %v18008_v19, %v18004_v63 }
 0x55d   : > { %16773 = vmatmul.mubr.msk.bf16.vlgmr.msra.gmra.mxu0 %vm1237_vm1, %v1683_v20  ;;  %v1572_v10 = vpack.c.bf16 %v1570_v22, %v1570_v22 }
 0x55e   : > { %16784 = vmatprep.mubr.msk.bf16.mxu0 %vm18390_vm0, %v21908_v2 }
 0x55f   : > { %16755 = vmatmul.mubr.msk.bf16.vlgmr.msra.gmra.mxu1 %vm1354_vm4, %v1572_v10 }
 0x560   : > { %16765 = vmatpush3.bf16.xpose.msra.mxu1 %v1690_v23  ;;  %16766 = vmatprep.mubr.msk.bf16.mxu1 %vm18390_vm0, %v21908_v2 }
 0x561   : > { %16776 = vmatprep.subr.bf16.mxu1 %v21908_v2 }
 0x567   : > { %16767 = vmatmul.mubr.msk.bf16.vlgmr.msra.gmra.mxu1 %vm1237_vm1, %v1683_v20 }
 0x568   : > { %16778 = vmatprep.mubr.msk.bf16.mxu1 %vm18390_vm0, %v21908_v2 }
 0x615   : > { %v18844_v24 = vpop.f32.mrf.mxu0 }
 0x617   : > { %v16762_v25 = vpop.f32.mrf.mxu0 }
 0x619   : > { %v1669_v26 = vpop.f32.mrf.mxu0 }
 0x61b   : > { %v16763_v27 = vpop.f32.mrf.mxu0 }
 0x61d   : > { %v1771_v29 = vpop.f32.mrf.mxu0 }
 0x61e   : > { %v1778_v30 = vmul.f32 0.088388346, %v1771_v29 }
 0x61f   : > { %v18846_v33 = vpop.f32.mrf.mxu1  ;;  %v16774_v34 = vpop.f32.mrf.mxu0 }
 0x620   : > { %v1782_v36 = vsel %vm1329_vm3, %v1778_v30, -inf }
 0x621   : > { %1783 = vmax.xlane.f32.xlu1 %v1782_v36  ;;  %v16756_v37 = vpop.f32.mrf.mxu1  ;;  %v1774_v38 = vpop.f32.mrf.mxu0 }
 0x623   : > { %v1620_v39 = vpop.f32.mrf.mxu1  ;;  %v16775_v43 = vpop.f32.mrf.mxu0 }
 0x625   : > { %v16757_v45 = vpop.f32.mrf.mxu1 }
 0x627   : > { %v1726_v31 = vpop.f32.mrf.mxu1 }
 0x628   : > { %v1777_v44 = vmul.f32 0.088388346, %v1726_v31 }
 0x629   : > { %v16768_v46 = vpop.f32.mrf.mxu1 }
 0x62a   : > { %v1779_v47 = vsel %vm1329_vm3, %v1777_v44, -inf }
 0x62b   : > { %1780 = vmax.xlane.f32.xlu0 %v1779_v47  ;;  %v1729_v48 = vpop.f32.mrf.mxu1 }
 0x62d   : > { %v16769_v49 = vpop.f32.mrf.mxu1 }
 0x632   : > { %1851 = vrot.lane.b32.xlu1 %v18758_v42, %s18392_s18 }
 0x636   : > { %1911 = vrot.lane.b32.xlu1 %v18731_v12, %s18393_s21 }
 0x63a   : > { %1959 = vrot.lane.b32.xlu1 %v18756_v41, %s18393_s21 }
 0x6aa   : > { %v1784_v50 = vpop.xlane.xlu1 %1783 }
 0x6ab   : > { %v1786_v51 = vsub.f32 %v1778_v30, %v1784_v50 }
 0x6ad   : > { %v1789_v52 = vmul.f32 1.442695, %v1786_v51 }
 0x6ae   : > { %v1852_v53 = vpop.permute.xlu1 %1851 }
 0x6af   : > { %18009 = vpow2.f32 %v1789_v52  ;;  %v1857_v54 = vsel %vm1358_vm2, %v1852_v53, 0 }
 0x6b0   : > { %16783 = vmatpush3.bf16.msra.mxu0 %v1857_v54 }
 0x6b1   : > { %16794 = vmatprep.subr.bf16.mxu0 %v21908_v2 }
 0x6b2   : > { %v1912_v62 = vpop.permute.xlu1 %1911 }
 0x6b3   : > { %v1917_v18 = vsel %vm1237_vm1, %v1912_v62, 0 }
 0x6b4   : > { %v1781_v55 = vpop.xlane.xlu0 %1780 }
 0x6b5   : > { %v1785_v56 = vsub.f32 %v1777_v44, %v1781_v55 }
 0x6b6   : > { %v1960_v5 = vpop.permute.xlu1 %1959 }
 0x6b7   : > { %v1787_v57 = vmul.f32 1.442695, %v1785_v56  ;;  %v1962_v9 = vsel %vm1237_vm1, %v1960_v5, 0  ;;  %v17757_v5 = vld [vmem:[%s18608_s24 + $0x18] sm:$0xff]  }
 0x6b9   : > { %18011 = vpow2.f32 %v1787_v57 }
 0x6bc   : > { %v18010_v59 = vpop.eup %18009 }
 0x6bd   : > { %v1794_v12 = vsel %vm1329_vm3, %v18010_v59, 0.0 }
 0x6be   : > { %1795 = vadd.xlane.f32.xlu0 %v1794_v12 }
 0x6c6   : > { %v18012_v60 = vpop.eup %18011 }
 0x6c7   : > { %v1791_v41 = vsel %vm1329_vm3, %v18012_v60, 0.0 }
 0x6c8   : > { %1792 = vadd.xlane.f32.xlu0 %v1791_v41 }
 0x6de   : > { %1803 = vrot.lane.b32.xlu0 %v18768_v35, %s18392_s18 }
 0x6e2   : > { %1909 = vrot.lane.b32.xlu0 %v18749_v32, %s18393_s21 }
 0x747   : > { %v1796_v61 = vpop.xlane.xlu0 %1795 }
 0x748   : > { %18013 = vrcp.f32 %v1796_v61 }
 0x751   : > { %v1793_v63 = vpop.xlane.xlu0 %1792 }
 0x752   : > { %18015 = vrcp.f32 %v1793_v63 }
 0x755   : > { %v18014_v4 = vpop.eup %18013  ;;  %v1804_v7 = vpop.permute.xlu0 %1803 }
 0x756   : > { %v1809_v8 = vsel %vm1358_vm2, %v1804_v7, 0  ;;  %v1800_v11 = vmul.f32 %v18014_v4, %v18010_v59  ;;  %v17753_v4 = vld [vmem:[%s18608_s24 + $0x38] sm:$0xff]   ;;  %v17754_v7 = vld [vmem:[%s18608_s24 + $0x30] sm:$0xff]  }
 0x757   : > { %16777 = vmatpush3.bf16.msra.mxu1 %v1809_v8  ;;  %v17755_v8 = vld [vmem:[%s18608_s24 + $0x28] sm:$0xff]  }
 0x758   : > { %v1802_v14 = vpack.c.bf16 %v1800_v11, %v1800_v11  ;;  %16788 = vmatprep.subr.bf16.mxu1 %v21908_v2 }
 0x759   : > { %v1910_v15 = vpop.permute.xlu0 %1909 }
 0x75a   : > { %16785 = vmatmul.mubr.msk.bf16.vlgmr.msra.gmra.mxu0 %vm1354_vm4, %v1802_v14 }
 0x75b   : > { %16795 = vmatpush3.bf16.xpose.msra.mxu0 %v1962_v9  ;;  %16796 = vmatprep.mubr.msk.bf16.mxu0 %vm18390_vm0, %v21908_v2 }
 0x75c   : > { %16806 = vmatprep.subr.bf16.mxu0 %v21908_v2 }
 0x75f   : > { %v18016_v32 = vpop.eup %18015 }
 0x760   : > { %v1799_v16 = vmul.f32 %v18016_v32, %v18012_v60  ;;  %v17758_v32 = vld [vmem:[%s18608_s24 + $0x10] sm:$0xff]  }
 0x762   : > { %16797 = vmatmul.mubr.msk.bf16.vlgmr.msra.gmra.mxu0 %vm1237_vm1, %v1910_v15  ;;  %v1801_v17 = vpack.c.bf16 %v1799_v16, %v1799_v16  ;;  %v17759_v16 = vld [vmem:[%s18608_s24 + $0x8] sm:$0xff]  }
 0x763   : > { %16808 = vmatprep.mubr.msk.bf16.mxu0 %vm18390_vm0, %v21908_v2 }
 0x764   : > { %16779 = vmatmul.mubr.msk.bf16.vlgmr.msra.gmra.mxu1 %vm1354_vm4, %v1801_v17 }
 0x765   : > { %16789 = vmatpush3.bf16.xpose.msra.mxu1 %v1917_v18  ;;  %16790 = vmatprep.mubr.msk.bf16.mxu1 %vm18390_vm0, %v21908_v2  ;;  %v17760_v18 = vld [vmem:[%s18608_s24] sm:$0xff]  }
 0x766   : > { %16800 = vmatprep.subr.bf16.mxu1 %v21908_v2 }
 0x76c   : > { %16791 = vmatmul.mubr.msk.bf16.vlgmr.msra.gmra.mxu1 %vm1237_vm1, %v1910_v15 }
 0x76d   : > { %16802 = vmatprep.mubr.msk.bf16.mxu1 %vm18390_vm0, %v21908_v2 }
 0x81a   : > { %v1893_v19 = vpop.f32.mrf.mxu0 }
 0x81c   : > { %v16786_v20 = vpop.f32.mrf.mxu0 }
 0x81e   : > { %v1896_v22 = vpop.f32.mrf.mxu0 }
 0x81f   : > { %v17761_v22 = vld [vmem:[%s18648_s20 + $0x78] sm:$0xff]  }
 0x820   : > { %v16787_v10 = vpop.f32.mrf.mxu0 }
 0x821   : > { %v17762_v10 = vld [vmem:[%s18648_s20 + $0x70] sm:$0xff]  }
 0x822   : > { %v1998_v23 = vpop.f32.mrf.mxu0 }
 0x823   : > { %v2005_v25 = vmul.f32 0.088388346, %v1998_v23 }
 0x824   : > { %v1845_v26 = vpop.f32.mrf.mxu1  ;;  %v16798_v27 = vpop.f32.mrf.mxu0 }
 0x825   : > { %v2009_v29 = vsel %vm1329_vm3, %v2005_v25, -inf  ;;  %v17767_v27 = vld [vmem:[%s18648_s20 + $0x60] sm:$0xff]  }
 0x826   : > { %2010 = vmax.xlane.f32.xlu0 %v2009_v29  ;;  %v16780_v30 = vpop.f32.mrf.mxu1  ;;  %v2001_v34 = vpop.f32.mrf.mxu0  ;;  %v17771_v29 = vld [vmem:[%s18648_s20 + $0x58] sm:$0xff]  }
 0x828   : > { %v1848_v36 = vpop.f32.mrf.mxu1  ;;  %v16799_v37 = vpop.f32.mrf.mxu0 }
 0x82a   : > { %v16781_v38 = vpop.f32.mrf.mxu1 }
 0x82c   : > { %v1953_v39 = vpop.f32.mrf.mxu1 }
 0x82d   : > { %v2004_v43 = vmul.f32 0.088388346, %v1953_v39  ;;  %v1448_v39 = vadd.f32 %v18806_v28, %v18737_v21 }
 0x82e   : > { %v16792_v45 = vpop.f32.mrf.mxu1 }
 0x82f   : > { %v2006_v31 = vsel %vm1329_vm3, %v2004_v43, -inf }
 0x830   : > { %2007 = vmax.xlane.f32.xlu1 %v2006_v31  ;;  %v1956_v44 = vpop.f32.mrf.mxu1 }
 0x832   : > { %v16793_v46 = vpop.f32.mrf.mxu1 }
 0x841   : > { %2030 = vrot.lane.b32.xlu1 %v18768_v35, %s18393_s21 }
 0x845   : > { %1674 = vrot.lane.b32.xlu1 %v18846_v33, %s18393_s21 }
 0x849   : > { %1901 = vrot.lane.b32.xlu1 %v1845_v26, %s18392_s18  ;;  %v17763_v26 = vld [vmem:[%s18648_s20 + $0x68] sm:$0xff]  }
 0x84d   : > { %1676 = vrot.lane.b32.xlu1 %v18844_v24, %s18393_s21 }
 0x851   : > { %1903 = vrot.lane.b32.xlu1 %v1893_v19, %s18392_s18 }
 0x8af   : > { %v2011_v47 = vpop.xlane.xlu0 %2010 }
 0x8b0   : > { %v2013_v48 = vsub.f32 %v2005_v25, %v2011_v47  ;;  %v17766_v25 = vld [vmem:[%s18602_s25 + $0xf4] ss:$8 sps:$4 sm:$0xff]  }
 0x8b2   : > { %v2016_v49 = vmul.f32 1.442695, %v2013_v48 }
 0x8b4   : > { %18017 = vpow2.f32 %v2016_v49  ;;  %v1449_v49 = vadd.f32 %v18809_v40, %v18737_v21 }
 0x8b9   : > { %v2008_v50 = vpop.xlane.xlu1 %2007 }
 0x8ba   : > { %v2012_v51 = vsub.f32 %v2004_v43, %v2008_v50 }
 0x8bc   : > { %v2014_v52 = vmul.f32 1.442695, %v2012_v51 }
 0x8bd   : > { %v2031_v53 = vpop.permute.xlu1 %2030 }
 0x8be   : > { %18019 = vpow2.f32 %v2014_v52  ;;  %v2036_v35 = vsel %vm1358_vm2, %v2031_v53, 0 }
 0x8bf   : > { %16801 = vmatpush3.bf16.msra.mxu1 %v2036_v35 }
 0x8c0   : > { %16812 = vmatprep.subr.bf16.mxu1 %v21908_v2 }
 0x8c1   : > { %v18018_v33 = vpop.eup %18017  ;;  %v1675_v30 = vpop.permute.xlu1 %1674 }
 0x8c2   : > { %v2021_v54 = vsel %vm1329_vm3, %v18018_v33, 0.0  ;;  %v1680_v37 = vadd.f32 %v1675_v30, %v18737_v21 }
 0x8c3   : > { %2022 = vadd.xlane.f32.xlu0 %v2021_v54 }
 0x8c4   : > { %v2136_v31 = vsel %vm1237_vm1, %v1448_v39, %v1680_v37 }
 0x8c5   : > { %v1902_v34 = vpop.permute.xlu1 %1901 }
 0x8c6   : > { %v1907_v38 = vadd.f32 %v1902_v34, %v18737_v21 }
 0x8c8   : > { %v2139_v47 = vsel %vm2138_vm5, %v2136_v31, %v1907_v38 }
 0x8c9   : > { %v1677_v36 = vpop.permute.xlu1 %1676 }
 0x8ca   : > { %v1681_v44 = vadd.f32 %v1677_v36, %v18737_v21 }
 0x8cb   : > { %v18020_v24 = vpop.eup %18019 }
 0x8cc   : > { %v2018_v55 = vsel %vm1329_vm3, %v18020_v24, 0.0  ;;  %v2137_v53 = vsel %vm1237_vm1, %v1449_v49, %v1681_v44 }
 0x8cd   : > { %2019 = vadd.xlane.f32.xlu0 %v2018_v55  ;;  %v1904_v43 = vpop.permute.xlu1 %1903 }
 0x8ce   : > { %v1908_v48 = vadd.f32 %v1904_v43, %v18737_v21 }
 0x8e3   : > { %2078 = vrot.lane.b32.xlu0 %v18758_v42, %s18393_s21 }
 0x94c   : > { %v2023_v56 = vpop.xlane.xlu0 %2022 }
 0x94d   : > { %18021 = vrcp.f32 %v2023_v56 }
 0x956   : > { %v2020_v57 = vpop.xlane.xlu0 %2019 }
 0x957   : > { %18023 = vrcp.f32 %v2020_v57 }
 0x95a   : > { %v18022_v59 = vpop.eup %18021  ;;  %v2079_v12 = vpop.permute.xlu0 %2078 }
 0x95b   : > { %v2084_v60 = vsel %vm1358_vm2, %v2079_v12, 0  ;;  %v2027_v41 = vmul.f32 %v18022_v59, %v18018_v33  ;;  %v2140_v33 = vsel %vm2138_vm5, %v2137_v53, %v1908_v48 }
 0x95c   : > { %16807 = vmatpush3.bf16.msra.mxu0 %v2084_v60 }
 0x95d   : > { %v2029_v61 = vpack.c.bf16 %v2027_v41, %v2027_v41  ;;  %16832 = vmatprep.subr.bf16.mxu0 %v17761_v22 }
 0x95f   : > { %16809 = vmatmul.mubr.msk.bf16.vlgmr.msra.gmra.mxu0 %vm1354_vm4, %v2029_v61 }
 0x960   : > { %16848 = vmatprep.mubr.bf16.mxu0 %v18662_v58  ;;  %v17756_v58 = vld [vmem:[%s18608_s24 + $0x20] sm:$0xff]   ;;  %16833 = vmatpush3.bf16.msra.mxu0 %v17761_v22  ;;  %v17787_v22 = vld [vmem:[%s18602_s25 + $0x90] ss:$8 sps:$4 sm:$0xff]  }
 0x961   : > { %16834 = vmatprep.subr.bf16.mxu0 %v17762_v10 }
 0x964   : > { %v18024_v42 = vpop.eup %18023  ;;  %16835 = vmatpush3.bf16.msra.mxu0 %v17762_v10  ;;  %v17790_v10 = vld [vmem:[%s18602_s25 + $0x80] ss:$8 sps:$4 sm:$0xff]  }
 0x965   : > { %v2026_v62 = vmul.f32 %v18024_v42, %v18020_v24  ;;  %16836 = vmatprep.subr.bf16.mxu0 %v17763_v26 }
 0x967   : > { %v2028_v63 = vpack.c.bf16 %v2026_v62, %v2026_v62 }
 0x968   : > { %16837 = vmatpush3.bf16.msra.mxu0 %v17763_v26 }
 0x969   : > { %16803 = vmatmul.mubr.msk.bf16.vlgmr.msra.gmra.mxu1 %vm1354_vm4, %v2028_v63  ;;  %16838 = vmatprep.subr.bf16.mxu0 %v17767_v27  ;;  %v17764_v63 = vld [vmem:[%s18602_s25 + $0xf0] ss:$8 sps:$4 sm:$0xff]  }
 0x96a   : > { %16828 = vmatprep.mubr.msk.bf16.mxu1 %vm18390_vm0, %v21908_v2  ;;  %16813 = vmatpush3.bf16.msra.mxu1 %v17753_v4 }
 0x96b   : > { %16814 = vmatprep.subr.bf16.mxu1 %v21908_v2 }
 0x96c   : > { %16839 = vmatpush3.bf16.msra.mxu0 %v17767_v27 }
 0x96d   : > { %16840 = vmatprep.subr.bf16.mxu0 %v17771_v29 }
 0x96e   : > { %16815 = vmatpush3.bf16.msra.mxu1 %v17754_v7  ;;  %v17770_v7 = vld [vmem:[%s18602_s25 + $0xe4] ss:$8 sps:$4 sm:$0xff]  }
 0x96f   : > { %16816 = vmatprep.subr.bf16.mxu1 %v21908_v2 }
 0x970   : > { %16841 = vmatpush3.bf16.msra.mxu0 %v17771_v29 }
 0x972   : > { %16817 = vmatpush3.bf16.msra.mxu1 %v17755_v8  ;;  %v17768_v8 = vld [vmem:[%s18602_s25 + $0xe0] ss:$8 sps:$4 sm:$0xff]  }
 0x973   : > { %16818 = vmatprep.subr.bf16.mxu1 %v21908_v2 }
 0x976   : > { %16819 = vmatpush3.bf16.msra.mxu1 %v17756_v58  ;;  %v17774_v58 = vld [vmem:[%s18602_s25 + $0xd4] ss:$8 sps:$4 sm:$0xff]  }
 0x977   : > { %16820 = vmatprep.subr.bf16.mxu1 %v21908_v2 }
 0x97a   : > { %16821 = vmatpush3.bf16.msra.mxu1 %v17757_v5  ;;  %v17775_v5 = vld [vmem:[%s18648_s20 + $0x50] sm:$0xff]  }
 0x97b   : > { %16822 = vmatprep.subr.bf16.mxu1 %v21908_v2  ;;  %16842 = vmatprep.subr.bf16.mxu0 %v17775_v5 }
 0x97c   : > { %16843 = vmatpush3.bf16.msra.mxu0 %v17775_v5 }
 0x97e   : > { %16823 = vmatpush3.bf16.msra.mxu1 %v17758_v32  ;;  %v17779_v32 = vld [vmem:[%s18648_s20 + $0x48] sm:$0xff]  }
 0x97f   : > { %16824 = vmatprep.subr.bf16.mxu1 %v21908_v2  ;;  %16844 = vmatprep.subr.bf16.mxu0 %v17779_v32 }
 0x980   : > { %16845 = vmatpush3.bf16.msra.mxu0 %v17779_v32 }
 0x982   : > { %16825 = vmatpush3.bf16.msra.mxu1 %v17759_v16  ;;  %v17780_v16 = vld [vmem:[%s18602_s25 + $0xb0] ss:$8 sps:$4 sm:$0xff]  }
 0x983   : > { %16826 = vmatprep.subr.bf16.mxu1 %v21908_v2 }
 0x986   : > { %16827 = vmatpush3.bf16.msra.mxu1 %v17760_v18  ;;  %v17786_v18 = vld [vmem:[%s18602_s25 + $0xa4] ss:$8 sps:$4 sm:$0xff]  }
 0x987   : > { %2708 = vmatprep.subr.bf16.mxu1 %v17766_v25 }
 0xa1f   : > { %v2120_v11 = vpop.f32.mrf.mxu0 }
 0xa21   : > { %v16810_v14 = vpop.f32.mrf.mxu0 }
 0xa22   : > { %v17778_v14 = vld [vmem:[%s18602_s25 + $0xc4] ss:$8 sps:$4 sm:$0xff]  }
 0xa23   : > { %v2123_v9 = vpop.f32.mrf.mxu0 }
 0xa24   : > { %v17776_v9 = vld [vmem:[%s18602_s25 + $0xc0] ss:$8 sps:$4 sm:$0xff]  }
 0xa25   : > { %v16811_v15 = vpop.f32.mrf.mxu0 }
 0xa26   : > { %v17782_v15 = vld [vmem:[%s18602_s25 + $0xb4] ss:$8 sps:$4 sm:$0xff]  }
 0xa29   : > { %v2072_v17 = vpop.f32.mrf.mxu1 }
 0xa2a   : > { %2128 = vrot.lane.b32.xlu0 %v2072_v17, %s18391_s28  ;;  %v17783_v17 = vld [vmem:[%s18648_s20 + $0x40] sm:$0xff]  }
 0xa2b   : > { %v16804_v19 = vpop.f32.mrf.mxu1  ;;  %16846 = vmatprep.subr.bf16.mxu0 %v17783_v17 }
 0xa2c   : > { %v17784_v19 = vld [vmem:[%s18602_s25 + $0xa0] ss:$8 sps:$4 sm:$0xff]   ;;  %16847 = vmatpush3.bf16.msra.mxu0 %v17783_v17 }
 0xa2d   : > { %v2075_v20 = vpop.f32.mrf.mxu1  ;;  %16852 = vmatprep.subr.bf16.mxu0 %v21908_v2 }
 0xa2e   : > { %2130 = vrot.lane.b32.xlu0 %v2120_v11, %s18391_s28  ;;  %v17772_v11 = vld [vmem:[%s18602_s25 + $0xd0] ss:$8 sps:$4 sm:$0xff]   ;;  %v17789_v20 = vld [vmem:[%s18602_s25 + $0x94] ss:$8 sps:$4 sm:$0xff]  }
 0xa2f   : > { %v16805_v23 = vpop.f32.mrf.mxu1  ;;  %16849 = vmatmul.mubr.bf16.vlgmr.msra.gmra.mxu0 %v18669_v0  ;;  %v15783_v0 = vld [vmem:[%s19002_s23] ss:$0 sm:$0xff] }
 0xa30   : > { %16854 = vmatprep.mubr.msk.bf16.mxu0 %vm18390_vm0, %v21908_v2  ;;  %v17792_v23 = vld [vmem:[%s18602_s25 + $0x84] ss:$8 sps:$4 sm:$0xff]  }
 0xa9c   : > { %v2129_v45 = vpop.permute.xlu0 %2128 }
 0xa9d   : > { %v2134_v46 = vadd.f32 %v2129_v45, %v18737_v21 }
 0xa9f   : > { %v2142_v50 = vsel %vm2141_vm6, %v2139_v47, %v2134_v46 }
 0xaa0   : > { %v2146_v28 = vcombine.high %v2142_v50, %v2142_v50  ;;  %v18940_v51 = vrot.slane %v2142_v50, %v18632_v13  ;;  %v2131_v52 = vpop.permute.xlu0 %2130 }
 0xaa1   : > { %v2135_v35 = vadd.f32 %v2131_v52, %v18737_v21 }
 0xaa2   : > { %v18947_v54 = vcombine.high %v18940_v51, %v18940_v51  ;;  %v18951_v24 = vrot.slane %v2146_v28, %v18632_v13 }
 0xaa3   : > { %v2143_v40 = vsel %vm2141_vm6, %v2140_v33, %v2135_v35 }
 0xaa4   : > { %v2184_v55 = vcombine.low %v18940_v51, %v18947_v54  ;;  %v2162_v56 = vcombine.high %v2143_v40, %v2143_v40  ;;  %v18956_v21 = vrot.slane %v2143_v40, %v18632_v13 }
 0xaa6   : > { %v18959_v57 = vrot.slane %v2162_v56, %v18632_v13  ;;  %v18963_v59 = vcombine.high %v18956_v21, %v18956_v21  ;;  %v2185_v12 = vcombine.low %v18951_v24, %v18956_v21  ;;  %v2192_v41 = vrot.slane %v2184_v55, %v18632_v13 }
 0xaa8   : > { %v2201_v60 = vcombine.low %v18963_v59, %v18959_v57  ;;  %v2199_v61 = vrot.slane %v2185_v12, %v18632_v13 }
 0xaaa   : > { %v2200_v42 = vcombine.low %v2192_v41, %v2199_v61  ;;  %v2208_v62 = vrot.slane %v2201_v60, %v18632_v13  ;;  %v15834_v41 = vld [vmem:[%s18688_s29 + $0x2] sm:$0x3] }
 0xaac   : > { %v2211_v4 = vpack.c.bf16 %v2208_v62, %v2200_v42  ;;  %v2621_v62 = vrot.slane %v15834_v41, %v18691_v3 }
 0xaae   : > { %16829 = vmatmul.mubr.bf16.vlgmr.msra.gmra.mxu1 %v2211_v4 }
 0xaaf   : > { %2709 = vmatpush1.bf16.msra.mxu1 %v17764_v63  ;;  %2740 = vmatprep.mubr.bf16.mxu1 %v21906_v1 }
 0xab0   : > { %2710 = vmatprep.subr.bf16.mxu1 %v17770_v7 }
 0xab3   : > { %2711 = vmatpush1.bf16.msra.mxu1 %v17768_v8  ;;  %v2625_v8 = vrot.slane %v15834_v41, %v18696_v6 }
 0xab4   : > { %2712 = vmatprep.subr.bf16.mxu1 %v17774_v58 }
 0xab7   : > { %2713 = vmatpush1.bf16.msra.mxu1 %v17772_v11 }
 0xab8   : > { %2714 = vmatprep.subr.bf16.mxu1 %v17778_v14 }
 0xabb   : > { %2715 = vmatpush1.bf16.msra.mxu1 %v17776_v9 }
 0xabc   : > { %2716 = vmatprep.subr.bf16.mxu1 %v17782_v15 }
 0xabf   : > { %2717 = vmatpush1.bf16.msra.mxu1 %v17780_v16 }
 0xac0   : > { %2718 = vmatprep.subr.bf16.mxu1 %v17786_v18 }
 0xac3   : > { %2719 = vmatpush1.bf16.msra.mxu1 %v17784_v19 }
 0xac4   : > { %2720 = vmatprep.subr.bf16.mxu1 %v17789_v20 }
 0xac7   : > { %2721 = vmatpush1.bf16.msra.mxu1 %v17787_v22 }
 0xac8   : > { %2722 = vmatprep.subr.bf16.mxu1 %v17792_v23 }
 0xacb   : > { %2723 = vmatpush1.bf16.msra.mxu1 %v17790_v10 }
 0xacc   : > { %16876 = vmatprep.subr.bf16.mxu1 %v21908_v2 }
 0xaef   : > { %v16850_v56 = vpop.f32.mrf.mxu0 }
 0xb6e   : > { %v2317_v25 = vpop.f32.mrf.mxu1 }
 0xb6f   : > { %v2318_v26 = vadd.f32 %v15783_v0, %v2317_v25 }
 0xb70   : > { %v16830_v27 = vpop.f32.mrf.mxu1 }
 0xb71   : > { %v2324_v29 = vmax.f32 %v2318_v26, 0.0 }
 0xb72   : > { %v2320_v30 = vpop.f32.mrf.mxu1 }
 0xb73   : > { %v2328_v34 = vcombine.high %v2324_v29, %v2324_v29  ;;  %v2335_v36 = vrot.slane %v2324_v29, %v18632_v13  ;;  %v2321_v37 = vadd.f32 %v15783_v0, %v2320_v30 }
 0xb74   : > { %v16831_v38 = vpop.f32.mrf.mxu1 }
 0xb75   : > { %v2342_v39 = vrot.slane %v2328_v34, %v18632_v13  ;;  %v2343_v43 = vcombine.high %v2335_v36, %v2335_v36  ;;  %v2325_v45 = vmax.f32 %v2321_v37, 0.0  ;;  %v2359_v44 = vadd.f32 %v2335_v36, %v18940_v51 }
 0xb77   : > { %v2344_v31 = vcombine.high %v2342_v39, %v2342_v39  ;;  %v2360_v46 = vadd.f32 %v2343_v43, %v18947_v54  ;;  %v2351_v47 = vrot.slane %v2325_v45, %v18632_v13  ;;  %v2361_v48 = vadd.f32 %v2342_v39, %v18951_v24 }
 0xb79   : > { %v2362_v49 = vadd.f32 %v2344_v31, %v18956_v21  ;;  %v2570_v50 = vcombine.low %v2359_v44, %v2360_v46  ;;  %v2352_v28 = vcombine.high %v2351_v47, %v2351_v47  ;;  %v2363_v53 = vadd.f32 %v2351_v47, %v18963_v59  ;;  %v2472_v21 = vpop.f32.mrf.mxu0 }
 0xb7b   : > { %v2571_v52 = vcombine.low %v2361_v48, %v2362_v49  ;;  %v2364_v35 = vadd.f32 %v2352_v28, %v18959_v57  ;;  %v2578_v33 = vrot.slane %v2570_v50, %v18632_v13  ;;  %v15809_v57 = vld [vmem:[%s19024_s22 + $0x1] ss:$0 sm:$0xff]  ;;  %v16851_v59 = vpop.f32.mrf.mxu0 }
 0xb7c   : > { %v2473_v12 = vadd.f32 %v15809_v57, %v2472_v21  ;;  %v2481_v60 = vadd.f32 %v16850_v56, %v15809_v57  ;;  %v2484_v30 = vadd.f32 %v16851_v59, %v15809_v57 }
 0xb7d   : > { %v2585_v51 = vrot.slane %v2571_v52, %v18632_v13  ;;  %v2587_v54 = vcombine.low %v2363_v53, %v2364_v35  ;;  %v2475_v61 = vpop.f32.mrf.mxu0 }
 0xb7e   : > { %v2491_v42 = vcombine.high %v2473_v12, %v2473_v12  ;;  %v2525_v63 = vcombine.high %v2481_v60, %v2481_v60  ;;  %v2476_v4 = vadd.f32 %v15809_v57, %v2475_v61  ;;  %v19030_v7 = vrot.slane %v2473_v12, %v18632_v13 }
 0xb7f   : > { %v2594_v40 = vrot.slane %v2587_v54, %v18632_v13  ;;  %v2586_v55 = vcombine.low %v2578_v33, %v2585_v51  ;;  %v19034_v58 = vrot.slane %v2481_v60, %v18632_v13  ;;  %v19082_v52 = vrot.slane %v2484_v30, %v18632_v13 }
 0xb80   : > { %v19037_v11 = vrot.slane %v2491_v42, %v18632_v13  ;;  %v19040_v14 = vrot.slane %v2476_v4, %v18632_v13  ;;  %v19043_v32 = vrot.slane %v2525_v63, %v18632_v13  ;;  %v2508_v15 = vcombine.high %v2476_v4, %v2476_v4 }
 0xb81   : > { %v2597_v24 = vpack.c.bf16 %v2594_v40, %v2586_v55  ;;  %v19047_v17 = vcombine.high %v19030_v7, %v19030_v7  ;;  %v19052_v22 = vcombine.high %v19034_v58, %v19034_v58 }
 0xb82   : > { %v19056_v10 = vcombine.high %v19037_v11, %v19037_v11  ;;  %v19060_v0 = vcombine.high %v19040_v14, %v19040_v14  ;;  %v19065_v29 = vcombine.high %v19043_v32, %v19043_v32  ;;  %v19068_v34 = vrot.slane %v2508_v15, %v18632_v13 }
 0xb83   : > { %2741 = vmatmul.mubr.bf16.vlgmr.msra.gmra.mxu1 %v2597_v24  ;;  %v2805_v45 = vcombine.low %v19030_v7, %v19047_v17  ;;  %v19110_v15 = vcombine.high %v19082_v52, %v19082_v52 }
 0xb84   : > { %16878 = vmatprep.mubr.msk.bf16.mxu1 %vm18390_vm0, %v21908_v2  ;;  %v2806_v47 = vcombine.low %v19037_v11, %v19056_v10  ;;  %v2822_v28 = vcombine.low %v19040_v14, %v19060_v0  ;;  %v19087_v51 = vcombine.high %v19068_v34, %v19068_v34  ;;  %v2836_v41 = vrot.slane %v19068_v34, %v18632_v13 }
 0xb85   : > { %v2813_v55 = vrot.slane %v2805_v45, %v18632_v13 }
 0xb86   : > { %v2820_v12 = vrot.slane %v2806_v47, %v18632_v13  ;;  %v2829_v60 = vrot.slane %v2822_v28, %v18632_v13 }
 0xc43   : > { %v2742_v5 = vpop.f32.mrf.mxu1 }
 0xc44   : > { %v2743_v9 = vadd.f32 %v2742_v5, %v2621_v62  ;;  %v2838_v5 = vcombine.low %v19087_v51, %v19034_v58 }
 0xc45   : > { %v2744_v16 = vpop.f32.mrf.mxu1 }
 0xc46   : > { %v2753_v18 = vcombine.high %v2743_v9, %v2743_v9  ;;  %v2760_v19 = vrot.slane %v2743_v9, %v18632_v13  ;;  %v2745_v20 = vadd.f32 %v2744_v16, %v2625_v8  ;;  %v2839_v9 = vcombine.low %v19052_v22, %v19043_v32 }
 0xc47   : > { %v2746_v23 = vpop.f32.mrf.mxu1  ;;  %v2821_v16 = vcombine.low %v2813_v55, %v2820_v12 }
 0xc48   : > { %v2767_v25 = vrot.slane %v2753_v18, %v18632_v13  ;;  %v2768_v26 = vcombine.high %v2760_v19, %v2760_v19  ;;  %v2780_v27 = vcombine.high %v2745_v20, %v2745_v20  ;;  %v2747_v36 = vadd.f32 %v2746_v23, %v2621_v62 }
 0xc49   : > { %v2748_v37 = vpop.f32.mrf.mxu1  ;;  %v2787_v39 = vrot.slane %v2745_v20, %v18632_v13  ;;  %v2837_v18 = vcombine.low %v2829_v60, %v2836_v41 }
 0xc4a   : > { %v2877_v38 = vcombine.low %v2760_v19, %v2768_v26  ;;  %v2794_v43 = vrot.slane %v2780_v27, %v18632_v13  ;;  %v2769_v31 = vcombine.high %v2767_v25, %v2767_v25  ;;  %v2776_v44 = vrot.slane %v2747_v36, %v18632_v13 }
 0xc4b   : > { %v2749_v46 = vadd.f32 %v2748_v37, %v2625_v8  ;;  %v2891_v49 = vrot.slane %v2767_v25, %v18632_v13  ;;  %v2795_v40 = vcombine.high %v2787_v39, %v2787_v39  ;;  %v2855_v19 = vcombine.low %v19065_v29, %v19082_v52 }
 0xc4c   : > { %v2884_v48 = vrot.slane %v2877_v38, %v18632_v13  ;;  %v2796_v50 = vcombine.high %v2794_v43, %v2794_v43  ;;  %v2777_v53 = vcombine.high %v2776_v44, %v2776_v44  ;;  %v2893_v35 = vcombine.low %v2769_v31, %v2776_v44 }
 0xc4d   : > { %v2803_v33 = vrot.slane %v2749_v46, %v18632_v13  ;;  %v2913_v62 = vcombine.low %v2787_v39, %v2795_v40  ;;  %v2846_v25 = vrot.slane %v2838_v5, %v18632_v13  ;;  %v2853_v26 = vrot.slane %v2839_v9, %v18632_v13 }
 0xc4e   : > { %v2892_v54 = vcombine.low %v2884_v48, %v2891_v49  ;;  %v2900_v24 = vrot.slane %v2893_v35, %v18632_v13  ;;  %v2907_v56 = vrot.slane %v2777_v53, %v18632_v13  ;;  %v2927_v27 = vrot.slane %v2794_v43, %v18632_v13 }
 0xc4f   : > { %v2804_v21 = vcombine.high %v2803_v33, %v2803_v33  ;;  %v2929_v57 = vcombine.low %v2796_v50, %v2803_v33  ;;  %v2920_v20 = vrot.slane %v2913_v62, %v18632_v13  ;;  %v19121_v30 = vpack.c.bf16 %v2837_v18, %v2821_v16 }
 0xc50   : > { %v19092_v59 = vpack.c.bf16 %v2892_v54, %v2892_v54  ;;  %v2908_v63 = vcombine.low %v2900_v24, %v2907_v56  ;;  %v2862_v36 = vrot.slane %v2855_v19, %v18632_v13  ;;  %v2869_v37 = vrot.slane %v19110_v15, %v18632_v13 }
 0xc51   : > { %v2936_v61 = vrot.slane %v2929_v57, %v18632_v13  ;;  %v2943_v42 = vrot.slane %v2804_v21, %v18632_v13  ;;  %v2928_v38 = vcombine.low %v2920_v20, %v2927_v27  ;;  %v2854_v45 = vcombine.low %v2846_v25, %v2853_v26 }
 0xc52   : > { %v2953_v4 = vsel %vm1237_vm1, %v19092_v59, 0  ;;  %v19116_v23 = vpack.c.bf16 %v2908_v63, %v2908_v63  ;;  %v2870_v43 = vcombine.low %v2862_v36, %v2869_v37 }
 0xc53   : > { %v19102_v8 = vcombine.low %v2936_v61, %v2943_v42  ;;  %16853 = vmatpush3.bf16.xpose.msra.mxu0 %v2953_v4  ;;  %v19133_v31 = vpack.c.bf16 %v2928_v38, %v2928_v38 }
 0xc54   : > { %16858 = vmatprep.subr.bf16.mxu0 %v21908_v2  ;;  %v3000_v39 = vsel %vm1237_vm1, %v19116_v23, 0  ;;  %v19135_v44 = vpack.c.bf16 %v2870_v43, %v2854_v45 }
 0xc55   : > { %v3100_v46 = vsel %vm3098_vm7, %v19133_v31, 0 }
 0xc5a   : > { %16855 = vmatmul.mubr.msk.bf16.vlgmr.msra.gmra.mxu0 %vm1237_vm1, %v19121_v30 }
 0xc5b   : > { %16859 = vmatpush3.bf16.xpose.msra.mxu0 %v3000_v39  ;;  %16860 = vmatprep.mubr.msk.bf16.mxu0 %vm18390_vm0, %v21908_v2 }
 0xc5c   : > { %16864 = vmatprep.subr.bf16.mxu0 %v21908_v2 }
 0xc62   : > { %16861 = vmatmul.mubr.msk.bf16.vlgmr.msra.gmra.mxu0 %vm1237_vm1, %v19135_v44 }
 0xc63   : > { %16865 = vmatpush3.bf16.msra.mxu0 %v3100_v46  ;;  %16866 = vmatprep.mubr.msk.bf16.mxu0 %vm18390_vm0, %v21908_v2 }
 0xc64   : > { %16870 = vmatprep.subr.bf16.mxu0 %v21908_v2 }
 0xd1a   : > { %v2989_v47 = vpop.f32.mrf.mxu0 }
 0xd1b   : > { %v3043_v48 = vmul.f32 0.088388346, %v2989_v47 }
 0xd1c   : > { %v16856_v49 = vpop.f32.mrf.mxu0 }
 0xd1d   : > { %v3048_v50 = vsel %vm3047_vm8, %v3043_v48, -inf }
 0xd1e   : > { %3049 = vmax.xlane.f32.xlu1 %v3048_v50  ;;  %v2992_v28 = vpop.f32.mrf.mxu0  ;;  %v19164_v50 = vpack.c.bf16 %v19102_v8, %v19102_v8 }
 0xd1f   : > { %v3044_v53 = vmul.f32 0.088388346, %v2992_v28 }
 0xd20   : > { %v16857_v35 = vpop.f32.mrf.mxu0 }
 0xd21   : > { %v3052_v33 = vsel %vm3051_vm9, %v3044_v53, -inf }
 0xd22   : > { %3053 = vmax.xlane.f32.xlu0 %v3052_v33  ;;  %v3036_v54 = vpop.f32.mrf.mxu0  ;;  %v3147_v33 = vsel %vm3098_vm7, %v19164_v50, 0 }
 0xd23   : > { %v3045_v40 = vmul.f32 0.088388346, %v3036_v54 }
 0xd24   : > { %v16862_v55 = vpop.f32.mrf.mxu0 }
 0xd25   : > { %v3055_v24 = vsel %vm3047_vm8, %v3045_v40, -inf }
 0xd26   : > { %3056 = vmax.xlane.f32.xlu0 %v3055_v24  ;;  %v3039_v56 = vpop.f32.mrf.mxu0 }
 0xd27   : > { %v3046_v21 = vmul.f32 0.088388346, %v3039_v56 }
 0xd28   : > { %v16863_v57 = vpop.f32.mrf.mxu0 }
 0xd29   : > { %v3058_v12 = vsel %vm3051_vm9, %v3046_v21, -inf }
 0xd2a   : > { %3059 = vmax.xlane.f32.xlu0 %v3058_v12 }
 0xda7   : > { %v3050_v60 = vpop.xlane.xlu1 %3049 }
 0xda8   : > { %v3061_v41 = vsub.f32 %v3043_v48, %v3050_v60 }
 0xdaa   : > { %v3065_v61 = vmul.f32 1.442695, %v3061_v41 }
 0xdab   : > { %v3054_v42 = vpop.xlane.xlu0 %3053 }
 0xdac   : > { %18025 = vpow2.f32 %v3065_v61  ;;  %v3062_v62 = vsub.f32 %v3044_v53, %v3054_v42 }
 0xdae   : > { %v3067_v63 = vmul.f32 1.442695, %v3062_v62 }
 0xdaf   : > { %v3057_v4 = vpop.xlane.xlu0 %3056 }
 0xdb0   : > { %18027 = vpow2.f32 %v3067_v63  ;;  %v3063_v36 = vsub.f32 %v3045_v40, %v3057_v4 }
 0xdb2   : > { %v3069_v37 = vmul.f32 1.442695, %v3063_v36 }
 0xdb3   : > { %v3060_v5 = vpop.xlane.xlu0 %3059 }
 0xdb4   : > { %v3064_v9 = vsub.f32 %v3046_v21, %v3060_v5 }
 0xdb6   : > { %v3071_v16 = vmul.f32 1.442695, %v3064_v9 }
 0xdb8   : > { %18029 = vpow2.f32 %v3071_v16 }
 0xdb9   : > { %v18026_v18 = vpop.eup %18025  ;;  %18031 = vpow2.f32 %v3069_v37 }
 0xdba   : > { %v3073_v19 = vsel %vm3047_vm8, %v18026_v18, 0.0 }
 0xdbb   : > { %3074 = vadd.xlane.f32.xlu1 %v3073_v19 }
 0xdbd   : > { %v18028_v20 = vpop.eup %18027 }
 0xdbe   : > { %v3076_v25 = vsel %vm3051_vm9, %v18028_v20, 0.0 }
 0xdbf   : > { %3077 = vadd.xlane.f32.xlu0 %v3076_v25 }
 0xdc5   : > { %v18030_v26 = vpop.eup %18029 }
 0xdc6   : > { %v3082_v27 = vsel %vm3051_vm9, %v18030_v26, 0.0  ;;  %v18032_v38 = vpop.eup %18031 }
 0xdc7   : > { %3083 = vadd.xlane.f32.xlu0 %v3082_v27  ;;  %v3079_v39 = vsel %vm3047_vm8, %v18032_v38, 0.0 }
 0xdcc   : > { %3292 = vrot.lane.b32.xlu1 %v19092_v59, %s18391_s28 }
 0xddd   : > { %3345 = vrot.lane.b32.xlu0 %v19116_v23, %s18391_s28 }
 0xdf0   : > { %3080 = vadd.xlane.f32.xlu1 %v3079_v39 }
 0xe01   : > { %3289 = vrot.lane.b32.xlu1 %v19121_v30, %s18391_s28 }
 0xe05   : > { %3342 = vrot.lane.b32.xlu1 %v19135_v44, %s18391_s28 }
 0xe44   : > { %v3075_v45 = vpop.xlane.xlu1 %3074 }
 0xe45   : > { %18033 = vrcp.f32 %v3075_v45 }
 0xe48   : > { %v3293_v43 = vpop.permute.xlu1 %3292  ;;  %v3078_v46 = vpop.xlane.xlu0 %3077 }
 0xe49   : > { %v3298_v47 = vsel %vm1237_vm1, %v3293_v43, 0  ;;  %18035 = vrcp.f32 %v3078_v46 }
 0xe4a   : > { %16877 = vmatpush3.bf16.xpose.msra.mxu1 %v3298_v47 }
 0xe4b   : > { %16888 = vmatprep.subr.bf16.mxu1 %v21908_v2 }
 0xe50   : > { %v3084_v54 = vpop.xlane.xlu0 %3083 }
 0xe51   : > { %18037 = vrcp.f32 %v3084_v54 }
 0xe52   : > { %v18034_v48 = vpop.eup %18033 }
 0xe53   : > { %v3089_v28 = vmul.f32 %v18034_v48, %v18026_v18 }
 0xe54   : > { %v3346_v57 = vpop.permute.xlu0 %3345 }
 0xe55   : > { %v3351_v60 = vsel %vm1237_vm1, %v3346_v57, 0 }
 0xe56   : > { %v18036_v49 = vpop.eup %18035 }
 0xe57   : > { %v3090_v53 = vmul.f32 %v18036_v49, %v18028_v20 }
 0xe59   : > { %v3093_v35 = vpack.c.bf16 %v3090_v53, %v3089_v28 }
 0xe5b   : > { %16867 = vmatmul.mubr.msk.bf16.vlgmr.msra.gmra.mxu0 %vm3047_vm8, %v3093_v35 }
 0xe5c   : > { %16871 = vmatpush3.bf16.msra.mxu0 %v3147_v33  ;;  %16872 = vmatprep.mubr.msk.bf16.mxu0 %vm18390_vm0, %v21908_v2 }
 0xe5d   : > { %16882 = vmatprep.subr.bf16.mxu0 %v21908_v2 }
 0xe5e   : > { %v18038_v55 = vpop.eup %18037 }
 0xe5f   : > { %v3092_v21 = vmul.f32 %v18038_v55, %v18030_v26 }
 0xe79   : > { %v3081_v40 = vpop.xlane.xlu1 %3080 }
 0xe7a   : > { %18039 = vrcp.f32 %v3081_v40 }
 0xe7d   : > { %v3290_v8 = vpop.permute.xlu1 %3289 }
 0xe7e   : > { %16879 = vmatmul.mubr.msk.bf16.vlgmr.msra.gmra.mxu1 %vm1237_vm1, %v3290_v8 }
 0xe7f   : > { %16890 = vmatprep.mubr.msk.bf16.mxu1 %vm18390_vm0, %v21908_v2 }
 0xe81   : > { %v3343_v41 = vpop.permute.xlu1 %3342 }
 0xe87   : > { %v18040_v24 = vpop.eup %18039 }
 0xe88   : > { %v3091_v56 = vmul.f32 %v18040_v24, %v18032_v38 }
 0xe8a   : > { %v3094_v12 = vpack.c.bf16 %v3092_v21, %v3091_v56 }
 0xe8c   : > { %16873 = vmatmul.mubr.msk.bf16.vlgmr.msra.gmra.mxu0 %vm3047_vm8, %v3094_v12 }
 0xe8d   : > { %16883 = vmatpush3.bf16.xpose.msra.mxu0 %v3351_v60  ;;  %16884 = vmatprep.mubr.msk.bf16.mxu0 %vm18390_vm0, %v21908_v2 }
 0xe8e   : > { %16894 = vmatprep.subr.bf16.mxu0 %v21908_v2 }
 0xe94   : > { %16885 = vmatmul.mubr.msk.bf16.vlgmr.msra.gmra.mxu0 %vm1237_vm1, %v3343_v41 }
 0xe95   : > { %16896 = vmatprep.mubr.msk.bf16.mxu0 %vm18390_vm0, %v21908_v2 }
 0xf1b   : > { %v19183_v61 = vpop.f32.mrf.mxu0 }
 0xf1d   : > { %v16868_v42 = vpop.f32.mrf.mxu0 }
 0xf1f   : > { %v19185_v62 = vpop.f32.mrf.mxu0 }
 0xf21   : > { %v16869_v63 = vpop.f32.mrf.mxu0 }
 0xf3e   : > { %v3334_v4 = vpop.f32.mrf.mxu1 }
 0xf3f   : > { %v3394_v5 = vmul.f32 0.088388346, %v3334_v4 }
 0xf40   : > { %v16880_v9 = vpop.f32.mrf.mxu1 }
 0xf41   : > { %v3398_v16 = vsel %vm3047_vm8, %v3394_v5, -inf }
 0xf42   : > { %3399 = vmax.xlane.f32.xlu1 %v3398_v16  ;;  %v3337_v18 = vpop.f32.mrf.mxu1 }
 0xf43   : > { %v3395_v19 = vmul.f32 0.088388346, %v3337_v18 }
 0xf44   : > { %v16881_v20 = vpop.f32.mrf.mxu1 }
 0xf45   : > { %v3401_v25 = vsel %vm3051_vm9, %v3395_v19, -inf }
 0xf46   : > { %3402 = vmax.xlane.f32.xlu0 %v3401_v25 }
 0xf4c   : > { %v19189_v26 = vpop.f32.mrf.mxu0 }
 0xf4e   : > { %v16874_v27 = vpop.f32.mrf.mxu0 }
 0xf50   : > { %v19191_v36 = vpop.f32.mrf.mxu0 }
 0xf52   : > { %v16875_v37 = vpop.f32.mrf.mxu0 }
 0xf54   : > { %v3387_v38 = vpop.f32.mrf.mxu0 }
 0xf55   : > { %v3396_v39 = vmul.f32 0.088388346, %v3387_v38 }
 0xf56   : > { %v16886_v45 = vpop.f32.mrf.mxu0 }
 0xf57   : > { %v3404_v43 = vsel %vm3047_vm8, %v3396_v39, -inf }
 0xf58   : > { %3405 = vmax.xlane.f32.xlu0 %v3404_v43  ;;  %v3390_v46 = vpop.f32.mrf.mxu0 }
 0xf59   : > { %v3397_v47 = vmul.f32 0.088388346, %v3390_v46 }
 0xf5a   : > { %v16887_v48 = vpop.f32.mrf.mxu0 }
 0xf5b   : > { %v3407_v49 = vsel %vm3051_vm9, %v3397_v47, -inf }
 0xf5c   : > { %3408 = vmax.xlane.f32.xlu0 %v3407_v49 }
 0xfcb   : > { %v3400_v28 = vpop.xlane.xlu1 %3399 }
 0xfcc   : > { %v3410_v53 = vsub.f32 %v3394_v5, %v3400_v28 }
 0xfce   : > { %v3414_v35 = vmul.f32 1.442695, %v3410_v53 }
 0xfcf   : > { %v3403_v33 = vpop.xlane.xlu0 %3402 }
 0xfd0   : > { %18041 = vpow2.f32 %v3414_v35  ;;  %v3411_v54 = vsub.f32 %v3395_v19, %v3403_v33 }
 0xfd2   : > { %v3416_v40 = vmul.f32 1.442695, %v3411_v54 }
 0xfd4   : > { %18043 = vpow2.f32 %v3416_v40 }
 0xfdd   : > { %v18042_v8 = vpop.eup %18041 }
 0xfde   : > { %v3422_v55 = vsel %vm3047_vm8, %v18042_v8, 0.0 }
 0xfdf   : > { %3423 = vadd.xlane.f32.xlu1 %v3422_v55 }
 0xfe1   : > { %v18044_v24 = vpop.eup %18043  ;;  %v3406_v56 = vpop.xlane.xlu0 %3405 }
 0xfe2   : > { %v3425_v21 = vsel %vm3051_vm9, %v18044_v24, 0.0  ;;  %v3412_v63 = vsub.f32 %v3396_v39, %v3406_v56 }
 0xfe3   : > { %3426 = vadd.xlane.f32.xlu0 %v3425_v21 }
 0xfe4   : > { %v3418_v4 = vmul.f32 1.442695, %v3412_v63 }
 0xfe5   : > { %v3409_v57 = vpop.xlane.xlu0 %3408 }
 0xfe6   : > { %v3413_v12 = vsub.f32 %v3397_v47, %v3409_v57 }
 0xfe8   : > { %v3420_v60 = vmul.f32 1.442695, %v3413_v12 }
 0xfea   : > { %18045 = vpow2.f32 %v3420_v60 }
 0xfeb   : > { %18047 = vpow2.f32 %v3418_v4 }
 0xff0   : > { %3445 = vrot.lane.b32.xlu1 %v19133_v31, %s18391_s28 }
 0xff7   : > { %v18046_v41 = vpop.eup %18045 }
 0xff8   : > { %v3431_v42 = vsel %vm3051_vm9, %v18046_v41, 0.0  ;;  %v18048_v5 = vpop.eup %18047 }
 0xff9   : > { %3432 = vadd.xlane.f32.xlu0 %v3431_v42  ;;  %v3428_v9 = vsel %vm3047_vm8, %v18048_v5, 0.0 }
0x100f   : > { %3495 = vrot.lane.b32.xlu0 %v19164_v50, %s18391_s28 }
0x1013   : > { %3721 = vrot.lane.b32.xlu0 %v19135_v44, %s18392_s18 }
0x1014   : > { %3429 = vadd.xlane.f32.xlu1 %v3428_v9 }
0x1025   : > { %3672 = vrot.lane.b32.xlu1 %v19092_v59, %s18392_s18 }
0x1029   : > { %3723 = vrot.lane.b32.xlu1 %v19116_v23, %s18392_s18 }
0x102d   : > { %3670 = vrot.lane.b32.xlu1 %v19121_v30, %s18392_s18 }
0x1068   : > { %v3424_v16 = vpop.xlane.xlu1 %3423 }
0x1069   : > { %18049 = vrcp.f32 %v3424_v16 }
0x106c   : > { %v3446_v18 = vpop.permute.xlu1 %3445  ;;  %v3427_v19 = vpop.xlane.xlu0 %3426 }
0x106d   : > { %v3451_v20 = vsel %vm3098_vm7, %v3446_v18, 0  ;;  %18051 = vrcp.f32 %v3427_v19 }
0x106e   : > { %16889 = vmatpush3.bf16.msra.mxu1 %v3451_v20 }
0x106f   : > { %16900 = vmatprep.subr.bf16.mxu1 %v21908_v2 }
0x1076   : > { %v18050_v25 = vpop.eup %18049 }
0x1077   : > { %v3438_v37 = vmul.f32 %v18050_v25, %v18042_v8 }
0x107a   : > { %v18052_v27 = vpop.eup %18051 }
0x107b   : > { %v3439_v38 = vmul.f32 %v18052_v27, %v18044_v24 }
0x107d   : > { %v3442_v39 = vpack.c.bf16 %v3439_v38, %v3438_v37 }
0x107f   : > { %16891 = vmatmul.mubr.msk.bf16.vlgmr.msra.gmra.mxu1 %vm3047_vm8, %v3442_v39 }
0x1080   : > { %16902 = vmatprep.mubr.msk.bf16.mxu1 %vm18390_vm0, %v21908_v2 }
0x1082   : > { %v3433_v45 = vpop.xlane.xlu0 %3432 }
0x1083   : > { %18053 = vrcp.f32 %v3433_v45 }
0x1086   : > { %v3496_v43 = vpop.permute.xlu0 %3495 }
0x1087   : > { %v3501_v46 = vsel %vm3098_vm7, %v3496_v43, 0 }
0x1088   : > { %16895 = vmatpush3.bf16.msra.mxu0 %v3501_v46 }
0x1089   : > { %16906 = vmatprep.subr.bf16.mxu0 %v21908_v2 }
0x108a   : > { %v3722_v24 = vpop.permute.xlu0 %3721 }
0x1090   : > { %v18054_v53 = vpop.eup %18053 }
0x1091   : > { %v3441_v40 = vmul.f32 %v18054_v53, %v18046_v41 }
0x109d   : > { %v3430_v47 = vpop.xlane.xlu1 %3429 }
0x109e   : > { %18055 = vrcp.f32 %v3430_v47 }
0x10a1   : > { %v3673_v48 = vpop.permute.xlu1 %3672 }
0x10a2   : > { %v3678_v49 = vsel %vm1237_vm1, %v3673_v48, 0 }
0x10a3   : > { %16901 = vmatpush3.bf16.xpose.msra.mxu1 %v3678_v49 }
0x10a4   : > { %16912 = vmatprep.subr.bf16.mxu1 %v21908_v2 }
0x10a5   : > { %v3724_v28 = vpop.permute.xlu1 %3723 }
0x10a6   : > { %v3729_v55 = vsel %vm1237_vm1, %v3724_v28, 0 }
0x10a9   : > { %v3671_v35 = vpop.permute.xlu1 %3670 }
0x10aa   : > { %16903 = vmatmul.mubr.msk.bf16.vlgmr.msra.gmra.mxu1 %vm1237_vm1, %v3671_v35 }
0x10ab   : > { %v18056_v33 = vpop.eup %18055  ;;  %16914 = vmatprep.mubr.msk.bf16.mxu1 %vm18390_vm0, %v21908_v2 }
0x10ac   : > { %v3440_v54 = vmul.f32 %v18056_v33, %v18048_v5 }
0x10ae   : > { %v3443_v8 = vpack.c.bf16 %v3441_v40, %v3440_v54 }
0x10b0   : > { %16897 = vmatmul.mubr.msk.bf16.vlgmr.msra.gmra.mxu0 %vm3047_vm8, %v3443_v8 }
0x10b1   : > { %16907 = vmatpush3.bf16.xpose.msra.mxu0 %v3729_v55  ;;  %16908 = vmatprep.mubr.msk.bf16.mxu0 %vm18390_vm0, %v21908_v2 }
0x10b2   : > { %16918 = vmatprep.subr.bf16.mxu0 %v21908_v2 }
0x10b8   : > { %16909 = vmatmul.mubr.msk.bf16.vlgmr.msra.gmra.mxu0 %vm1237_vm1, %v3722_v24 }
0x10b9   : > { %16920 = vmatprep.mubr.msk.bf16.mxu0 %vm18390_vm0, %v21908_v2 }
0x113f   : > { %v19231_v56 = vpop.f32.mrf.mxu1 }
0x1141   : > { %v16892_v21 = vpop.f32.mrf.mxu1 }
0x1143   : > { %v19233_v57 = vpop.f32.mrf.mxu1 }
0x1145   : > { %v16893_v12 = vpop.f32.mrf.mxu1 }
0x116a   : > { %v3714_v60 = vpop.f32.mrf.mxu1 }
0x116b   : > { %v3772_v41 = vmul.f32 0.088388346, %v3714_v60 }
0x116c   : > { %v16904_v42 = vpop.f32.mrf.mxu1 }
0x116d   : > { %v3776_v63 = vsel %vm3047_vm8, %v3772_v41, -inf }
0x116e   : > { %3777 = vmax.xlane.f32.xlu1 %v3776_v63  ;;  %v3717_v4 = vpop.f32.mrf.mxu1 }
0x116f   : > { %v3773_v5 = vmul.f32 0.088388346, %v3717_v4 }
0x1170   : > { %v19236_v9 = vpop.f32.mrf.mxu0  ;;  %v16905_v16 = vpop.f32.mrf.mxu1 }
0x1171   : > { %v3779_v18 = vsel %vm3051_vm9, %v3773_v5, -inf }
0x1172   : > { %3780 = vmax.xlane.f32.xlu0 %v3779_v18  ;;  %v16898_v19 = vpop.f32.mrf.mxu0 }
0x1174   : > { %v19239_v20 = vpop.f32.mrf.mxu0 }
0x1176   : > { %v16899_v25 = vpop.f32.mrf.mxu0 }
0x1178   : > { %v3765_v27 = vpop.f32.mrf.mxu0 }
0x1179   : > { %v3774_v37 = vmul.f32 0.088388346, %v3765_v27 }
0x117a   : > { %v16910_v38 = vpop.f32.mrf.mxu0 }
0x117b   : > { %v3782_v39 = vsel %vm3047_vm8, %v3774_v37, -inf }
0x117c   : > { %3783 = vmax.xlane.f32.xlu0 %v3782_v39  ;;  %v3768_v45 = vpop.f32.mrf.mxu0 }
0x117d   : > { %v3775_v43 = vmul.f32 0.088388346, %v3768_v45 }
0x117e   : > { %v16911_v46 = vpop.f32.mrf.mxu0 }
0x117f   : > { %v3785_v47 = vsel %vm3051_vm9, %v3775_v43, -inf }
0x1180   : > { %3786 = vmax.xlane.f32.xlu0 %v3785_v47 }
0x11f7   : > { %v3778_v48 = vpop.xlane.xlu1 %3777 }
0x11f8   : > { %v3788_v49 = vsub.f32 %v3772_v41, %v3778_v48 }
0x11fa   : > { %v3792_v28 = vmul.f32 1.442695, %v3788_v49 }
0x11fb   : > { %v3781_v53 = vpop.xlane.xlu0 %3780 }
0x11fc   : > { %18057 = vpow2.f32 %v3792_v28  ;;  %v3789_v35 = vsub.f32 %v3773_v5, %v3781_v53 }
0x11fe   : > { %v3794_v33 = vmul.f32 1.442695, %v3789_v35 }
0x1200   : > { %18059 = vpow2.f32 %v3794_v33 }
0x1205   : > { %v3784_v54 = vpop.xlane.xlu0 %3783 }
0x1206   : > { %v3790_v63 = vsub.f32 %v3774_v37, %v3784_v54 }
0x1208   : > { %v3796_v4 = vmul.f32 1.442695, %v3790_v63 }
0x1209   : > { %v18058_v40 = vpop.eup %18057  ;;  %v3787_v8 = vpop.xlane.xlu0 %3786 }
0x120a   : > { %v3791_v55 = vsub.f32 %v3775_v43, %v3787_v8  ;;  %v3800_v24 = vsel %vm3047_vm8, %v18058_v40, 0.0 }
0x120b   : > { %3801 = vadd.xlane.f32.xlu1 %v3800_v24 }
0x120c   : > { %v3798_v21 = vmul.f32 1.442695, %v3791_v55 }
0x120d   : > { %v18060_v12 = vpop.eup %18059 }
0x120e   : > { %18061 = vpow2.f32 %v3798_v21  ;;  %v3803_v60 = vsel %vm3051_vm9, %v18060_v12, 0.0 }
0x120f   : > { %3804 = vadd.xlane.f32.xlu0 %v3803_v60  ;;  %18063 = vpow2.f32 %v3796_v4 }
0x121b   : > { %v18062_v41 = vpop.eup %18061 }
0x121c   : > { %3822 = vrot.lane.b32.xlu1 %v19133_v31, %s18392_s18  ;;  %v3809_v42 = vsel %vm3051_vm9, %v18062_v41, 0.0  ;;  %v18064_v5 = vpop.eup %18063 }
0x121d   : > { %3810 = vadd.xlane.f32.xlu0 %v3809_v42  ;;  %v3806_v16 = vsel %vm3047_vm8, %v18064_v5, 0.0 }
0x1233   : > { %3871 = vrot.lane.b32.xlu0 %v19164_v50, %s18392_s18 }
0x1237   : > { %4097 = vrot.lane.b32.xlu0 %v19135_v44, %s18393_s21 }
0x1240   : > { %3807 = vadd.xlane.f32.xlu1 %v3806_v16 }
0x1251   : > { %4048 = vrot.lane.b32.xlu1 %v19092_v59, %s18393_s21 }
0x1255   : > { %4099 = vrot.lane.b32.xlu1 %v19116_v23, %s18393_s21 }
0x1259   : > { %4046 = vrot.lane.b32.xlu1 %v19121_v30, %s18393_s21 }
0x1294   : > { %v3802_v18 = vpop.xlane.xlu1 %3801 }
0x1295   : > { %18065 = vrcp.f32 %v3802_v18 }
0x1298   : > { %v3823_v19 = vpop.permute.xlu1 %3822  ;;  %v3805_v25 = vpop.xlane.xlu0 %3804 }
0x1299   : > { %v3828_v27 = vsel %vm3098_vm7, %v3823_v19, 0  ;;  %18067 = vrcp.f32 %v3805_v25 }
0x129a   : > { %16913 = vmatpush3.bf16.msra.mxu1 %v3828_v27 }
0x129b   : > { %16924 = vmatprep.subr.bf16.mxu1 %v21908_v2 }
0x12a2   : > { %v18066_v44 = vpop.eup %18065 }
0x12a3   : > { %v3816_v59 = vmul.f32 %v18066_v44, %v18058_v40 }
0x12a6   : > { %v18068_v37 = vpop.eup %18067  ;;  %v3811_v38 = vpop.xlane.xlu0 %3810 }
0x12a7   : > { %v3817_v39 = vmul.f32 %v18068_v37, %v18060_v12  ;;  %18069 = vrcp.f32 %v3811_v38 }
0x12a9   : > { %v3820_v45 = vpack.c.bf16 %v3817_v39, %v3816_v59 }
0x12aa   : > { %v3872_v23 = vpop.permute.xlu0 %3871 }
0x12ab   : > { %v3877_v43 = vsel %vm3098_vm7, %v3872_v23, 0  ;;  %16915 = vmatmul.mubr.msk.bf16.vlgmr.msra.gmra.mxu1 %vm3047_vm8, %v3820_v45 }
0x12ac   : > { %16919 = vmatpush3.bf16.msra.mxu0 %v3877_v43  ;;  %16926 = vmatprep.mubr.msk.bf16.mxu1 %vm18390_vm0, %v21908_v2 }
0x12ad   : > { %16930 = vmatprep.subr.bf16.mxu0 %v21908_v2 }
0x12ae   : > { %v4098_v8 = vpop.permute.xlu0 %4097 }
0x12b4   : > { %v18070_v49 = vpop.eup %18069 }
0x12b5   : > { %v3819_v33 = vmul.f32 %v18070_v49, %v18062_v41 }
0x12c9   : > { %v3808_v30 = vpop.xlane.xlu1 %3807 }
0x12ca   : > { %18071 = vrcp.f32 %v3808_v30 }
0x12cd   : > { %v4049_v46 = vpop.permute.xlu1 %4048 }
0x12ce   : > { %v4054_v47 = vsel %vm1237_vm1, %v4049_v46, 0 }
0x12cf   : > { %16925 = vmatpush3.bf16.xpose.msra.mxu1 %v4054_v47 }
0x12d0   : > { %16936 = vmatprep.subr.bf16.mxu1 %v21908_v2 }
0x12d1   : > { %v4100_v48 = vpop.permute.xlu1 %4099 }
0x12d2   : > { %v4105_v40 = vsel %vm1237_vm1, %v4100_v48, 0 }
0x12d5   : > { %v4047_v28 = vpop.permute.xlu1 %4046 }
0x12d6   : > { %16927 = vmatmul.mubr.msk.bf16.vlgmr.msra.gmra.mxu1 %vm1237_vm1, %v4047_v28 }
0x12d7   : > { %v18072_v53 = vpop.eup %18071  ;;  %16938 = vmatprep.mubr.msk.bf16.mxu1 %vm18390_vm0, %v21908_v2 }
0x12d8   : > { %v3818_v35 = vmul.f32 %v18072_v53, %v18064_v5 }
0x12da   : > { %v3821_v54 = vpack.c.bf16 %v3819_v33, %v3818_v35 }
0x12dc   : > { %16921 = vmatmul.mubr.msk.bf16.vlgmr.msra.gmra.mxu0 %vm3047_vm8, %v3821_v54 }
0x12dd   : > { %16931 = vmatpush3.bf16.xpose.msra.mxu0 %v4105_v40  ;;  %16932 = vmatprep.mubr.msk.bf16.mxu0 %vm18390_vm0, %v21908_v2 }
0x12de   : > { %16942 = vmatprep.subr.bf16.mxu0 %v21908_v2 }
0x12e4   : > { %16933 = vmatmul.mubr.msk.bf16.vlgmr.msra.gmra.mxu0 %vm1237_vm1, %v4098_v8 }
0x12e5   : > { %16944 = vmatprep.mubr.msk.bf16.mxu0 %vm18390_vm0, %v21908_v2 }
0x136b   : > { %v19279_v55 = vpop.f32.mrf.mxu1 }
0x136d   : > { %v16916_v24 = vpop.f32.mrf.mxu1 }
0x136f   : > { %v19281_v21 = vpop.f32.mrf.mxu1 }
0x1371   : > { %v16917_v12 = vpop.f32.mrf.mxu1 }
0x1396   : > { %v4090_v60 = vpop.f32.mrf.mxu1 }
0x1397   : > { %v4148_v41 = vmul.f32 0.088388346, %v4090_v60 }
0x1398   : > { %v16928_v42 = vpop.f32.mrf.mxu1 }
0x1399   : > { %v4152_v63 = vsel %vm3047_vm8, %v4148_v41, -inf }
0x139a   : > { %4153 = vmax.xlane.f32.xlu1 %v4152_v63  ;;  %v4093_v4 = vpop.f32.mrf.mxu1 }
0x139b   : > { %v4149_v5 = vmul.f32 0.088388346, %v4093_v4 }
0x139c   : > { %v19284_v16 = vpop.f32.mrf.mxu0  ;;  %v16929_v18 = vpop.f32.mrf.mxu1 }
0x139d   : > { %v4155_v19 = vsel %vm3051_vm9, %v4149_v5, -inf }
0x139e   : > { %4156 = vmax.xlane.f32.xlu0 %v4155_v19  ;;  %v16922_v25 = vpop.f32.mrf.mxu0  ;;  %v3555_v19 = vrot.slane %v19231_v56, %v18632_v13 }
0x139f   : > { %v3548_v25 = vcombine.high %v19231_v56, %v19231_v56 }
0x13a0   : > { %v19287_v27 = vpop.f32.mrf.mxu0 }
0x13a2   : > { %v16923_v44 = vpop.f32.mrf.mxu0 }
0x13a3   : > { %v3563_v44 = vcombine.high %v3555_v19, %v3555_v19 }
0x13a4   : > { %v4141_v37 = vpop.f32.mrf.mxu0 }
0x13a5   : > { %v4150_v38 = vmul.f32 0.088388346, %v4141_v37  ;;  %v3562_v37 = vrot.slane %v3548_v25, %v18632_v13 }
0x13a6   : > { %v16934_v59 = vpop.f32.mrf.mxu0 }
0x13a7   : > { %v4158_v39 = vsel %vm3047_vm8, %v4150_v38, -inf  ;;  %v3564_v59 = vcombine.high %v3562_v37, %v3562_v37 }
0x13a8   : > { %4159 = vmax.xlane.f32.xlu0 %v4158_v39  ;;  %v4144_v45 = vpop.f32.mrf.mxu0 }
0x13a9   : > { %v4151_v23 = vmul.f32 0.088388346, %v4144_v45  ;;  %v3931_v45 = vrot.slane %v19279_v55, %v18632_v13 }
0x13aa   : > { %v16935_v43 = vpop.f32.mrf.mxu0 }
0x13ab   : > { %v4161_v30 = vsel %vm3051_vm9, %v4151_v23, -inf  ;;  %v3939_v43 = vcombine.high %v3931_v45, %v3931_v45 }
0x13ac   : > { %4162 = vmax.xlane.f32.xlu0 %v4161_v30  ;;  %v3572_v30 = vrot.slane %v19233_v57, %v18632_v13 }
0x1423   : > { %v4154_v46 = vpop.xlane.xlu1 %4153 }
0x1424   : > { %v4164_v47 = vsub.f32 %v4148_v41, %v4154_v46 }
0x1426   : > { %v4168_v48 = vmul.f32 1.442695, %v4164_v47  ;;  %v3957_v47 = vcombine.high %v19284_v16, %v19284_v16 }
0x1427   : > { %v4157_v49 = vpop.xlane.xlu0 %4156 }
0x1428   : > { %18073 = vpow2.f32 %v4168_v48  ;;  %v4165_v28 = vsub.f32 %v4149_v5, %v4157_v49  ;;  %v3964_v48 = vrot.slane %v19284_v16, %v18632_v13  ;;  %v3971_v49 = vrot.slane %v3957_v47, %v18632_v13 }
0x142a   : > { %v4170_v53 = vmul.f32 1.442695, %v4165_v28  ;;  %v3972_v28 = vcombine.high %v3964_v48, %v3964_v48 }
0x142c   : > { %18075 = vpow2.f32 %v4170_v53  ;;  %v3973_v53 = vcombine.high %v3971_v49, %v3971_v49 }
0x1431   : > { %v4160_v35 = vpop.xlane.xlu0 %4159 }
0x1432   : > { %v4166_v33 = vsub.f32 %v4150_v38, %v4160_v35  ;;  %v3581_v38 = vcombine.high %v19236_v9, %v19236_v9 }
0x1434   : > { %v4172_v54 = vmul.f32 1.442695, %v4166_v33  ;;  %v3595_v56 = vrot.slane %v3581_v38, %v18632_v13 }
0x1435   : > { %v19291_v40 = vpop.eup %18073  ;;  %v4163_v8 = vpop.xlane.xlu0 %4162 }
0x1436   : > { %18077 = vpow2.f32 %v4172_v54  ;;  %v4167_v24 = vsub.f32 %v4151_v23, %v4163_v8  ;;  %v4176_v12 = vsel %vm3047_vm8, %v19291_v40, 0.0  ;;  %v3597_v23 = vcombine.high %v3595_v56, %v3595_v56 }
0x1437   : > { %4177 = vadd.xlane.f32.xlu1 %v4176_v12 }
0x1438   : > { %v4174_v60 = vmul.f32 1.442695, %v4167_v24 }
0x1439   : > { %v19295_v41 = vpop.eup %18075 }
0x143a   : > { %18079 = vpow2.f32 %v4174_v60  ;;  %v4179_v42 = vsel %vm3051_vm9, %v19295_v41, 0.0 }
0x143b   : > { %4180 = vadd.xlane.f32.xlu0 %v4179_v42 }
0x1443   : > { %v19299_v63 = vpop.eup %18077 }
0x1444   : > { %v4182_v4 = vsel %vm3047_vm8, %v19299_v63, 0.0 }
0x1445   : > { %4183 = vadd.xlane.f32.xlu1 %v4182_v4 }
0x1447   : > { %v19303_v5 = vpop.eup %18079 }
0x1448   : > { %v4185_v18 = vsel %vm3051_vm9, %v19303_v5, 0.0 }
0x1449   : > { %4186 = vadd.xlane.f32.xlu0 %v4185_v18 }
0x1456   : > { %4198 = vrot.lane.b32.xlu1 %v19133_v31, %s18393_s21  ;;  %v3588_v31 = vrot.slane %v19236_v9, %v18632_v13 }
0x1458   : > { %v3596_v39 = vcombine.high %v3588_v31, %v3588_v31 }
0x145a   : > { %3614 = vrot.lane.b32.xlu1 %v3555_v19, %s18393_s21 }
0x145e   : > { %3616 = vrot.lane.b32.xlu1 %v3563_v44, %s18393_s21 }
0x145f   : > { %4247 = vrot.lane.b32.xlu0 %v19164_v50, %s18393_s21  ;;  %v3924_v50 = vcombine.high %v19279_v55, %v19279_v55  ;;  %v3580_v55 = vcombine.high %v3572_v30, %v3572_v30 }
0x1461   : > { %v3938_v9 = vrot.slane %v3924_v50, %v18632_v13 }
0x1462   : > { %3618 = vrot.lane.b32.xlu1 %v3562_v37, %s18393_s21 }
0x1463   : > { %3620 = vrot.lane.b32.xlu0 %v3564_v59, %s18393_s21  ;;  %v3940_v46 = vcombine.high %v3938_v9, %v3938_v9 }
0x1466   : > { %3628 = vrot.lane.b32.xlu1 %v3588_v31, %s18393_s21 }
0x1467   : > { %3630 = vrot.lane.b32.xlu0 %v3596_v39, %s18393_s21 }
0x146a   : > { %3632 = vrot.lane.b32.xlu1 %v3595_v56, %s18393_s21 }
0x146b   : > { %3634 = vrot.lane.b32.xlu0 %v3597_v23, %s18393_s21 }
0x146e   : > { %3990 = vrot.lane.b32.xlu1 %v3931_v45, %s18392_s18 }
0x146f   : > { %3992 = vrot.lane.b32.xlu0 %v3939_v43, %s18392_s18  ;;  %v3565_v43 = vcombine.high %v19233_v57, %v19233_v57 }
0x1472   : > { %3994 = vrot.lane.b32.xlu1 %v3938_v9, %s18392_s18 }
0x1473   : > { %3996 = vrot.lane.b32.xlu0 %v3940_v46, %s18392_s18  ;;  %v3579_v46 = vrot.slane %v3565_v43, %v18632_v13  ;;  %v17804_v43 = vld [vmem:[%s18602_s25 + $0x160] ss:$8 sps:$4 sm:$0xff]  }
0x1476   : > { %3622 = vrot.lane.b32.xlu1 %v3572_v30, %s18393_s21 }
0x1477   : > { %3624 = vrot.lane.b32.xlu0 %v3580_v55, %s18393_s21 }
0x147a   : > { %4004 = vrot.lane.b32.xlu1 %v3964_v48, %s18392_s18 }
0x147b   : > { %4006 = vrot.lane.b32.xlu0 %v3972_v28, %s18392_s18 }
0x147e   : > { %4008 = vrot.lane.b32.xlu1 %v3971_v49, %s18392_s18  ;;  %v3605_v49 = vrot.slane %v19239_v20, %v18632_v13 }
0x147f   : > { %4010 = vrot.lane.b32.xlu0 %v3973_v53, %s18392_s18  ;;  %v3941_v53 = vcombine.high %v19281_v21, %v19281_v21 }
0x14c0   : > { %v4178_v35 = vpop.xlane.xlu1 %4177 }
0x14c1   : > { %18081 = vrcp.f32 %v4178_v35 }
0x14c4   : > { %v4181_v33 = vpop.xlane.xlu0 %4180 }
0x14c5   : > { %18083 = vrcp.f32 %v4181_v33  ;;  %v3613_v33 = vcombine.high %v3605_v49, %v3605_v49 }
0x14ce   : > { %v4184_v16 = vpop.xlane.xlu1 %4183  ;;  %v18082_v54 = vpop.eup %18081 }
0x14cf   : > { %18085 = vrcp.f32 %v4184_v16  ;;  %v4192_v42 = vmul.f32 %v18082_v54, %v19291_v40  ;;  %v17793_v16 = vld [vmem:[%s18608_s24 + $0x78] sm:$0xff]   ;;  %v3955_v54 = vrot.slane %v3941_v53, %v18632_v13 }
0x14d2   : > { %v18084_v8 = vpop.eup %18083  ;;  %v4199_v24 = vpop.permute.xlu1 %4198 }
0x14d3   : > { %v4187_v12 = vpop.xlane.xlu0 %4186  ;;  %v4204_v60 = vsel %vm3098_vm7, %v4199_v24, 0  ;;  %v4193_v4 = vmul.f32 %v18084_v8, %v19295_v41  ;;  %v3981_v8 = vrot.slane %v19287_v27, %v18632_v13 }
0x14d4   : > { %18087 = vrcp.f32 %v4187_v12  ;;  %16937 = vmatpush3.bf16.msra.mxu1 %v4204_v60  ;;  %v3598_v12 = vcombine.high %v19239_v20, %v19239_v20  ;;  %v17796_v20 = vld [vmem:[%s18608_s24 + $0x60] sm:$0xff]  }
0x14d5   : > { %v4196_v18 = vpack.c.bf16 %v4193_v4, %v4192_v42  ;;  %16948 = vmatprep.subr.bf16.mxu1 %v17793_v16  ;;  %v3989_v60 = vcombine.high %v3981_v8, %v3981_v8  ;;  %v17795_v4 = vld [vmem:[%s18608_s24 + $0x68] sm:$0xff]  }
0x14d7   : > { %v4248_v19 = vpop.permute.xlu0 %4247  ;;  %16939 = vmatmul.mubr.msk.bf16.vlgmr.msra.gmra.mxu1 %vm3047_vm8, %v4196_v18  ;;  %v3612_v18 = vrot.slane %v3598_v12, %v18632_v13  ;;  %v3194_v12 = vcombine.high %v19183_v61, %v19183_v61 }
0x14d8   : > { %v4253_v25 = vsel %vm3098_vm7, %v4248_v19, 0  ;;  %16949 = vmatpush3.bf16.msra.mxu1 %v17793_v16 }
0x14d9   : > { %16943 = vmatpush3.bf16.msra.mxu0 %v4253_v25 }
0x14dc   : > { %v18086_v44 = vpop.eup %18085 }
0x14dd   : > { %v4194_v38 = vmul.f32 %v18086_v44, %v19299_v63 }
0x14e1   : > { %v18088_v37 = vpop.eup %18087 }
0x14e2   : > { %v4195_v31 = vmul.f32 %v18088_v37, %v19303_v5  ;;  %v3948_v5 = vrot.slane %v19281_v21, %v18632_v13  ;;  %v17794_v21 = vld [vmem:[%s18608_s24 + $0x70] sm:$0xff]  }
0x14e3   : > { %16950 = vmatprep.subr.bf16.mxu1 %v17794_v21 }
0x14e4   : > { %v4197_v59 = vpack.c.bf16 %v4195_v31, %v4194_v38  ;;  %v3956_v30 = vcombine.high %v3948_v5, %v3948_v5  ;;  %16951 = vmatpush3.bf16.msra.mxu1 %v17794_v21  ;;  %v17797_v38 = vld [vmem:[%s18608_s24 + $0x58] sm:$0xff]  }
0x14e5   : > { %16952 = vmatprep.subr.bf16.mxu1 %v17795_v4 }
0x14e6   : > { %16945 = vmatmul.mubr.msk.bf16.vlgmr.msra.gmra.mxu0 %vm3047_vm8, %v4197_v59 }
0x14e7   : > { %5357 = vmatprep.mubr.bf16.mxu0 %v21906_v1 }
0x14e8   : > { %16953 = vmatpush3.bf16.msra.mxu1 %v17795_v4  ;;  %v3208_v4 = vrot.slane %v3194_v12, %v18632_v13 }
0x14e9   : > { %16954 = vmatprep.subr.bf16.mxu1 %v17796_v20 }
0x14ec   : > { %16955 = vmatpush3.bf16.msra.mxu1 %v17796_v20  ;;  %v3210_v20 = vcombine.high %v3208_v4, %v3208_v4 }
0x14ed   : > { %16956 = vmatprep.subr.bf16.mxu1 %v17797_v38 }
0x14f0   : > { %16957 = vmatpush3.bf16.msra.mxu1 %v17797_v38  ;;  %v3218_v38 = vrot.slane %v19185_v62, %v18632_v13 }
0x14f2   : > { %v3278_v12 = vadd.f32 %v3218_v38, %v19040_v14 }
0x1597   : > { %v4240_v40 = vpop.f32.mrf.mxu1 }
0x1598   : > { %v4300_v41 = vcombine.high %v4240_v40, %v4240_v40  ;;  %v4307_v56 = vrot.slane %v4240_v40, %v18632_v13  ;;  %v3974_v40 = vcombine.high %v19287_v27, %v19287_v27 }
0x1599   : > { %v16940_v39 = vpop.f32.mrf.mxu1 }
0x159a   : > { %v4314_v50 = vrot.slane %v4300_v41, %v18632_v13  ;;  %v4315_v45 = vcombine.high %v4307_v56, %v4307_v56  ;;  %4366 = vrot.lane.b32.xlu1 %v4307_v56, %s18391_s28  ;;  %v17798_v41 = vld [vmem:[%s18608_s24 + $0x50] sm:$0xff]  }
0x159b   : > { %v4243_v23 = vpop.f32.mrf.mxu1  ;;  %16958 = vmatprep.subr.bf16.mxu1 %v17798_v41 }
0x159c   : > { %4368 = vrot.lane.b32.xlu0 %v4315_v45, %s18391_s28  ;;  %v4316_v9 = vcombine.high %v4314_v50, %v4314_v50  ;;  %v4324_v55 = vrot.slane %v4243_v23, %v18632_v13  ;;  %v4317_v24 = vcombine.high %v4243_v23, %v4243_v23  ;;  %16959 = vmatpush3.bf16.msra.mxu1 %v17798_v41  ;;  %v17799_v45 = vld [vmem:[%s18608_s24 + $0x48] sm:$0xff]   ;;  %v17800_v23 = vld [vmem:[%s18608_s24 + $0x40] sm:$0xff]  }
0x159d   : > { %v16941_v63 = vpop.f32.mrf.mxu1  ;;  %16960 = vmatprep.subr.bf16.mxu1 %v17799_v45 }
0x159e   : > { %4370 = vrot.lane.b32.xlu1 %v4314_v50, %s18391_s28  ;;  %v4332_v57 = vcombine.high %v4324_v55, %v4324_v55  ;;  %v4331_v42 = vrot.slane %v4317_v24, %v18632_v13  ;;  %v3988_v50 = vrot.slane %v3974_v40, %v18632_v13  ;;  %v17801_v63 = vld [vmem:[%s18602_s25 + $0x170] ss:$8 sps:$4 sm:$0xff]   ;;  %v3277_v40 = vadd.f32 %v3210_v20, %v19056_v10 }
0x15a0   : > { %4372 = vrot.lane.b32.xlu0 %v4316_v9, %s18391_s28  ;;  %16961 = vmatpush3.bf16.msra.mxu1 %v17799_v45  ;;  %v17806_v9 = vld [vmem:[%s18602_s25 + $0x164] ss:$8 sps:$4 sm:$0xff]  }
0x15a1   : > { %16962 = vmatprep.subr.bf16.mxu1 %v17800_v23 }
0x15a2   : > { %3998 = vrot.lane.b32.xlu1 %v3948_v5, %s18392_s18  ;;  %v17803_v5 = vld [vmem:[%s18602_s25 + $0x174] ss:$8 sps:$4 sm:$0xff]  }
0x15a3   : > { %5325 = vmatprep.subr.bf16.mxu0 %v17803_v5 }
0x15a4   : > { %4000 = vrot.lane.b32.xlu0 %v3956_v30, %s18392_s18  ;;  %16963 = vmatpush3.bf16.msra.mxu1 %v17800_v23  ;;  %v3615_v30 = vpop.permute.xlu1 %3614 }
0x15a5   : > { %16968 = vmatprep.subr.bf16.mxu1 %v21908_v2  ;;  %5326 = vmatpush1.bf16.msra.mxu0 %v17801_v63  ;;  %v3227_v63 = vcombine.high %v19189_v26, %v19189_v26 }
0x15a6   : > { %v4289_v47 = vpop.f32.mrf.mxu0  ;;  %3626 = vrot.lane.b32.xlu1 %v3579_v46, %s18393_s21  ;;  %5327 = vmatprep.subr.bf16.mxu0 %v17806_v9 }
0x15a7   : > { %v4333_v19 = vcombine.high %v4289_v47, %v4289_v47  ;;  %v4340_v25 = vrot.slane %v4289_v47, %v18632_v13  ;;  %v3621_v47 = vpop.permute.xlu0 %3620 }
0x15a8   : > { %v16946_v48 = vpop.f32.mrf.mxu0  ;;  %4374 = vrot.lane.b32.xlu0 %v4324_v55, %s18391_s28  ;;  %v3617_v46 = vpop.permute.xlu1 %3616 }
0x15a9   : > { %v4347_v44 = vrot.slane %v4333_v19, %v18632_v13  ;;  %v4348_v37 = vcombine.high %v4340_v25, %v4340_v25  ;;  %5328 = vmatpush1.bf16.msra.mxu0 %v17804_v43  ;;  %v3234_v43 = vrot.slane %v19189_v26, %v18632_v13  ;;  %v3657_v26 = vadd.f32 %v3617_v46, %v19047_v17 }
0x15aa   : > { %v4292_v28 = vpop.f32.mrf.mxu0  ;;  %4376 = vrot.lane.b32.xlu1 %v4332_v57, %s18391_s28 }
0x15ab   : > { %v4349_v31 = vcombine.high %v4347_v44, %v4347_v44  ;;  %v4357_v59 = vrot.slane %v4292_v28, %v18632_v13  ;;  %v4350_v56 = vcombine.high %v4292_v28, %v4292_v28 }
0x15ac   : > { %v16947_v35 = vpop.f32.mrf.mxu0  ;;  %3636 = vrot.lane.b32.xlu0 %v3605_v49, %s18393_s21  ;;  %v3619_v55 = vpop.permute.xlu1 %3618 }
0x15ad   : > { %v4365_v39 = vcombine.high %v4357_v59, %v4357_v59  ;;  %v4364_v27 = vrot.slane %v4350_v56, %v18632_v13  ;;  %v19425_v49 = vpop.permute.xlu0 %3630 }
0x15ae   : > { %3638 = vrot.lane.b32.xlu1 %v3613_v33, %s18393_s21 }
0x15b0   : > { %4002 = vrot.lane.b32.xlu0 %v3955_v54, %s18392_s18  ;;  %v19423_v48 = vpop.permute.xlu1 %3628 }
0x15b1   : > { %v19429_v28 = vpop.permute.xlu0 %3634 }
0x15b2   : > { %4012 = vrot.lane.b32.xlu1 %v3981_v8, %s18392_s18 }
0x15b4   : > { %4014 = vrot.lane.b32.xlu0 %v3989_v60, %s18392_s18  ;;  %v19427_v57 = vpop.permute.xlu1 %3632 }
0x15b5   : > { %v3993_v35 = vpop.permute.xlu0 %3992 }
0x15b6   : > { %4378 = vrot.lane.b32.xlu1 %v4331_v42, %s18391_s28  ;;  %v3201_v42 = vrot.slane %v19183_v61, %v18632_v13 }
0x15b8   : > { %3640 = vrot.lane.b32.xlu0 %v3612_v18, %s18393_s21  ;;  %v3991_v53 = vpop.permute.xlu1 %3990  ;;  %v3274_v56 = vadd.f32 %v3201_v42, %v19030_v7 }
0x15b9   : > { %v3997_v16 = vpop.permute.xlu0 %3996 }
0x15ba   : > { %4380 = vrot.lane.b32.xlu1 %v4340_v25, %s18391_s28  ;;  %v3209_v25 = vcombine.high %v3201_v42, %v3201_v42  ;;  %v3658_v42 = vadd.f32 %v3619_v55, %v19037_v11 }
0x15bc   : > { %4382 = vrot.lane.b32.xlu0 %v4348_v37, %s18391_s28  ;;  %v3995_v33 = vpop.permute.xlu1 %3994 }
0x15bd   : > { %v19433_v8 = vpop.permute.xlu0 %3624 }
0x15be   : > { %4384 = vrot.lane.b32.xlu1 %v4347_v44, %s18391_s28  ;;  %v3211_v44 = vcombine.high %v19185_v62, %v19185_v62 }
0x15c0   : > { %4386 = vrot.lane.b32.xlu0 %v4349_v31, %s18391_s28  ;;  %v19431_v54 = vpop.permute.xlu1 %3622  ;;  %v3225_v61 = vrot.slane %v3211_v44, %v18632_v13  ;;  %v3241_v44 = vrot.slane %v3227_v63, %v18632_v13 }
0x15c1   : > { %v19437_v21 = vpop.permute.xlu0 %4006 }
0x15c2   : > { %4388 = vrot.lane.b32.xlu1 %v4357_v59, %s18391_s28  ;;  %v3275_v59 = vadd.f32 %v3209_v25, %v19047_v17  ;;  %v19460_v62 = vadd.f32 %v3225_v61, %v19068_v34  ;;  %v3243_v46 = vcombine.high %v3241_v44, %v3241_v44 }
0x15c4   : > { %4390 = vrot.lane.b32.xlu0 %v4365_v39, %s18391_s28  ;;  %v19435_v24 = vpop.permute.xlu1 %4004  ;;  %v3276_v39 = vadd.f32 %v3208_v4, %v19037_v11 }
0x15c5   : > { %v19446_v18 = vpop.permute.xlu0 %4010 }
0x15c6   : > { %4016 = vrot.lane.b32.xlu1 %v3988_v50, %s18392_s18  ;;  %v3226_v50 = vcombine.high %v3218_v38, %v3218_v38  ;;  %v4437_v23 = vcombine.low %v3276_v39, %v3277_v40  ;;  %v4467_v40 = vrot.slane %v19460_v62, %v18632_v13  ;;  %v3659_v38 = vadd.f32 %v3621_v47, %v19056_v10 }
0x15c7   : > { %v3242_v39 = vcombine.high %v3234_v43, %v3234_v43  ;;  %v3244_v47 = vcombine.high %v19191_v36, %v19191_v36 }
0x15c8   : > { %4392 = vrot.lane.b32.xlu0 %v4364_v27, %s18391_s28  ;;  %v19441_v60 = vpop.permute.xlu1 %4008  ;;  %v4436_v27 = vcombine.low %v3274_v56, %v3275_v59  ;;  %v3279_v9 = vadd.f32 %v3226_v50, %v19060_v0  ;;  %v19471_v20 = vrot.slane %v4437_v23, %v18632_v13  ;;  %v4034_v59 = vadd.f32 %v3995_v33, %v19037_v11 }
0x15c9   : > { %v4032_v50 = vadd.f32 %v3991_v53, %v19030_v7  ;;  %v3656_v23 = vadd.f32 %v3615_v30, %v19030_v7  ;;  %v4521_v63 = vcombine.low %v3658_v42, %v3659_v38  ;;  %v19490_v53 = vrot.slane %v19191_v36, %v18632_v13 }
0x15ca   : > { %v19468_v25 = vrot.slane %v4436_v27, %v18632_v13  ;;  %v4453_v56 = vcombine.low %v3278_v12, %v3279_v9  ;;  %v4035_v27 = vadd.f32 %v3997_v16, %v19056_v10  ;;  %v19505_v36 = vadd.f32 %v3241_v44, %v19052_v22 }
0x15cb   : > { %v3284_v42 = vadd.f32 %v3243_v46, %v19043_v32 }
0x15cc   : > { %v4605_v9 = vcombine.low %v4034_v59, %v4035_v27  ;;  %v3259_v59 = vcombine.high %v19490_v53, %v19490_v53 }
0x160c   : > { %v4367_v19 = vpop.permute.xlu1 %4366 }
0x160d   : > { %v4408_v30 = vadd.f32 %v4367_v19, %v19030_v7  ;;  %v4535_v7 = vrot.slane %v4521_v63, %v18632_v13 }
0x160e   : > { %v4369_v37 = vpop.permute.xlu0 %4368 }
0x160f   : > { %v4409_v33 = vadd.f32 %v4369_v37, %v19047_v17  ;;  %v4460_v37 = vrot.slane %v4453_v56, %v18632_v13 }
0x1610   : > { %v4371_v31 = vpop.permute.xlu1 %4370 }
0x1611   : > { %v4410_v1 = vadd.f32 %v4371_v31, %v19037_v11  ;;  %v4452_v11 = vcombine.low %v19468_v25, %v19471_v20  ;;  %v19499_v31 = vadd.f32 %v3234_v43, %v19087_v51  ;;  %v3258_v25 = vrot.slane %v3244_v47, %v18632_v13 }
0x1612   : > { %v4373_v41 = vpop.permute.xlu0 %4372  ;;  %v4619_v20 = vrot.slane %v4605_v9, %v18632_v13  ;;  %v3660_v43 = vadd.f32 %v19431_v54, %v19040_v14 }
0x1613   : > { %v4411_v55 = vadd.f32 %v4373_v41, %v19056_v10  ;;  %v4033_v41 = vadd.f32 %v3993_v35, %v19047_v17  ;;  %v4520_v10 = vcombine.low %v3656_v23, %v3657_v26  ;;  %v19502_v35 = vadd.f32 %v3242_v39, %v19034_v58 }
0x1614   : > { %v3999_v45 = vpop.permute.xlu1 %3998  ;;  %v3661_v39 = vadd.f32 %v19433_v8, %v19060_v0 }
0x1615   : > { %v4689_v16 = vcombine.low %v4410_v1, %v4411_v55  ;;  %v4604_v17 = vcombine.low %v4032_v50, %v4033_v41  ;;  %v4688_v1 = vcombine.low %v4408_v30, %v4409_v33  ;;  %v4528_v44 = vrot.slane %v4520_v10, %v18632_v13 }
0x1616   : > { %v4001_v5 = vpop.permute.xlu0 %4000  ;;  %v4036_v63 = vadd.f32 %v3999_v45, %v19040_v14  ;;  %v4537_v41 = vcombine.low %v3660_v43, %v3661_v39  ;;  %v19537_v45 = vadd.f32 %v3259_v59, %v19082_v52  ;;  %v19540_v30 = vadd.f32 %v3258_v25, %v19110_v15 }
0x1617   : > { %v4703_v26 = vrot.slane %v4689_v16, %v18632_v13  ;;  %v4037_v38 = vadd.f32 %v4001_v5, %v19060_v0  ;;  %v4612_v56 = vrot.slane %v4604_v17, %v18632_v13  ;;  %v4536_v54 = vcombine.low %v4528_v44, %v4535_v7 }
0x1618   : > { %v3627_v4 = vpop.permute.xlu1 %3626  ;;  %v4696_v23 = vrot.slane %v4688_v1, %v18632_v13  ;;  %v4469_v5 = vcombine.low %v19499_v31, %v19502_v35  ;;  %v4544_v7 = vrot.slane %v4537_v41, %v18632_v13  ;;  %v4041_v1 = vadd.f32 %v19441_v60, %v19052_v22 }
0x1619   : > { %v3662_v50 = vadd.f32 %v3627_v4, %v19068_v34  ;;  %v4620_v47 = vcombine.low %v4612_v56, %v4619_v20  ;;  %v4470_v4 = vcombine.low %v19505_v36, %v3284_v42  ;;  %v4621_v9 = vcombine.low %v4036_v63, %v4037_v38 }
0x161a   : > { %v4375_v61 = vpop.permute.xlu0 %4374  ;;  %v4758_v17 = vsel %vm1237_vm1, %v4452_v11, %v4536_v54  ;;  %v3664_v11 = vadd.f32 %v19425_v49, %v19034_v58  ;;  %v4042_v43 = vadd.f32 %v19446_v18, %v19043_v32  ;;  %v4039_v49 = vadd.f32 %v19435_v24, %v19087_v51 }
0x161b   : > { %v4412_v8 = vadd.f32 %v4375_v61, %v19040_v14  ;;  %v4551_v16 = vrot.slane %v3662_v50, %v18632_v13  ;;  %v3663_v14 = vadd.f32 %v19423_v48, %v19087_v51  ;;  %v4762_v36 = vsel %vm2138_vm5, %v4758_v17, %v4620_v47 }
0x161c   : > { %v4377_v2 = vpop.permute.xlu1 %4376  ;;  %v3285_v56 = vadd.f32 %v19490_v53, %v19065_v29  ;;  %v4638_v39 = vcombine.low %v4041_v1, %v4042_v43  ;;  %v4484_v54 = vrot.slane %v4470_v4, %v18632_v13  ;;  %v4500_v62 = vrot.slane %v19540_v30, %v18632_v13 }
0x161d   : > { %v4413_v27 = vadd.f32 %v4377_v2, %v19060_v0  ;;  %v3665_v2 = vadd.f32 %v19427_v57, %v19052_v22  ;;  %v4704_v0 = vcombine.low %v4696_v23, %v4703_v26  ;;  %v3666_v57 = vadd.f32 %v19429_v28, %v19043_v32 }
0x161e   : > { %v19493_v12 = vpop.permute.xlu0 %3636  ;;  %v4628_v28 = vrot.slane %v4621_v9, %v18632_v13  ;;  %v4552_v59 = vcombine.low %v4544_v7, %v4551_v16  ;;  %v4553_v60 = vcombine.low %v3663_v14, %v3664_v11  ;;  %v4486_v24 = vcombine.low %v3285_v56, %v19537_v45 }
0x161f   : > { %v4705_v31 = vcombine.low %v4412_v8, %v4413_v27  ;;  %v4554_v25 = vcombine.low %v3665_v2, %v3666_v57  ;;  %v4766_v48 = vsel %vm2141_vm6, %v4762_v36, %v4704_v0  ;;  %v4477_v27 = vrot.slane %v4469_v5, %v18632_v13 }
0x1620   : > { %v19508_v19 = vpop.permute.xlu1 %3638  ;;  %v4774_v18 = vcombine.high %v4766_v48, %v4766_v48  ;;  %v3667_v9 = vadd.f32 %v19493_v12, %v19065_v29  ;;  %v4493_v36 = vrot.slane %v4486_v24, %v18632_v13 }
0x1621   : > { %v4712_v44 = vrot.slane %v4705_v31, %v18632_v13  ;;  %v4568_v23 = vrot.slane %v4554_v25, %v18632_v13  ;;  %v3668_v47 = vadd.f32 %v19508_v19, %v19082_v52 }
0x1622   : > { %v4003_v55 = vpop.permute.xlu0 %4002  ;;  %v19587_v0 = vrot.slane %v4774_v18, %v18632_v13 }
0x1623   : > { %v4038_v33 = vadd.f32 %v4003_v55, %v19068_v34  ;;  %v4570_v57 = vcombine.low %v3667_v9, %v3668_v47 }
0x1624   : > { %v19528_v46 = vpop.permute.xlu1 %4012  ;;  %v19607_v1 = vcombine.high %v19587_v0, %v19587_v0 }
0x1625   : > { %v4635_v61 = vrot.slane %v4038_v33, %v18632_v13  ;;  %v4561_v33 = vrot.slane %v4553_v60, %v18632_v13 }
0x1626   : > { %v4015_v10 = vpop.permute.xlu0 %4014 }
0x1627   : > { %v4636_v38 = vcombine.low %v4628_v28, %v4635_v61  ;;  %v4044_v19 = vadd.f32 %v4015_v10, %v19082_v52  ;;  %v4569_v16 = vcombine.low %v4561_v33, %v4568_v23  ;;  %v4043_v61 = vadd.f32 %v19528_v46, %v19065_v29 }
0x1628   : > { %v4379_v35 = vpop.permute.xlu1 %4378  ;;  %v4485_v10 = vcombine.low %v4477_v27, %v4484_v54 }
0x1629   : > { %v4414_v42 = vadd.f32 %v4379_v35, %v19068_v34  ;;  %v4468_v34 = vcombine.low %v4460_v37, %v4467_v40  ;;  %v4040_v40 = vadd.f32 %v19437_v21, %v19034_v58  ;;  %v4652_v21 = vrot.slane %v4638_v39, %v18632_v13 }
0x162a   : > { %v3641_v20 = vpop.permute.xlu0 %3640  ;;  %v4760_v43 = vsel %vm1237_vm1, %v4485_v10, %v4569_v16 }
0x162b   : > { %v4719_v26 = vrot.slane %v4414_v42, %v18632_v13  ;;  %v4759_v53 = vsel %vm1237_vm1, %v4468_v34, %v4552_v59  ;;  %v4637_v5 = vcombine.low %v4039_v49, %v4040_v40  ;;  %v3669_v45 = vadd.f32 %v3641_v20, %v19110_v15 }
0x162c   : > { %v4381_v55 = vpop.permute.xlu1 %4380  ;;  %v4763_v41 = vsel %vm2138_vm5, %v4759_v53, %v4636_v38  ;;  %v4577_v59 = vrot.slane %v4570_v57, %v18632_v13 }
0x162d   : > { %v4720_v50 = vcombine.low %v4712_v44, %v4719_v26  ;;  %v4415_v2 = vadd.f32 %v4381_v55, %v19087_v51  ;;  %v4645_v14 = vrot.slane %v4637_v5, %v18632_v13  ;;  %v4584_v42 = vrot.slane %v3669_v45, %v18632_v13 }
0x162e   : > { %v4383_v37 = vpop.permute.xlu0 %4382  ;;  %v4855_v55 = vcombine.low %v19587_v0, %v19607_v1 }
0x162f   : > { %v4416_v63 = vadd.f32 %v4383_v37, %v19034_v58  ;;  %v4767_v4 = vsel %vm2141_vm6, %v4763_v41, %v4720_v50  ;;  %v19590_v58 = vrot.slane %v4766_v48, %v18632_v13  ;;  %v4585_v56 = vcombine.low %v4577_v59, %v4584_v42  ;;  %v17815_v59 = vld [vmem:[%s18602_s25 + $0x134] ss:$8 sps:$4 sm:$0xff]  }
0x1630   : > { %v4385_v8 = vpop.permute.xlu1 %4384  ;;  %v19602_v35 = vrot.slane %v4767_v4, %v18632_v13  ;;  %v4791_v44 = vcombine.high %v4767_v4, %v4767_v4  ;;  %v4869_v5 = vrot.slane %v4855_v55, %v18632_v13  ;;  %v17824_v55 = vld [vmem:[%s18602_s25 + $0x104] ss:$8 sps:$4 sm:$0xff]  }
0x1631   : > { %v4721_v31 = vcombine.low %v4415_v2, %v4416_v63  ;;  %v4417_v17 = vadd.f32 %v4385_v8, %v19052_v22  ;;  %v4653_v22 = vcombine.low %v4645_v14, %v4652_v21  ;;  %v19612_v46 = vcombine.high %v19590_v58, %v19590_v58 }
0x1632   : > { %v4387_v30 = vpop.permute.xlu0 %4386  ;;  %v19622_v34 = vcombine.high %v19602_v35, %v19602_v35 }
0x1633   : > { %v4418_v51 = vadd.f32 %v4387_v30, %v19043_v32  ;;  %v4654_v32 = vcombine.low %v4043_v61, %v4044_v19  ;;  %v4729_v25 = vrot.slane %v4721_v31, %v18632_v13  ;;  %v4854_v18 = vcombine.low %v19590_v58, %v19612_v46 }
0x1634   : > { %v4389_v12 = vpop.permute.xlu1 %4388  ;;  %v4871_v23 = vcombine.low %v19602_v35, %v19622_v34 }
0x1635   : > { %v4722_v7 = vcombine.low %v4417_v17, %v4418_v51  ;;  %v4419_v28 = vadd.f32 %v4389_v12, %v19065_v29  ;;  %v4501_v29 = vcombine.low %v4493_v36, %v4500_v62  ;;  %v4661_v50 = vrot.slane %v4654_v32, %v18632_v13 }
0x1636   : > { %v4391_v11 = vpop.permute.xlu0 %4390  ;;  %v19638_v62 = vrot.slane %v4791_v44, %v18632_v13  ;;  %v4862_v2 = vrot.slane %v4854_v18, %v18632_v13  ;;  %v4879_v9 = vrot.slane %v4871_v23, %v18632_v13  ;;  %v17813_v44 = vld [vmem:[%s18602_s25 + $0x130] ss:$8 sps:$4 sm:$0xff]  }
0x1637   : > { %v4736_v48 = vrot.slane %v4722_v7, %v18632_v13  ;;  %v4420_v20 = vadd.f32 %v4391_v11, %v19082_v52  ;;  %v4764_v52 = vsel %vm2138_vm5, %v4760_v43, %v4653_v22  ;;  %v4761_v47 = vsel %vm1237_vm1, %v4501_v29, %v4585_v56  ;;  %v17810_v43 = vld [vmem:[%s18602_s25 + $0x140] ss:$8 sps:$4 sm:$0xff]  }
0x1638   : > { %v4017_v26 = vpop.permute.xlu1 %4016  ;;  %v4870_v30 = vcombine.low %v4862_v2, %v4869_v5  ;;  %v17822_v29 = vld [vmem:[%s18602_s25 + $0x100] ss:$8 sps:$4 sm:$0xff]  }
0x1639   : > { %v4737_v60 = vcombine.low %v4729_v25, %v4736_v48  ;;  %v4738_v49 = vcombine.low %v4419_v28, %v4420_v20  ;;  %v4045_v38 = vadd.f32 %v4017_v26, %v19110_v15  ;;  %v21924_v25 = vmov 0.0   ;;  %v17809_v48 = vld [vmem:[%s18602_s25 + $0x154] ss:$8 sps:$4 sm:$0xff]   ;;  %v17807_v28 = vld [vmem:[%s18602_s25 + $0x150] ss:$8 sps:$4 sm:$0xff]  }
0x163a   : > { %v4393_v39 = vpop.permute.xlu0 %4392  ;;  %5329 = vmatprep.subr.bf16.mxu0 %v17809_v48  ;;  %v17812_v20 = vld [vmem:[%s18602_s25 + $0x144] ss:$8 sps:$4 sm:$0xff]  }
0x163b   : > { %v4768_v27 = vsel %vm2141_vm6, %v4764_v52, %v4737_v60  ;;  %v4668_v54 = vrot.slane %v4045_v38, %v18632_v13  ;;  %v4421_v40 = vadd.f32 %v4393_v39, %v19110_v15  ;;  %v4745_v53 = vrot.slane %v4738_v49, %v18632_v13  ;;  %5330 = vmatpush1.bf16.msra.mxu0 %v17807_v28  ;;  %v17818_v26 = vld [vmem:[%s18602_s25 + $0x124] ss:$8 sps:$4 sm:$0xff]   ;;  %v17816_v60 = vld [vmem:[%s18602_s25 + $0x120] ss:$8 sps:$4 sm:$0xff]   ;;  %v17821_v49 = vld [vmem:[%s18602_s25 + $0x114] ss:$8 sps:$4 sm:$0xff]  }
0x163c   : > { %v4807_v37 = vcombine.high %v4768_v27, %v4768_v27  ;;  %v19635_v24 = vrot.slane %v4768_v27, %v18632_v13  ;;  %5331 = vmatprep.subr.bf16.mxu0 %v17812_v20  ;;  %v17819_v38 = vld [vmem:[%s18602_s25 + $0x110] ss:$8 sps:$4 sm:$0xff]   ;;  %v15884_v52 = vld [vmem:[%s19002_s23 + $0x1] ss:$0 sm:$0xff] }
0x163d   : > { %v4669_v63 = vcombine.low %v4661_v50, %v4668_v54  ;;  %v4752_v33 = vrot.slane %v4421_v40, %v18632_v13 }
0x163e   : > { %v19647_v15 = vrot.slane %v4807_v37, %v18632_v13  ;;  %v4872_v41 = vcombine.low %v19638_v62, %v19635_v24  ;;  %v19653_v8 = vcombine.high %v19635_v24, %v19635_v24 }
0x163f   : > { %v4765_v21 = vsel %vm2138_vm5, %v4761_v47, %v4669_v63  ;;  %v4753_v4 = vcombine.low %v4745_v53, %v4752_v33  ;;  %5332 = vmatpush1.bf16.msra.mxu0 %v17810_v43 }
0x1640   : > { %v4886_v19 = vrot.slane %v4872_v41, %v18632_v13  ;;  %v19662_v16 = vcombine.high %v19647_v15, %v19647_v15  ;;  %v4888_v14 = vcombine.low %v19653_v8, %v19647_v15  ;;  %5333 = vmatprep.subr.bf16.mxu0 %v17815_v59 }
0x1641   : > { %v4769_v45 = vsel %vm2141_vm6, %v4765_v21, %v4753_v4 }
0x1642   : > { %v4824_v31 = vcombine.high %v4769_v45, %v4769_v45  ;;  %v19665_v17 = vrot.slane %v4769_v45, %v18632_v13  ;;  %v4887_v51 = vcombine.low %v4879_v9, %v4886_v19  ;;  %v4896_v36 = vrot.slane %v4888_v14, %v18632_v13 }
0x1643   : > { %5334 = vmatpush1.bf16.msra.mxu0 %v17813_v44 }
0x1644   : > { %v19670_v57 = vrot.slane %v4824_v31, %v18632_v13  ;;  %v4917_v61 = vpack.c.bf16 %v4887_v51, %v4870_v30  ;;  %v19674_v12 = vcombine.high %v19665_v17, %v19665_v17  ;;  %v4889_v10 = vcombine.low %v19662_v16, %v19665_v17  ;;  %5335 = vmatprep.subr.bf16.mxu0 %v17818_v26 }
0x1646   : > { %16964 = vmatprep.mubr.bf16.mxu1 %v4917_v61  ;;  %v4903_v7 = vrot.slane %v4889_v10, %v18632_v13  ;;  %v4905_v22 = vcombine.low %v19674_v12, %v19670_v57 }
0x1647   : > { %5336 = vmatpush1.bf16.msra.mxu0 %v17816_v60 }
0x1648   : > { %v4904_v32 = vcombine.low %v4896_v36, %v4903_v7  ;;  %v4912_v42 = vrot.slane %v4905_v22, %v18632_v13  ;;  %5337 = vmatprep.subr.bf16.mxu0 %v17821_v49 }
0x164a   : > { %v4918_v11 = vpack.c.bf16 %v4912_v42, %v4904_v32 }
0x164b   : > { %5338 = vmatpush1.bf16.msra.mxu0 %v17819_v38 }
0x164c   : > { %16965 = vmatmul.mubr.bf16.vlgmr.msra.gmra.mxu1 %v4918_v11  ;;  %5339 = vmatprep.subr.bf16.mxu0 %v17824_v55 }
0x164d   : > { %16970 = vmatprep.mubr.msk.bf16.mxu1 %vm18390_vm0, %v21924_v25 }
0x164f   : > { %5340 = vmatpush1.bf16.msra.mxu0 %v17822_v29 }
0x1650   : > { %16980 = vmatprep.subr.bf16.mxu0 %v21924_v25 }
0x170c   : > { %v16966_v56 = vpop.f32.mrf.mxu1 }
0x170d   : > { %v5035_v39 = vadd.f32 %v16966_v56, %v15884_v52 }
0x170e   : > { %v5026_v18 = vpop.f32.mrf.mxu1 }
0x170f   : > { %v5043_v50 = vmax.f32 %v5035_v39, 0.0  ;;  %v5027_v27 = vadd.f32 %v15884_v52, %v5026_v18 }
0x1710   : > { %v16967_v54 = vpop.f32.mrf.mxu1 }
0x1711   : > { %v5083_v40 = vcombine.high %v5043_v50, %v5043_v50  ;;  %v5041_v37 = vmax.f32 %v5027_v27, 0.0  ;;  %v5038_v23 = vadd.f32 %v16967_v54, %v15884_v52  ;;  %v5090_v19 = vrot.slane %v5043_v50, %v18632_v13 }
0x1712   : > { %v5029_v53 = vpop.f32.mrf.mxu1 }
0x1713   : > { %v5049_v63 = vcombine.high %v5041_v37, %v5041_v37  ;;  %v5056_v33 = vrot.slane %v5041_v37, %v18632_v13  ;;  %v5030_v5 = vadd.f32 %v15884_v52, %v5029_v53  ;;  %v5097_v47 = vrot.slane %v5083_v40, %v18632_v13 }
0x1714   : > { %v5044_v4 = vmax.f32 %v5038_v23, 0.0  ;;  %v5098_v22 = vcombine.high %v5090_v19, %v5090_v19 }
0x1715   : > { %v5063_v41 = vrot.slane %v5049_v63, %v18632_v13  ;;  %v5064_v21 = vcombine.high %v5056_v33, %v5056_v33  ;;  %v5042_v2 = vmax.f32 %v5030_v5, 0.0  ;;  %v5099_v30 = vcombine.high %v5097_v47, %v5097_v47 }
0x1716   : > { %v5106_v10 = vrot.slane %v5044_v4, %v18632_v13  ;;  %v5122_v32 = vadd.f32 %v5056_v33, %v19590_v58  ;;  %v5132_v59 = vadd.f32 %v5097_v47, %v19662_v16  ;;  %v5131_v26 = vadd.f32 %v5098_v22, %v19647_v15 }
0x1717   : > { %v5065_v9 = vcombine.high %v5063_v41, %v5063_v41  ;;  %v5066_v45 = vcombine.high %v5042_v2, %v5042_v2  ;;  %v5073_v51 = vrot.slane %v5042_v2, %v18632_v13  ;;  %v5123_v14 = vadd.f32 %v5064_v21, %v19612_v46 }
0x1718   : > { %v5124_v61 = vadd.f32 %v5063_v41, %v19587_v0  ;;  %v5133_v48 = vadd.f32 %v5099_v30, %v19665_v17  ;;  %v5107_v46 = vcombine.high %v5106_v10, %v5106_v10  ;;  %v5130_v17 = vadd.f32 %v5090_v19, %v19653_v8 }
0x1719   : > { %v5125_v31 = vadd.f32 %v5065_v9, %v19607_v1  ;;  %v5080_v36 = vrot.slane %v5066_v45, %v18632_v13  ;;  %v5081_v7 = vcombine.high %v5073_v51, %v5073_v51  ;;  %v5126_v1 = vadd.f32 %v5073_v51, %v19602_v35 }
0x171a   : > { %v5150_v20 = vcombine.low %v5122_v32, %v5123_v14  ;;  %v5185_v49 = vcombine.low %v5132_v59, %v5133_v48  ;;  %v5134_v16 = vadd.f32 %v5106_v10, %v19674_v12  ;;  %v15909_v12 = vld [vmem:[%s18688_s29 + $0x4] sm:$0x3] }
0x171b   : > { %v5151_v42 = vcombine.low %v5124_v61, %v5125_v31  ;;  %v5082_v11 = vcombine.high %v5080_v36, %v5080_v36  ;;  %v5127_v28 = vadd.f32 %v5081_v7, %v19622_v34  ;;  %v5128_v0 = vadd.f32 %v5080_v36, %v19638_v62 }
0x171c   : > { %v5158_v35 = vrot.slane %v5150_v20, %v18632_v13  ;;  %v5135_v34 = vadd.f32 %v5107_v46, %v19670_v57  ;;  %v5199_v8 = vrot.slane %v5185_v49, %v18632_v13  ;;  %v21925_v57 = vmov 0  }
0x171d   : > { %v5129_v43 = vadd.f32 %v5082_v11, %v19635_v24  ;;  %v5167_v44 = vcombine.low %v5126_v1, %v5127_v28  ;;  %v5165_v58 = vrot.slane %v5151_v42, %v18632_v13  ;;  %v5184_v24 = vcombine.low %v5130_v17, %v5131_v26 }
0x171e   : > { %v5201_v29 = vcombine.low %v5134_v16, %v5135_v34  ;;  %v5238_v27 = vrot.slane %v15909_v12, %v18691_v3  ;;  %v19739_v54 = vrot.slane %v15909_v12, %v18696_v6 }
0x171f   : > { %v5168_v60 = vcombine.low %v5128_v0, %v5129_v43  ;;  %v5175_v38 = vrot.slane %v5167_v44, %v18632_v13  ;;  %v5166_v55 = vcombine.low %v5158_v35, %v5165_v58  ;;  %v5192_v56 = vrot.slane %v5184_v24, %v18632_v13 }
0x1720   : > { %v5208_v18 = vrot.slane %v5201_v29, %v18632_v13 }
0x1721   : > { %v5182_v62 = vrot.slane %v5168_v60, %v18632_v13  ;;  %v5200_v39 = vcombine.low %v5192_v56, %v5199_v8 }
0x1723   : > { %v5183_v15 = vcombine.low %v5175_v38, %v5182_v62  ;;  %v19731_v50 = vpack.c.bf16 %v5208_v18, %v5200_v39 }
0x1725   : > { %v19724_v52 = vpack.c.bf16 %v5183_v15, %v5166_v55 }
0x1727   : > { %5358 = vmatmul.mubr.bf16.vlgmr.msra.gmra.mxu0 %v19724_v52 }
0x1728   : > { %5367 = vmatprep.mubr.bf16.mxu0 %v21925_v57 }
0x172f   : > { %5368 = vmatmul.mubr.bf16.gmra.mxu0 %v19731_v50 }
0x1730   : > { %16982 = vmatprep.mubr.msk.bf16.mxu0 %vm18390_vm0, %v21924_v25 }
0x17e7   : > { %v5359_v40 = vpop.f32.mrf.mxu0 }
0x17e8   : > { %v5360_v37 = vadd.f32 %v5359_v40, %v5238_v27 }
0x17e9   : > { %v5361_v23 = vpop.f32.mrf.mxu0 }
0x17ea   : > { %v5382_v53 = vcombine.high %v5360_v37, %v5360_v37  ;;  %v5389_v63 = vrot.slane %v5360_v37, %v18632_v13  ;;  %v5362_v33 = vadd.f32 %v5361_v23, %v19739_v54 }
0x17eb   : > { %v5363_v5 = vpop.f32.mrf.mxu0 }
0x17ec   : > { %v5396_v47 = vrot.slane %v5382_v53, %v18632_v13  ;;  %v5397_v41 = vcombine.high %v5389_v63, %v5389_v63  ;;  %v5445_v21 = vcombine.high %v5362_v33, %v5362_v33  ;;  %v5452_v4 = vrot.slane %v5362_v33, %v18632_v13 }
0x17ed   : > { %v5364_v2 = vadd.f32 %v5363_v5, %v5238_v27  ;;  %v5365_v9 = vpop.f32.mrf.mxu0 }
0x17ee   : > { %v5398_v19 = vcombine.high %v5396_v47, %v5396_v47  ;;  %v5459_v45 = vrot.slane %v5445_v21, %v18632_v13  ;;  %v5460_v30 = vcombine.high %v5452_v4, %v5452_v4  ;;  %v5366_v14 = vadd.f32 %v5365_v9, %v19739_v54 }
0x17ef   : > { %v5399_v31 = vcombine.high %v5364_v2, %v5364_v2  ;;  %v5406_v51 = vrot.slane %v5364_v2, %v18632_v13  ;;  %v5369_v61 = vpop.f32.mrf.mxu0  ;;  %v5505_v10 = vcombine.low %v5389_v63, %v5397_v41 }
0x17f0   : > { %v5506_v36 = vcombine.low %v5396_v47, %v5398_v19  ;;  %v5461_v7 = vcombine.high %v5459_v45, %v5459_v45  ;;  %v5577_v22 = vcombine.low %v5452_v4, %v5460_v30  ;;  %v5462_v11 = vcombine.high %v5366_v14, %v5366_v14 }
0x17f1   : > { %v5413_v32 = vrot.slane %v5399_v31, %v18632_v13  ;;  %v5414_v42 = vcombine.high %v5406_v51, %v5406_v51  ;;  %v5469_v48 = vrot.slane %v5366_v14, %v18632_v13  ;;  %v5371_v1 = vpop.f32.mrf.mxu0  ;;  %v5370_v46 = vadd.f32 %v5369_v61, %v5238_v27 }
0x17f2   : > { %v5520_v28 = vrot.slane %v5506_v36, %v18632_v13  ;;  %v5578_v20 = vcombine.low %v5459_v45, %v5461_v7  ;;  %v5476_v43 = vrot.slane %v5462_v11, %v18632_v13  ;;  %v5513_v44 = vrot.slane %v5505_v10, %v18632_v13 }
0x17f3   : > { %v5522_v0 = vcombine.low %v5406_v51, %v5414_v42  ;;  %v5477_v59 = vcombine.high %v5469_v48, %v5469_v48  ;;  %v5585_v26 = vrot.slane %v5577_v22, %v18632_v13  ;;  %v5416_v60 = vcombine.high %v5370_v46, %v5370_v46  ;;  %v5373_v17 = vpop.f32.mrf.mxu0 }
0x17f4   : > { %v5592_v58 = vrot.slane %v5578_v20, %v18632_v13  ;;  %v5536_v35 = vrot.slane %v5413_v32, %v18632_v13  ;;  %v5423_v38 = vrot.slane %v5370_v46, %v18632_v13  ;;  %v5521_v62 = vcombine.low %v5513_v44, %v5520_v28 }
0x17f5   : > { %v5529_v49 = vrot.slane %v5522_v0, %v18632_v13  ;;  %v5594_v34 = vcombine.low %v5469_v48, %v5477_v59  ;;  %v5415_v24 = vcombine.high %v5413_v32, %v5413_v32  ;;  %v5430_v16 = vrot.slane %v5416_v60, %v18632_v13  ;;  %v5375_v37 = vpop.f32.mrf.mxu0 }
0x17f6   : > { %v5372_v55 = vadd.f32 %v5371_v1, %v19739_v54  ;;  %v5608_v8 = vrot.slane %v5476_v43, %v18632_v13  ;;  %v5431_v56 = vcombine.high %v5423_v38, %v5423_v38  ;;  %v5593_v39 = vcombine.low %v5585_v26, %v5592_v58 }
0x17f7   : > { %v5537_v15 = vcombine.low %v5529_v49, %v5536_v35  ;;  %v5601_v29 = vrot.slane %v5594_v34, %v18632_v13  ;;  %v5374_v40 = vadd.f32 %v5373_v17, %v5238_v27  ;;  %v5432_v33 = vcombine.high %v5430_v16, %v5430_v16  ;;  %v19773_v27 = vld [vmem:[%s18728_s15 + $0x8] sm:$0x3f] }
0x17f8   : > { %v5479_v18 = vcombine.high %v5372_v55, %v5372_v55  ;;  %v5486_v12 = vrot.slane %v5372_v55, %v18632_v13  ;;  %v5539_v63 = vcombine.low %v5431_v56, %v5430_v16  ;;  %v5538_v5 = vcombine.low %v5415_v24, %v5423_v38 }
0x17f9   : > { %v19763_v23 = vpack.c.bf16 %v5537_v15, %v5521_v62  ;;  %v5609_v53 = vcombine.low %v5601_v29, %v5608_v8  ;;  %v5439_v41 = vrot.slane %v5374_v40, %v18632_v13  ;;  %v5376_v4 = vadd.f32 %v5375_v37, %v19739_v54 }
0x17fa   : > { %v5493_v47 = vrot.slane %v5479_v18, %v18632_v13  ;;  %v5494_v21 = vcombine.high %v5486_v12, %v5486_v12  ;;  %v5478_v19 = vcombine.high %v5476_v43, %v5476_v43  ;;  %v5553_v31 = vrot.slane %v5539_v63, %v18632_v13 }
0x17fb   : > { %v5653_v2 = vsel %vm1237_vm1, %v19763_v23, 0  ;;  %v19770_v9 = vpack.c.bf16 %v5609_v53, %v5593_v39  ;;  %v5440_v30 = vcombine.high %v5439_v41, %v5439_v41  ;;  %v5555_v51 = vcombine.low %v5432_v33, %v5439_v41 }
0x17fc   : > { %v5495_v45 = vcombine.high %v5493_v47, %v5493_v47  ;;  %16969 = vmatpush3.bf16.xpose.msra.mxu1 %v5653_v2  ;;  %v5502_v14 = vrot.slane %v5376_v4, %v18632_v13  ;;  %v5546_v54 = vrot.slane %v5538_v5, %v18632_v13  ;;  %v19784_v36 = vpack.c.bf16 %v19773_v27, %v19773_v27 }
0x17fd   : > { %v5768_v61 = vsel %vm1358_vm2, %v19770_v9, 0  ;;  %16974 = vmatprep.subr.bf16.mxu1 %v21924_v25  ;;  %v5569_v10 = vrot.slane %v5440_v30, %v18632_v13  ;;  %v5611_v7 = vcombine.low %v5494_v21, %v5493_v47  ;;  %v5562_v22 = vrot.slane %v5555_v51, %v18632_v13 }
0x17fe   : > { %16981 = vmatpush3.bf16.msra.mxu0 %v5768_v61  ;;  %v5503_v32 = vcombine.high %v5502_v14, %v5502_v14  ;;  %v5627_v42 = vcombine.low %v5495_v45, %v5502_v14  ;;  %v5610_v11 = vcombine.low %v5478_v19, %v5486_v12  ;;  %v5554_v48 = vcombine.low %v5546_v54, %v5553_v31 }
0x17ff   : > { %16992 = vmatprep.subr.bf16.mxu0 %v21924_v25  ;;  %v5570_v1 = vcombine.low %v5562_v22, %v5569_v10  ;;  %v5625_v46 = vrot.slane %v5611_v7, %v18632_v13 }
0x1800   : > { %v5634_v28 = vrot.slane %v5627_v42, %v18632_v13  ;;  %v5641_v20 = vrot.slane %v5503_v32, %v18632_v13  ;;  %v5618_v43 = vrot.slane %v5610_v11, %v18632_v13 }
0x1801   : > { %v19791_v0 = vpack.c.bf16 %v5570_v1, %v5554_v48 }
0x1802   : > { %v5642_v59 = vcombine.low %v5634_v28, %v5641_v20  ;;  %v5626_v26 = vcombine.low %v5618_v43, %v5625_v46 }
0x1803   : > { %16971 = vmatmul.mubr.msk.bf16.vlgmr.msra.gmra.mxu1 %vm1237_vm1, %v19784_v36  ;;  %v5696_v44 = vsel %vm1237_vm1, %v19791_v0, 0 }
0x1804   : > { %16976 = vmatprep.mubr.msk.bf16.mxu1 %vm18390_vm0, %v21924_v25  ;;  %16975 = vmatpush3.bf16.xpose.msra.mxu1 %v5696_v44  ;;  %v19801_v58 = vpack.c.bf16 %v5642_v59, %v5626_v26 }
0x1805   : > { %16986 = vmatprep.subr.bf16.mxu1 %v21924_v25 }
0x1806   : > { %v5814_v60 = vsel %vm1358_vm2, %v19801_v58, 0 }
0x180b   : > { %16977 = vmatmul.mubr.msk.bf16.vlgmr.msra.gmra.mxu1 %vm1237_vm1, %v19784_v36 }
0x180c   : > { %16987 = vmatpush3.bf16.msra.mxu1 %v5814_v60  ;;  %16988 = vmatprep.mubr.msk.bf16.mxu1 %vm18390_vm0, %v21924_v25 }
0x180d   : > { %16998 = vmatprep.subr.bf16.mxu1 %v21924_v25 }
0x18c3   : > { %v5689_v17 = vpop.f32.mrf.mxu1 }
0x18c4   : > { %v5738_v49 = vmul.f32 0.088388346, %v5689_v17 }
0x18c5   : > { %v16972_v35 = vpop.f32.mrf.mxu1 }
0x18c6   : > { %v5740_v34 = vsel %vm1329_vm3, %v5738_v49, -inf }
0x18c7   : > { %5741 = vmax.xlane.f32.xlu1 %v5740_v34  ;;  %v5692_v38 = vpop.f32.mrf.mxu1 }
0x18c9   : > { %v16973_v62 = vpop.f32.mrf.mxu1 }
0x18cb   : > { %v5732_v24 = vpop.f32.mrf.mxu1 }
0x18cc   : > { %v5739_v16 = vmul.f32 0.088388346, %v5732_v24 }
0x18cd   : > { %v16978_v55 = vpop.f32.mrf.mxu1 }
0x18ce   : > { %v5743_v15 = vsel %vm1329_vm3, %v5739_v16, -inf }
0x18cf   : > { %5744 = vmax.xlane.f32.xlu0 %v5743_v15  ;;  %v5735_v29 = vpop.f32.mrf.mxu1 }
0x18d1   : > { %v16979_v8 = vpop.f32.mrf.mxu1 }
0x18d8   : > { %5862 = vrot.lane.b32.xlu1 %v19763_v23, %s18391_s28 }
0x18dc   : > { %5859 = vrot.lane.b32.xlu1 %v19784_v36, %s18391_s28 }
0x1950   : > { %v5742_v56 = vpop.xlane.xlu1 %5741 }
0x1951   : > { %v5746_v39 = vsub.f32 %v5738_v49, %v5742_v56 }
0x1953   : > { %v5748_v18 = vmul.f32 1.442695, %v5746_v39 }
0x1954   : > { %v5863_v2 = vpop.permute.xlu1 %5862 }
0x1955   : > { %18089 = vpow2.f32 %v5748_v18  ;;  %v5868_v45 = vsel %vm1237_vm1, %v5863_v2, 0 }
0x1958   : > { %v5745_v12 = vpop.xlane.xlu0 %5744  ;;  %v5860_v31 = vpop.permute.xlu1 %5859 }
0x1959   : > { %v5747_v40 = vsub.f32 %v5739_v16, %v5745_v12 }
0x195b   : > { %v5750_v37 = vmul.f32 1.442695, %v5747_v40 }
0x195d   : > { %18091 = vpow2.f32 %v5750_v37 }
0x1962   : > { %v18090_v53 = vpop.eup %18089 }
0x1963   : > { %v5752_v63 = vsel %vm1329_vm3, %v18090_v53, 0.0 }
0x1964   : > { %5753 = vadd.xlane.f32.xlu0 %v5752_v63 }
0x196a   : > { %v18092_v33 = vpop.eup %18091 }
0x196b   : > { %v5755_v5 = vsel %vm1329_vm3, %v18092_v33, 0.0 }
0x196c   : > { %5756 = vadd.xlane.f32.xlu0 %v5755_v5 }
0x1982   : > { %5911 = vrot.lane.b32.xlu0 %v19791_v0, %s18391_s28 }
0x19ed   : > { %v5754_v47 = vpop.xlane.xlu0 %5753 }
0x19ee   : > { %18093 = vrcp.f32 %v5754_v47 }
0x19f5   : > { %v5757_v41 = vpop.xlane.xlu0 %5756 }
0x19f6   : > { %18095 = vrcp.f32 %v5757_v41 }
0x19f9   : > { %v5912_v14 = vpop.permute.xlu0 %5911 }
0x19fa   : > { %v5914_v54 = vsel %vm1237_vm1, %v5912_v14, 0 }
0x19fb   : > { %v18094_v21 = vpop.eup %18093 }
0x19fc   : > { %v5760_v4 = vmul.f32 %v18094_v21, %v18090_v53 }
0x19fe   : > { %v5762_v19 = vpack.c.bf16 %v5760_v4, %v5760_v4 }
0x1a00   : > { %16983 = vmatmul.mubr.msk.bf16.vlgmr.msra.gmra.mxu0 %vm1354_vm4, %v5762_v19 }
0x1a01   : > { %16993 = vmatpush3.bf16.xpose.msra.mxu0 %v5868_v45  ;;  %16994 = vmatprep.mubr.msk.bf16.mxu0 %vm18390_vm0, %v21924_v25 }
0x1a02   : > { %17004 = vmatprep.subr.bf16.mxu0 %v21924_v25 }
0x1a03   : > { %v18096_v30 = vpop.eup %18095 }
0x1a04   : > { %v5761_v51 = vmul.f32 %v18096_v30, %v18092_v33 }
0x1a06   : > { %v5763_v61 = vpack.c.bf16 %v5761_v51, %v5761_v51 }
0x1a08   : > { %16995 = vmatmul.mubr.msk.bf16.vlgmr.msra.gmra.mxu0 %vm1237_vm1, %v5860_v31  ;;  %16989 = vmatmul.mubr.msk.bf16.vlgmr.msra.gmra.mxu1 %vm1354_vm4, %v5763_v61 }
0x1a09   : > { %17006 = vmatprep.mubr.msk.bf16.mxu0 %vm18390_vm0, %v21924_v25  ;;  %16999 = vmatpush3.bf16.xpose.msra.mxu1 %v5914_v54 }
0x1a0a   : > { %17000 = vmatprep.mubr.msk.bf16.mxu1 %vm18390_vm0, %v21924_v25  ;;  %17010 = vmatprep.subr.bf16.mxu1 %v21924_v25 }
0x1a10   : > { %17001 = vmatmul.mubr.msk.bf16.vlgmr.msra.gmra.mxu1 %vm1237_vm1, %v5860_v31 }
0x1a11   : > { %17012 = vmatprep.mubr.msk.bf16.mxu1 %vm18390_vm0, %v21924_v25 }
0x1ac0   : > { %v19836_v10 = vpop.f32.mrf.mxu0 }
0x1ac2   : > { %v16984_v7 = vpop.f32.mrf.mxu0 }
0x1ac4   : > { %v5807_v22 = vpop.f32.mrf.mxu0 }
0x1ac6   : > { %v16985_v32 = vpop.f32.mrf.mxu0 }
0x1ac8   : > { %v5904_v42 = vpop.f32.mrf.mxu0  ;;  %v19838_v48 = vpop.f32.mrf.mxu1 }
0x1ac9   : > { %v5956_v11 = vmul.f32 0.088388346, %v5904_v42 }
0x1aca   : > { %v16996_v1 = vpop.f32.mrf.mxu0  ;;  %v16990_v20 = vpop.f32.mrf.mxu1 }
0x1acb   : > { %v5958_v28 = vsel %vm1329_vm3, %v5956_v11, -inf }
0x1acc   : > { %5959 = vmax.xlane.f32.xlu1 %v5958_v28  ;;  %v5907_v46 = vpop.f32.mrf.mxu0  ;;  %v5853_v43 = vpop.f32.mrf.mxu1 }
0x1ace   : > { %v16997_v59 = vpop.f32.mrf.mxu0  ;;  %v16991_v44 = vpop.f32.mrf.mxu1 }
0x1ad0   : > { %v5950_v26 = vpop.f32.mrf.mxu1 }
0x1ad1   : > { %v5957_v60 = vmul.f32 0.088388346, %v5950_v26 }
0x1ad2   : > { %v17002_v17 = vpop.f32.mrf.mxu1 }
0x1ad3   : > { %v5961_v49 = vsel %vm1329_vm3, %v5957_v60, -inf }
0x1ad4   : > { %5962 = vmax.xlane.f32.xlu0 %v5961_v49  ;;  %v5953_v35 = vpop.f32.mrf.mxu1 }
0x1ad6   : > { %v17003_v34 = vpop.f32.mrf.mxu1 }
0x1add   : > { %6032 = vrot.lane.b32.xlu1 %v19801_v58, %s18391_s28 }
0x1ae1   : > { %6092 = vrot.lane.b32.xlu1 %v19763_v23, %s18392_s18 }
0x1b55   : > { %v5960_v38 = vpop.xlane.xlu1 %5959 }
0x1b56   : > { %v5964_v62 = vsub.f32 %v5956_v11, %v5960_v38 }
0x1b58   : > { %v5966_v24 = vmul.f32 1.442695, %v5964_v62 }
0x1b59   : > { %v6033_v16 = vpop.permute.xlu1 %6032 }
0x1b5a   : > { %18097 = vpow2.f32 %v5966_v24  ;;  %v6038_v55 = vsel %vm1358_vm2, %v6033_v16, 0 }
0x1b5b   : > { %17011 = vmatpush3.bf16.msra.mxu1 %v6038_v55 }
0x1b5c   : > { %17022 = vmatprep.subr.bf16.mxu1 %v21924_v25 }
0x1b5d   : > { %v5963_v15 = vpop.xlane.xlu0 %5962  ;;  %v6093_v63 = vpop.permute.xlu1 %6092 }
0x1b5e   : > { %v5965_v29 = vsub.f32 %v5957_v60, %v5963_v15  ;;  %v6098_v21 = vsel %vm1237_vm1, %v6093_v63, 0 }
0x1b60   : > { %v5968_v8 = vmul.f32 1.442695, %v5965_v29 }
0x1b62   : > { %18099 = vpow2.f32 %v5968_v8 }
0x1b67   : > { %v18098_v56 = vpop.eup %18097 }
0x1b68   : > { %v5970_v39 = vsel %vm1329_vm3, %v18098_v56, 0.0 }
0x1b69   : > { %5971 = vadd.xlane.f32.xlu0 %v5970_v39 }
0x1b6f   : > { %v18100_v18 = vpop.eup %18099 }
0x1b70   : > { %v5973_v12 = vsel %vm1329_vm3, %v18100_v18, 0.0 }
0x1b71   : > { %5974 = vadd.xlane.f32.xlu1 %v5973_v12 }
0x1b7f   : > { %5983 = vrot.lane.b32.xlu0 %v19770_v9, %s18391_s28 }
0x1b82   : > { %6140 = vrot.lane.b32.xlu1 %v19791_v0, %s18392_s18 }
0x1b83   : > { %6090 = vrot.lane.b32.xlu0 %v19784_v36, %s18392_s18 }
0x1bf2   : > { %v5972_v40 = vpop.xlane.xlu0 %5971 }
0x1bf3   : > { %18101 = vrcp.f32 %v5972_v40 }
0x1bf6   : > { %v5984_v37 = vpop.permute.xlu0 %5983 }
0x1bf7   : > { %v5989_v53 = vsel %vm1358_vm2, %v5984_v37, 0 }
0x1bf8   : > { %17005 = vmatpush3.bf16.msra.mxu0 %v5989_v53 }
0x1bf9   : > { %17016 = vmatprep.subr.bf16.mxu0 %v21924_v25 }
0x1bfa   : > { %v5975_v33 = vpop.xlane.xlu1 %5974  ;;  %v6091_v2 = vpop.permute.xlu0 %6090 }
0x1bfb   : > { %18103 = vrcp.f32 %v5975_v33 }
0x1bfe   : > { %v6141_v45 = vpop.permute.xlu1 %6140 }
0x1bff   : > { %v6143_v31 = vsel %vm1237_vm1, %v6141_v45, 0 }
0x1c00   : > { %v18102_v5 = vpop.eup %18101 }
0x1c01   : > { %v5978_v47 = vmul.f32 %v18102_v5, %v18098_v56 }
0x1c03   : > { %v5980_v41 = vpack.c.bf16 %v5978_v47, %v5978_v47 }
0x1c05   : > { %17007 = vmatmul.mubr.msk.bf16.vlgmr.msra.gmra.mxu0 %vm1354_vm4, %v5980_v41 }
0x1c06   : > { %17017 = vmatpush3.bf16.xpose.msra.mxu0 %v6098_v21  ;;  %17018 = vmatprep.mubr.msk.bf16.mxu0 %vm18390_vm0, %v21924_v25 }
0x1c07   : > { %17028 = vmatprep.subr.bf16.mxu0 %v21924_v25 }
0x1c08   : > { %v18104_v4 = vpop.eup %18103 }
0x1c09   : > { %v5979_v19 = vmul.f32 %v18104_v4, %v18100_v18 }
0x1c0b   : > { %v5981_v30 = vpack.c.bf16 %v5979_v19, %v5979_v19 }
0x1c0d   : > { %17019 = vmatmul.mubr.msk.bf16.vlgmr.msra.gmra.mxu0 %vm1237_vm1, %v6091_v2  ;;  %17013 = vmatmul.mubr.msk.bf16.vlgmr.msra.gmra.mxu1 %vm1354_vm4, %v5981_v30 }
0x1c0e   : > { %17030 = vmatprep.mubr.msk.bf16.mxu0 %vm18390_vm0, %v21924_v25  ;;  %17023 = vmatpush3.bf16.xpose.msra.mxu1 %v6143_v31 }
0x1c0f   : > { %17024 = vmatprep.mubr.msk.bf16.mxu1 %vm18390_vm0, %v21924_v25  ;;  %17034 = vmatprep.subr.bf16.mxu1 %v21924_v25 }
0x1c15   : > { %17025 = vmatmul.mubr.msk.bf16.vlgmr.msra.gmra.mxu1 %vm1237_vm1, %v6091_v2 }
0x1c16   : > { %17036 = vmatprep.mubr.msk.bf16.mxu1 %vm18390_vm0, %v21924_v25 }
0x1cc5   : > { %v19874_v51 = vpop.f32.mrf.mxu0 }
0x1cc7   : > { %v17008_v14 = vpop.f32.mrf.mxu0 }
0x1cc9   : > { %v6028_v61 = vpop.f32.mrf.mxu0 }
0x1ccb   : > { %v17009_v54 = vpop.f32.mrf.mxu0 }
0x1ccd   : > { %v6134_v7 = vpop.f32.mrf.mxu0  ;;  %v19876_v32 = vpop.f32.mrf.mxu1 }
0x1cce   : > { %v6185_v22 = vmul.f32 0.088388346, %v6134_v7 }
0x1ccf   : > { %v17020_v42 = vpop.f32.mrf.mxu0  ;;  %v17014_v1 = vpop.f32.mrf.mxu1 }
0x1cd0   : > { %v6187_v11 = vsel %vm1329_vm3, %v6185_v22, -inf }
0x1cd1   : > { %6188 = vmax.xlane.f32.xlu1 %v6187_v11  ;;  %v6137_v28 = vpop.f32.mrf.mxu0  ;;  %v6077_v20 = vpop.f32.mrf.mxu1 }
0x1cd3   : > { %v17021_v46 = vpop.f32.mrf.mxu0  ;;  %v17015_v43 = vpop.f32.mrf.mxu1 }
0x1cd5   : > { %v6179_v59 = vpop.f32.mrf.mxu1 }
0x1cd6   : > { %v6186_v44 = vmul.f32 0.088388346, %v6179_v59 }
0x1cd7   : > { %v17026_v26 = vpop.f32.mrf.mxu1 }
0x1cd8   : > { %v6190_v60 = vsel %vm1329_vm3, %v6186_v44, -inf }
0x1cd9   : > { %6191 = vmax.xlane.f32.xlu0 %v6190_v60  ;;  %v6182_v17 = vpop.f32.mrf.mxu1 }
0x1cdb   : > { %v17027_v49 = vpop.f32.mrf.mxu1 }
0x1ce2   : > { %6211 = vrot.lane.b32.xlu1 %v19770_v9, %s18392_s18 }
0x1ce6   : > { %6319 = vrot.lane.b32.xlu1 %v19763_v23, %s18393_s21 }
0x1cea   : > { %6367 = vrot.lane.b32.xlu1 %v19791_v0, %s18393_s21 }
0x1cee   : > { %6317 = vrot.lane.b32.xlu1 %v19784_v36, %s18393_s21 }
0x1d5a   : > { %v6189_v35 = vpop.xlane.xlu1 %6188 }
0x1d5b   : > { %v6193_v34 = vsub.f32 %v6185_v22, %v6189_v35 }
0x1d5d   : > { %v6195_v38 = vmul.f32 1.442695, %v6193_v34 }
0x1d5e   : > { %v6212_v62 = vpop.permute.xlu1 %6211 }
0x1d5f   : > { %18105 = vpow2.f32 %v6195_v38  ;;  %v6217_v24 = vsel %vm1358_vm2, %v6212_v62, 0 }
0x1d60   : > { %17029 = vmatpush3.bf16.msra.mxu0 %v6217_v24 }
0x1d61   : > { %17040 = vmatprep.subr.bf16.mxu0 %v21924_v25 }
0x1d62   : > { %v6192_v16 = vpop.xlane.xlu0 %6191  ;;  %v6320_v18 = vpop.permute.xlu1 %6319 }
0x1d63   : > { %v6194_v55 = vsub.f32 %v6186_v44, %v6192_v16  ;;  %v6325_v63 = vsel %vm1237_vm1, %v6320_v18, 0 }
0x1d65   : > { %v6197_v15 = vmul.f32 1.442695, %v6194_v55 }
0x1d66   : > { %v6368_v33 = vpop.permute.xlu1 %6367 }
0x1d67   : > { %18107 = vpow2.f32 %v6197_v15  ;;  %v6370_v4 = vsel %vm1237_vm1, %v6368_v33, 0  ;;  %v17825_v15 = vld [vmem:[%s18648_s20 + $0xf8] sm:$0xff]   ;;  %v17831_v33 = vld [vmem:[%s18648_s20 + $0xc8] sm:$0xff]  }
0x1d6a   : > { %v6318_v47 = vpop.permute.xlu1 %6317 }
0x1d6c   : > { %v18106_v23 = vpop.eup %18105 }
0x1d6d   : > { %v6199_v0 = vsel %vm1329_vm3, %v18106_v23, 0.0 }
0x1d6e   : > { %6200 = vadd.xlane.f32.xlu0 %v6199_v0 }
0x1d74   : > { %v18108_v29 = vpop.eup %18107 }
0x1d75   : > { %v6202_v36 = vsel %vm1329_vm3, %v18108_v29, 0.0 }
0x1d76   : > { %6203 = vadd.xlane.f32.xlu0 %v6202_v36 }
0x1d8c   : > { %6259 = vrot.lane.b32.xlu0 %v19801_v58, %s18392_s18 }
0x1df7   : > { %v6201_v8 = vpop.xlane.xlu0 %6200 }
0x1df8   : > { %18109 = vrcp.f32 %v6201_v8 }
0x1dff   : > { %v6204_v56 = vpop.xlane.xlu0 %6203 }
0x1e00   : > { %18111 = vrcp.f32 %v6204_v56 }
0x1e03   : > { %v6260_v12 = vpop.permute.xlu0 %6259 }
0x1e04   : > { %v6265_v40 = vsel %vm1358_vm2, %v6260_v12, 0  ;;  %v17826_v12 = vld [vmem:[%s18648_s20 + $0xf0] sm:$0xff]  }
0x1e05   : > { %v18110_v39 = vpop.eup %18109  ;;  %17035 = vmatpush3.bf16.msra.mxu1 %v6265_v40  ;;  %v17827_v40 = vld [vmem:[%s18648_s20 + $0xe8] sm:$0xff]  }
0x1e06   : > { %v6207_v37 = vmul.f32 %v18110_v39, %v18106_v23  ;;  %17046 = vmatprep.subr.bf16.mxu1 %v21924_v25 }
0x1e08   : > { %v6209_v53 = vpack.c.bf16 %v6207_v37, %v6207_v37  ;;  %v17828_v37 = vld [vmem:[%s18648_s20 + $0xe0] sm:$0xff]  }
0x1e0a   : > { %17031 = vmatmul.mubr.msk.bf16.vlgmr.msra.gmra.mxu0 %vm1354_vm4, %v6209_v53  ;;  %v17829_v53 = vld [vmem:[%s18648_s20 + $0xd8] sm:$0xff]  }
0x1e0b   : > { %17041 = vmatpush3.bf16.xpose.msra.mxu0 %v6325_v63  ;;  %17042 = vmatprep.mubr.msk.bf16.mxu0 %vm18390_vm0, %v21924_v25  ;;  %v17830_v63 = vld [vmem:[%s18648_s20 + $0xd0] sm:$0xff]  }
0x1e0c   : > { %17052 = vmatprep.subr.bf16.mxu0 %v21924_v25 }
0x1e0d   : > { %v18112_v5 = vpop.eup %18111 }
0x1e0e   : > { %v6208_v41 = vmul.f32 %v18112_v5, %v18108_v29  ;;  %v17833_v5 = vld [vmem:[%s18608_s24 + $0xb8] sm:$0xff]  }
0x1e10   : > { %v6210_v21 = vpack.c.bf16 %v6208_v41, %v6208_v41  ;;  %v17835_v41 = vld [vmem:[%s18608_s24 + $0xa8] sm:$0xff]  }
0x1e12   : > { %17043 = vmatmul.mubr.msk.bf16.vlgmr.msra.gmra.mxu0 %vm1237_vm1, %v6318_v47  ;;  %17037 = vmatmul.mubr.msk.bf16.vlgmr.msra.gmra.mxu1 %vm1354_vm4, %v6210_v21  ;;  %v17836_v21 = vld [vmem:[%s18608_s24 + $0xa0] sm:$0xff]  }
0x1e13   : > { %17054 = vmatprep.mubr.msk.bf16.mxu0 %vm18390_vm0, %v21924_v25  ;;  %17047 = vmatpush3.bf16.xpose.msra.mxu1 %v6370_v4 }
0x1e14   : > { %17048 = vmatprep.mubr.msk.bf16.mxu1 %vm18390_vm0, %v21924_v25  ;;  %17058 = vmatprep.subr.bf16.mxu1 %v21924_v25 }
0x1e1a   : > { %17049 = vmatmul.mubr.msk.bf16.vlgmr.msra.gmra.mxu1 %vm1237_vm1, %v6318_v47  ;;  %v17834_v47 = vld [vmem:[%s18608_s24 + $0xb0] sm:$0xff]  }
0x1e1b   : > { %17060 = vmatprep.mubr.msk.bf16.mxu1 %vm18390_vm0, %v21924_v25 }
0x1eca   : > { %v6253_v2 = vpop.f32.mrf.mxu0 }
0x1ecc   : > { %v17032_v19 = vpop.f32.mrf.mxu0 }
0x1ece   : > { %v6256_v45 = vpop.f32.mrf.mxu0 }
0x1ed0   : > { %v17033_v30 = vpop.f32.mrf.mxu0 }
0x1ed1   : > { %v17839_v30 = vld [vmem:[%s18608_s24 + $0x88] sm:$0xff]  }
0x1ed2   : > { %v6361_v31 = vpop.f32.mrf.mxu0  ;;  %v6301_v61 = vpop.f32.mrf.mxu1 }
0x1ed3   : > { %v6412_v14 = vmul.f32 0.088388346, %v6361_v31 }
0x1ed4   : > { %v17044_v54 = vpop.f32.mrf.mxu0  ;;  %v17038_v22 = vpop.f32.mrf.mxu1 }
0x1ed5   : > { %v6414_v7 = vsel %vm1329_vm3, %v6412_v14, -inf  ;;  %v17843_v54 = vld [vmem:[%s18602_s25 + $0x1f4] ss:$8 sps:$4 sm:$0xff]  }
0x1ed6   : > { %6415 = vmax.xlane.f32.xlu0 %v6414_v7  ;;  %v6364_v42 = vpop.f32.mrf.mxu0  ;;  %v6304_v11 = vpop.f32.mrf.mxu1 }
0x1ed8   : > { %v17045_v1 = vpop.f32.mrf.mxu0  ;;  %v17039_v28 = vpop.f32.mrf.mxu1 }
0x1eda   : > { %v6406_v20 = vpop.f32.mrf.mxu1 }
0x1edb   : > { %v6413_v46 = vmul.f32 0.088388346, %v6406_v20 }
0x1edc   : > { %v17050_v43 = vpop.f32.mrf.mxu1 }
0x1edd   : > { %v6417_v59 = vsel %vm1329_vm3, %v6413_v46, -inf }
0x1ede   : > { %6418 = vmax.xlane.f32.xlu1 %v6417_v59  ;;  %v6409_v44 = vpop.f32.mrf.mxu1 }
0x1ee0   : > { %v17051_v26 = vpop.f32.mrf.mxu1 }
0x1eef   : > { %6486 = vrot.lane.b32.xlu1 %v19801_v58, %s18393_s21 }
0x1ef3   : > { %6082 = vrot.lane.b32.xlu1 %v19874_v51, %s18393_s21 }
0x1ef7   : > { %6309 = vrot.lane.b32.xlu1 %v6253_v2, %s18392_s18  ;;  %v17838_v2 = vld [vmem:[%s18608_s24 + $0x90] sm:$0xff]  }
0x1f5f   : > { %v6416_v60 = vpop.xlane.xlu0 %6415 }
0x1f60   : > { %v6420_v17 = vsub.f32 %v6412_v14, %v6416_v60  ;;  %v17840_v14 = vld [vmem:[%s18608_s24 + $0x80] sm:$0xff]  }
0x1f62   : > { %v6422_v49 = vmul.f32 1.442695, %v6420_v17 }
0x1f64   : > { %18113 = vpow2.f32 %v6422_v49 }
0x1f67   : > { %v6419_v35 = vpop.xlane.xlu1 %6418 }
0x1f68   : > { %v6421_v34 = vsub.f32 %v6413_v46, %v6419_v35  ;;  %v5856_v46 = vadd.f32 %v19773_v27, %v19836_v10  ;;  %v5857_v10 = vadd.f32 %v19773_v27, %v19838_v48 }
0x1f6a   : > { %v6424_v38 = vmul.f32 1.442695, %v6421_v34 }
0x1f6b   : > { %v6487_v62 = vpop.permute.xlu1 %6486 }
0x1f6c   : > { %18115 = vpow2.f32 %v6424_v38  ;;  %v6492_v24 = vsel %vm1358_vm2, %v6487_v62, 0 }
0x1f6d   : > { %17059 = vmatpush3.bf16.msra.mxu1 %v6492_v24 }
0x1f6e   : > { %17084 = vmatprep.subr.bf16.mxu1 %v17825_v15 }
0x1f6f   : > { %v6083_v11 = vpop.permute.xlu1 %6082 }
0x1f70   : > { %v6088_v28 = vadd.f32 %v19773_v27, %v6083_v11 }
0x1f71   : > { %v18114_v16 = vpop.eup %18113 }
0x1f72   : > { %v6426_v58 = vsel %vm1329_vm3, %v18114_v16, 0.0  ;;  %v6544_v44 = vsel %vm1237_vm1, %v5856_v46, %v6088_v28 }
0x1f73   : > { %6427 = vadd.xlane.f32.xlu0 %v6426_v58  ;;  %v6310_v1 = vpop.permute.xlu1 %6309 }
0x1f74   : > { %v6315_v20 = vadd.f32 %v19773_v27, %v6310_v1 }
0x1f76   : > { %v6546_v60 = vsel %vm2138_vm5, %v6544_v44, %v6315_v20 }
0x1f79   : > { %v18116_v51 = vpop.eup %18115 }
0x1f7a   : > { %v6429_v55 = vsel %vm1329_vm3, %v18116_v51, 0.0 }
0x1f7b   : > { %6430 = vadd.xlane.f32.xlu0 %v6429_v55 }
0x1f91   : > { %6438 = vrot.lane.b32.xlu0 %v19770_v9, %s18393_s21 }
0x1f95   : > { %6084 = vrot.lane.b32.xlu0 %v19876_v32, %s18393_s21 }
0x1f99   : > { %6311 = vrot.lane.b32.xlu0 %v6301_v61, %s18392_s18 }
0x1ffc   : > { %v6428_v23 = vpop.xlane.xlu0 %6427 }
0x1ffd   : > { %18117 = vrcp.f32 %v6428_v23 }
0x2004   : > { %v6431_v0 = vpop.xlane.xlu0 %6430 }
0x2005   : > { %18119 = vrcp.f32 %v6431_v0 }
0x2008   : > { %v6439_v36 = vpop.permute.xlu0 %6438 }
0x2009   : > { %v6444_v8 = vsel %vm1358_vm2, %v6439_v36, 0 }
0x200a   : > { %v18118_v29 = vpop.eup %18117  ;;  %17053 = vmatpush3.bf16.msra.mxu0 %v6444_v8 }
0x200b   : > { %v6434_v56 = vmul.f32 %v18118_v29, %v18114_v16  ;;  %17064 = vmatprep.subr.bf16.mxu0 %v21924_v25 }
0x200c   : > { %v6085_v43 = vpop.permute.xlu0 %6084 }
0x200d   : > { %v6436_v9 = vpack.c.bf16 %v6434_v56, %v6434_v56  ;;  %v6089_v34 = vadd.f32 %v19773_v27, %v6085_v43 }
0x200f   : > { %17055 = vmatmul.mubr.msk.bf16.vlgmr.msra.gmra.mxu0 %vm1354_vm4, %v6436_v9  ;;  %v6545_v58 = vsel %vm1237_vm1, %v5857_v10, %v6089_v34 }
0x2010   : > { %17080 = vmatprep.mubr.msk.bf16.mxu0 %vm18390_vm0, %v21924_v25  ;;  %17065 = vmatpush3.bf16.msra.mxu0 %v17833_v5  ;;  %v6312_v49 = vpop.permute.xlu0 %6311  ;;  %v17850_v5 = vld [vmem:[%s18602_s25 + $0x1c0] ss:$8 sps:$4 sm:$0xff]  }
0x2011   : > { %17066 = vmatprep.subr.bf16.mxu0 %v21924_v25  ;;  %v6316_v38 = vadd.f32 %v19773_v27, %v6312_v49 }
0x2012   : > { %v18120_v32 = vpop.eup %18119 }
0x2013   : > { %v6435_v39 = vmul.f32 %v18120_v32, %v18116_v51  ;;  %v6547_v55 = vsel %vm2138_vm5, %v6545_v58, %v6316_v38 }
0x2014   : > { %17067 = vmatpush3.bf16.msra.mxu0 %v17834_v47  ;;  %v17855_v47 = vld [vmem:[%s18602_s25 + $0x1b4] ss:$8 sps:$4 sm:$0xff]  }
0x2015   : > { %v6437_v18 = vpack.c.bf16 %v6435_v39, %v6435_v39  ;;  %17068 = vmatprep.subr.bf16.mxu0 %v21924_v25 }
0x2017   : > { %17061 = vmatmul.mubr.msk.bf16.vlgmr.msra.gmra.mxu1 %vm1354_vm4, %v6437_v18 }
0x2018   : > { %17085 = vmatpush3.bf16.msra.mxu1 %v17825_v15  ;;  %17100 = vmatprep.mubr.bf16.mxu1 %v19724_v52  ;;  %v17832_v52 = vld [vmem:[%s18648_s20 + $0xc0] sm:$0xff]  }
0x2019   : > { %17086 = vmatprep.subr.bf16.mxu1 %v17826_v12  ;;  %17069 = vmatpush3.bf16.msra.mxu0 %v17835_v41  ;;  %v17853_v41 = vld [vmem:[%s18602_s25 + $0x1b0] ss:$8 sps:$4 sm:$0xff]  }
0x201a   : > { %17070 = vmatprep.subr.bf16.mxu0 %v21924_v25 }
0x201c   : > { %17087 = vmatpush3.bf16.msra.mxu1 %v17826_v12  ;;  %v17841_v12 = vld [vmem:[%s18602_s25 + $0x1f0] ss:$8 sps:$4 sm:$0xff]  }
0x201d   : > { %17088 = vmatprep.subr.bf16.mxu1 %v17827_v40  ;;  %17071 = vmatpush3.bf16.msra.mxu0 %v17836_v21  ;;  %v17858_v21 = vld [vmem:[%s18602_s25 + $0x1a4] ss:$8 sps:$4 sm:$0xff]  }
0x201e   : > { %17072 = vmatprep.subr.bf16.mxu0 %v21924_v25 }
0x2020   : > { %17089 = vmatpush3.bf16.msra.mxu1 %v17827_v40 }
0x2021   : > { %17090 = vmatprep.subr.bf16.mxu1 %v17828_v37 }
0x2024   : > { %17091 = vmatpush3.bf16.msra.mxu1 %v17828_v37  ;;  %v17846_v37 = vld [vmem:[%s18602_s25 + $0x1e4] ss:$8 sps:$4 sm:$0xff]  }
0x2025   : > { %17092 = vmatprep.subr.bf16.mxu1 %v17829_v53 }
0x2028   : > { %17093 = vmatpush3.bf16.msra.mxu1 %v17829_v53  ;;  %v17844_v53 = vld [vmem:[%s18602_s25 + $0x1e0] ss:$8 sps:$4 sm:$0xff]  }
0x2029   : > { %17094 = vmatprep.subr.bf16.mxu1 %v17830_v63 }
0x202c   : > { %17095 = vmatpush3.bf16.msra.mxu1 %v17830_v63  ;;  %v17849_v63 = vld [vmem:[%s18602_s25 + $0x1d4] ss:$8 sps:$4 sm:$0xff]  }
0x202d   : > { %17096 = vmatprep.subr.bf16.mxu1 %v17831_v33 }
0x2030   : > { %17097 = vmatpush3.bf16.msra.mxu1 %v17831_v33  ;;  %v17847_v33 = vld [vmem:[%s18602_s25 + $0x1d0] ss:$8 sps:$4 sm:$0xff]  }
0x2031   : > { %17098 = vmatprep.subr.bf16.mxu1 %v17832_v52 }
0x2034   : > { %17099 = vmatpush3.bf16.msra.mxu1 %v17832_v52  ;;  %v17852_v52 = vld [vmem:[%s18602_s25 + $0x1c4] ss:$8 sps:$4 sm:$0xff]  }
0x2035   : > { %17104 = vmatprep.subr.bf16.mxu1 %v21924_v25 }
0x2037   : > { %17101 = vmatmul.mubr.bf16.vlgmr.msra.gmra.mxu1 %v19731_v50  ;;  %v17837_v50 = vld [vmem:[%s18608_s24 + $0x98] sm:$0xff]  }
0x2038   : > { %17106 = vmatprep.mubr.msk.bf16.mxu1 %vm18390_vm0, %v21924_v25  ;;  %17073 = vmatpush3.bf16.msra.mxu0 %v17837_v50  ;;  %v17856_v50 = vld [vmem:[%s18602_s25 + $0x1a0] ss:$8 sps:$4 sm:$0xff]  }
0x2039   : > { %17074 = vmatprep.subr.bf16.mxu0 %v21924_v25 }
0x203c   : > { %17075 = vmatpush3.bf16.msra.mxu0 %v17838_v2  ;;  %v17859_v2 = vld [vmem:[%s18602_s25 + $0x190] ss:$8 sps:$4 sm:$0xff]  }
0x203d   : > { %17076 = vmatprep.subr.bf16.mxu0 %v21924_v25 }
0x2040   : > { %17077 = vmatpush3.bf16.msra.mxu0 %v17839_v30  ;;  %v15959_v30 = vld [vmem:[%s19002_s23 + $0x2] ss:$0 sm:$0xff] }
0x2041   : > { %17078 = vmatprep.subr.bf16.mxu0 %v21924_v25 }
0x2044   : > { %17079 = vmatpush3.bf16.msra.mxu0 %v17840_v14 }
0x2045   : > { %7116 = vmatprep.subr.bf16.mxu0 %v17843_v54 }
0x20cf   : > { %v6480_v4 = vpop.f32.mrf.mxu0 }
0x20d0   : > { %6536 = vrot.lane.b32.xlu1 %v6480_v4, %s18391_s28  ;;  %v17861_v4 = vld [vmem:[%s18602_s25 + $0x194] ss:$8 sps:$4 sm:$0xff]  }
0x20d1   : > { %v17056_v19 = vpop.f32.mrf.mxu0 }
0x20d2   : > { %v17864_v19 = vld [vmem:[%s18602_s25 + $0x184] ss:$8 sps:$4 sm:$0xff]  }
0x20d3   : > { %v6483_v45 = vpop.f32.mrf.mxu0 }
0x20d4   : > { %v17862_v45 = vld [vmem:[%s18602_s25 + $0x180] ss:$8 sps:$4 sm:$0xff]  }
0x20d5   : > { %v17057_v31 = vpop.f32.mrf.mxu0 }
0x20d7   : > { %v6528_v61 = vpop.f32.mrf.mxu1 }
0x20d8   : > { %6538 = vrot.lane.b32.xlu1 %v6528_v61, %s18391_s28 }
0x20d9   : > { %v17062_v7 = vpop.f32.mrf.mxu1 }
0x20db   : > { %v6531_v22 = vpop.f32.mrf.mxu1 }
0x20dd   : > { %v17063_v42 = vpop.f32.mrf.mxu1 }
0x2142   : > { %v6537_v59 = vpop.permute.xlu1 %6536 }
0x2143   : > { %v6542_v26 = vadd.f32 %v19773_v27, %v6537_v59 }
0x2145   : > { %v6548_v17 = vsel %vm2141_vm6, %v6546_v60, %v6542_v26 }
0x2146   : > { %v19973_v35 = vrot.slane %v6548_v17, %v18632_v13  ;;  %v6552_v62 = vcombine.high %v6548_v17, %v6548_v17 }
0x2148   : > { %v19981_v24 = vcombine.high %v19973_v35, %v19973_v35  ;;  %v19988_v23 = vrot.slane %v6552_v62, %v18632_v13 }
0x214a   : > { %v6539_v16 = vpop.permute.xlu1 %6538  ;;  %v6590_v48 = vcombine.low %v19973_v35, %v19981_v24 }
0x214b   : > { %v6543_v51 = vadd.f32 %v19773_v27, %v6539_v16 }
0x214c   : > { %v6598_v56 = vrot.slane %v6590_v48, %v18632_v13 }
0x214d   : > { %v6549_v15 = vsel %vm2141_vm6, %v6547_v55, %v6543_v51 }
0x214e   : > { %v6568_v0 = vcombine.high %v6549_v15, %v6549_v15  ;;  %v6575_v29 = vrot.slane %v6549_v15, %v18632_v13  ;;  %v17102_v15 = vpop.f32.mrf.mxu1 }
0x2150   : > { %v19994_v36 = vrot.slane %v6568_v0, %v18632_v13  ;;  %v19996_v27 = vcombine.high %v6575_v29, %v6575_v29  ;;  %v6591_v8 = vcombine.low %v19988_v23, %v6575_v29  ;;  %v15985_v0 = vld [vmem:[%s19024_s22 + $0x3] ss:$0 sm:$0xff] }
0x2152   : > { %v6605_v9 = vrot.slane %v6591_v8, %v18632_v13  ;;  %v6607_v32 = vcombine.low %v19996_v27, %v19994_v36 }
0x2154   : > { %v6614_v39 = vrot.slane %v6607_v32, %v18632_v13  ;;  %v6606_v18 = vcombine.low %v6598_v56, %v6605_v9  ;;  %v6889_v9 = vadd.f32 %v17102_v15, %v15985_v0 }
0x2156   : > { %v6617_v40 = vpack.c.bf16 %v6614_v39, %v6606_v18 }
0x2158   : > { %17081 = vmatmul.mubr.bf16.vlgmr.msra.gmra.mxu0 %v6617_v40 }
0x2159   : > { %7117 = vmatpush1.bf16.msra.mxu0 %v17841_v12  ;;  %7148 = vmatprep.mubr.bf16.mxu0 %v21925_v57 }
0x215a   : > { %7118 = vmatprep.subr.bf16.mxu0 %v17846_v37  ;;  %v6933_v37 = vcombine.high %v6889_v9, %v6889_v9 }
0x215d   : > { %7119 = vmatpush1.bf16.msra.mxu0 %v17844_v53 }
0x215e   : > { %7120 = vmatprep.subr.bf16.mxu0 %v17849_v63 }
0x2161   : > { %7121 = vmatpush1.bf16.msra.mxu0 %v17847_v33 }
0x2162   : > { %7122 = vmatprep.subr.bf16.mxu0 %v17852_v52 }
0x2165   : > { %7123 = vmatpush1.bf16.msra.mxu0 %v17850_v5 }
0x2166   : > { %7124 = vmatprep.subr.bf16.mxu0 %v17855_v47 }
0x2169   : > { %7125 = vmatpush1.bf16.msra.mxu0 %v17853_v41  ;;  %v20050_v41 = vrot.slane %v6889_v9, %v18632_v13 }
0x216a   : > { %7126 = vmatprep.subr.bf16.mxu0 %v17858_v21 }
0x216d   : > { %7127 = vmatpush1.bf16.msra.mxu0 %v17856_v50 }
0x216e   : > { %7128 = vmatprep.subr.bf16.mxu0 %v17861_v4 }
0x2171   : > { %7129 = vmatpush1.bf16.msra.mxu0 %v17859_v2 }
0x2172   : > { %7130 = vmatprep.subr.bf16.mxu0 %v17864_v19 }
0x2175   : > { %7131 = vmatpush1.bf16.msra.mxu0 %v17862_v45 }
0x2176   : > { %17128 = vmatprep.subr.bf16.mxu0 %v21924_v25 }
0x2218   : > { %v6725_v31 = vpop.f32.mrf.mxu0 }
0x2219   : > { %v6726_v14 = vadd.f32 %v15959_v30, %v6725_v31 }
0x221a   : > { %v17082_v61 = vpop.f32.mrf.mxu0 }
0x221b   : > { %v6732_v54 = vmax.f32 %v6726_v14, 0.0 }
0x221c   : > { %v6728_v7 = vpop.f32.mrf.mxu0 }
0x221d   : > { %v6736_v22 = vcombine.high %v6732_v54, %v6732_v54  ;;  %v6743_v42 = vrot.slane %v6732_v54, %v18632_v13  ;;  %v6729_v11 = vadd.f32 %v15959_v30, %v6728_v7  ;;  %v20058_v30 = vrot.slane %v6933_v37, %v18632_v13 }
0x221e   : > { %v17083_v1 = vpop.f32.mrf.mxu0 }
0x221f   : > { %v6750_v28 = vrot.slane %v6736_v22, %v18632_v13  ;;  %v6751_v20 = vcombine.high %v6743_v42, %v6743_v42  ;;  %v6733_v46 = vmax.f32 %v6729_v11, 0.0  ;;  %v6767_v59 = vadd.f32 %v6743_v42, %v19973_v35 }
0x2221   : > { %v6752_v43 = vcombine.high %v6750_v28, %v6750_v28  ;;  %v6768_v44 = vadd.f32 %v6751_v20, %v19981_v24  ;;  %v6759_v26 = vrot.slane %v6733_v46, %v18632_v13  ;;  %v6769_v60 = vadd.f32 %v6750_v28, %v19988_v23  ;;  %v6880_v23 = vpop.f32.mrf.mxu1 }
0x2223   : > { %v6770_v17 = vadd.f32 %v6752_v43, %v6575_v29  ;;  %v6978_v49 = vcombine.low %v6767_v59, %v6768_v44  ;;  %v6760_v34 = vcombine.high %v6759_v26, %v6759_v26  ;;  %v6771_v10 = vadd.f32 %v6759_v26, %v19996_v27  ;;  %v17103_v48 = vpop.f32.mrf.mxu1 }
0x2224   : > { %v6881_v29 = vadd.f32 %v15985_v0, %v6880_v23  ;;  %v6892_v14 = vadd.f32 %v17103_v48, %v15985_v0 }
0x2225   : > { %v6979_v38 = vcombine.low %v6769_v60, %v6770_v17  ;;  %v6772_v62 = vadd.f32 %v6760_v34, %v19994_v36  ;;  %v6986_v16 = vrot.slane %v6978_v49, %v18632_v13  ;;  %v6883_v27 = vpop.f32.mrf.mxu1  ;;  %v16010_v36 = vld [vmem:[%s18688_s29 + $0x6] sm:$0x3] }
0x2226   : > { %v6884_v8 = vadd.f32 %v15985_v0, %v6883_v27  ;;  %v7029_v56 = vrot.slane %v16010_v36, %v18691_v3  ;;  %v6899_v32 = vcombine.high %v6881_v29, %v6881_v29  ;;  %v7033_v39 = vrot.slane %v16010_v36, %v18696_v6 }
0x2227   : > { %v6993_v35 = vrot.slane %v6979_v38, %v18632_v13  ;;  %v6995_v58 = vcombine.low %v6771_v10, %v6772_v62  ;;  %v20046_v33 = vrot.slane %v6881_v29, %v18632_v13  ;;  %v20083_v38 = vcombine.high %v20050_v41, %v20050_v41 }
0x2228   : > { %v20040_v12 = vrot.slane %v6884_v8, %v18632_v13  ;;  %v20043_v53 = vrot.slane %v6899_v32, %v18632_v13  ;;  %v6916_v21 = vcombine.high %v6884_v8, %v6884_v8  ;;  %v20087_v10 = vcombine.high %v20058_v30, %v20058_v30 }
0x2229   : > { %v6994_v24 = vcombine.low %v6986_v16, %v6993_v35  ;;  %v7002_v51 = vrot.slane %v6995_v58, %v18632_v13  ;;  %v20066_v7 = vcombine.high %v20046_v33, %v20046_v33  ;;  %v20101_v0 = vrot.slane %v6892_v14, %v18632_v13 }
0x222a   : > { %v20054_v4 = vcombine.high %v20040_v12, %v20040_v12  ;;  %v20062_v31 = vcombine.high %v20043_v53, %v20043_v53  ;;  %v20071_v1 = vrot.slane %v6916_v21, %v18632_v13 }
0x222b   : > { %v7005_v55 = vpack.c.bf16 %v7002_v51, %v6994_v24 }
0x222c   : > { %v7230_v43 = vcombine.low %v20040_v12, %v20054_v4  ;;  %v7214_v60 = vcombine.low %v20043_v53, %v20062_v31  ;;  %v20095_v15 = vcombine.high %v20071_v1, %v20071_v1  ;;  %v7244_v32 = vrot.slane %v20071_v1, %v18632_v13 }
0x222d   : > { %7149 = vmatmul.mubr.bf16.vlgmr.msra.gmra.mxu0 %v7005_v55  ;;  %v7213_v55 = vcombine.low %v20046_v33, %v20066_v7 }
0x222e   : > { %17130 = vmatprep.mubr.msk.bf16.mxu0 %vm18390_vm0, %v21924_v25  ;;  %v7237_v48 = vrot.slane %v7230_v43, %v18632_v13  ;;  %v7228_v36 = vrot.slane %v7214_v60, %v18632_v13  ;;  %v7246_v37 = vcombine.low %v20095_v15, %v20050_v41 }
0x22ed   : > { %v7150_v18 = vpop.f32.mrf.mxu0 }
0x22ee   : > { %v7151_v40 = vadd.f32 %v7150_v18, %v7029_v56  ;;  %v7221_v18 = vrot.slane %v7213_v55, %v18632_v13 }
0x22ef   : > { %v7152_v63 = vpop.f32.mrf.mxu0 }
0x22f0   : > { %v7161_v52 = vcombine.high %v7151_v40, %v7151_v40  ;;  %v7168_v5 = vrot.slane %v7151_v40, %v18632_v13  ;;  %v7153_v47 = vadd.f32 %v7152_v63, %v7033_v39  ;;  %v7245_v40 = vcombine.low %v7237_v48, %v7244_v32 }
0x22f1   : > { %v7154_v50 = vpop.f32.mrf.mxu0  ;;  %v7247_v63 = vcombine.low %v20083_v38, %v20058_v30 }
0x22f2   : > { %v7175_v2 = vrot.slane %v7161_v52, %v18632_v13  ;;  %v7176_v19 = vcombine.high %v7168_v5, %v7168_v5  ;;  %v7188_v45 = vcombine.high %v7153_v47, %v7153_v47  ;;  %v7155_v61 = vadd.f32 %v7154_v50, %v7029_v56 }
0x22f3   : > { %v7156_v54 = vpop.f32.mrf.mxu0  ;;  %v7195_v42 = vrot.slane %v7153_v47, %v18632_v13  ;;  %v20120_v52 = vcombine.high %v20101_v0, %v20101_v0  ;;  %v7229_v50 = vcombine.low %v7221_v18, %v7228_v36  ;;  %v7261_v14 = vrot.slane %v7247_v63, %v18632_v13 }
0x22f4   : > { %v7285_v22 = vcombine.low %v7168_v5, %v7176_v19  ;;  %v7202_v11 = vrot.slane %v7188_v45, %v18632_v13  ;;  %v7177_v28 = vcombine.high %v7175_v2, %v7175_v2  ;;  %v7184_v20 = vrot.slane %v7155_v61, %v18632_v13 }
0x22f5   : > { %v7157_v46 = vadd.f32 %v7156_v54, %v7033_v39  ;;  %v7299_v44 = vrot.slane %v7175_v2, %v18632_v13  ;;  %v7203_v16 = vcombine.high %v7195_v42, %v7195_v42  ;;  %v7263_v5 = vcombine.low %v20087_v10, %v20101_v0 }
0x22f6   : > { %v7292_v59 = vrot.slane %v7285_v22, %v18632_v13  ;;  %v7204_v26 = vcombine.high %v7202_v11, %v7202_v11  ;;  %v7185_v17 = vcombine.high %v7184_v20, %v7184_v20  ;;  %v7301_v49 = vcombine.low %v7177_v28, %v7184_v20 }
0x22f7   : > { %v7211_v34 = vrot.slane %v7157_v46, %v18632_v13  ;;  %v7321_v8 = vcombine.low %v7195_v42, %v7203_v16  ;;  %v7335_v2 = vrot.slane %v7202_v11, %v18632_v13  ;;  %v20128_v19 = vpack.c.bf16 %v7245_v40, %v7229_v50 }
0x22f8   : > { %v7300_v62 = vcombine.low %v7292_v59, %v7299_v44  ;;  %v7308_v35 = vrot.slane %v7301_v49, %v18632_v13  ;;  %v7315_v58 = vrot.slane %v7185_v17, %v18632_v13  ;;  %v7254_v45 = vrot.slane %v7246_v37, %v18632_v13 }
0x22f9   : > { %v7212_v24 = vcombine.high %v7211_v34, %v7211_v34  ;;  %v7337_v51 = vcombine.low %v7204_v26, %v7211_v34  ;;  %v7328_v47 = vrot.slane %v7321_v8, %v18632_v13  ;;  %v7270_v22 = vrot.slane %v7263_v5, %v18632_v13 }
0x22fa   : > { %v20097_v23 = vpack.c.bf16 %v7300_v62, %v7300_v62  ;;  %v7316_v56 = vcombine.low %v7308_v35, %v7315_v58  ;;  %v7277_v42 = vrot.slane %v20120_v52, %v18632_v13  ;;  %v7262_v11 = vcombine.low %v7254_v45, %v7261_v14 }
0x22fb   : > { %v7344_v29 = vrot.slane %v7337_v51, %v18632_v13  ;;  %v7351_v27 = vrot.slane %v7212_v24, %v18632_v13  ;;  %v7336_v61 = vcombine.low %v7328_v47, %v7335_v2 }
0x22fc   : > { %v7361_v9 = vsel %vm1237_vm1, %v20097_v23, 0  ;;  %v20125_v21 = vpack.c.bf16 %v7316_v56, %v7316_v56  ;;  %v7278_v20 = vcombine.low %v7270_v22, %v7277_v42 }
0x22fd   : > { %v20110_v39 = vcombine.low %v7344_v29, %v7351_v27  ;;  %17105 = vmatpush3.bf16.xpose.msra.mxu1 %v7361_v9  ;;  %v20142_v28 = vpack.c.bf16 %v7336_v61, %v7336_v61 }
0x22fe   : > { %17110 = vmatprep.subr.bf16.mxu1 %v21924_v25  ;;  %v7408_v54 = vsel %vm1237_vm1, %v20125_v21, 0  ;;  %v20144_v46 = vpack.c.bf16 %v7278_v20, %v7262_v11 }
0x22ff   : > { %v7505_v43 = vsel %vm3098_vm7, %v20142_v28, 0 }
0x2304   : > { %17107 = vmatmul.mubr.msk.bf16.vlgmr.msra.gmra.mxu1 %vm1237_vm1, %v20128_v19 }
0x2305   : > { %17111 = vmatpush3.bf16.xpose.msra.mxu1 %v7408_v54  ;;  %17112 = vmatprep.mubr.msk.bf16.mxu1 %vm18390_vm0, %v21924_v25 }
0x2306   : > { %17116 = vmatprep.subr.bf16.mxu1 %v21924_v25 }
0x230c   : > { %17113 = vmatmul.mubr.msk.bf16.vlgmr.msra.gmra.mxu1 %vm1237_vm1, %v20144_v46 }
0x230d   : > { %17117 = vmatpush3.bf16.msra.mxu1 %v7505_v43  ;;  %17118 = vmatprep.mubr.msk.bf16.mxu1 %vm18390_vm0, %v21924_v25 }
0x230e   : > { %17122 = vmatprep.subr.bf16.mxu1 %v21924_v25 }
0x23c4   : > { %v7397_v59 = vpop.f32.mrf.mxu1 }
0x23c5   : > { %v7451_v44 = vmul.f32 0.088388346, %v7397_v59 }
0x23c6   : > { %v17108_v26 = vpop.f32.mrf.mxu1 }
0x23c7   : > { %v7455_v60 = vsel %vm3047_vm8, %v7451_v44, -inf }
0x23c8   : > { %7456 = vmax.xlane.f32.xlu0 %v7455_v60  ;;  %v7400_v17 = vpop.f32.mrf.mxu1 }
0x23c9   : > { %v7452_v49 = vmul.f32 0.088388346, %v7400_v17  ;;  %v20173_v17 = vpack.c.bf16 %v20110_v39, %v20110_v39 }
0x23ca   : > { %v17109_v34 = vpop.f32.mrf.mxu1 }
0x23cb   : > { %v7458_v62 = vsel %vm3051_vm9, %v7452_v49, -inf }
0x23cc   : > { %7459 = vmax.xlane.f32.xlu1 %v7458_v62  ;;  %v7444_v16 = vpop.f32.mrf.mxu1 }
0x23cd   : > { %v7453_v35 = vmul.f32 0.088388346, %v7444_v16  ;;  %v7552_v16 = vsel %vm3098_vm7, %v20173_v17, 0 }
0x23ce   : > { %v17114_v58 = vpop.f32.mrf.mxu1 }
0x23cf   : > { %v7461_v24 = vsel %vm3047_vm8, %v7453_v35, -inf }
0x23d0   : > { %7462 = vmax.xlane.f32.xlu0 %v7461_v24  ;;  %v7447_v51 = vpop.f32.mrf.mxu1 }
0x23d1   : > { %v7454_v55 = vmul.f32 0.088388346, %v7447_v51 }
0x23d2   : > { %v17115_v48 = vpop.f32.mrf.mxu1 }
0x23d3   : > { %v7464_v29 = vsel %vm3051_vm9, %v7454_v55, -inf }
0x23d4   : > { %7465 = vmax.xlane.f32.xlu0 %v7464_v29 }
0x2451   : > { %v7457_v27 = vpop.xlane.xlu0 %7456 }
0x2452   : > { %v7467_v36 = vsub.f32 %v7451_v44, %v7457_v27 }
0x2454   : > { %v7471_v8 = vmul.f32 1.442695, %v7467_v36 }
0x2455   : > { %v7460_v56 = vpop.xlane.xlu1 %7459 }
0x2456   : > { %18121 = vpow2.f32 %v7471_v8  ;;  %v7468_v9 = vsub.f32 %v7452_v49, %v7460_v56 }
0x2458   : > { %v7473_v32 = vmul.f32 1.442695, %v7468_v9 }
0x2459   : > { %v7463_v18 = vpop.xlane.xlu0 %7462 }
0x245a   : > { %18123 = vpow2.f32 %v7473_v32  ;;  %v7469_v40 = vsub.f32 %v7453_v35, %v7463_v18 }
0x245c   : > { %v7475_v37 = vmul.f32 1.442695, %v7469_v40 }
0x245d   : > { %v7466_v14 = vpop.xlane.xlu0 %7465 }
0x245e   : > { %18125 = vpow2.f32 %v7475_v37  ;;  %v7470_v61 = vsub.f32 %v7454_v55, %v7466_v14 }
0x2460   : > { %v7477_v54 = vmul.f32 1.442695, %v7470_v61 }
0x2462   : > { %18127 = vpow2.f32 %v7477_v54 }
0x2463   : > { %v18122_v63 = vpop.eup %18121 }
0x2464   : > { %v7479_v5 = vsel %vm3047_vm8, %v18122_v63, 0.0 }
0x2465   : > { %7480 = vadd.xlane.f32.xlu0 %v7479_v5 }
0x2467   : > { %v18124_v47 = vpop.eup %18123 }
0x2468   : > { %v7482_v50 = vsel %vm3051_vm9, %v18124_v47, 0.0 }
0x2469   : > { %7483 = vadd.xlane.f32.xlu1 %v7482_v50 }
0x246b   : > { %v18126_v2 = vpop.eup %18125 }
0x246c   : > { %v7485_v45 = vsel %vm3047_vm8, %v18126_v2, 0.0 }
0x246d   : > { %7486 = vadd.xlane.f32.xlu0 %v7485_v45 }
0x246f   : > { %v18128_v22 = vpop.eup %18127 }
0x2470   : > { %v7488_v42 = vsel %vm3051_vm9, %v18128_v22, 0.0 }
0x247a   : > { %7750 = vrot.lane.b32.xlu1 %v20125_v21, %s18391_s28 }
0x2483   : > { %7697 = vrot.lane.b32.xlu0 %v20097_v23, %s18391_s28 }
0x249e   : > { %7489 = vadd.xlane.f32.xlu1 %v7488_v42 }
0x24af   : > { %7694 = vrot.lane.b32.xlu1 %v20128_v19, %s18391_s28 }
0x24b3   : > { %7747 = vrot.lane.b32.xlu1 %v20144_v46, %s18391_s28 }
0x24ee   : > { %v7481_v11 = vpop.xlane.xlu0 %7480 }
0x24ef   : > { %18129 = vrcp.f32 %v7481_v11 }
0x24f2   : > { %v7484_v20 = vpop.xlane.xlu1 %7483 }
0x24f3   : > { %18131 = vrcp.f32 %v7484_v20 }
0x24f6   : > { %v7487_v43 = vpop.xlane.xlu0 %7486  ;;  %v7751_v35 = vpop.permute.xlu1 %7750 }
0x24f7   : > { %18133 = vrcp.f32 %v7487_v43  ;;  %v7756_v27 = vsel %vm1237_vm1, %v7751_v35, 0 }
0x24fa   : > { %v7698_v59 = vpop.permute.xlu0 %7697 }
0x24fb   : > { %v7703_v44 = vsel %vm1237_vm1, %v7698_v59, 0 }
0x24fc   : > { %17129 = vmatpush3.bf16.xpose.msra.mxu0 %v7703_v44  ;;  %v18130_v26 = vpop.eup %18129 }
0x24fd   : > { %17140 = vmatprep.subr.bf16.mxu0 %v21924_v25  ;;  %v7495_v49 = vmul.f32 %v18130_v26, %v18122_v63 }
0x2500   : > { %v18132_v60 = vpop.eup %18131 }
0x2501   : > { %v7496_v34 = vmul.f32 %v18132_v60, %v18124_v47 }
0x2503   : > { %v7499_v62 = vpack.c.bf16 %v7496_v34, %v7495_v49 }
0x2504   : > { %v18134_v24 = vpop.eup %18133 }
0x2505   : > { %17119 = vmatmul.mubr.msk.bf16.vlgmr.msra.gmra.mxu1 %vm3047_vm8, %v7499_v62  ;;  %v7497_v55 = vmul.f32 %v18134_v24, %v18126_v2 }
0x2506   : > { %17123 = vmatpush3.bf16.msra.mxu1 %v7552_v16  ;;  %17124 = vmatprep.mubr.msk.bf16.mxu1 %vm18390_vm0, %v21924_v25 }
0x2507   : > { %17134 = vmatprep.subr.bf16.mxu1 %v21924_v25 }
0x2527   : > { %v7490_v58 = vpop.xlane.xlu1 %7489 }
0x2528   : > { %18135 = vrcp.f32 %v7490_v58 }
0x252b   : > { %v7695_v39 = vpop.permute.xlu1 %7694 }
0x252c   : > { %17131 = vmatmul.mubr.msk.bf16.vlgmr.msra.gmra.mxu0 %vm1237_vm1, %v7695_v39 }
0x252d   : > { %17142 = vmatprep.mubr.msk.bf16.mxu0 %vm18390_vm0, %v21924_v25 }
0x252f   : > { %v7748_v36 = vpop.permute.xlu1 %7747 }
0x2535   : > { %v18136_v51 = vpop.eup %18135 }
0x2536   : > { %v7498_v48 = vmul.f32 %v18136_v51, %v18128_v22 }
0x2538   : > { %v7500_v29 = vpack.c.bf16 %v7498_v48, %v7497_v55 }
0x253a   : > { %17125 = vmatmul.mubr.msk.bf16.vlgmr.msra.gmra.mxu1 %vm3047_vm8, %v7500_v29 }
0x253b   : > { %17135 = vmatpush3.bf16.xpose.msra.mxu1 %v7756_v27  ;;  %17136 = vmatprep.mubr.msk.bf16.mxu1 %vm18390_vm0, %v21924_v25 }
0x253c   : > { %17146 = vmatprep.subr.bf16.mxu1 %v21924_v25 }
0x2542   : > { %17137 = vmatmul.mubr.msk.bf16.vlgmr.msra.gmra.mxu1 %vm1237_vm1, %v7748_v36 }
0x2543   : > { %17148 = vmatprep.mubr.msk.bf16.mxu1 %vm18390_vm0, %v21924_v25 }
0x25c5   : > { %v20192_v8 = vpop.f32.mrf.mxu1 }
0x25c7   : > { %v17120_v56 = vpop.f32.mrf.mxu1 }
0x25c9   : > { %v20194_v9 = vpop.f32.mrf.mxu1 }
0x25cb   : > { %v17121_v32 = vpop.f32.mrf.mxu1 }
0x25ec   : > { %v7739_v18 = vpop.f32.mrf.mxu0 }
0x25ed   : > { %v7799_v40 = vmul.f32 0.088388346, %v7739_v18 }
0x25ee   : > { %v17132_v37 = vpop.f32.mrf.mxu0 }
0x25ef   : > { %v7803_v63 = vsel %vm3047_vm8, %v7799_v40, -inf }
0x25f0   : > { %7804 = vmax.xlane.f32.xlu0 %v7803_v63  ;;  %v7742_v5 = vpop.f32.mrf.mxu0 }
0x25f1   : > { %v7800_v47 = vmul.f32 0.088388346, %v7742_v5 }
0x25f2   : > { %v17133_v50 = vpop.f32.mrf.mxu0 }
0x25f3   : > { %v7806_v2 = vsel %vm3051_vm9, %v7800_v47, -inf }
0x25f4   : > { %7807 = vmax.xlane.f32.xlu1 %v7806_v2 }
0x25fa   : > { %v20198_v45 = vpop.f32.mrf.mxu1 }
0x25fc   : > { %v17126_v14 = vpop.f32.mrf.mxu1 }
0x25fe   : > { %v20200_v61 = vpop.f32.mrf.mxu1 }
0x2600   : > { %v17127_v54 = vpop.f32.mrf.mxu1 }
0x2602   : > { %v7792_v22 = vpop.f32.mrf.mxu1 }
0x2603   : > { %v7801_v42 = vmul.f32 0.088388346, %v7792_v22 }
0x2604   : > { %v17138_v11 = vpop.f32.mrf.mxu1 }
0x2605   : > { %v7809_v20 = vsel %vm3047_vm8, %v7801_v42, -inf }
0x2606   : > { %7810 = vmax.xlane.f32.xlu0 %v7809_v20  ;;  %v7795_v43 = vpop.f32.mrf.mxu1 }
0x2607   : > { %v7802_v59 = vmul.f32 0.088388346, %v7795_v43 }
0x2608   : > { %v17139_v44 = vpop.f32.mrf.mxu1 }
0x2609   : > { %v7812_v26 = vsel %vm3051_vm9, %v7802_v59, -inf }
0x260a   : > { %7813 = vmax.xlane.f32.xlu0 %v7812_v26 }
0x2679   : > { %v7805_v60 = vpop.xlane.xlu0 %7804 }
0x267a   : > { %v7815_v49 = vsub.f32 %v7799_v40, %v7805_v60 }
0x267c   : > { %v7819_v34 = vmul.f32 1.442695, %v7815_v49 }
0x267d   : > { %v7808_v62 = vpop.xlane.xlu1 %7807 }
0x267e   : > { %18137 = vpow2.f32 %v7819_v34  ;;  %v7816_v16 = vsub.f32 %v7800_v47, %v7808_v62 }
0x2680   : > { %v7821_v35 = vmul.f32 1.442695, %v7816_v16 }
0x2682   : > { %18139 = vpow2.f32 %v7821_v35 }
0x268b   : > { %v18138_v58 = vpop.eup %18137 }
0x268c   : > { %v7827_v39 = vsel %vm3047_vm8, %v18138_v58, 0.0 }
0x268d   : > { %7828 = vadd.xlane.f32.xlu0 %v7827_v39 }
0x268f   : > { %v18140_v24 = vpop.eup %18139  ;;  %v7811_v51 = vpop.xlane.xlu0 %7810 }
0x2690   : > { %v7817_v55 = vsub.f32 %v7801_v42, %v7811_v51  ;;  %v7830_v48 = vsel %vm3051_vm9, %v18140_v24, 0.0 }
0x2691   : > { %7831 = vadd.xlane.f32.xlu1 %v7830_v48 }
0x2692   : > { %v7823_v29 = vmul.f32 1.442695, %v7817_v55 }
0x2693   : > { %v7814_v56 = vpop.xlane.xlu0 %7813 }
0x2694   : > { %18141 = vpow2.f32 %v7823_v29  ;;  %v7818_v32 = vsub.f32 %v7802_v59, %v7814_v56 }
0x2696   : > { %v7825_v18 = vmul.f32 1.442695, %v7818_v32 }
0x2698   : > { %18143 = vpow2.f32 %v7825_v18 }
0x26a1   : > { %v18142_v27 = vpop.eup %18141 }
0x26a2   : > { %7900 = vrot.lane.b32.xlu1 %v20173_v17, %s18391_s28  ;;  %v7833_v36 = vsel %vm3047_vm8, %v18142_v27, 0.0 }
0x26a3   : > { %7834 = vadd.xlane.f32.xlu0 %v7833_v36 }
0x26a5   : > { %v18144_v40 = vpop.eup %18143 }
0x26a6   : > { %8077 = vrot.lane.b32.xlu1 %v20097_v23, %s18392_s18  ;;  %v7836_v37 = vsel %vm3051_vm9, %v18144_v40, 0.0 }
0x26b9   : > { %7850 = vrot.lane.b32.xlu0 %v20142_v28, %s18391_s28 }
0x26bd   : > { %8075 = vrot.lane.b32.xlu0 %v20128_v19, %s18392_s18 }
0x26ca   : > { %7837 = vadd.xlane.f32.xlu1 %v7836_v37 }
0x26db   : > { %8128 = vrot.lane.b32.xlu1 %v20125_v21, %s18392_s18 }
0x26df   : > { %8126 = vrot.lane.b32.xlu1 %v20144_v46, %s18392_s18 }
0x2716   : > { %v7829_v5 = vpop.xlane.xlu0 %7828 }
0x271a   : > { %v7832_v63 = vpop.xlane.xlu1 %7831 }
0x271b   : > { %18145 = vrcp.f32 %v7832_v63 }
0x271c   : > { %18147 = vrcp.f32 %v7829_v5 }
0x271e   : > { %v7901_v47 = vpop.permute.xlu1 %7900 }
0x271f   : > { %v7906_v50 = vsel %vm3098_vm7, %v7901_v47, 0 }
0x2720   : > { %17147 = vmatpush3.bf16.msra.mxu1 %v7906_v50 }
0x2721   : > { %17158 = vmatprep.subr.bf16.mxu1 %v21924_v25 }
0x2722   : > { %v8078_v43 = vpop.permute.xlu1 %8077 }
0x2723   : > { %v8083_v44 = vsel %vm1237_vm1, %v8078_v43, 0 }
0x2728   : > { %v18146_v2 = vpop.eup %18145 }
0x2729   : > { %v18148_v54 = vpop.eup %18147  ;;  %v7844_v22 = vmul.f32 %v18146_v2, %v18140_v24 }
0x272a   : > { %v7843_v11 = vmul.f32 %v18148_v54, %v18138_v58 }
0x272c   : > { %v7835_v14 = vpop.xlane.xlu0 %7834  ;;  %v7847_v59 = vpack.c.bf16 %v7844_v22, %v7843_v11 }
0x272d   : > { %18149 = vrcp.f32 %v7835_v14 }
0x2730   : > { %v7851_v42 = vpop.permute.xlu0 %7850 }
0x2731   : > { %v7856_v20 = vsel %vm3098_vm7, %v7851_v42, 0 }
0x2732   : > { %17141 = vmatpush3.bf16.msra.mxu0 %v7856_v20 }
0x2733   : > { %17152 = vmatprep.subr.bf16.mxu0 %v21924_v25 }
0x2734   : > { %v8076_v26 = vpop.permute.xlu0 %8075 }
0x2735   : > { %17143 = vmatmul.mubr.msk.bf16.vlgmr.msra.gmra.mxu0 %vm3047_vm8, %v7847_v59 }
0x2736   : > { %17153 = vmatpush3.bf16.xpose.msra.mxu0 %v8083_v44  ;;  %17154 = vmatprep.mubr.msk.bf16.mxu0 %vm18390_vm0, %v21924_v25 }
0x2737   : > { %17164 = vmatprep.subr.bf16.mxu0 %v21924_v25 }
0x273a   : > { %v18150_v49 = vpop.eup %18149 }
0x273b   : > { %v7845_v62 = vmul.f32 %v18150_v49, %v18142_v27 }
0x273d   : > { %17155 = vmatmul.mubr.msk.bf16.vlgmr.msra.gmra.mxu0 %vm1237_vm1, %v8076_v26 }
0x273e   : > { %17166 = vmatprep.mubr.msk.bf16.mxu0 %vm18390_vm0, %v21924_v25 }
0x2753   : > { %v7838_v60 = vpop.xlane.xlu1 %7837 }
0x2754   : > { %18151 = vrcp.f32 %v7838_v60 }
0x2757   : > { %v8129_v35 = vpop.permute.xlu1 %8128 }
0x2758   : > { %v8134_v39 = vsel %vm1237_vm1, %v8129_v35, 0 }
0x275b   : > { %v8127_v24 = vpop.permute.xlu1 %8126 }
0x2761   : > { %v18152_v34 = vpop.eup %18151 }
0x2762   : > { %v7846_v16 = vmul.f32 %v18152_v34, %v18144_v40 }
0x2764   : > { %v7848_v58 = vpack.c.bf16 %v7846_v16, %v7845_v62 }
0x2766   : > { %17149 = vmatmul.mubr.msk.bf16.vlgmr.msra.gmra.mxu1 %vm3047_vm8, %v7848_v58 }
0x2767   : > { %17159 = vmatpush3.bf16.xpose.msra.mxu1 %v8134_v39  ;;  %17160 = vmatprep.mubr.msk.bf16.mxu1 %vm18390_vm0, %v21924_v25 }
0x2768   : > { %17170 = vmatprep.subr.bf16.mxu1 %v21924_v25 }
0x276e   : > { %17161 = vmatmul.mubr.msk.bf16.vlgmr.msra.gmra.mxu1 %vm1237_vm1, %v8127_v24 }
0x276f   : > { %17172 = vmatprep.mubr.msk.bf16.mxu1 %vm18390_vm0, %v21924_v25 }
0x27f5   : > { %v20240_v51 = vpop.f32.mrf.mxu0 }
0x27f7   : > { %v17144_v55 = vpop.f32.mrf.mxu0 }
0x27f9   : > { %v20242_v48 = vpop.f32.mrf.mxu0 }
0x27fb   : > { %v17145_v29 = vpop.f32.mrf.mxu0 }
0x27fd   : > { %v8119_v27 = vpop.f32.mrf.mxu0 }
0x27fe   : > { %v8177_v36 = vmul.f32 0.088388346, %v8119_v27 }
0x27ff   : > { %v17156_v56 = vpop.f32.mrf.mxu0 }
0x2800   : > { %v8181_v32 = vsel %vm3047_vm8, %v8177_v36, -inf }
0x2801   : > { %8182 = vmax.xlane.f32.xlu0 %v8181_v32  ;;  %v8122_v18 = vpop.f32.mrf.mxu0 }
0x2802   : > { %v8178_v40 = vmul.f32 0.088388346, %v8122_v18 }
0x2803   : > { %v17157_v37 = vpop.f32.mrf.mxu0 }
0x2804   : > { %v8184_v63 = vsel %vm3051_vm9, %v8178_v40, -inf }
0x2805   : > { %8185 = vmax.xlane.f32.xlu1 %v8184_v63 }
0x2826   : > { %v20246_v5 = vpop.f32.mrf.mxu1 }
0x2828   : > { %v17150_v47 = vpop.f32.mrf.mxu1 }
0x282a   : > { %v20248_v50 = vpop.f32.mrf.mxu1 }
0x282c   : > { %v17151_v2 = vpop.f32.mrf.mxu1 }
0x282e   : > { %v8170_v14 = vpop.f32.mrf.mxu1 }
0x282f   : > { %v8179_v54 = vmul.f32 0.088388346, %v8170_v14 }
0x2830   : > { %v17162_v22 = vpop.f32.mrf.mxu1 }
0x2831   : > { %v8187_v42 = vsel %vm3047_vm8, %v8179_v54, -inf }
0x2832   : > { %8188 = vmax.xlane.f32.xlu0 %v8187_v42  ;;  %v8173_v11 = vpop.f32.mrf.mxu1 }
0x2833   : > { %v8180_v20 = vmul.f32 0.088388346, %v8173_v11 }
0x2834   : > { %v17163_v43 = vpop.f32.mrf.mxu1 }
0x2835   : > { %v8190_v59 = vsel %vm3051_vm9, %v8180_v20, -inf }
0x2836   : > { %8191 = vmax.xlane.f32.xlu0 %v8190_v59 }
0x288a   : > { %v8183_v44 = vpop.xlane.xlu0 %8182 }
0x288b   : > { %v8193_v26 = vsub.f32 %v8177_v36, %v8183_v44 }
0x288d   : > { %v8197_v60 = vmul.f32 1.442695, %v8193_v26 }
0x288e   : > { %v8186_v49 = vpop.xlane.xlu1 %8185 }
0x288f   : > { %18153 = vpow2.f32 %v8197_v60  ;;  %v8194_v34 = vsub.f32 %v8178_v40, %v8186_v49 }
0x2891   : > { %v8199_v62 = vmul.f32 1.442695, %v8194_v34 }
0x2893   : > { %18155 = vpow2.f32 %v8199_v62 }
0x289c   : > { %v18154_v16 = vpop.eup %18153 }
0x289d   : > { %v8205_v35 = vsel %vm3047_vm8, %v18154_v16, 0.0 }
0x289e   : > { %8206 = vadd.xlane.f32.xlu0 %v8205_v35 }
0x28a0   : > { %v18156_v58 = vpop.eup %18155 }
0x28a1   : > { %v8208_v39 = vsel %vm3051_vm9, %v18156_v58, 0.0 }
0x28a2   : > { %8209 = vadd.xlane.f32.xlu1 %v8208_v39 }
0x28b3   : > { %8276 = vrot.lane.b32.xlu1 %v20173_v17, %s18392_s18 }
0x28b7   : > { %8453 = vrot.lane.b32.xlu1 %v20097_v23, %s18393_s21 }
0x28bb   : > { %v8189_v24 = vpop.xlane.xlu0 %8188 }
0x28bc   : > { %v8195_v55 = vsub.f32 %v8179_v54, %v8189_v24 }
0x28be   : > { %v8201_v29 = vmul.f32 1.442695, %v8195_v55 }
0x28bf   : > { %v8192_v27 = vpop.xlane.xlu0 %8191 }
0x28c0   : > { %18157 = vpow2.f32 %v8201_v29  ;;  %v8196_v36 = vsub.f32 %v8180_v20, %v8192_v27 }
0x28c2   : > { %v8203_v56 = vmul.f32 1.442695, %v8196_v36 }
0x28c4   : > { %18159 = vpow2.f32 %v8203_v56 }
0x28cd   : > { %v18158_v32 = vpop.eup %18157 }
0x28ce   : > { %v8211_v18 = vsel %vm3047_vm8, %v18158_v32, 0.0 }
0x28cf   : > { %8212 = vadd.xlane.f32.xlu0 %v8211_v18 }
0x28d1   : > { %v18160_v40 = vpop.eup %18159 }
0x28d2   : > { %v8214_v37 = vsel %vm3051_vm9, %v18160_v40, 0.0 }
0x28db   : > { %8215 = vadd.xlane.f32.xlu1 %v8214_v37 }
0x28e5   : > { %8227 = vrot.lane.b32.xlu0 %v20142_v28, %s18392_s18 }
0x28e9   : > { %8451 = vrot.lane.b32.xlu0 %v20128_v19, %s18393_s21 }
0x28ec   : > { %8504 = vrot.lane.b32.xlu1 %v20125_v21, %s18393_s21 }
0x28f0   : > { %8502 = vrot.lane.b32.xlu1 %v20144_v46, %s18393_s21 }
0x2927   : > { %v8207_v2 = vpop.xlane.xlu0 %8206 }
0x292b   : > { %v8210_v23 = vpop.xlane.xlu1 %8209 }
0x292c   : > { %18161 = vrcp.f32 %v8210_v23 }
0x292d   : > { %18163 = vrcp.f32 %v8207_v2 }
0x292f   : > { %v8277_v63 = vpop.permute.xlu1 %8276 }
0x2930   : > { %v8282_v47 = vsel %vm3098_vm7, %v8277_v63, 0 }
0x2931   : > { %17171 = vmatpush3.bf16.msra.mxu1 %v8282_v47 }
0x2932   : > { %17182 = vmatprep.subr.bf16.mxu1 %v21924_v25 }
0x2933   : > { %v8454_v20 = vpop.permute.xlu1 %8453 }
0x2934   : > { %v8459_v43 = vsel %vm1237_vm1, %v8454_v20, 0 }
0x2939   : > { %v18162_v14 = vpop.eup %18161 }
0x293a   : > { %v18164_v22 = vpop.eup %18163  ;;  %v8222_v19 = vmul.f32 %v18162_v14, %v18156_v58 }
0x293b   : > { %v8221_v11 = vmul.f32 %v18164_v22, %v18154_v16 }
0x293d   : > { %v8225_v46 = vpack.c.bf16 %v8222_v19, %v8221_v11 }
0x2958   : > { %v8213_v54 = vpop.xlane.xlu0 %8212 }
0x2959   : > { %18165 = vrcp.f32 %v8213_v54 }
0x295c   : > { %v8228_v42 = vpop.permute.xlu0 %8227 }
0x295d   : > { %v8233_v21 = vsel %vm3098_vm7, %v8228_v42, 0 }
0x295e   : > { %17165 = vmatpush3.bf16.msra.mxu0 %v8233_v21 }
0x295f   : > { %17176 = vmatprep.subr.bf16.mxu0 %v21924_v25 }
0x2960   : > { %v8452_v44 = vpop.permute.xlu0 %8451 }
0x2961   : > { %17167 = vmatmul.mubr.msk.bf16.vlgmr.msra.gmra.mxu0 %vm3047_vm8, %v8225_v46 }
0x2962   : > { %17177 = vmatpush3.bf16.xpose.msra.mxu0 %v8459_v43  ;;  %17178 = vmatprep.mubr.msk.bf16.mxu0 %vm18390_vm0, %v21924_v25 }
0x2963   : > { %17188 = vmatprep.subr.bf16.mxu0 %v21924_v25 }
0x2964   : > { %v8216_v59 = vpop.xlane.xlu1 %8215 }
0x2965   : > { %18167 = vrcp.f32 %v8216_v59 }
0x2966   : > { %v18166_v26 = vpop.eup %18165 }
0x2967   : > { %v8223_v49 = vmul.f32 %v18166_v26, %v18158_v32 }
0x2968   : > { %v8505_v62 = vpop.permute.xlu1 %8504 }
0x2969   : > { %17179 = vmatmul.mubr.msk.bf16.vlgmr.msra.gmra.mxu0 %vm1237_vm1, %v8452_v44  ;;  %v8510_v35 = vsel %vm1237_vm1, %v8505_v62, 0 }
0x296a   : > { %17190 = vmatprep.mubr.msk.bf16.mxu0 %vm18390_vm0, %v21924_v25 }
0x296c   : > { %v8503_v58 = vpop.permute.xlu1 %8502 }
0x2972   : > { %v18168_v60 = vpop.eup %18167 }
0x2973   : > { %v8224_v34 = vmul.f32 %v18168_v60, %v18160_v40 }
0x2975   : > { %v8226_v16 = vpack.c.bf16 %v8224_v34, %v8223_v49 }
0x2977   : > { %17173 = vmatmul.mubr.msk.bf16.vlgmr.msra.gmra.mxu1 %vm3047_vm8, %v8226_v16 }
0x2978   : > { %17183 = vmatpush3.bf16.xpose.msra.mxu1 %v8510_v35  ;;  %17184 = vmatprep.mubr.msk.bf16.mxu1 %vm18390_vm0, %v21924_v25 }
0x2979   : > { %17194 = vmatprep.subr.bf16.mxu1 %v21924_v25 }
0x297f   : > { %17185 = vmatmul.mubr.msk.bf16.vlgmr.msra.gmra.mxu1 %vm1237_vm1, %v8503_v58 }
0x2980   : > { %17196 = vmatprep.mubr.msk.bf16.mxu1 %vm18390_vm0, %v21924_v25 }
0x2a21   : > { %v20288_v39 = vpop.f32.mrf.mxu0 }
0x2a23   : > { %v17168_v24 = vpop.f32.mrf.mxu0 }
0x2a25   : > { %v20290_v55 = vpop.f32.mrf.mxu0 }
0x2a27   : > { %v17169_v29 = vpop.f32.mrf.mxu0 }
0x2a29   : > { %v8495_v27 = vpop.f32.mrf.mxu0 }
0x2a2a   : > { %v8553_v36 = vmul.f32 0.088388346, %v8495_v27 }
0x2a2b   : > { %v17180_v56 = vpop.f32.mrf.mxu0 }
0x2a2c   : > { %v8557_v32 = vsel %vm3047_vm8, %v8553_v36, -inf }
0x2a2d   : > { %8558 = vmax.xlane.f32.xlu0 %v8557_v32  ;;  %v8498_v18 = vpop.f32.mrf.mxu0 }
0x2a2e   : > { %v8554_v40 = vmul.f32 0.088388346, %v8498_v18 }
0x2a2f   : > { %v17181_v37 = vpop.f32.mrf.mxu0 }
0x2a30   : > { %v8560_v23 = vsel %vm3051_vm9, %v8554_v40, -inf }
0x2a31   : > { %8561 = vmax.xlane.f32.xlu1 %v8560_v23  ;;  %v7953_v23 = vcombine.high %v20240_v51, %v20240_v51 }
0x2a37   : > { %v20294_v63 = vpop.f32.mrf.mxu1 }
0x2a39   : > { %v17174_v47 = vpop.f32.mrf.mxu1 }
0x2a3a   : > { %v7960_v47 = vrot.slane %v20240_v51, %v18632_v13 }
0x2a3b   : > { %v20296_v2 = vpop.f32.mrf.mxu1 }
0x2a3d   : > { %v17175_v14 = vpop.f32.mrf.mxu1 }
0x2a3e   : > { %v7967_v14 = vrot.slane %v7953_v23, %v18632_v13 }
0x2a3f   : > { %v8546_v54 = vpop.f32.mrf.mxu1 }
0x2a40   : > { %v8555_v22 = vmul.f32 0.088388346, %v8546_v54  ;;  %v7968_v54 = vcombine.high %v7960_v47, %v7960_v47 }
0x2a41   : > { %v17186_v19 = vpop.f32.mrf.mxu1 }
0x2a42   : > { %v8563_v42 = vsel %vm3047_vm8, %v8555_v22, -inf  ;;  %v7993_v19 = vrot.slane %v20246_v5, %v18632_v13 }
0x2a43   : > { %8564 = vmax.xlane.f32.xlu0 %v8563_v42  ;;  %v8549_v11 = vpop.f32.mrf.mxu1  ;;  %v8329_v42 = vcombine.high %v20288_v39, %v20288_v39 }
0x2a44   : > { %v8556_v21 = vmul.f32 0.088388346, %v8549_v11  ;;  %v8001_v51 = vcombine.high %v7993_v19, %v7993_v19  ;;  %v8336_v11 = vrot.slane %v20288_v39, %v18632_v13 }
0x2a45   : > { %v17187_v20 = vpop.f32.mrf.mxu1 }
0x2a46   : > { %v8566_v46 = vsel %vm3051_vm9, %v8556_v21, -inf  ;;  %v8344_v20 = vcombine.high %v8336_v11, %v8336_v11 }
0x2a47   : > { %8567 = vmax.xlane.f32.xlu0 %v8566_v46  ;;  %v7977_v46 = vrot.slane %v20242_v48, %v18632_v13 }
0x2ab6   : > { %v8559_v43 = vpop.xlane.xlu0 %8558 }
0x2ab7   : > { %v8569_v59 = vsub.f32 %v8553_v36, %v8559_v43  ;;  %v8362_v43 = vcombine.high %v20294_v63, %v20294_v63 }
0x2ab9   : > { %v8573_v44 = vmul.f32 1.442695, %v8569_v59  ;;  %v8369_v59 = vrot.slane %v20294_v63, %v18632_v13 }
0x2aba   : > { %v8562_v26 = vpop.xlane.xlu1 %8561 }
0x2abb   : > { %18169 = vpow2.f32 %v8573_v44  ;;  %v8570_v60 = vsub.f32 %v8554_v40, %v8562_v26  ;;  %v7985_v44 = vcombine.high %v7977_v46, %v7977_v46  ;;  %v8376_v26 = vrot.slane %v8362_v43, %v18632_v13 }
0x2abd   : > { %v8575_v49 = vmul.f32 1.442695, %v8570_v60  ;;  %v8377_v60 = vcombine.high %v8369_v59, %v8369_v59 }
0x2abf   : > { %18171 = vpow2.f32 %v8575_v49  ;;  %v8378_v49 = vcombine.high %v8376_v26, %v8376_v26 }
0x2ac8   : > { %v20300_v34 = vpop.eup %18169 }
0x2ac9   : > { %v8581_v62 = vsel %vm3047_vm8, %v20300_v34, 0.0 }
0x2aca   : > { %8582 = vadd.xlane.f32.xlu0 %v8581_v62 }
0x2acc   : > { %v20304_v16 = vpop.eup %18171  ;;  %v8565_v35 = vpop.xlane.xlu0 %8564 }
0x2acd   : > { %v8571_v58 = vsub.f32 %v8555_v22, %v8565_v35  ;;  %v8584_v24 = vsel %vm3051_vm9, %v20304_v16, 0.0  ;;  %v7986_v22 = vcombine.high %v20246_v5, %v20246_v5 }
0x2ace   : > { %8585 = vadd.xlane.f32.xlu1 %v8584_v24 }
0x2acf   : > { %v8577_v29 = vmul.f32 1.442695, %v8571_v58 }
0x2ad0   : > { %v8568_v27 = vpop.xlane.xlu0 %8567 }
0x2ad1   : > { %18173 = vpow2.f32 %v8577_v29  ;;  %v8572_v36 = vsub.f32 %v8556_v21, %v8568_v27  ;;  %v8343_v21 = vrot.slane %v8329_v42, %v18632_v13 }
0x2ad3   : > { %v8579_v56 = vmul.f32 1.442695, %v8572_v36  ;;  %v8345_v39 = vcombine.high %v8343_v21, %v8343_v21 }
0x2ad5   : > { %18175 = vpow2.f32 %v8579_v56 }
0x2ade   : > { %v20308_v32 = vpop.eup %18173 }
0x2adf   : > { %v8587_v18 = vsel %vm3047_vm8, %v20308_v32, 0.0 }
0x2ae0   : > { %8588 = vadd.xlane.f32.xlu0 %v8587_v18 }
0x2ae2   : > { %v20312_v40 = vpop.eup %18175 }
0x2ae3   : > { %v8590_v37 = vsel %vm3051_vm9, %v20312_v40, 0.0 }
0x2ae4   : > { %8591 = vadd.xlane.f32.xlu1 %v8590_v37 }
0x2af5   : > { %8652 = vrot.lane.b32.xlu1 %v20173_v17, %s18393_s21  ;;  %v8000_v17 = vrot.slane %v7986_v22, %v18632_v13 }
0x2af6   : > { %8603 = vrot.lane.b32.xlu0 %v20142_v28, %s18393_s21  ;;  %v7969_v28 = vcombine.high %v7967_v14, %v7967_v14 }
0x2af7   : > { %v8002_v5 = vcombine.high %v8000_v17, %v8000_v17 }
0x2af9   : > { %8019 = vrot.lane.b32.xlu1 %v7960_v47, %s18393_s21 }
0x2afa   : > { %8023 = vrot.lane.b32.xlu0 %v7967_v14, %s18393_s21 }
0x2afd   : > { %8021 = vrot.lane.b32.xlu1 %v7968_v54, %s18393_s21 }
0x2afe   : > { %8033 = vrot.lane.b32.xlu0 %v7993_v19, %s18393_s21 }
0x2b01   : > { %8025 = vrot.lane.b32.xlu1 %v7969_v28, %s18393_s21 }
0x2b02   : > { %8037 = vrot.lane.b32.xlu0 %v8000_v17, %s18393_s21 }
0x2b05   : > { %8035 = vrot.lane.b32.xlu1 %v8001_v51, %s18393_s21 }
0x2b06   : > { %8395 = vrot.lane.b32.xlu0 %v8336_v11, %s18392_s18 }
0x2b09   : > { %8039 = vrot.lane.b32.xlu1 %v8002_v5, %s18393_s21 }
0x2b0a   : > { %8399 = vrot.lane.b32.xlu0 %v8343_v21, %s18392_s18 }
0x2b0d   : > { %8397 = vrot.lane.b32.xlu1 %v8344_v20, %s18392_s18  ;;  %v7970_v20 = vcombine.high %v20242_v48, %v20242_v48 }
0x2b0e   : > { %8027 = vrot.lane.b32.xlu0 %v7977_v46, %s18393_s21 }
0x2b11   : > { %8401 = vrot.lane.b32.xlu1 %v8345_v39, %s18392_s18  ;;  %v7984_v39 = vrot.slane %v7970_v20, %v18632_v13  ;;  %v17876_v20 = vld [vmem:[%s18602_s25 + $0x260] ss:$8 sps:$4 sm:$0xff]  }
0x2b12   : > { %8409 = vrot.lane.b32.xlu0 %v8369_v59, %s18392_s18 }
0x2b15   : > { %8029 = vrot.lane.b32.xlu1 %v7985_v44, %s18393_s21 }
0x2b16   : > { %8413 = vrot.lane.b32.xlu0 %v8376_v26, %s18392_s18  ;;  %v8010_v26 = vrot.slane %v20248_v50, %v18632_v13 }
0x2b19   : > { %8411 = vrot.lane.b32.xlu1 %v8377_v60, %s18392_s18 }
0x2b1d   : > { %8415 = vrot.lane.b32.xlu1 %v8378_v49, %s18392_s18  ;;  %v8346_v49 = vcombine.high %v20290_v55, %v20290_v55 }
0x2b53   : > { %v8583_v35 = vpop.xlane.xlu0 %8582 }
0x2b57   : > { %v8586_v62 = vpop.xlane.xlu1 %8585 }
0x2b58   : > { %18177 = vrcp.f32 %v8586_v62 }
0x2b59   : > { %18179 = vrcp.f32 %v8583_v35  ;;  %v8018_v35 = vcombine.high %v8010_v26, %v8010_v26 }
0x2b65   : > { %v18178_v63 = vpop.eup %18177 }
0x2b66   : > { %v18180_v24 = vpop.eup %18179  ;;  %v8598_v29 = vmul.f32 %v18178_v63, %v20304_v16  ;;  %v17865_v63 = vld [vmem:[%s18608_s24 + $0xf8] sm:$0xff]  }
0x2b67   : > { %v8597_v56 = vmul.f32 %v18180_v24, %v20300_v34  ;;  %v8386_v24 = vrot.slane %v20296_v2, %v18632_v13 }
0x2b69   : > { %v8589_v58 = vpop.xlane.xlu0 %8588  ;;  %v8601_v37 = vpack.c.bf16 %v8598_v29, %v8597_v56 }
0x2b6a   : > { %18181 = vrcp.f32 %v8589_v58  ;;  %v8360_v58 = vrot.slane %v8346_v49, %v18632_v13 }
0x2b6d   : > { %v8592_v27 = vpop.xlane.xlu1 %8591  ;;  %v8604_v36 = vpop.permute.xlu0 %8603 }
0x2b6e   : > { %18183 = vrcp.f32 %v8592_v27  ;;  %v8609_v18 = vsel %vm3098_vm7, %v8604_v36, 0  ;;  %v8003_v27 = vcombine.high %v20248_v50, %v20248_v50  ;;  %v8394_v36 = vcombine.high %v8386_v24, %v8386_v24  ;;  %v17868_v50 = vld [vmem:[%s18608_s24 + $0xe0] sm:$0xff]  }
0x2b6f   : > { %17189 = vmatpush3.bf16.msra.mxu0 %v8609_v18  ;;  %v17867_v18 = vld [vmem:[%s18608_s24 + $0xe8] sm:$0xff]  }
0x2b70   : > { %17200 = vmatprep.subr.bf16.mxu0 %v17865_v63 }
0x2b71   : > { %v8653_v23 = vpop.permute.xlu1 %8652 }
0x2b72   : > { %v8658_v47 = vsel %vm3098_vm7, %v8653_v23, 0  ;;  %17191 = vmatmul.mubr.msk.bf16.vlgmr.msra.gmra.mxu0 %vm3047_vm8, %v8601_v37  ;;  %v8017_v37 = vrot.slane %v8003_v27, %v18632_v13  ;;  %v7599_v27 = vcombine.high %v20192_v8, %v20192_v8 }
0x2b73   : > { %17195 = vmatpush3.bf16.msra.mxu1 %v8658_v47  ;;  %17201 = vmatpush3.bf16.msra.mxu0 %v17865_v63 }
0x2b77   : > { %v18182_v14 = vpop.eup %18181 }
0x2b78   : > { %v8599_v16 = vmul.f32 %v18182_v14, %v20308_v32 }
0x2b7b   : > { %v18184_v54 = vpop.eup %18183 }
0x2b7c   : > { %v8600_v22 = vmul.f32 %v18184_v54, %v20312_v40  ;;  %v8353_v40 = vrot.slane %v20290_v55, %v18632_v13  ;;  %v17866_v55 = vld [vmem:[%s18608_s24 + $0xf0] sm:$0xff]  }
0x2b7d   : > { %17202 = vmatprep.subr.bf16.mxu0 %v17866_v55 }
0x2b7e   : > { %v8602_v19 = vpack.c.bf16 %v8600_v22, %v8599_v16  ;;  %v8361_v46 = vcombine.high %v8353_v40, %v8353_v40  ;;  %17203 = vmatpush3.bf16.msra.mxu0 %v17866_v55  ;;  %v17869_v16 = vld [vmem:[%s18608_s24 + $0xd8] sm:$0xff]  }
0x2b7f   : > { %17204 = vmatprep.subr.bf16.mxu0 %v17867_v18 }
0x2b80   : > { %17197 = vmatmul.mubr.msk.bf16.vlgmr.msra.gmra.mxu1 %vm3047_vm8, %v8602_v19 }
0x2b81   : > { %9762 = vmatprep.mubr.bf16.mxu1 %v21925_v57 }
0x2b82   : > { %17205 = vmatpush3.bf16.msra.mxu0 %v17867_v18  ;;  %v7613_v18 = vrot.slane %v7599_v27, %v18632_v13 }
0x2b83   : > { %17206 = vmatprep.subr.bf16.mxu0 %v17868_v50 }
0x2b86   : > { %17207 = vmatpush3.bf16.msra.mxu0 %v17868_v50  ;;  %v7615_v50 = vcombine.high %v7613_v18, %v7613_v18 }
0x2b87   : > { %17208 = vmatprep.subr.bf16.mxu0 %v17869_v16 }
0x2b8a   : > { %17209 = vmatpush3.bf16.msra.mxu0 %v17869_v16  ;;  %v7623_v16 = vrot.slane %v20194_v9, %v18632_v13 }
0x2b8c   : > { %v7683_v27 = vadd.f32 %v7623_v16, %v20040_v12 }
0x2c32   : > { %v8645_v34 = vpop.f32.mrf.mxu0 }
0x2c33   : > { %v8705_v28 = vcombine.high %v8645_v34, %v8645_v34  ;;  %v8712_v17 = vrot.slane %v8645_v34, %v18632_v13  ;;  %v8379_v34 = vcombine.high %v20296_v2, %v20296_v2 }
0x2c34   : > { %v17192_v51 = vpop.f32.mrf.mxu0 }
0x2c35   : > { %v8719_v42 = vrot.slane %v8705_v28, %v18632_v13  ;;  %v8720_v11 = vcombine.high %v8712_v17, %v8712_v17  ;;  %8771 = vrot.lane.b32.xlu0 %v8712_v17, %s18391_s28  ;;  %v17870_v28 = vld [vmem:[%s18608_s24 + $0xd0] sm:$0xff]  }
0x2c36   : > { %v8648_v5 = vpop.f32.mrf.mxu0  ;;  %17210 = vmatprep.subr.bf16.mxu0 %v17870_v28 }
0x2c37   : > { %8773 = vrot.lane.b32.xlu1 %v8720_v11, %s18391_s28  ;;  %v8721_v21 = vcombine.high %v8719_v42, %v8719_v42  ;;  %v8729_v43 = vrot.slane %v8648_v5, %v18632_v13  ;;  %v8722_v29 = vcombine.high %v8648_v5, %v8648_v5  ;;  %17211 = vmatpush3.bf16.msra.mxu0 %v17870_v28  ;;  %v17871_v11 = vld [vmem:[%s18608_s24 + $0xc8] sm:$0xff]   ;;  %v17872_v5 = vld [vmem:[%s18608_s24 + $0xc0] sm:$0xff]  }
0x2c38   : > { %v17193_v32 = vpop.f32.mrf.mxu0  ;;  %17212 = vmatprep.subr.bf16.mxu0 %v17871_v11 }
0x2c39   : > { %8775 = vrot.lane.b32.xlu0 %v8719_v42, %s18391_s28  ;;  %v8737_v48 = vcombine.high %v8729_v43, %v8729_v43  ;;  %v8736_v56 = vrot.slane %v8722_v29, %v18632_v13  ;;  %v8393_v42 = vrot.slane %v8379_v34, %v18632_v13  ;;  %v17873_v32 = vld [vmem:[%s18602_s25 + $0x270] ss:$8 sps:$4 sm:$0xff]   ;;  %v7682_v34 = vadd.f32 %v7615_v50, %v20062_v31 }
0x2c3b   : > { %8777 = vrot.lane.b32.xlu1 %v8721_v21, %s18391_s28  ;;  %17213 = vmatpush3.bf16.msra.mxu0 %v17871_v11  ;;  %v17878_v21 = vld [vmem:[%s18602_s25 + $0x264] ss:$8 sps:$4 sm:$0xff]  }
0x2c3c   : > { %17214 = vmatprep.subr.bf16.mxu0 %v17872_v5 }
0x2c3d   : > { %8403 = vrot.lane.b32.xlu0 %v8353_v40, %s18392_s18  ;;  %v17875_v40 = vld [vmem:[%s18602_s25 + $0x274] ss:$8 sps:$4 sm:$0xff]  }
0x2c3e   : > { %9730 = vmatprep.subr.bf16.mxu1 %v17875_v40 }
0x2c3f   : > { %8405 = vrot.lane.b32.xlu1 %v8361_v46, %s18392_s18  ;;  %17215 = vmatpush3.bf16.msra.mxu0 %v17872_v5  ;;  %v8020_v46 = vpop.permute.xlu1 %8019 }
0x2c40   : > { %v8694_v59 = vpop.f32.mrf.mxu1  ;;  %17220 = vmatprep.subr.bf16.mxu0 %v21924_v25  ;;  %9731 = vmatpush1.bf16.msra.mxu1 %v17873_v32  ;;  %v7632_v32 = vcombine.high %v20198_v45, %v20198_v45 }
0x2c41   : > { %8031 = vrot.lane.b32.xlu0 %v7984_v39, %s18393_s21  ;;  %v8738_v23 = vcombine.high %v8694_v59, %v8694_v59  ;;  %v8745_v47 = vrot.slane %v8694_v59, %v18632_v13  ;;  %9732 = vmatprep.subr.bf16.mxu1 %v17878_v21 }
0x2c42   : > { %v17198_v44 = vpop.f32.mrf.mxu1 }
0x2c43   : > { %8779 = vrot.lane.b32.xlu1 %v8729_v43, %s18391_s28  ;;  %v8752_v14 = vrot.slane %v8738_v23, %v18632_v13  ;;  %v8753_v54 = vcombine.high %v8745_v47, %v8745_v47  ;;  %v8022_v39 = vpop.permute.xlu1 %8021  ;;  %v8024_v43 = vpop.permute.xlu0 %8023 }
0x2c44   : > { %v8697_v60 = vpop.f32.mrf.mxu1  ;;  %9733 = vmatpush1.bf16.msra.mxu1 %v17876_v20  ;;  %v7639_v20 = vrot.slane %v20198_v45, %v18632_v13  ;;  %v8063_v45 = vadd.f32 %v8024_v43, %v20043_v53 }
0x2c45   : > { %8781 = vrot.lane.b32.xlu0 %v8737_v48, %s18391_s28  ;;  %v8754_v22 = vcombine.high %v8752_v14, %v8752_v14  ;;  %v8762_v19 = vrot.slane %v8697_v60, %v18632_v13  ;;  %v8755_v17 = vcombine.high %v8697_v60, %v8697_v60 }
0x2c46   : > { %v17199_v62 = vpop.f32.mrf.mxu1 }
0x2c47   : > { %8041 = vrot.lane.b32.xlu1 %v8010_v26, %s18393_s21  ;;  %v8770_v51 = vcombine.high %v8762_v19, %v8762_v19  ;;  %v8769_v2 = vrot.slane %v8755_v17, %v18632_v13  ;;  %v8026_v59 = vpop.permute.xlu1 %8025  ;;  %v20432_v44 = vpop.permute.xlu0 %8033 }
0x2c49   : > { %8043 = vrot.lane.b32.xlu0 %v8018_v35, %s18393_s21 }
0x2c4b   : > { %8407 = vrot.lane.b32.xlu1 %v8360_v58, %s18392_s18  ;;  %v20434_v26 = vpop.permute.xlu1 %8035  ;;  %v20436_v48 = vpop.permute.xlu0 %8037 }
0x2c4d   : > { %8417 = vrot.lane.b32.xlu0 %v8386_v24, %s18392_s18 }
0x2c4f   : > { %8419 = vrot.lane.b32.xlu1 %v8394_v36, %s18392_s18  ;;  %v20438_v60 = vpop.permute.xlu1 %8039  ;;  %v8396_v49 = vpop.permute.xlu0 %8395 }
0x2c51   : > { %8783 = vrot.lane.b32.xlu0 %v8736_v56, %s18391_s28  ;;  %v7606_v56 = vrot.slane %v20192_v8, %v18632_v13 }
0x2c53   : > { %8045 = vrot.lane.b32.xlu1 %v8017_v37, %s18393_s21  ;;  %v8398_v62 = vpop.permute.xlu1 %8397  ;;  %v8400_v35 = vpop.permute.xlu0 %8399  ;;  %v7679_v17 = vadd.f32 %v7606_v56, %v20046_v33 }
0x2c55   : > { %8785 = vrot.lane.b32.xlu0 %v8745_v47, %s18391_s28  ;;  %v7614_v47 = vcombine.high %v7606_v56, %v7606_v56  ;;  %v8064_v56 = vadd.f32 %v8026_v59, %v20062_v31 }
0x2c57   : > { %8787 = vrot.lane.b32.xlu1 %v8753_v54, %s18391_s28  ;;  %v8402_v63 = vpop.permute.xlu1 %8401  ;;  %v20440_v58 = vpop.permute.xlu0 %8027 }
0x2c59   : > { %8789 = vrot.lane.b32.xlu0 %v8752_v14, %s18391_s28  ;;  %v7616_v14 = vcombine.high %v20194_v9, %v20194_v9 }
0x2c5b   : > { %8791 = vrot.lane.b32.xlu1 %v8754_v22, %s18391_s28  ;;  %v20442_v24 = vpop.permute.xlu1 %8029  ;;  %v20444_v29 = vpop.permute.xlu0 %8409  ;;  %v7630_v8 = vrot.slane %v7616_v14, %v18632_v13  ;;  %v7646_v14 = vrot.slane %v7632_v32, %v18632_v13  ;;  %v8926_v32 = vcombine.low %v8063_v45, %v8064_v56 }
0x2c5d   : > { %8793 = vrot.lane.b32.xlu0 %v8762_v19, %s18391_s28  ;;  %v7680_v19 = vadd.f32 %v7614_v47, %v20066_v7  ;;  %v20469_v9 = vadd.f32 %v7630_v8, %v20071_v1  ;;  %v7648_v43 = vcombine.high %v7646_v14, %v7646_v14 }
0x2c5f   : > { %8795 = vrot.lane.b32.xlu1 %v8770_v51, %s18391_s28  ;;  %v20446_v55 = vpop.permute.xlu1 %8411  ;;  %v20450_v36 = vpop.permute.xlu0 %8413  ;;  %v7681_v51 = vadd.f32 %v7613_v18, %v20043_v53 }
0x2c61   : > { %8421 = vrot.lane.b32.xlu0 %v8393_v42, %s18392_s18  ;;  %v7631_v42 = vcombine.high %v7623_v16, %v7623_v16  ;;  %v8842_v5 = vcombine.low %v7681_v51, %v7682_v34  ;;  %v8062_v16 = vadd.f32 %v8022_v39, %v20066_v7  ;;  %v7647_v51 = vcombine.high %v7639_v20, %v7639_v20 }
0x2c62   : > { %v7649_v39 = vcombine.high %v20200_v61, %v20200_v61 }
0x2c63   : > { %8797 = vrot.lane.b32.xlu1 %v8769_v2, %s18391_s28  ;;  %v20455_v37 = vpop.permute.xlu1 %8415  ;;  %v8841_v2 = vcombine.low %v7679_v17, %v7680_v19  ;;  %v7684_v21 = vadd.f32 %v7631_v42, %v20054_v4  ;;  %v20480_v50 = vrot.slane %v8842_v5, %v18632_v13  ;;  %v8440_v19 = vadd.f32 %v8402_v63, %v20062_v31 }
0x2c64   : > { %v8439_v42 = vadd.f32 %v8400_v35, %v20043_v53  ;;  %v8061_v5 = vadd.f32 %v8020_v46, %v20046_v33  ;;  %v20499_v35 = vrot.slane %v20200_v61, %v18632_v13  ;;  %v20514_v61 = vadd.f32 %v7646_v14, %v20083_v38 }
0x2c65   : > { %v20477_v47 = vrot.slane %v8841_v2, %v18632_v13  ;;  %v8858_v17 = vcombine.low %v7683_v27, %v7684_v21  ;;  %v8438_v2 = vadd.f32 %v8398_v62, %v20066_v7 }
0x2c66   : > { %v8925_v62 = vcombine.low %v8061_v5, %v8062_v16 }
0x2c68   : > { %v8933_v14 = vrot.slane %v8925_v62, %v18632_v13 }
0x2ca7   : > { %v8772_v23 = vpop.permute.xlu0 %8771 }
0x2ca8   : > { %v8813_v46 = vadd.f32 %v8772_v23, %v20046_v33 }
0x2ca9   : > { %v8774_v54 = vpop.permute.xlu1 %8773 }
0x2caa   : > { %v8814_v63 = vadd.f32 %v8774_v54, %v20066_v7  ;;  %v8865_v7 = vrot.slane %v8858_v17, %v18632_v13  ;;  %v20508_v54 = vadd.f32 %v7639_v20, %v20095_v15  ;;  %v8066_v20 = vadd.f32 %v20442_v24, %v20054_v4 }
0x2cab   : > { %v8776_v22 = vpop.permute.xlu0 %8775  ;;  %v8065_v17 = vadd.f32 %v20440_v58, %v20040_v12 }
0x2cac   : > { %v8815_v34 = vadd.f32 %v8776_v22, %v20043_v53  ;;  %v8857_v53 = vcombine.low %v20477_v47, %v20480_v50  ;;  %v20511_v22 = vadd.f32 %v7647_v51, %v20050_v41  ;;  %v9093_v23 = vcombine.low %v8813_v46, %v8814_v63 }
0x2cad   : > { %v8778_v28 = vpop.permute.xlu1 %8777  ;;  %v7663_v47 = vrot.slane %v7649_v39, %v18632_v13  ;;  %v8942_v58 = vcombine.low %v8065_v17, %v8066_v20  ;;  %v8446_v20 = vadd.f32 %v20450_v36, %v20083_v38 }
0x2cae   : > { %v8816_v59 = vadd.f32 %v8778_v28, %v20062_v31  ;;  %v8437_v31 = vadd.f32 %v8396_v49, %v20046_v33  ;;  %v9010_v28 = vcombine.low %v8439_v42, %v8440_v19  ;;  %v8940_v33 = vrot.slane %v8926_v32, %v18632_v13 }
0x2caf   : > { %v8404_v11 = vpop.permute.xlu0 %8403  ;;  %v7689_v19 = vadd.f32 %v7648_v43, %v20058_v30  ;;  %v9101_v5 = vrot.slane %v9093_v23, %v18632_v13  ;;  %v20549_v46 = vadd.f32 %v7663_v47, %v20120_v52  ;;  %v8447_v23 = vadd.f32 %v20455_v37, %v20058_v30 }
0x2cb0   : > { %v9094_v21 = vcombine.low %v8815_v34, %v8816_v59  ;;  %v9009_v49 = vcombine.low %v8437_v31, %v8438_v2  ;;  %v9024_v50 = vrot.slane %v9010_v28, %v18632_v13  ;;  %v7664_v34 = vcombine.high %v20499_v35, %v20499_v35 }
0x2cb1   : > { %v8406_v40 = vpop.permute.xlu1 %8405  ;;  %v8941_v24 = vcombine.low %v8933_v14, %v8940_v33  ;;  %v8441_v32 = vadd.f32 %v8404_v11, %v20040_v12  ;;  %v8949_v33 = vrot.slane %v8942_v58, %v18632_v13 }
0x2cb2   : > { %v9108_v45 = vrot.slane %v9094_v21, %v18632_v13  ;;  %v8442_v16 = vadd.f32 %v8406_v40, %v20054_v4  ;;  %v9017_v51 = vrot.slane %v9009_v49, %v18632_v13  ;;  %v8874_v40 = vcombine.low %v20508_v54, %v20511_v22 }
0x2cb3   : > { %v8032_v18 = vpop.permute.xlu0 %8031  ;;  %v20546_v11 = vadd.f32 %v7664_v34, %v20101_v0 }
0x2cb4   : > { %v8067_v42 = vadd.f32 %v8032_v18, %v20071_v1  ;;  %v9025_v39 = vcombine.low %v9017_v51, %v9024_v50  ;;  %v8875_v18 = vcombine.low %v20514_v61, %v7689_v19  ;;  %v9026_v28 = vcombine.low %v8441_v32, %v8442_v16 }
0x2cb5   : > { %v8780_v8 = vpop.permute.xlu1 %8779  ;;  %v7690_v51 = vadd.f32 %v20499_v35, %v20087_v10 }
0x2cb6   : > { %v8817_v31 = vadd.f32 %v8780_v8, %v20040_v12  ;;  %v8956_v21 = vrot.slane %v8067_v42, %v18632_v13  ;;  %v8070_v12 = vadd.f32 %v20436_v48, %v20083_v38  ;;  %v9163_v8 = vsel %vm1237_vm1, %v8857_v53, %v8941_v24 }
0x2cb7   : > { %v8782_v6 = vpop.permute.xlu0 %8781  ;;  %v9167_v61 = vsel %vm2138_vm5, %v9163_v8, %v9025_v39  ;;  %v8068_v48 = vadd.f32 %v20432_v44, %v20095_v15  ;;  %v8445_v44 = vadd.f32 %v20446_v55, %v20050_v41  ;;  %v9043_v42 = vcombine.low %v8446_v20, %v8447_v23 }
0x2cb8   : > { %v8818_v2 = vadd.f32 %v8782_v6, %v20054_v4  ;;  %v8071_v6 = vadd.f32 %v20438_v60, %v20058_v30  ;;  %v9109_v4 = vcombine.low %v9101_v5, %v9108_v45  ;;  %v8069_v60 = vadd.f32 %v20434_v26, %v20050_v41 }
0x2cb9   : > { %v20502_v27 = vpop.permute.xlu1 %8041  ;;  %v9033_v26 = vrot.slane %v9026_v28, %v18632_v13  ;;  %v8957_v34 = vcombine.low %v8949_v33, %v8956_v21  ;;  %v8882_v24 = vrot.slane %v8874_v40, %v18632_v13  ;;  %v8889_v5 = vrot.slane %v8875_v18, %v18632_v13 }
0x2cba   : > { %v9110_v54 = vcombine.low %v8817_v31, %v8818_v2  ;;  %v8959_v47 = vcombine.low %v8070_v12, %v8071_v6  ;;  %v9171_v53 = vsel %vm2141_vm6, %v9167_v61, %v9109_v4  ;;  %v8958_v16 = vcombine.low %v8068_v48, %v8069_v60 }
0x2cbb   : > { %v20517_v56 = vpop.permute.xlu0 %8043  ;;  %v9179_v36 = vcombine.high %v9171_v53, %v9171_v53  ;;  %v8891_v55 = vcombine.low %v7690_v51, %v20546_v11 }
0x2cbc   : > { %v9117_v14 = vrot.slane %v9110_v54, %v18632_v13  ;;  %v8966_v58 = vrot.slane %v8958_v16, %v18632_v13  ;;  %v8073_v31 = vadd.f32 %v20517_v56, %v20101_v0 }
0x2cbd   : > { %v8408_v59 = vpop.permute.xlu1 %8407  ;;  %v20596_v11 = vrot.slane %v9179_v36, %v18632_v13  ;;  %v8898_v23 = vrot.slane %v8891_v55, %v18632_v13 }
0x2cbe   : > { %v8443_v63 = vadd.f32 %v8408_v59, %v20071_v1 }
0x2cbf   : > { %v20537_v43 = vpop.permute.xlu0 %8417  ;;  %v20616_v48 = vcombine.high %v20596_v11, %v20596_v11 }
0x2cc0   : > { %v9040_v49 = vrot.slane %v8443_v63, %v18632_v13  ;;  %v8973_v63 = vrot.slane %v8959_v47, %v18632_v13  ;;  %v8448_v61 = vadd.f32 %v20537_v43, %v20087_v10 }
0x2cc1   : > { %v8420_v62 = vpop.permute.xlu1 %8419  ;;  %v9260_v51 = vcombine.low %v20596_v11, %v20616_v48 }
0x2cc2   : > { %v9041_v59 = vcombine.low %v9033_v26, %v9040_v49  ;;  %v8449_v56 = vadd.f32 %v8420_v62, %v20101_v0  ;;  %v8974_v12 = vcombine.low %v8966_v58, %v8973_v63  ;;  %v8890_v62 = vcombine.low %v8882_v24, %v8889_v5 }
0x2cc3   : > { %v8784_v22 = vpop.permute.xlu0 %8783 }
0x2cc4   : > { %v8819_v19 = vadd.f32 %v8784_v22, %v20071_v1  ;;  %v21926_v1 = vrot.slane %v20469_v9, %v18632_v13  ;;  %v8905_v9 = vrot.slane %v20549_v46, %v18632_v13  ;;  %v8072_v46 = vadd.f32 %v20502_v27, %v20087_v10 }
0x2cc5   : > { %v8046_v50 = vpop.permute.xlu1 %8045 }
0x2cc6   : > { %v9124_v45 = vrot.slane %v8819_v19, %v18632_v13  ;;  %v8873_v37 = vcombine.low %v8865_v7, %v21926_v1  ;;  %v8444_v7 = vadd.f32 %v20444_v29, %v20095_v15  ;;  %v9057_v29 = vrot.slane %v9043_v42, %v18632_v13 }
0x2cc7   : > { %v8786_v17 = vpop.permute.xlu0 %8785  ;;  %v8074_v21 = vadd.f32 %v8046_v50, %v20120_v52  ;;  %v8975_v22 = vcombine.low %v8072_v46, %v8073_v31  ;;  %v9274_v31 = vrot.slane %v9260_v51, %v18632_v13  ;;  %v17896_v51 = vld [vmem:[%s18602_s25 + $0x204] ss:$8 sps:$4 sm:$0xff]  }
0x2cc8   : > { %v9125_v2 = vcombine.low %v9117_v14, %v9124_v45  ;;  %v9164_v35 = vsel %vm1237_vm1, %v8873_v37, %v8957_v34  ;;  %v9042_v40 = vcombine.low %v8444_v7, %v8445_v44  ;;  %v8820_v28 = vadd.f32 %v8786_v17, %v20095_v15 }
0x2cc9   : > { %v8788_v32 = vpop.permute.xlu1 %8787  ;;  %v9168_v18 = vsel %vm2138_vm5, %v9164_v35, %v9041_v59  ;;  %v8989_v47 = vrot.slane %v8074_v21, %v18632_v13  ;;  %v9165_v14 = vsel %vm1237_vm1, %v8890_v62, %v8974_v12  ;;  %v8982_v45 = vrot.slane %v8975_v22, %v18632_v13 }
0x2cca   : > { %v8821_v39 = vadd.f32 %v8788_v32, %v20050_v41  ;;  %v9172_v4 = vsel %vm2141_vm6, %v9168_v18, %v9125_v2  ;;  %v20599_v41 = vrot.slane %v9171_v53, %v18632_v13  ;;  %v9050_v49 = vrot.slane %v9042_v40, %v18632_v13 }
0x2ccb   : > { %v8790_v6 = vpop.permute.xlu0 %8789  ;;  %v20611_v33 = vrot.slane %v9172_v4, %v18632_v13  ;;  %v9196_v1 = vcombine.high %v9172_v4, %v9172_v4  ;;  %v8990_v42 = vcombine.low %v8982_v45, %v8989_v47  ;;  %v17887_v45 = vld [vmem:[%s18602_s25 + $0x234] ss:$8 sps:$4 sm:$0xff]  }
0x2ccc   : > { %v9126_v8 = vcombine.low %v8820_v28, %v8821_v39  ;;  %v8822_v60 = vadd.f32 %v8790_v6, %v20083_v38  ;;  %v9058_v38 = vcombine.low %v9050_v49, %v9057_v29  ;;  %v20621_v43 = vcombine.high %v20599_v41, %v20599_v41 }
0x2ccd   : > { %v8792_v54 = vpop.permute.xlu1 %8791  ;;  %v20631_v16 = vcombine.high %v20611_v33, %v20611_v33 }
0x2cce   : > { %v8823_v15 = vadd.f32 %v8792_v54, %v20058_v30  ;;  %v9059_v30 = vcombine.low %v8448_v61, %v8449_v56  ;;  %v9134_v26 = vrot.slane %v9126_v8, %v18632_v13  ;;  %v9259_v2 = vcombine.low %v20599_v41, %v20621_v43 }
0x2ccf   : > { %v8794_v27 = vpop.permute.xlu0 %8793  ;;  %v9276_v35 = vcombine.low %v20611_v33, %v20631_v16 }
0x2cd0   : > { %v9127_v19 = vcombine.low %v8822_v60, %v8823_v15  ;;  %v8824_v20 = vadd.f32 %v8794_v27, %v20087_v10  ;;  %v8906_v10 = vcombine.low %v8898_v23, %v8905_v9  ;;  %v9066_v24 = vrot.slane %v9059_v30, %v18632_v13 }
0x2cd1   : > { %v8796_v53 = vpop.permute.xlu1 %8795  ;;  %v20647_v9 = vrot.slane %v9196_v1, %v18632_v13  ;;  %v9267_v46 = vrot.slane %v9259_v2, %v18632_v13  ;;  %v9284_v56 = vrot.slane %v9276_v35, %v18632_v13  ;;  %v17885_v1 = vld [vmem:[%s18602_s25 + $0x230] ss:$8 sps:$4 sm:$0xff]  }
0x2cd2   : > { %v9141_v50 = vrot.slane %v9127_v19, %v18632_v13  ;;  %v8825_v34 = vadd.f32 %v8796_v53, %v20101_v0  ;;  %v9169_v0 = vsel %vm2138_vm5, %v9165_v14, %v9058_v38  ;;  %v9166_v18 = vsel %vm1237_vm1, %v8906_v10, %v8990_v42  ;;  %v17882_v14 = vld [vmem:[%s18602_s25 + $0x240] ss:$8 sps:$4 sm:$0xff]  }
0x2cd3   : > { %v8422_v37 = vpop.permute.xlu0 %8421  ;;  %v9275_v8 = vcombine.low %v9267_v46, %v9274_v31  ;;  %v17894_v10 = vld [vmem:[%s18602_s25 + $0x200] ss:$8 sps:$4 sm:$0xff]  }
0x2cd4   : > { %v9142_v44 = vcombine.low %v9134_v26, %v9141_v50  ;;  %v9143_v59 = vcombine.low %v8824_v20, %v8825_v34  ;;  %v8450_v17 = vadd.f32 %v8422_v37, %v20120_v52  ;;  %v17881_v50 = vld [vmem:[%s18602_s25 + $0x254] ss:$8 sps:$4 sm:$0xff]   ;;  %v17879_v20 = vld [vmem:[%s18602_s25 + $0x250] ss:$8 sps:$4 sm:$0xff]   ;;  %v17884_v34 = vld [vmem:[%s18602_s25 + $0x244] ss:$8 sps:$4 sm:$0xff]  }
0x2cd5   : > { %v8798_v36 = vpop.permute.xlu1 %8797  ;;  %9734 = vmatprep.subr.bf16.mxu1 %v17881_v50  ;;  %v17890_v37 = vld [vmem:[%s18602_s25 + $0x224] ss:$8 sps:$4 sm:$0xff]  }
0x2cd6   : > { %v9173_v5 = vsel %vm2141_vm6, %v9169_v0, %v9142_v44  ;;  %v9073_v7 = vrot.slane %v8450_v17, %v18632_v13  ;;  %v8826_v32 = vadd.f32 %v8798_v36, %v20120_v52  ;;  %v9150_v39 = vrot.slane %v9143_v59, %v18632_v13  ;;  %9735 = vmatpush1.bf16.msra.mxu1 %v17879_v20  ;;  %v17888_v44 = vld [vmem:[%s18602_s25 + $0x220] ss:$8 sps:$4 sm:$0xff]   ;;  %v17893_v59 = vld [vmem:[%s18602_s25 + $0x214] ss:$8 sps:$4 sm:$0xff]   ;;  %v17891_v17 = vld [vmem:[%s18602_s25 + $0x210] ss:$8 sps:$4 sm:$0xff]  }
0x2cd7   : > { %v9212_v55 = vcombine.high %v9173_v5, %v9173_v5  ;;  %v20644_v63 = vrot.slane %v9173_v5, %v18632_v13  ;;  %9736 = vmatprep.subr.bf16.mxu1 %v17884_v34  ;;  %v16060_v0 = vld [vmem:[%s19002_s23 + $0x3] ss:$0 sm:$0xff] }
0x2cd8   : > { %v9074_v58 = vcombine.low %v9066_v24, %v9073_v7  ;;  %v9157_v40 = vrot.slane %v8826_v32, %v18632_v13 }
0x2cd9   : > { %v20656_v52 = vrot.slane %v9212_v55, %v18632_v13  ;;  %v20660_v6 = vcombine.high %v20644_v63, %v20644_v63  ;;  %v9277_v29 = vcombine.low %v20647_v9, %v20644_v63 }
0x2cda   : > { %v9170_v4 = vsel %vm2138_vm5, %v9166_v18, %v9074_v58  ;;  %v9158_v28 = vcombine.low %v9150_v39, %v9157_v40  ;;  %9737 = vmatpush1.bf16.msra.mxu1 %v17882_v14 }
0x2cdb   : > { %v9291_v21 = vrot.slane %v9277_v29, %v18632_v13  ;;  %v20670_v54 = vcombine.high %v20656_v52, %v20656_v52  ;;  %v9293_v22 = vcombine.low %v20660_v6, %v20656_v52  ;;  %9738 = vmatprep.subr.bf16.mxu1 %v17887_v45 }
0x2cdc   : > { %v9174_v12 = vsel %vm2141_vm6, %v9170_v4, %v9158_v28 }
0x2cdd   : > { %v9229_v60 = vcombine.high %v9174_v12, %v9174_v12  ;;  %v20674_v15 = vrot.slane %v9174_v12, %v18632_v13  ;;  %v9292_v49 = vcombine.low %v9284_v56, %v9291_v21  ;;  %v9301_v38 = vrot.slane %v9293_v22, %v18632_v13 }
0x2cde   : > { %9739 = vmatpush1.bf16.msra.mxu1 %v17885_v1 }
0x2cdf   : > { %v20679_v61 = vrot.slane %v9229_v60, %v18632_v13  ;;  %v20683_v27 = vcombine.high %v20674_v15, %v20674_v15  ;;  %v9294_v62 = vcombine.low %v20670_v54, %v20674_v15  ;;  %v9322_v23 = vpack.c.bf16 %v9292_v49, %v9275_v8  ;;  %9740 = vmatprep.subr.bf16.mxu1 %v17890_v37 }
0x2ce1   : > { %v9310_v19 = vcombine.low %v20683_v27, %v20679_v61  ;;  %17216 = vmatprep.mubr.bf16.mxu0 %v9322_v23  ;;  %v9308_v30 = vrot.slane %v9294_v62, %v18632_v13 }
0x2ce2   : > { %9741 = vmatpush1.bf16.msra.mxu1 %v17888_v44 }
0x2ce3   : > { %v9309_v47 = vcombine.low %v9301_v38, %v9308_v30  ;;  %v9317_v53 = vrot.slane %v9310_v19, %v18632_v13  ;;  %9742 = vmatprep.subr.bf16.mxu1 %v17893_v59 }
0x2ce5   : > { %v9323_v26 = vpack.c.bf16 %v9317_v53, %v9309_v47 }
0x2ce6   : > { %9743 = vmatpush1.bf16.msra.mxu1 %v17891_v17 }
0x2ce7   : > { %17217 = vmatmul.mubr.bf16.vlgmr.msra.gmra.mxu0 %v9323_v26  ;;  %9744 = vmatprep.subr.bf16.mxu1 %v17896_v51 }
0x2ce8   : > { %17222 = vmatprep.mubr.msk.bf16.mxu0 %vm18390_vm0, %v21924_v25 }
0x2cea   : > { %9745 = vmatpush1.bf16.msra.mxu1 %v17894_v10 }
0x2ceb   : > { %17232 = vmatprep.subr.bf16.mxu1 %v21924_v25 }
0x2da7   : > { %v17218_v42 = vpop.f32.mrf.mxu0 }
0x2da8   : > { %v9440_v36 = vadd.f32 %v17218_v42, %v16060_v0 }
0x2da9   : > { %v9431_v2 = vpop.f32.mrf.mxu0 }
0x2daa   : > { %v9448_v24 = vmax.f32 %v9440_v36, 0.0  ;;  %v9432_v5 = vadd.f32 %v16060_v0, %v9431_v2 }
0x2dab   : > { %v17219_v7 = vpop.f32.mrf.mxu0 }
0x2dac   : > { %v9488_v32 = vcombine.high %v9448_v24, %v9448_v24  ;;  %v9446_v55 = vmax.f32 %v9432_v5, 0.0  ;;  %v9443_v35 = vadd.f32 %v17219_v7, %v16060_v0  ;;  %v9495_v21 = vrot.slane %v9448_v24, %v18632_v13  ;;  %v16085_v24 = vld [vmem:[%s18688_s29 + $0x8] sm:$0x3] }
0x2dad   : > { %v9434_v39 = vpop.f32.mrf.mxu0  ;;  %v21927_v5 = vld [vmem:[#allocation13_spill] sm:$0xff] }
0x2dae   : > { %v9454_v58 = vcombine.high %v9446_v55, %v9446_v55  ;;  %v9461_v40 = vrot.slane %v9446_v55, %v18632_v13  ;;  %v9435_v31 = vadd.f32 %v16060_v0, %v9434_v39  ;;  %v9502_v18 = vrot.slane %v9488_v32, %v18632_v13 }
0x2daf   : > { %v9449_v28 = vmax.f32 %v9443_v35, 0.0  ;;  %v9503_v30 = vcombine.high %v9495_v21, %v9495_v21  ;;  %v20742_v7 = vrot.slane %v16085_v24, %v21927_v5 }
0x2db0   : > { %v9468_v29 = vrot.slane %v9454_v58, %v18632_v13  ;;  %v9469_v4 = vcombine.high %v9461_v40, %v9461_v40  ;;  %v9447_v46 = vmax.f32 %v9435_v31, 0.0  ;;  %v9504_v8 = vcombine.high %v9502_v18, %v9502_v18 }
0x2db1   : > { %v9511_v23 = vrot.slane %v9449_v28, %v18632_v13  ;;  %v9527_v47 = vadd.f32 %v9461_v40, %v20599_v41  ;;  %v9537_v45 = vadd.f32 %v9502_v18, %v20670_v54  ;;  %v9536_v37 = vadd.f32 %v9503_v30, %v20656_v52 }
0x2db2   : > { %v9470_v56 = vcombine.high %v9468_v29, %v9468_v29  ;;  %v9471_v12 = vcombine.high %v9447_v46, %v9447_v46  ;;  %v9478_v49 = vrot.slane %v9447_v46, %v18632_v13  ;;  %v9528_v22 = vadd.f32 %v9469_v4, %v20621_v43 }
0x2db3   : > { %v9529_v62 = vadd.f32 %v9468_v29, %v20596_v11  ;;  %v9538_v50 = vadd.f32 %v9504_v8, %v20674_v15  ;;  %v9512_v43 = vcombine.high %v9511_v23, %v9511_v23  ;;  %v9535_v15 = vadd.f32 %v9495_v21, %v20660_v6 }
0x2db4   : > { %v9530_v60 = vadd.f32 %v9470_v56, %v20616_v48  ;;  %v9485_v19 = vrot.slane %v9471_v12, %v18632_v13  ;;  %v9486_v38 = vcombine.high %v9478_v49, %v9478_v49  ;;  %v9531_v48 = vadd.f32 %v9478_v49, %v20611_v33 }
0x2db5   : > { %v9555_v34 = vcombine.low %v9527_v47, %v9528_v22  ;;  %v9590_v59 = vcombine.low %v9537_v45, %v9538_v50  ;;  %v9539_v51 = vadd.f32 %v9511_v23, %v20683_v27  ;;  %v9643_v27 = vrot.slane %v16085_v24, %v18691_v3 }
0x2db6   : > { %v9556_v53 = vcombine.low %v9529_v62, %v9530_v60  ;;  %v9487_v26 = vcombine.high %v9485_v19, %v9485_v19  ;;  %v9532_v20 = vadd.f32 %v9486_v38, %v20631_v16  ;;  %v9533_v11 = vadd.f32 %v9485_v19, %v20647_v9 }
0x2db7   : > { %v9563_v33 = vrot.slane %v9555_v34, %v18632_v13  ;;  %v9540_v16 = vadd.f32 %v9512_v43, %v20679_v61  ;;  %v9604_v10 = vrot.slane %v9590_v59, %v18632_v13 }
0x2db8   : > { %v9534_v14 = vadd.f32 %v9487_v26, %v20644_v63  ;;  %v9572_v1 = vcombine.low %v9531_v48, %v9532_v20  ;;  %v9570_v41 = vrot.slane %v9556_v53, %v18632_v13  ;;  %v9589_v63 = vcombine.low %v9535_v15, %v9536_v37 }
0x2db9   : > { %v9606_v0 = vcombine.low %v9539_v51, %v9540_v16 }
0x2dba   : > { %v9573_v44 = vcombine.low %v9533_v11, %v9534_v14  ;;  %v9580_v17 = vrot.slane %v9572_v1, %v18632_v13  ;;  %v9571_v54 = vcombine.low %v9563_v33, %v9570_v41  ;;  %v9597_v6 = vrot.slane %v9589_v63, %v18632_v13 }
0x2dbb   : > { %v9613_v61 = vrot.slane %v9606_v0, %v18632_v13 }
0x2dbc   : > { %v9587_v9 = vrot.slane %v9573_v44, %v18632_v13  ;;  %v9605_v36 = vcombine.low %v9597_v6, %v9604_v10 }
0x2dbe   : > { %v9588_v52 = vcombine.low %v9580_v17, %v9587_v9  ;;  %v9619_v2 = vpack.c.bf16 %v9613_v61, %v9605_v36 }
0x2dc0   : > { %v9618_v42 = vpack.c.bf16 %v9588_v52, %v9571_v54 }
0x2dc2   : > { %9763 = vmatmul.mubr.bf16.vlgmr.msra.gmra.mxu1 %v9618_v42 }
0x2dc3   : > { %9772 = vmatprep.mubr.bf16.mxu1 %v21925_v57 }
0x2dca   : > { %9773 = vmatmul.mubr.bf16.gmra.mxu1 %v9619_v2 }
0x2dcb   : > { %17234 = vmatprep.mubr.msk.bf16.mxu1 %vm18390_vm0, %v21924_v25 }
0x2e82   : > { %v9764_v32 = vpop.f32.mrf.mxu1 }
0x2e83   : > { %v9765_v55 = vadd.f32 %v9764_v32, %v9643_v27 }
0x2e84   : > { %v9766_v35 = vpop.f32.mrf.mxu1 }
0x2e85   : > { %v9787_v39 = vcombine.high %v9765_v55, %v9765_v55  ;;  %v9794_v58 = vrot.slane %v9765_v55, %v18632_v13  ;;  %v9767_v40 = vadd.f32 %v9766_v35, %v20742_v7 }
0x2e86   : > { %v9768_v31 = vpop.f32.mrf.mxu1 }
0x2e87   : > { %v9801_v18 = vrot.slane %v9787_v39, %v18632_v13  ;;  %v9802_v29 = vcombine.high %v9794_v58, %v9794_v58  ;;  %v9850_v4 = vcombine.high %v9767_v40, %v9767_v40  ;;  %v9857_v28 = vrot.slane %v9767_v40, %v18632_v13 }
0x2e88   : > { %v9769_v46 = vadd.f32 %v9768_v31, %v9643_v27  ;;  %v9770_v56 = vpop.f32.mrf.mxu1 }
0x2e89   : > { %v9803_v21 = vcombine.high %v9801_v18, %v9801_v18  ;;  %v9864_v12 = vrot.slane %v9850_v4, %v18632_v13  ;;  %v9865_v8 = vcombine.high %v9857_v28, %v9857_v28  ;;  %v9771_v22 = vadd.f32 %v9770_v56, %v20742_v7 }
0x2e8a   : > { %v9804_v60 = vcombine.high %v9769_v46, %v9769_v46  ;;  %v9811_v49 = vrot.slane %v9769_v46, %v18632_v13  ;;  %v9774_v62 = vpop.f32.mrf.mxu1  ;;  %v9910_v23 = vcombine.low %v9794_v58, %v9802_v29 }
0x2e8b   : > { %v9911_v19 = vcombine.low %v9801_v18, %v9803_v21  ;;  %v9866_v38 = vcombine.high %v9864_v12, %v9864_v12  ;;  %v9982_v30 = vcombine.low %v9857_v28, %v9865_v8  ;;  %v9867_v26 = vcombine.high %v9771_v22, %v9771_v22  ;;  %v20776_v28 = vld [vmem:[%s18728_s15 + $0x10] sm:$0x3f] }
0x2e8c   : > { %v9818_v47 = vrot.slane %v9804_v60, %v18632_v13  ;;  %v9819_v53 = vcombine.high %v9811_v49, %v9811_v49  ;;  %v9874_v50 = vrot.slane %v9771_v22, %v18632_v13  ;;  %v9776_v48 = vpop.f32.mrf.mxu1  ;;  %v9775_v43 = vadd.f32 %v9774_v62, %v9643_v27 }
0x2e8d   : > { %v9925_v20 = vrot.slane %v9911_v19, %v18632_v13  ;;  %v9983_v34 = vcombine.low %v9864_v12, %v9866_v38  ;;  %v9881_v14 = vrot.slane %v9867_v26, %v18632_v13  ;;  %v9918_v1 = vrot.slane %v9910_v23, %v18632_v13 }
0x2e8e   : > { %v9927_v11 = vcombine.low %v9811_v49, %v9819_v53  ;;  %v9882_v45 = vcombine.high %v9874_v50, %v9874_v50  ;;  %v9990_v37 = vrot.slane %v9982_v30, %v18632_v13  ;;  %v9941_v41 = vrot.slane %v9818_v47, %v18632_v13  ;;  %v9778_v15 = vpop.f32.mrf.mxu1 }
0x2e8f   : > { %v9821_v44 = vcombine.high %v9775_v43, %v9775_v43  ;;  %v9997_v59 = vrot.slane %v9983_v34, %v18632_v13  ;;  %v9828_v17 = vrot.slane %v9775_v43, %v18632_v13  ;;  %v9926_v9 = vcombine.low %v9918_v1, %v9925_v20 }
0x2e90   : > { %v9934_v33 = vrot.slane %v9927_v11, %v18632_v13  ;;  %v9999_v16 = vcombine.low %v9874_v50, %v9882_v45  ;;  %v9820_v63 = vcombine.high %v9818_v47, %v9818_v47  ;;  %v9777_v51 = vadd.f32 %v9776_v48, %v20742_v7  ;;  %v9780_v24 = vpop.f32.mrf.mxu1 }
0x2e91   : > { %v9835_v54 = vrot.slane %v9821_v44, %v18632_v13  ;;  %v10013_v0 = vrot.slane %v9881_v14, %v18632_v13  ;;  %v9836_v42 = vcombine.high %v9828_v17, %v9828_v17  ;;  %v9779_v36 = vadd.f32 %v9778_v15, %v9643_v27 }
0x2e92   : > { %v9942_v52 = vcombine.low %v9934_v33, %v9941_v41  ;;  %v10006_v10 = vrot.slane %v9999_v16, %v18632_v13  ;;  %v9884_v6 = vcombine.high %v9777_v51, %v9777_v51  ;;  %v9891_v61 = vrot.slane %v9777_v51, %v18632_v13 }
0x2e93   : > { %v9837_v2 = vcombine.high %v9835_v54, %v9835_v54  ;;  %v9998_v32 = vcombine.low %v9990_v37, %v9997_v59  ;;  %v9944_v39 = vcombine.low %v9836_v42, %v9835_v54  ;;  %v9943_v58 = vcombine.low %v9820_v63, %v9828_v17 }
0x2e94   : > { %v20766_v55 = vpack.c.bf16 %v9942_v52, %v9926_v9  ;;  %v10014_v35 = vcombine.low %v10006_v10, %v10013_v0  ;;  %v9898_v40 = vrot.slane %v9884_v6, %v18632_v13  ;;  %v9899_v31 = vcombine.high %v9891_v61, %v9891_v61 }
0x2e95   : > { %v9844_v18 = vrot.slane %v9779_v36, %v18632_v13  ;;  %v9781_v4 = vadd.f32 %v9780_v24, %v20742_v7  ;;  %v9958_v46 = vrot.slane %v9944_v39, %v18632_v13  ;;  %v9883_v56 = vcombine.high %v9881_v14, %v9881_v14 }
0x2e96   : > { %v20770_v29 = vpack.c.bf16 %v10014_v35, %v9998_v32  ;;  %v10058_v27 = vsel %vm1237_vm1, %v20766_v55, 0  ;;  %v9900_v8 = vcombine.high %v9898_v40, %v9898_v40  ;;  %v9951_v7 = vrot.slane %v9943_v58, %v18632_v13 }
0x2e97   : > { %v9845_v21 = vcombine.high %v9844_v18, %v9844_v18  ;;  %v9960_v12 = vcombine.low %v9837_v2, %v9844_v18  ;;  %17221 = vmatpush3.bf16.xpose.msra.mxu0 %v10058_v27  ;;  %v9907_v60 = vrot.slane %v9781_v4, %v18632_v13  ;;  %v10016_v22 = vcombine.low %v9899_v31, %v9898_v40 }
0x2e98   : > { %v10173_v49 = vsel %vm1358_vm2, %v20770_v29, 0  ;;  %17226 = vmatprep.subr.bf16.mxu0 %v21924_v25  ;;  %v20788_v30 = vpack.c.bf16 %v20776_v28, %v20776_v28  ;;  %v9959_v47 = vcombine.low %v9951_v7, %v9958_v46  ;;  %v10015_v53 = vcombine.low %v9883_v56, %v9891_v61 }
0x2e99   : > { %v9967_v62 = vrot.slane %v9960_v12, %v18632_v13  ;;  %v9974_v23 = vrot.slane %v9845_v21, %v18632_v13  ;;  %17233 = vmatpush3.bf16.msra.mxu1 %v10173_v49  ;;  %v9908_v19 = vcombine.high %v9907_v60, %v9907_v60  ;;  %v10032_v38 = vcombine.low %v9900_v8, %v9907_v60 }
0x2e9a   : > { %17244 = vmatprep.subr.bf16.mxu1 %v21924_v25  ;;  %v10030_v20 = vrot.slane %v10016_v22, %v18632_v13  ;;  %v10023_v43 = vrot.slane %v10015_v53, %v18632_v13 }
0x2e9b   : > { %v9975_v26 = vcombine.low %v9967_v62, %v9974_v23  ;;  %v10039_v50 = vrot.slane %v10032_v38, %v18632_v13  ;;  %v10046_v48 = vrot.slane %v9908_v19, %v18632_v13 }
0x2e9c   : > { %v10031_v45 = vcombine.low %v10023_v43, %v10030_v20 }
0x2e9d   : > { %v20794_v34 = vpack.c.bf16 %v9975_v26, %v9959_v47  ;;  %v10047_v11 = vcombine.low %v10039_v50, %v10046_v48 }
0x2e9e   : > { %17223 = vmatmul.mubr.msk.bf16.vlgmr.msra.gmra.mxu0 %vm1237_vm1, %v20788_v30 }
0x2e9f   : > { %v10101_v14 = vsel %vm1237_vm1, %v20794_v34, 0  ;;  %17228 = vmatprep.mubr.msk.bf16.mxu0 %vm18390_vm0, %v21924_v25  ;;  %v20804_v1 = vpack.c.bf16 %v10047_v11, %v10031_v45 }
0x2ea0   : > { %17227 = vmatpush3.bf16.xpose.msra.mxu0 %v10101_v14 }
0x2ea1   : > { %17238 = vmatprep.subr.bf16.mxu0 %v21924_v25  ;;  %v10219_v37 = vsel %vm1358_vm2, %v20804_v1, 0 }
0x2ea7   : > { %17229 = vmatmul.mubr.msk.bf16.vlgmr.msra.gmra.mxu0 %vm1237_vm1, %v20788_v30 }
0x2ea8   : > { %17239 = vmatpush3.bf16.msra.mxu0 %v10219_v37  ;;  %17240 = vmatprep.mubr.msk.bf16.mxu0 %vm18390_vm0, %v21924_v25 }
0x2ea9   : > { %17250 = vmatprep.subr.bf16.mxu0 %v21924_v25 }
0x2f5e   : > { %v10094_v41 = vpop.f32.mrf.mxu0 }
0x2f5f   : > { %v10143_v44 = vmul.f32 0.088388346, %v10094_v41 }
0x2f60   : > { %v17224_v15 = vpop.f32.mrf.mxu0 }
0x2f61   : > { %v10145_v59 = vsel %vm1329_vm3, %v10143_v44, -inf }
0x2f62   : > { %10146 = vmax.xlane.f32.xlu0 %v10145_v59  ;;  %v10097_v33 = vpop.f32.mrf.mxu0 }
0x2f64   : > { %v17225_v16 = vpop.f32.mrf.mxu0 }
0x2f67   : > { %v10137_v17 = vpop.f32.mrf.mxu0 }
0x2f68   : > { %v10144_v9 = vmul.f32 0.088388346, %v10137_v17 }
0x2f69   : > { %v17230_v63 = vpop.f32.mrf.mxu0 }
0x2f6a   : > { %v10148_v54 = vsel %vm1329_vm3, %v10144_v9, -inf }
0x2f6b   : > { %10149 = vmax.xlane.f32.xlu1 %v10148_v54  ;;  %v10140_v51 = vpop.f32.mrf.mxu0 }
0x2f6d   : > { %v17231_v52 = vpop.f32.mrf.mxu0 }
0x2f7c   : > { %10316 = vrot.lane.b32.xlu1 %v20794_v34, %s18391_s28 }
0x2f80   : > { %10264 = vrot.lane.b32.xlu1 %v20788_v30, %s18391_s28 }
0x2feb   : > { %v10147_v10 = vpop.xlane.xlu0 %10146 }
0x2fec   : > { %v10151_v0 = vsub.f32 %v10143_v44, %v10147_v10 }
0x2fee   : > { %v10153_v42 = vmul.f32 1.442695, %v10151_v0 }
0x2ff0   : > { %18185 = vpow2.f32 %v10153_v42 }
0x2ff4   : > { %v10150_v6 = vpop.xlane.xlu1 %10149 }
0x2ff5   : > { %v10152_v61 = vsub.f32 %v10144_v9, %v10150_v6 }
0x2ff7   : > { %v10155_v36 = vmul.f32 1.442695, %v10152_v61 }
0x2ff8   : > { %v10317_v46 = vpop.permute.xlu1 %10316 }
0x2ff9   : > { %18187 = vpow2.f32 %v10155_v36  ;;  %v10319_v60 = vsel %vm1237_vm1, %v10317_v46, 0 }
0x2ffc   : > { %v10265_v12 = vpop.permute.xlu1 %10264 }
0x2ffd   : > { %v18186_v2 = vpop.eup %18185 }
0x2ffe   : > { %v10157_v24 = vsel %vm1329_vm3, %v18186_v2, 0.0 }
0x2fff   : > { %10158 = vadd.xlane.f32.xlu0 %v10157_v24 }
0x3006   : > { %v18188_v32 = vpop.eup %18187 }
0x3007   : > { %v10160_v35 = vsel %vm1329_vm3, %v18188_v32, 0.0 }
0x3008   : > { %10161 = vadd.xlane.f32.xlu0 %v10160_v35 }
0x301e   : > { %10267 = vrot.lane.b32.xlu0 %v20766_v55, %s18391_s28 }
0x3088   : > { %v10159_v39 = vpop.xlane.xlu0 %10158 }
0x3089   : > { %18189 = vrcp.f32 %v10159_v39 }
0x3091   : > { %v10162_v58 = vpop.xlane.xlu0 %10161 }
0x3092   : > { %18191 = vrcp.f32 %v10162_v58 }
0x3095   : > { %v10268_v18 = vpop.permute.xlu0 %10267 }
0x3096   : > { %v18190_v40 = vpop.eup %18189  ;;  %v10273_v27 = vsel %vm1237_vm1, %v10268_v18, 0 }
0x3097   : > { %v10165_v31 = vmul.f32 %v18190_v40, %v18186_v2 }
0x3099   : > { %v10167_v4 = vpack.c.bf16 %v10165_v31, %v10165_v31 }
0x309b   : > { %17235 = vmatmul.mubr.msk.bf16.vlgmr.msra.gmra.mxu1 %vm1354_vm4, %v10167_v4 }
0x309c   : > { %17245 = vmatpush3.bf16.xpose.msra.mxu1 %v10273_v27  ;;  %17246 = vmatprep.mubr.msk.bf16.mxu1 %vm18390_vm0, %v21924_v25 }
0x309d   : > { %17256 = vmatprep.subr.bf16.mxu1 %v21924_v25 }
0x309f   : > { %v18192_v56 = vpop.eup %18191 }
0x30a0   : > { %v10166_v21 = vmul.f32 %v18192_v56, %v18188_v32 }
0x30a2   : > { %v10168_v8 = vpack.c.bf16 %v10166_v21, %v10166_v21 }
0x30a3   : > { %17247 = vmatmul.mubr.msk.bf16.vlgmr.msra.gmra.mxu1 %vm1237_vm1, %v10265_v12 }
0x30a4   : > { %17241 = vmatmul.mubr.msk.bf16.vlgmr.msra.gmra.mxu0 %vm1354_vm4, %v10168_v8  ;;  %17258 = vmatprep.mubr.msk.bf16.mxu1 %vm18390_vm0, %v21924_v25 }
0x30a5   : > { %17251 = vmatpush3.bf16.xpose.msra.mxu0 %v10319_v60  ;;  %17252 = vmatprep.mubr.msk.bf16.mxu0 %vm18390_vm0, %v21924_v25 }
0x30a6   : > { %17262 = vmatprep.subr.bf16.mxu0 %v21924_v25 }
0x30ac   : > { %17253 = vmatmul.mubr.msk.bf16.vlgmr.msra.gmra.mxu0 %vm1237_vm1, %v10265_v12 }
0x30ad   : > { %17264 = vmatprep.mubr.msk.bf16.mxu0 %vm18390_vm0, %v21924_v25 }
0x315b   : > { %v20839_v49 = vpop.f32.mrf.mxu1 }
0x315d   : > { %v17236_v7 = vpop.f32.mrf.mxu1 }
0x315f   : > { %v10212_v22 = vpop.f32.mrf.mxu1 }
0x3161   : > { %v17237_v62 = vpop.f32.mrf.mxu1 }
0x3163   : > { %v10309_v23 = vpop.f32.mrf.mxu1 }
0x3164   : > { %v20841_v19 = vpop.f32.mrf.mxu0  ;;  %v10361_v38 = vmul.f32 0.088388346, %v10309_v23 }
0x3165   : > { %v17248_v47 = vpop.f32.mrf.mxu1 }
0x3166   : > { %v17242_v53 = vpop.f32.mrf.mxu0  ;;  %v10363_v26 = vsel %vm1329_vm3, %v10361_v38, -inf }
0x3167   : > { %10364 = vmax.xlane.f32.xlu1 %v10363_v26  ;;  %v10312_v50 = vpop.f32.mrf.mxu1 }
0x3168   : > { %v10258_v48 = vpop.f32.mrf.mxu0 }
0x3169   : > { %v17249_v20 = vpop.f32.mrf.mxu1 }
0x316a   : > { %v17243_v43 = vpop.f32.mrf.mxu0 }
0x316c   : > { %v10355_v11 = vpop.f32.mrf.mxu0 }
0x316d   : > { %v10362_v14 = vmul.f32 0.088388346, %v10355_v11 }
0x316e   : > { %v17254_v45 = vpop.f32.mrf.mxu0 }
0x316f   : > { %v10366_v37 = vsel %vm1329_vm3, %v10362_v14, -inf }
0x3170   : > { %10367 = vmax.xlane.f32.xlu0 %v10366_v37  ;;  %v10358_v41 = vpop.f32.mrf.mxu0 }
0x3172   : > { %v17255_v44 = vpop.f32.mrf.mxu0 }
0x3178   : > { %10388 = vrot.lane.b32.xlu1 %v20770_v29, %s18391_s28 }
0x317c   : > { %10497 = vrot.lane.b32.xlu1 %v20766_v55, %s18392_s18 }
0x3180   : > { %10545 = vrot.lane.b32.xlu1 %v20794_v34, %s18392_s18 }
0x3184   : > { %10495 = vrot.lane.b32.xlu1 %v20788_v30, %s18392_s18 }
0x31f0   : > { %v10365_v15 = vpop.xlane.xlu1 %10364 }
0x31f1   : > { %v10369_v59 = vsub.f32 %v10361_v38, %v10365_v15 }
0x31f3   : > { %v10371_v33 = vmul.f32 1.442695, %v10369_v59 }
0x31f4   : > { %v10389_v16 = vpop.permute.xlu1 %10388 }
0x31f5   : > { %18193 = vpow2.f32 %v10371_v33  ;;  %v10394_v17 = vsel %vm1358_vm2, %v10389_v16, 0 }
0x31f6   : > { %17257 = vmatpush3.bf16.msra.mxu1 %v10394_v17 }
0x31f7   : > { %17268 = vmatprep.subr.bf16.mxu1 %v21924_v25 }
0x31f8   : > { %v10498_v2 = vpop.permute.xlu1 %10497 }
0x31f9   : > { %v10368_v9 = vpop.xlane.xlu0 %10367  ;;  %v10503_v39 = vsel %vm1237_vm1, %v10498_v2, 0 }
0x31fa   : > { %v10370_v63 = vsub.f32 %v10362_v14, %v10368_v9 }
0x31fc   : > { %v10373_v54 = vmul.f32 1.442695, %v10370_v63  ;;  %v10546_v58 = vpop.permute.xlu1 %10545 }
0x31fd   : > { %v10548_v27 = vsel %vm1237_vm1, %v10546_v58, 0 }
0x31fe   : > { %18195 = vpow2.f32 %v10373_v54 }
0x3200   : > { %v10496_v18 = vpop.permute.xlu1 %10495 }
0x3202   : > { %v18194_v51 = vpop.eup %18193 }
0x3203   : > { %v10375_v52 = vsel %vm1329_vm3, %v18194_v51, 0.0 }
0x3204   : > { %10376 = vadd.xlane.f32.xlu0 %v10375_v52 }
0x320b   : > { %v18196_v10 = vpop.eup %18195 }
0x320c   : > { %v10378_v0 = vsel %vm1329_vm3, %v18196_v10, 0.0 }
0x320d   : > { %10379 = vadd.xlane.f32.xlu0 %v10378_v0 }
0x3223   : > { %10437 = vrot.lane.b32.xlu0 %v20804_v1, %s18391_s28 }
0x328d   : > { %v10377_v42 = vpop.xlane.xlu0 %10376 }
0x328e   : > { %18197 = vrcp.f32 %v10377_v42 }
0x3296   : > { %v10380_v6 = vpop.xlane.xlu0 %10379 }
0x3297   : > { %18199 = vrcp.f32 %v10380_v6 }
0x329a   : > { %v10438_v61 = vpop.permute.xlu0 %10437 }
0x329b   : > { %v18198_v36 = vpop.eup %18197  ;;  %v10443_v24 = vsel %vm1358_vm2, %v10438_v61, 0 }
0x329c   : > { %v10383_v32 = vmul.f32 %v18198_v36, %v18194_v51  ;;  %17263 = vmatpush3.bf16.msra.mxu0 %v10443_v24 }
0x329d   : > { %17274 = vmatprep.subr.bf16.mxu0 %v21924_v25 }
0x329e   : > { %v10385_v35 = vpack.c.bf16 %v10383_v32, %v10383_v32 }
0x32a0   : > { %17259 = vmatmul.mubr.msk.bf16.vlgmr.msra.gmra.mxu1 %vm1354_vm4, %v10385_v35 }
0x32a1   : > { %17269 = vmatpush3.bf16.xpose.msra.mxu1 %v10503_v39  ;;  %17270 = vmatprep.mubr.msk.bf16.mxu1 %vm18390_vm0, %v21924_v25 }
0x32a2   : > { %17280 = vmatprep.subr.bf16.mxu1 %v21924_v25 }
0x32a4   : > { %v18200_v40 = vpop.eup %18199 }
0x32a5   : > { %v10384_v31 = vmul.f32 %v18200_v40, %v18196_v10 }
0x32a7   : > { %v10386_v4 = vpack.c.bf16 %v10384_v31, %v10384_v31 }
0x32a8   : > { %17271 = vmatmul.mubr.msk.bf16.vlgmr.msra.gmra.mxu1 %vm1237_vm1, %v10496_v18 }
0x32a9   : > { %17265 = vmatmul.mubr.msk.bf16.vlgmr.msra.gmra.mxu0 %vm1354_vm4, %v10386_v4  ;;  %17282 = vmatprep.mubr.msk.bf16.mxu1 %vm18390_vm0, %v21924_v25 }
0x32aa   : > { %17275 = vmatpush3.bf16.xpose.msra.mxu0 %v10548_v27  ;;  %17276 = vmatprep.mubr.msk.bf16.mxu0 %vm18390_vm0, %v21924_v25 }
0x32ab   : > { %17286 = vmatprep.subr.bf16.mxu0 %v21924_v25 }
0x32b1   : > { %17277 = vmatmul.mubr.msk.bf16.vlgmr.msra.gmra.mxu0 %vm1237_vm1, %v10496_v18 }
0x32b2   : > { %17288 = vmatprep.mubr.msk.bf16.mxu0 %vm18390_vm0, %v21924_v25 }
0x3360   : > { %v20877_v46 = vpop.f32.mrf.mxu1 }
0x3362   : > { %v17260_v56 = vpop.f32.mrf.mxu1 }
0x3364   : > { %v10433_v21 = vpop.f32.mrf.mxu1 }
0x3366   : > { %v17261_v12 = vpop.f32.mrf.mxu1 }
0x3368   : > { %v10539_v8 = vpop.f32.mrf.mxu1 }
0x3369   : > { %v20879_v60 = vpop.f32.mrf.mxu0  ;;  %v10590_v7 = vmul.f32 0.088388346, %v10539_v8 }
0x336a   : > { %v17272_v22 = vpop.f32.mrf.mxu1 }
0x336b   : > { %v17266_v62 = vpop.f32.mrf.mxu0  ;;  %v10592_v23 = vsel %vm1329_vm3, %v10590_v7, -inf }
0x336c   : > { %10593 = vmax.xlane.f32.xlu0 %v10592_v23  ;;  %v10542_v38 = vpop.f32.mrf.mxu1 }
0x336d   : > { %v10482_v47 = vpop.f32.mrf.mxu0 }
0x336e   : > { %v17273_v53 = vpop.f32.mrf.mxu1 }
0x336f   : > { %v17267_v26 = vpop.f32.mrf.mxu0 }
0x3371   : > { %v10584_v50 = vpop.f32.mrf.mxu0 }
0x3372   : > { %v10591_v48 = vmul.f32 0.088388346, %v10584_v50 }
0x3373   : > { %v17278_v20 = vpop.f32.mrf.mxu0 }
0x3374   : > { %v10595_v43 = vsel %vm1329_vm3, %v10591_v48, -inf }
0x3375   : > { %10596 = vmax.xlane.f32.xlu1 %v10595_v43  ;;  %v10587_v11 = vpop.f32.mrf.mxu0 }
0x3377   : > { %v17279_v14 = vpop.f32.mrf.mxu0 }
0x3386   : > { %10664 = vrot.lane.b32.xlu1 %v20804_v1, %s18392_s18 }
0x338a   : > { %10724 = vrot.lane.b32.xlu1 %v20766_v55, %s18393_s21 }
0x338e   : > { %10772 = vrot.lane.b32.xlu1 %v20794_v34, %s18393_s21 }
0x33f5   : > { %v10594_v45 = vpop.xlane.xlu0 %10593 }
0x33f6   : > { %v10598_v37 = vsub.f32 %v10590_v7, %v10594_v45 }
0x33f8   : > { %v10600_v41 = vmul.f32 1.442695, %v10598_v37 }
0x33fa   : > { %18201 = vpow2.f32 %v10600_v41 }
0x33fe   : > { %v10597_v44 = vpop.xlane.xlu1 %10596 }
0x33ff   : > { %v10599_v15 = vsub.f32 %v10591_v48, %v10597_v44 }
0x3401   : > { %v10602_v59 = vmul.f32 1.442695, %v10599_v15 }
0x3402   : > { %v10665_v33 = vpop.permute.xlu1 %10664 }
0x3403   : > { %18203 = vpow2.f32 %v10602_v59  ;;  %v10670_v16 = vsel %vm1358_vm2, %v10665_v33, 0 }
0x3404   : > { %17287 = vmatpush3.bf16.msra.mxu0 %v10670_v16 }
0x3405   : > { %17298 = vmatprep.subr.bf16.mxu0 %v21924_v25 }
0x3406   : > { %v10725_v42 = vpop.permute.xlu1 %10724 }
0x3407   : > { %v18202_v17 = vpop.eup %18201  ;;  %v10730_v61 = vsel %vm1237_vm1, %v10725_v42, 0 }
0x3408   : > { %v10604_v55 = vsel %vm1329_vm3, %v18202_v17, 0.0 }
0x3409   : > { %10605 = vadd.xlane.f32.xlu0 %v10604_v55 }
0x340a   : > { %v10773_v24 = vpop.permute.xlu1 %10772 }
0x340b   : > { %v10775_v35 = vsel %vm1237_vm1, %v10773_v24, 0  ;;  %v17904_v24 = vld [vmem:[%s18608_s24 + $0x100] sm:$0xff]  }
0x3410   : > { %v18204_v9 = vpop.eup %18203 }
0x3411   : > { %v10607_v34 = vsel %vm1329_vm3, %v18204_v9, 0.0 }
0x3412   : > { %10608 = vadd.xlane.f32.xlu0 %v10607_v34 }
0x3428   : > { %10616 = vrot.lane.b32.xlu0 %v20770_v29, %s18392_s18 }
0x342c   : > { %10722 = vrot.lane.b32.xlu0 %v20788_v30, %s18393_s21 }
0x3492   : > { %v10606_v63 = vpop.xlane.xlu0 %10605 }
0x3493   : > { %18205 = vrcp.f32 %v10606_v63 }
0x349b   : > { %v10609_v54 = vpop.xlane.xlu0 %10608 }
0x349c   : > { %18207 = vrcp.f32 %v10609_v54  ;;  %v17897_v54 = vld [vmem:[%s18608_s24 + $0x138] sm:$0xff]  }
0x349f   : > { %v10617_v51 = vpop.permute.xlu0 %10616 }
0x34a0   : > { %v18206_v52 = vpop.eup %18205  ;;  %v10622_v10 = vsel %vm1358_vm2, %v10617_v51, 0  ;;  %v17898_v51 = vld [vmem:[%s18608_s24 + $0x130] sm:$0xff]  }
0x34a1   : > { %v10612_v0 = vmul.f32 %v18206_v52, %v18202_v17  ;;  %17281 = vmatpush3.bf16.msra.mxu1 %v10622_v10  ;;  %v17899_v52 = vld [vmem:[%s18608_s24 + $0x128] sm:$0xff]   ;;  %v17900_v10 = vld [vmem:[%s18608_s24 + $0x120] sm:$0xff]  }
0x34a2   : > { %17292 = vmatprep.subr.bf16.mxu1 %v21924_v25 }
0x34a3   : > { %v10614_v6 = vpack.c.bf16 %v10612_v0, %v10612_v0  ;;  %v10723_v2 = vpop.permute.xlu0 %10722  ;;  %v17901_v0 = vld [vmem:[%s18608_s24 + $0x118] sm:$0xff]  }
0x34a5   : > { %17283 = vmatmul.mubr.msk.bf16.vlgmr.msra.gmra.mxu1 %vm1354_vm4, %v10614_v6  ;;  %v17902_v6 = vld [vmem:[%s18608_s24 + $0x110] sm:$0xff]  }
0x34a6   : > { %17293 = vmatpush3.bf16.xpose.msra.mxu1 %v10730_v61  ;;  %17294 = vmatprep.mubr.msk.bf16.mxu1 %vm18390_vm0, %v21924_v25 }
0x34a7   : > { %17304 = vmatprep.subr.bf16.mxu1 %v21924_v25 }
0x34a9   : > { %v18208_v30 = vpop.eup %18207 }
0x34aa   : > { %v10613_v36 = vmul.f32 %v18208_v30, %v18204_v9 }
0x34ac   : > { %v10615_v32 = vpack.c.bf16 %v10613_v36, %v10613_v36  ;;  %v17903_v36 = vld [vmem:[%s18608_s24 + $0x108] sm:$0xff]  }
0x34ad   : > { %17295 = vmatmul.mubr.msk.bf16.vlgmr.msra.gmra.mxu1 %vm1237_vm1, %v10723_v2 }
0x34ae   : > { %17289 = vmatmul.mubr.msk.bf16.vlgmr.msra.gmra.mxu0 %vm1354_vm4, %v10615_v32  ;;  %17306 = vmatprep.mubr.msk.bf16.mxu1 %vm18390_vm0, %v21924_v25 }
0x34af   : > { %17299 = vmatpush3.bf16.xpose.msra.mxu0 %v10775_v35  ;;  %17300 = vmatprep.mubr.msk.bf16.mxu0 %vm18390_vm0, %v21924_v25  ;;  %v17907_v35 = vld [vmem:[%s18602_s25 + $0x2f4] ss:$8 sps:$4 sm:$0xff]  }
0x34b0   : > { %17310 = vmatprep.subr.bf16.mxu0 %v21924_v25 }
0x34b6   : > { %17301 = vmatmul.mubr.msk.bf16.vlgmr.msra.gmra.mxu0 %vm1237_vm1, %v10723_v2 }
0x34b7   : > { %17312 = vmatprep.mubr.msk.bf16.mxu0 %vm18390_vm0, %v21924_v25 }
0x3565   : > { %v10658_v39 = vpop.f32.mrf.mxu1 }
0x3567   : > { %v17284_v58 = vpop.f32.mrf.mxu1 }
0x3569   : > { %v10661_v40 = vpop.f32.mrf.mxu1 }
0x356a   : > { %v17912_v40 = vld [vmem:[%s18648_s20 + $0x170] sm:$0xff]  }
0x356b   : > { %v17285_v31 = vpop.f32.mrf.mxu1 }
0x356d   : > { %v10766_v18 = vpop.f32.mrf.mxu1 }
0x356e   : > { %v10706_v4 = vpop.f32.mrf.mxu0  ;;  %v10817_v27 = vmul.f32 0.088388346, %v10766_v18 }
0x356f   : > { %v17296_v56 = vpop.f32.mrf.mxu1 }
0x3570   : > { %v17290_v21 = vpop.f32.mrf.mxu0  ;;  %v10819_v12 = vsel %vm1329_vm3, %v10817_v27, -inf }
0x3571   : > { %10820 = vmax.xlane.f32.xlu1 %v10819_v12  ;;  %v10769_v8 = vpop.f32.mrf.mxu1 }
0x3572   : > { %v10709_v7 = vpop.f32.mrf.mxu0 }
0x3573   : > { %v17297_v22 = vpop.f32.mrf.mxu1  ;;  %v10261_v7 = vadd.f32 %v20776_v28, %v20839_v49  ;;  %v10262_v49 = vadd.f32 %v20776_v28, %v20841_v19 }
0x3574   : > { %v17291_v62 = vpop.f32.mrf.mxu0 }
0x3576   : > { %v10811_v23 = vpop.f32.mrf.mxu0 }
0x3577   : > { %v10818_v38 = vmul.f32 0.088388346, %v10811_v23 }
0x3578   : > { %v17302_v47 = vpop.f32.mrf.mxu0 }
0x3579   : > { %v10822_v53 = vsel %vm1329_vm3, %v10818_v38, -inf }
0x357a   : > { %10823 = vmax.xlane.f32.xlu0 %v10822_v53  ;;  %v10814_v26 = vpop.f32.mrf.mxu0 }
0x357c   : > { %v17303_v50 = vpop.f32.mrf.mxu0 }
0x3582   : > { %10843 = vrot.lane.b32.xlu1 %v20770_v29, %s18393_s21 }
0x3586   : > { %10487 = vrot.lane.b32.xlu1 %v20877_v46, %s18393_s21 }
0x358a   : > { %10714 = vrot.lane.b32.xlu1 %v10658_v39, %s18392_s18  ;;  %v17908_v39 = vld [vmem:[%s18648_s20 + $0x178] sm:$0xff]  }
0x358e   : > { %10489 = vrot.lane.b32.xlu1 %v20879_v60, %s18393_s21 }
0x3592   : > { %10716 = vrot.lane.b32.xlu1 %v10706_v4, %s18392_s18  ;;  %v17916_v4 = vld [vmem:[%s18648_s20 + $0x168] sm:$0xff]  }
0x35fa   : > { %v10821_v48 = vpop.xlane.xlu1 %10820 }
0x35fb   : > { %v10825_v20 = vsub.f32 %v10817_v27, %v10821_v48 }
0x35fd   : > { %v10827_v43 = vmul.f32 1.442695, %v10825_v20 }
0x35fe   : > { %v10844_v11 = vpop.permute.xlu1 %10843 }
0x35ff   : > { %18209 = vpow2.f32 %v10827_v43  ;;  %v10849_v14 = vsel %vm1358_vm2, %v10844_v11, 0 }
0x3600   : > { %17305 = vmatpush3.bf16.msra.mxu1 %v10849_v14 }
0x3601   : > { %17316 = vmatprep.subr.bf16.mxu1 %v21924_v25 }
0x3602   : > { %v10488_v27 = vpop.permute.xlu1 %10487 }
0x3603   : > { %v10824_v29 = vpop.xlane.xlu0 %10823  ;;  %v10493_v21 = vadd.f32 %v20776_v28, %v10488_v27 }
0x3604   : > { %v10826_v45 = vsub.f32 %v10818_v38, %v10824_v29 }
0x3605   : > { %v10949_v62 = vsel %vm1237_vm1, %v10261_v7, %v10493_v21 }
0x3606   : > { %v10829_v46 = vmul.f32 1.442695, %v10826_v45  ;;  %v10715_v56 = vpop.permute.xlu1 %10714 }
0x3607   : > { %v10720_v12 = vadd.f32 %v20776_v28, %v10715_v56 }
0x3608   : > { %18211 = vpow2.f32 %v10829_v46 }
0x3609   : > { %v10951_v38 = vsel %vm2138_vm5, %v10949_v62, %v10720_v12 }
0x360a   : > { %v10490_v8 = vpop.permute.xlu1 %10489 }
0x360b   : > { %v10494_v50 = vadd.f32 %v20776_v28, %v10490_v8 }
0x360c   : > { %v18210_v37 = vpop.eup %18209 }
0x360d   : > { %v10831_v41 = vsel %vm1329_vm3, %v18210_v37, 0.0  ;;  %v10950_v14 = vsel %vm1237_vm1, %v10262_v49, %v10494_v50 }
0x360e   : > { %10832 = vadd.xlane.f32.xlu0 %v10831_v41  ;;  %v10717_v53 = vpop.permute.xlu1 %10716 }
0x360f   : > { %v10721_v48 = vadd.f32 %v20776_v28, %v10717_v53 }
0x3611   : > { %v10952_v45 = vsel %vm2138_vm5, %v10950_v14, %v10721_v48 }
0x3615   : > { %v18212_v60 = vpop.eup %18211 }
0x3616   : > { %v10834_v44 = vsel %vm1329_vm3, %v18212_v60, 0.0 }
0x3617   : > { %10835 = vadd.xlane.f32.xlu0 %v10834_v44 }
0x362d   : > { %10891 = vrot.lane.b32.xlu0 %v20804_v1, %s18393_s21 }
0x3697   : > { %v10833_v15 = vpop.xlane.xlu0 %10832 }
0x3698   : > { %18213 = vrcp.f32 %v10833_v15 }
0x36a0   : > { %v10836_v59 = vpop.xlane.xlu0 %10835 }
0x36a1   : > { %18215 = vrcp.f32 %v10836_v59 }
0x36a4   : > { %v10892_v33 = vpop.permute.xlu0 %10891 }
0x36a5   : > { %v18214_v16 = vpop.eup %18213  ;;  %v10897_v17 = vsel %vm1358_vm2, %v10892_v33, 0 }
0x36a6   : > { %v10839_v55 = vmul.f32 %v18214_v16, %v18210_v37  ;;  %17311 = vmatpush3.bf16.msra.mxu0 %v10897_v17 }
0x36a7   : > { %17336 = vmatprep.subr.bf16.mxu0 %v21924_v25 }
0x36a8   : > { %v10841_v9 = vpack.c.bf16 %v10839_v55, %v10839_v55 }
0x36aa   : > { %17307 = vmatmul.mubr.msk.bf16.vlgmr.msra.gmra.mxu1 %vm1354_vm4, %v10841_v9  ;;  %v17905_v9 = vld [vmem:[%s18602_s25 + $0x2f0] ss:$8 sps:$4 sm:$0xff]  }
0x36ab   : > { %17332 = vmatprep.mubr.msk.bf16.mxu1 %vm18390_vm0, %v21924_v25  ;;  %17317 = vmatpush3.bf16.msra.mxu1 %v17897_v54  ;;  %v17915_v54 = vld [vmem:[%s18602_s25 + $0x2d4] ss:$8 sps:$4 sm:$0xff]  }
0x36ac   : > { %17318 = vmatprep.subr.bf16.mxu1 %v21924_v25 }
0x36ae   : > { %v18216_v1 = vpop.eup %18215 }
0x36af   : > { %v10840_v34 = vmul.f32 %v18216_v1, %v18212_v60  ;;  %17319 = vmatpush3.bf16.msra.mxu1 %v17898_v51  ;;  %v17913_v51 = vld [vmem:[%s18602_s25 + $0x2d0] ss:$8 sps:$4 sm:$0xff]  }
0x36b0   : > { %17320 = vmatprep.subr.bf16.mxu1 %v21924_v25 }
0x36b1   : > { %v10842_v63 = vpack.c.bf16 %v10840_v34, %v10840_v34  ;;  %v17911_v34 = vld [vmem:[%s18602_s25 + $0x2e4] ss:$8 sps:$4 sm:$0xff]  }
0x36b3   : > { %17313 = vmatmul.mubr.msk.bf16.vlgmr.msra.gmra.mxu0 %vm1354_vm4, %v10842_v63  ;;  %17321 = vmatpush3.bf16.msra.mxu1 %v17899_v52  ;;  %v17909_v63 = vld [vmem:[%s18602_s25 + $0x2e0] ss:$8 sps:$4 sm:$0xff]   ;;  %v17919_v52 = vld [vmem:[%s18602_s25 + $0x2c4] ss:$8 sps:$4 sm:$0xff]  }
0x36b4   : > { %17352 = vmatprep.mubr.msk.bf16.mxu0 %vm18390_vm0, %v21924_v25  ;;  %17322 = vmatprep.subr.bf16.mxu1 %v21924_v25 }
0x36b5   : > { %17337 = vmatpush3.bf16.msra.mxu0 %v17908_v39  ;;  %v17935_v39 = vld [vmem:[%s18602_s25 + $0x284] ss:$8 sps:$4 sm:$0xff]  }
0x36b6   : > { %17338 = vmatprep.subr.bf16.mxu0 %v21924_v25 }
0x36b7   : > { %17323 = vmatpush3.bf16.msra.mxu1 %v17900_v10  ;;  %v17917_v10 = vld [vmem:[%s18602_s25 + $0x2c0] ss:$8 sps:$4 sm:$0xff]  }
0x36b8   : > { %17324 = vmatprep.subr.bf16.mxu1 %v21924_v25 }
0x36b9   : > { %17339 = vmatpush3.bf16.msra.mxu0 %v17912_v40  ;;  %v17936_v40 = vld [vmem:[%s18648_s20 + $0x140] sm:$0xff]  }
0x36ba   : > { %17340 = vmatprep.subr.bf16.mxu0 %v21924_v25 }
0x36bb   : > { %17325 = vmatpush3.bf16.msra.mxu1 %v17901_v0  ;;  %v17920_v0 = vld [vmem:[%s18648_s20 + $0x160] sm:$0xff]  }
0x36bc   : > { %17326 = vmatprep.subr.bf16.mxu1 %v21924_v25 }
0x36bd   : > { %17341 = vmatpush3.bf16.msra.mxu0 %v17916_v4 }
0x36be   : > { %17342 = vmatprep.subr.bf16.mxu0 %v21924_v25 }
0x36bf   : > { %17327 = vmatpush3.bf16.msra.mxu1 %v17902_v6  ;;  %v17921_v6 = vld [vmem:[%s18602_s25 + $0x2b0] ss:$8 sps:$4 sm:$0xff]  }
0x36c0   : > { %17328 = vmatprep.subr.bf16.mxu1 %v21924_v25 }
0x36c1   : > { %17343 = vmatpush3.bf16.msra.mxu0 %v17920_v0 }
0x36c2   : > { %17344 = vmatprep.subr.bf16.mxu0 %v21924_v25 }
0x36c3   : > { %17329 = vmatpush3.bf16.msra.mxu1 %v17903_v36  ;;  %v17925_v36 = vld [vmem:[%s18602_s25 + $0x2a0] ss:$8 sps:$4 sm:$0xff]  }
0x36c4   : > { %17330 = vmatprep.subr.bf16.mxu1 %v21924_v25 }
0x36c7   : > { %17331 = vmatpush3.bf16.msra.mxu1 %v17904_v24  ;;  %v17931_v24 = vld [vmem:[%s18602_s25 + $0x294] ss:$8 sps:$4 sm:$0xff]  }
0x36c8   : > { %11469 = vmatprep.subr.bf16.mxu1 %v17907_v35  ;;  %v17932_v35 = vld [vmem:[%s18648_s20 + $0x148] sm:$0xff]  }
0x376a   : > { %v10885_v42 = vpop.f32.mrf.mxu1 }
0x376b   : > { %10941 = vrot.lane.b32.xlu0 %v10885_v42, %s18391_s28  ;;  %v17923_v42 = vld [vmem:[%s18602_s25 + $0x2b4] ss:$8 sps:$4 sm:$0xff]  }
0x376c   : > { %v17308_v61 = vpop.f32.mrf.mxu1 }
0x376d   : > { %v17924_v61 = vld [vmem:[%s18648_s20 + $0x158] sm:$0xff]  }
0x376e   : > { %v10888_v30 = vpop.f32.mrf.mxu1  ;;  %17345 = vmatpush3.bf16.msra.mxu0 %v17924_v61 }
0x376f   : > { %17346 = vmatprep.subr.bf16.mxu0 %v21924_v25  ;;  %v17927_v30 = vld [vmem:[%s18602_s25 + $0x2a4] ss:$8 sps:$4 sm:$0xff]  }
0x3770   : > { %v17309_v2 = vpop.f32.mrf.mxu1 }
0x3771   : > { %v17928_v2 = vld [vmem:[%s18648_s20 + $0x150] sm:$0xff]  }
0x3772   : > { %17347 = vmatpush3.bf16.msra.mxu0 %v17928_v2 }
0x3773   : > { %v10933_v32 = vpop.f32.mrf.mxu0  ;;  %17348 = vmatprep.subr.bf16.mxu0 %v21924_v25 }
0x3774   : > { %10943 = vrot.lane.b32.xlu0 %v10933_v32, %s18391_s28  ;;  %v17929_v32 = vld [vmem:[%s18602_s25 + $0x290] ss:$8 sps:$4 sm:$0xff]  }
0x3775   : > { %v17314_v58 = vpop.f32.mrf.mxu0 }
0x3776   : > { %17349 = vmatpush3.bf16.msra.mxu0 %v17932_v35  ;;  %v17933_v58 = vld [vmem:[%s18602_s25 + $0x280] ss:$8 sps:$4 sm:$0xff]  }
0x3777   : > { %v10936_v31 = vpop.f32.mrf.mxu0  ;;  %17350 = vmatprep.subr.bf16.mxu0 %v21924_v25 }
0x3778   : > { %v16135_v31 = vld [vmem:[%s19002_s23 + $0x4] ss:$0 sm:$0xff] }
0x3779   : > { %v17315_v18 = vpop.f32.mrf.mxu0 }
0x377a   : > { %17351 = vmatpush3.bf16.msra.mxu0 %v17936_v40 }
0x377b   : > { %17356 = vmatprep.subr.bf16.mxu0 %v21924_v25 }
0x37dd   : > { %v10942_v22 = vpop.permute.xlu0 %10941 }
0x37de   : > { %v10947_v23 = vadd.f32 %v20776_v28, %v10942_v22 }
0x37e0   : > { %v10953_v47 = vsel %vm2141_vm6, %v10951_v38, %v10947_v23 }
0x37e1   : > { %v20972_v26 = vrot.slane %v10953_v47, %v18632_v13  ;;  %v10957_v20 = vcombine.high %v10953_v47, %v10953_v47 }
0x37e3   : > { %v20980_v43 = vcombine.high %v20972_v26, %v20972_v26  ;;  %v20987_v37 = vrot.slane %v10957_v20, %v18632_v13 }
0x37e5   : > { %v10995_v19 = vcombine.low %v20972_v26, %v20980_v43 }
0x37e6   : > { %v10944_v11 = vpop.permute.xlu0 %10943 }
0x37e7   : > { %v10948_v29 = vadd.f32 %v20776_v28, %v10944_v11  ;;  %v11003_v59 = vrot.slane %v10995_v19, %v18632_v13 }
0x37e9   : > { %v10954_v46 = vsel %vm2141_vm6, %v10952_v45, %v10948_v29 }
0x37ea   : > { %v10973_v41 = vcombine.high %v10954_v46, %v10954_v46  ;;  %v20992_v60 = vrot.slane %v10954_v46, %v18632_v13 }
0x37ec   : > { %v20995_v44 = vrot.slane %v10973_v41, %v18632_v13  ;;  %v20999_v28 = vcombine.high %v20992_v60, %v20992_v60  ;;  %v10996_v15 = vcombine.low %v20987_v37, %v20992_v60 }
0x37ee   : > { %v11010_v33 = vrot.slane %v10996_v15, %v18632_v13  ;;  %v11012_v16 = vcombine.low %v20999_v28, %v20995_v44 }
0x37f0   : > { %v11019_v17 = vrot.slane %v11012_v16, %v18632_v13  ;;  %v11011_v55 = vcombine.low %v11003_v59, %v11010_v33 }
0x37f2   : > { %v11022_v1 = vpack.c.bf16 %v11019_v17, %v11011_v55 }
0x37f4   : > { %17333 = vmatmul.mubr.bf16.vlgmr.msra.gmra.mxu1 %v11022_v1 }
0x37f5   : > { %11470 = vmatpush1.bf16.msra.mxu1 %v17905_v9  ;;  %11501 = vmatprep.mubr.bf16.mxu1 %v21925_v57 }
0x37f6   : > { %11471 = vmatprep.subr.bf16.mxu1 %v17911_v34 }
0x37f9   : > { %11472 = vmatpush1.bf16.msra.mxu1 %v17909_v63 }
0x37fa   : > { %11473 = vmatprep.subr.bf16.mxu1 %v17915_v54 }
0x37fd   : > { %11474 = vmatpush1.bf16.msra.mxu1 %v17913_v51 }
0x37fe   : > { %11475 = vmatprep.subr.bf16.mxu1 %v17919_v52 }
0x3801   : > { %11476 = vmatpush1.bf16.msra.mxu1 %v17917_v10 }
0x3802   : > { %11477 = vmatprep.subr.bf16.mxu1 %v17923_v42 }
0x3805   : > { %11478 = vmatpush1.bf16.msra.mxu1 %v17921_v6 }
0x3806   : > { %11479 = vmatprep.subr.bf16.mxu1 %v17927_v30 }
0x3809   : > { %11480 = vmatpush1.bf16.msra.mxu1 %v17925_v36 }
0x380a   : > { %11481 = vmatprep.subr.bf16.mxu1 %v17931_v24 }
0x380d   : > { %11482 = vmatpush1.bf16.msra.mxu1 %v17929_v32 }
0x380e   : > { %11483 = vmatprep.subr.bf16.mxu1 %v17935_v39 }
0x3811   : > { %11484 = vmatpush1.bf16.msra.mxu1 %v17933_v58 }
0x3812   : > { %17380 = vmatprep.subr.bf16.mxu1 %v21924_v25 }
0x38b4   : > { %v11130_v18 = vpop.f32.mrf.mxu1 }
0x38b5   : > { %v11131_v4 = vadd.f32 %v16135_v31, %v11130_v18 }
0x38b6   : > { %v17334_v27 = vpop.f32.mrf.mxu1 }
0x38b7   : > { %v11137_v56 = vmax.f32 %v11131_v4, 0.0 }
0x38b8   : > { %v11133_v21 = vpop.f32.mrf.mxu1 }
0x38b9   : > { %v11141_v12 = vcombine.high %v11137_v56, %v11137_v56  ;;  %v11148_v8 = vrot.slane %v11137_v56, %v18632_v13  ;;  %v11134_v7 = vadd.f32 %v16135_v31, %v11133_v21 }
0x38ba   : > { %v17335_v22 = vpop.f32.mrf.mxu1 }
0x38bb   : > { %v11155_v62 = vrot.slane %v11141_v12, %v18632_v13  ;;  %v11156_v23 = vcombine.high %v11148_v8, %v11148_v8  ;;  %v11138_v38 = vmax.f32 %v11134_v7, 0.0  ;;  %v11172_v53 = vadd.f32 %v11148_v8, %v20972_v26 }
0x38bd   : > { %v11157_v47 = vcombine.high %v11155_v62, %v11155_v62  ;;  %v11173_v50 = vadd.f32 %v11156_v23, %v20980_v43  ;;  %v11164_v48 = vrot.slane %v11138_v38, %v18632_v13  ;;  %v11174_v49 = vadd.f32 %v11155_v62, %v20987_v37 }
0x38bf   : > { %v11175_v20 = vadd.f32 %v11157_v47, %v20992_v60  ;;  %v11184_v11 = vcombine.low %v11172_v53, %v11173_v50  ;;  %v11165_v14 = vcombine.high %v11164_v48, %v11164_v48  ;;  %v11176_v45 = vadd.f32 %v11164_v48, %v20999_v28  ;;  %v16186_v60 = vld [vmem:[%s18688_s29 + $0xa] sm:$0x3]  ;;  %v16161_v28 = vld [vmem:[%s19024_s22 + $0x5] ss:$0 sm:$0xff] }
0x38c0   : > { %v11386_v16 = vrot.slane %v16186_v60, %v21927_v5 }
0x38c1   : > { %v11185_v29 = vcombine.low %v11174_v49, %v11175_v20  ;;  %v11177_v46 = vadd.f32 %v11165_v14, %v20995_v44  ;;  %v11192_v19 = vrot.slane %v11184_v11, %v18632_v13  ;;  %v11382_v44 = vrot.slane %v16186_v60, %v18691_v3 }
0x38c3   : > { %v11199_v26 = vrot.slane %v11185_v29, %v18632_v13  ;;  %v11201_v43 = vcombine.low %v11176_v45, %v11177_v46 }
0x38c5   : > { %v11200_v41 = vcombine.low %v11192_v19, %v11199_v26  ;;  %v11208_v15 = vrot.slane %v11201_v43, %v18632_v13 }
0x38c7   : > { %v11211_v37 = vpack.c.bf16 %v11208_v15, %v11200_v41 }
0x38c9   : > { %17353 = vmatmul.mubr.bf16.vlgmr.msra.gmra.mxu0 %v11211_v37  ;;  %11502 = vmatmul.mubr.bf16.vlgmr.msra.gmra.mxu1 %v11211_v37 }
0x38ca   : > { %17358 = vmatprep.mubr.msk.bf16.mxu0 %vm18390_vm0, %v21924_v25  ;;  %17382 = vmatprep.mubr.msk.bf16.mxu1 %vm18390_vm0, %v21924_v25 }
0x3989   : > { %v11319_v59 = vpop.f32.mrf.mxu0  ;;  %v11503_v33 = vpop.f32.mrf.mxu1 }
0x398a   : > { %v11320_v17 = vadd.f32 %v16161_v28, %v11319_v59  ;;  %v11504_v55 = vadd.f32 %v11503_v33, %v11382_v44 }
0x398b   : > { %v17354_v9 = vpop.f32.mrf.mxu0  ;;  %v11505_v1 = vpop.f32.mrf.mxu1 }
0x398c   : > { %v11328_v34 = vcombine.high %v11320_v17, %v11320_v17  ;;  %v21057_v63 = vrot.slane %v11320_v17, %v18632_v13  ;;  %v11514_v54 = vcombine.high %v11504_v55, %v11504_v55  ;;  %v11521_v51 = vrot.slane %v11504_v55, %v18632_v13 }
0x398d   : > { %v11506_v52 = vadd.f32 %v11505_v1, %v11386_v16  ;;  %v11322_v10 = vpop.f32.mrf.mxu0  ;;  %v11507_v0 = vpop.f32.mrf.mxu1 }
0x398e   : > { %v21062_v42 = vcombine.high %v21057_v63, %v21057_v63  ;;  %v11528_v6 = vrot.slane %v11514_v54, %v18632_v13  ;;  %v11529_v61 = vcombine.high %v11521_v51, %v11521_v51  ;;  %v11508_v2 = vadd.f32 %v11507_v0, %v11382_v44 }
0x398f   : > { %v11541_v30 = vcombine.high %v11506_v52, %v11506_v52  ;;  %v11548_v36 = vrot.slane %v11506_v52, %v18632_v13  ;;  %v17355_v24 = vpop.f32.mrf.mxu0  ;;  %v11509_v32 = vpop.f32.mrf.mxu1  ;;  %v21067_v35 = vrot.slane %v11328_v34, %v18632_v13  ;;  %v11323_v31 = vadd.f32 %v16161_v28, %v11322_v10 }
0x3990   : > { %v11602_v39 = vcombine.low %v11521_v51, %v11529_v61  ;;  %v11566_v58 = vcombine.low %v21057_v63, %v21062_v42  ;;  %v11530_v18 = vcombine.high %v11528_v6, %v11528_v6  ;;  %v11616_v27 = vrot.slane %v11528_v6, %v18632_v13 }
0x3991   : > { %v11555_v40 = vrot.slane %v11541_v30, %v18632_v13  ;;  %v11537_v56 = vrot.slane %v11508_v2, %v18632_v13  ;;  %v11510_v21 = vadd.f32 %v11509_v32, %v11386_v16  ;;  %v11556_v12 = vcombine.high %v11548_v36, %v11548_v36 }
0x3992   : > { %v11609_v4 = vrot.slane %v11602_v39, %v18632_v13  ;;  %v21077_v23 = vcombine.high %v21067_v35, %v21067_v35  ;;  %v21080_v38 = vrot.slane %v11323_v31, %v18632_v13  ;;  %v11573_v49 = vrot.slane %v11566_v58, %v18632_v13 }
0x3993   : > { %v11538_v7 = vcombine.high %v11537_v56, %v11537_v56  ;;  %v11618_v22 = vcombine.low %v11530_v18, %v11537_v56  ;;  %v11557_v62 = vcombine.high %v11555_v40, %v11555_v40  ;;  %v11564_v47 = vrot.slane %v11510_v21, %v18632_v13 }
0x3994   : > { %v11617_v8 = vcombine.low %v11609_v4, %v11616_v27  ;;  %v11638_v14 = vcombine.low %v11548_v36, %v11556_v12  ;;  %v11580_v46 = vrot.slane %v21067_v35, %v18632_v13  ;;  %v21096_v43 = vcombine.high %v21080_v38, %v21080_v38 }
0x3995   : > { %v11625_v50 = vrot.slane %v11618_v22, %v18632_v13  ;;  %v11632_v48 = vrot.slane %v11538_v7, %v18632_v13  ;;  %v11565_v20 = vcombine.high %v11564_v47, %v11564_v47  ;;  %v11654_v11 = vcombine.low %v11557_v62, %v11564_v47 }
0x3996   : > { %v21083_v53 = vpack.c.bf16 %v11617_v8, %v11617_v8  ;;  %v11582_v41 = vcombine.low %v21077_v23, %v21080_v38  ;;  %v11581_v15 = vcombine.low %v11573_v49, %v11580_v46  ;;  %v11645_v60 = vrot.slane %v11638_v14, %v18632_v13 }
0x3997   : > { %v11633_v29 = vcombine.low %v11625_v50, %v11632_v48  ;;  %v11661_v19 = vrot.slane %v11654_v11, %v18632_v13  ;;  %v11668_v26 = vrot.slane %v11565_v20, %v18632_v13  ;;  %v11652_v28 = vrot.slane %v11555_v40, %v18632_v13 }
0x3998   : > { %v11678_v45 = vsel %vm1237_vm1, %v21083_v53, 0  ;;  %v21107_v59 = vpack.c.bf16 %v11581_v15, %v11581_v15  ;;  %v11589_v33 = vrot.slane %v11582_v41, %v18632_v13  ;;  %v11596_v16 = vrot.slane %v21096_v43, %v18632_v13 }
0x3999   : > { %17357 = vmatpush3.bf16.xpose.msra.mxu0 %v11678_v45  ;;  %v21101_v37 = vcombine.low %v11661_v19, %v11668_v26  ;;  %v21104_v44 = vpack.c.bf16 %v11633_v29, %v11633_v29  ;;  %v11653_v17 = vcombine.low %v11645_v60, %v11652_v28 }
0x399a   : > { %17362 = vmatprep.subr.bf16.mxu0 %v21924_v25  ;;  %v11597_v9 = vcombine.low %v11589_v33, %v11596_v16 }
0x399b   : > { %v11724_v55 = vsel %vm1237_vm1, %v21104_v44, 0  ;;  %v21119_v1 = vpack.c.bf16 %v11653_v17, %v11653_v17  ;;  %v21149_v49 = vpack.c.bf16 %v21101_v37, %v21101_v37 }
0x399c   : > { %v21121_v34 = vpack.c.bf16 %v11597_v9, %v11597_v9 }
0x399d   : > { %v11796_v54 = vsel %vm3098_vm7, %v21119_v1, 0  ;;  %v11842_v14 = vsel %vm3098_vm7, %v21149_v49, 0 }
0x39a0   : > { %17359 = vmatmul.mubr.msk.bf16.vlgmr.msra.gmra.mxu0 %vm1237_vm1, %v21107_v59 }
0x39a1   : > { %17363 = vmatpush3.bf16.xpose.msra.mxu0 %v11724_v55  ;;  %17364 = vmatprep.mubr.msk.bf16.mxu0 %vm18390_vm0, %v21924_v25 }
0x39a2   : > { %17368 = vmatprep.subr.bf16.mxu0 %v21924_v25 }
0x39a8   : > { %17365 = vmatmul.mubr.msk.bf16.vlgmr.msra.gmra.mxu0 %vm1237_vm1, %v21121_v34 }
0x39a9   : > { %17369 = vmatpush3.bf16.msra.mxu0 %v11796_v54  ;;  %17370 = vmatprep.mubr.msk.bf16.mxu0 %vm18390_vm0, %v21924_v25 }
0x39aa   : > { %17374 = vmatprep.subr.bf16.mxu0 %v21924_v25 }
0x3a60   : > { %v11714_v51 = vpop.f32.mrf.mxu0 }
0x3a61   : > { %v11766_v52 = vmul.f32 0.088388346, %v11714_v51 }
0x3a62   : > { %v17360_v10 = vpop.f32.mrf.mxu0 }
0x3a63   : > { %v11768_v0 = vsel %vm3051_vm9, %v11766_v52, -inf }
0x3a64   : > { %11769 = vmax.xlane.f32.xlu1 %v11768_v0  ;;  %v11717_v6 = vpop.f32.mrf.mxu0 }
0x3a66   : > { %v17361_v61 = vpop.f32.mrf.mxu0 }
0x3a68   : > { %v11760_v30 = vpop.f32.mrf.mxu0 }
0x3a69   : > { %v11767_v36 = vmul.f32 0.088388346, %v11760_v30 }
0x3a6a   : > { %v17366_v2 = vpop.f32.mrf.mxu0 }
0x3a6b   : > { %v11771_v24 = vsel %vm3051_vm9, %v11767_v36, -inf }
0x3a6c   : > { %11772 = vmax.xlane.f32.xlu0 %v11771_v24  ;;  %v11763_v32 = vpop.f32.mrf.mxu0 }
0x3a6e   : > { %v17367_v39 = vpop.f32.mrf.mxu0 }
0x3a75   : > { %11934 = vrot.lane.b32.xlu1 %v21083_v53, %s18391_s28 }
0x3a79   : > { %11931 = vrot.lane.b32.xlu1 %v21107_v59, %s18391_s28 }
0x3a7d   : > { %11983 = vrot.lane.b32.xlu1 %v21121_v34, %s18391_s28 }
0x3aed   : > { %v11770_v58 = vpop.xlane.xlu1 %11769 }
0x3aee   : > { %v11774_v40 = vsub.f32 %v11766_v52, %v11770_v58 }
0x3af0   : > { %v11776_v31 = vmul.f32 1.442695, %v11774_v40 }
0x3af1   : > { %v11935_v18 = vpop.permute.xlu1 %11934 }
0x3af2   : > { %18217 = vpow2.f32 %v11776_v31  ;;  %v11940_v4 = vsel %vm1237_vm1, %v11935_v18, 0 }
0x3af3   : > { %17381 = vmatpush3.bf16.xpose.msra.mxu1 %v11940_v4 }
0x3af4   : > { %17392 = vmatprep.subr.bf16.mxu1 %v21924_v25 }
0x3af5   : > { %v11773_v27 = vpop.xlane.xlu0 %11772  ;;  %v11932_v12 = vpop.permute.xlu1 %11931 }
0x3af6   : > { %v11775_v56 = vsub.f32 %v11767_v36, %v11773_v27 }
0x3af8   : > { %v11778_v21 = vmul.f32 1.442695, %v11775_v56 }
0x3af9   : > { %v11984_v41 = vpop.permute.xlu1 %11983 }
0x3afa   : > { %18219 = vpow2.f32 %v11778_v21  ;;  %17383 = vmatmul.mubr.msk.bf16.vlgmr.msra.gmra.mxu1 %vm1237_vm1, %v11932_v12 }
0x3afb   : > { %17394 = vmatprep.mubr.msk.bf16.mxu1 %vm18390_vm0, %v21924_v25 }
0x3aff   : > { %v18218_v8 = vpop.eup %18217 }
0x3b00   : > { %v11780_v7 = vsel %vm3051_vm9, %v18218_v8, 0.0 }
0x3b01   : > { %11781 = vadd.xlane.f32.xlu0 %v11780_v7 }
0x3b07   : > { %v18220_v22 = vpop.eup %18219 }
0x3b08   : > { %v11783_v62 = vsel %vm3051_vm9, %v18220_v22, 0.0 }
0x3b09   : > { %11784 = vadd.xlane.f32.xlu0 %v11783_v62 }
0x3b1f   : > { %11986 = vrot.lane.b32.xlu0 %v21104_v44, %s18391_s28 }
0x3b8a   : > { %v11782_v47 = vpop.xlane.xlu0 %11781 }
0x3b8b   : > { %18221 = vrcp.f32 %v11782_v47 }
0x3b92   : > { %v11785_v50 = vpop.xlane.xlu0 %11784 }
0x3b93   : > { %18223 = vrcp.f32 %v11785_v50 }
0x3b96   : > { %v11987_v46 = vpop.permute.xlu0 %11986 }
0x3b97   : > { %v11992_v26 = vsel %vm1237_vm1, %v11987_v46, 0 }
0x3b98   : > { %v18222_v48 = vpop.eup %18221 }
0x3b99   : > { %v11788_v20 = vmul.f32 %v18222_v48, %v18218_v8 }
0x3b9b   : > { %v11790_v11 = vpack.c.bf16 %v11788_v20, %v11788_v20 }
0x3b9d   : > { %17371 = vmatmul.mubr.msk.bf16.vlgmr.msra.gmra.mxu0 %vm3047_vm8, %v11790_v11 }
0x3b9e   : > { %17375 = vmatpush3.bf16.msra.mxu0 %v11842_v14  ;;  %17376 = vmatprep.mubr.msk.bf16.mxu0 %vm18390_vm0, %v21924_v25 }
0x3b9f   : > { %17386 = vmatprep.subr.bf16.mxu0 %v21924_v25 }
0x3ba0   : > { %v18224_v29 = vpop.eup %18223 }
0x3ba1   : > { %v11789_v45 = vmul.f32 %v18224_v29, %v18220_v22 }
0x3ba3   : > { %v11791_v19 = vpack.c.bf16 %v11789_v45, %v11789_v45 }
0x3ba5   : > { %17377 = vmatmul.mubr.msk.bf16.vlgmr.msra.gmra.mxu0 %vm3047_vm8, %v11791_v19 }
0x3ba6   : > { %17387 = vmatpush3.bf16.xpose.msra.mxu0 %v11992_v26  ;;  %17388 = vmatprep.mubr.msk.bf16.mxu0 %vm18390_vm0, %v21924_v25 }
0x3ba7   : > { %17398 = vmatprep.subr.bf16.mxu0 %v21924_v25 }
0x3bad   : > { %17389 = vmatmul.mubr.msk.bf16.vlgmr.msra.gmra.mxu0 %vm1237_vm1, %v11984_v41 }
0x3bae   : > { %17400 = vmatprep.mubr.msk.bf16.mxu0 %vm18390_vm0, %v21924_v25 }
0x3bba   : > { %v11976_v15 = vpop.f32.mrf.mxu1 }
0x3bbb   : > { %v12034_v37 = vmul.f32 0.088388346, %v11976_v15 }
0x3bbc   : > { %v17384_v60 = vpop.f32.mrf.mxu1 }
0x3bbd   : > { %v12036_v28 = vsel %vm3051_vm9, %v12034_v37, -inf }
0x3bbe   : > { %12037 = vmax.xlane.f32.xlu1 %v12036_v28  ;;  %v11979_v33 = vpop.f32.mrf.mxu1 }
0x3bc0   : > { %v17385_v16 = vpop.f32.mrf.mxu1 }
0x3bcf   : > { %12061 = vrot.lane.b32.xlu1 %v21119_v1, %s18391_s28 }
0x3bd3   : > { %12218 = vrot.lane.b32.xlu1 %v21083_v53, %s18392_s18 }
0x3bd7   : > { %12268 = vrot.lane.b32.xlu1 %v21104_v44, %s18392_s18 }
0x3bdb   : > { %12216 = vrot.lane.b32.xlu1 %v21107_v59, %s18392_s18 }
0x3c47   : > { %v12038_v17 = vpop.xlane.xlu1 %12037 }
0x3c48   : > { %v12042_v54 = vsub.f32 %v12034_v37, %v12038_v17 }
0x3c4a   : > { %v12044_v10 = vmul.f32 1.442695, %v12042_v54 }
0x3c4b   : > { %v12062_v55 = vpop.permute.xlu1 %12061 }
0x3c4c   : > { %v12067_v9 = vsel %vm3098_vm7, %v12062_v55, 0  ;;  %18225 = vpow2.f32 %v12044_v10 }
0x3c4d   : > { %17393 = vmatpush3.bf16.msra.mxu1 %v12067_v9 }
0x3c4e   : > { %17404 = vmatprep.subr.bf16.mxu1 %v21924_v25 }
0x3c4f   : > { %v12219_v22 = vpop.permute.xlu1 %12218 }
0x3c50   : > { %v12224_v48 = vsel %vm1237_vm1, %v12219_v22, 0 }
0x3c53   : > { %v12269_v20 = vpop.permute.xlu1 %12268 }
0x3c54   : > { %v12274_v41 = vsel %vm1237_vm1, %v12269_v20, 0 }
0x3c57   : > { %v12217_v11 = vpop.permute.xlu1 %12216 }
0x3c59   : > { %v18226_v40 = vpop.eup %18225 }
0x3c5a   : > { %v12048_v4 = vsel %vm3051_vm9, %v18226_v40, 0.0 }
0x3c5d   : > { %v21176_v51 = vpop.f32.mrf.mxu0 }
0x3c5f   : > { %v17372_v52 = vpop.f32.mrf.mxu0 }
0x3c61   : > { %v11835_v0 = vpop.f32.mrf.mxu0 }
0x3c63   : > { %v17373_v6 = vpop.f32.mrf.mxu0 }
0x3c65   : > { %v21178_v61 = vpop.f32.mrf.mxu0 }
0x3c67   : > { %v17378_v30 = vpop.f32.mrf.mxu0 }
0x3c69   : > { %v11881_v36 = vpop.f32.mrf.mxu0 }
0x3c6b   : > { %v17379_v2 = vpop.f32.mrf.mxu0 }
0x3c6d   : > { %v12028_v24 = vpop.f32.mrf.mxu0 }
0x3c6e   : > { %v12035_v32 = vmul.f32 0.088388346, %v12028_v24 }
0x3c6f   : > { %v17390_v39 = vpop.f32.mrf.mxu0 }
0x3c70   : > { %v12039_v58 = vsel %vm3051_vm9, %v12035_v32, -inf }
0x3c71   : > { %12040 = vmax.xlane.f32.xlu0 %v12039_v58  ;;  %v12031_v31 = vpop.f32.mrf.mxu0 }
0x3c73   : > { %v17391_v18 = vpop.f32.mrf.mxu0 }
0x3c75   : > { %12049 = vadd.xlane.f32.xlu0 %v12048_v4 }
0x3cfa   : > { %v12041_v27 = vpop.xlane.xlu0 %12040 }
0x3cfb   : > { %v12043_v56 = vsub.f32 %v12035_v32, %v12041_v27 }
0x3cfd   : > { %v12046_v21 = vmul.f32 1.442695, %v12043_v56 }
0x3cfe   : > { %v12050_v12 = vpop.xlane.xlu0 %12049 }
0x3cff   : > { %18227 = vpow2.f32 %v12046_v21 }
0x3d00   : > { %18229 = vrcp.f32 %v12050_v12 }
0x3d0c   : > { %v18228_v8 = vpop.eup %18227 }
0x3d0d   : > { %v18230_v7 = vpop.eup %18229  ;;  %v12051_v62 = vsel %vm3051_vm9, %v18228_v8, 0.0 }
0x3d0e   : > { %v12056_v47 = vmul.f32 %v18230_v7, %v18226_v40  ;;  %12052 = vadd.xlane.f32.xlu0 %v12051_v62 }
0x3d10   : > { %v12058_v50 = vpack.c.bf16 %v12056_v47, %v12056_v47 }
0x3d12   : > { %17395 = vmatmul.mubr.msk.bf16.vlgmr.msra.gmra.mxu1 %vm3047_vm8, %v12058_v50 }
0x3d13   : > { %17405 = vmatpush3.bf16.xpose.msra.mxu1 %v12224_v48  ;;  %17406 = vmatprep.mubr.msk.bf16.mxu1 %vm18390_vm0, %v21924_v25 }
0x3d14   : > { %17416 = vmatprep.subr.bf16.mxu1 %v21924_v25 }
0x3d1a   : > { %17407 = vmatmul.mubr.msk.bf16.vlgmr.msra.gmra.mxu1 %vm1237_vm1, %v12217_v11 }
0x3d1b   : > { %17418 = vmatprep.mubr.msk.bf16.mxu1 %vm18390_vm0, %v21924_v25 }
0x3d24   : > { %12110 = vrot.lane.b32.xlu0 %v21149_v49, %s18391_s28 }
0x3d28   : > { %12266 = vrot.lane.b32.xlu0 %v21121_v34, %s18392_s18 }
0x3d97   : > { %v12053_v14 = vpop.xlane.xlu0 %12052 }
0x3d98   : > { %18231 = vrcp.f32 %v12053_v14 }
0x3d9b   : > { %v12111_v29 = vpop.permute.xlu0 %12110 }
0x3d9c   : > { %v12116_v45 = vsel %vm3098_vm7, %v12111_v29, 0 }
0x3d9d   : > { %17399 = vmatpush3.bf16.msra.mxu0 %v12116_v45 }
0x3d9e   : > { %17410 = vmatprep.subr.bf16.mxu0 %v21924_v25 }
0x3d9f   : > { %v12267_v15 = vpop.permute.xlu0 %12266 }
0x3da5   : > { %v18232_v46 = vpop.eup %18231 }
0x3da6   : > { %v12057_v19 = vmul.f32 %v18232_v46, %v18228_v8 }
0x3da8   : > { %v12059_v26 = vpack.c.bf16 %v12057_v19, %v12057_v19 }
0x3daa   : > { %17401 = vmatmul.mubr.msk.bf16.vlgmr.msra.gmra.mxu0 %vm3047_vm8, %v12059_v26 }
0x3dab   : > { %17411 = vmatpush3.bf16.xpose.msra.mxu0 %v12274_v41  ;;  %17412 = vmatprep.mubr.msk.bf16.mxu0 %vm18390_vm0, %v21924_v25 }
0x3dac   : > { %17422 = vmatprep.subr.bf16.mxu0 %v21924_v25 }
0x3db2   : > { %17413 = vmatmul.mubr.msk.bf16.vlgmr.msra.gmra.mxu0 %vm1237_vm1, %v12267_v15 }
0x3db3   : > { %17424 = vmatprep.mubr.msk.bf16.mxu0 %vm18390_vm0, %v21924_v25 }
0x3dd2   : > { %v21205_v37 = vpop.f32.mrf.mxu1 }
0x3dd4   : > { %v17396_v60 = vpop.f32.mrf.mxu1 }
0x3dd6   : > { %v12106_v28 = vpop.f32.mrf.mxu1 }
0x3dd8   : > { %v17397_v33 = vpop.f32.mrf.mxu1 }
0x3dda   : > { %v12260_v16 = vpop.f32.mrf.mxu1 }
0x3ddb   : > { %v12316_v17 = vmul.f32 0.088388346, %v12260_v16 }
0x3ddc   : > { %v17408_v55 = vpop.f32.mrf.mxu1 }
0x3ddd   : > { %v12318_v9 = vsel %vm3051_vm9, %v12316_v17, -inf }
0x3dde   : > { %12319 = vmax.xlane.f32.xlu1 %v12318_v9  ;;  %v12263_v54 = vpop.f32.mrf.mxu1 }
0x3de0   : > { %v17409_v52 = vpop.f32.mrf.mxu1 }
0x3def   : > { %12342 = vrot.lane.b32.xlu1 %v21119_v1, %s18392_s18 }
0x3df3   : > { %12498 = vrot.lane.b32.xlu1 %v21083_v53, %s18393_s21 }
0x3df7   : > { %12548 = vrot.lane.b32.xlu1 %v21104_v44, %s18393_s21 }
0x3dfb   : > { %12496 = vrot.lane.b32.xlu1 %v21107_v59, %s18393_s21 }
0x3e67   : > { %v12320_v10 = vpop.xlane.xlu1 %12319 }
0x3e68   : > { %v12324_v0 = vsub.f32 %v12316_v17, %v12320_v10  ;;  %v12167_v10 = vrot.slane %v21205_v37, %v18632_v13 }
0x3e6a   : > { %v12326_v6 = vmul.f32 1.442695, %v12324_v0  ;;  %v21216_v30 = vpop.f32.mrf.mxu0  ;;  %v12175_v0 = vcombine.high %v12167_v10, %v12167_v10 }
0x3e6b   : > { %v12343_v36 = vpop.permute.xlu1 %12342 }
0x3e6c   : > { %18233 = vpow2.f32 %v12326_v6  ;;  %v12348_v2 = vsel %vm3098_vm7, %v12343_v36, 0  ;;  %v17402_v24 = vpop.f32.mrf.mxu0  ;;  %v12160_v6 = vcombine.high %v21205_v37, %v21205_v37 }
0x3e6d   : > { %17417 = vmatpush3.bf16.msra.mxu1 %v12348_v2 }
0x3e6e   : > { %v12155_v32 = vpop.f32.mrf.mxu0  ;;  %17428 = vmatprep.subr.bf16.mxu1 %v21924_v25  ;;  %v12174_v2 = vrot.slane %v12160_v6, %v18632_v13 }
0x3e6f   : > { %v12499_v22 = vpop.permute.xlu1 %12498 }
0x3e70   : > { %v17403_v53 = vpop.f32.mrf.mxu0  ;;  %v12504_v48 = vsel %vm1237_vm1, %v12499_v22, 0 }
0x3e72   : > { %v12310_v39 = vpop.f32.mrf.mxu0 }
0x3e73   : > { %v12317_v44 = vmul.f32 0.088388346, %v12310_v39  ;;  %v12549_v20 = vpop.permute.xlu1 %12548 }
0x3e74   : > { %v17414_v58 = vpop.f32.mrf.mxu0  ;;  %v12554_v41 = vsel %vm1237_vm1, %v12549_v20, 0 }
0x3e75   : > { %v12321_v59 = vsel %vm3051_vm9, %v12317_v44, -inf }
0x3e76   : > { %12322 = vmax.xlane.f32.xlu0 %v12321_v59  ;;  %v12313_v40 = vpop.f32.mrf.mxu0 }
0x3e77   : > { %v12497_v11 = vpop.permute.xlu1 %12496 }
0x3e78   : > { %v17415_v31 = vpop.f32.mrf.mxu0 }
0x3e79   : > { %v18234_v18 = vpop.eup %18233 }
0x3e7a   : > { %v12330_v4 = vsel %vm3051_vm9, %v18234_v18, 0.0 }
0x3e7b   : > { %12331 = vadd.xlane.f32.xlu0 %v12330_v4 }
0x3eff   : > { %v12323_v27 = vpop.xlane.xlu0 %12322 }
0x3f00   : > { %v12325_v56 = vsub.f32 %v12317_v44, %v12323_v27 }
0x3f02   : > { %v12328_v21 = vmul.f32 1.442695, %v12325_v56 }
0x3f04   : > { %18235 = vpow2.f32 %v12328_v21  ;;  %v12332_v12 = vpop.xlane.xlu0 %12331 }
0x3f05   : > { %18237 = vrcp.f32 %v12332_v12 }
0x3f11   : > { %v18236_v8 = vpop.eup %18235 }
0x3f12   : > { %v18238_v7 = vpop.eup %18237  ;;  %v12333_v62 = vsel %vm3051_vm9, %v18236_v8, 0.0 }
0x3f13   : > { %v12338_v47 = vmul.f32 %v18238_v7, %v18234_v18  ;;  %12334 = vadd.xlane.f32.xlu0 %v12333_v62 }
0x3f15   : > { %v12340_v50 = vpack.c.bf16 %v12338_v47, %v12338_v47 }
0x3f17   : > { %17419 = vmatmul.mubr.msk.bf16.vlgmr.msra.gmra.mxu1 %vm3047_vm8, %v12340_v50 }
0x3f18   : > { %17429 = vmatpush3.bf16.xpose.msra.mxu1 %v12504_v48  ;;  %17430 = vmatprep.mubr.msk.bf16.mxu1 %vm18390_vm0, %v21924_v25 }
0x3f19   : > { %17440 = vmatprep.subr.bf16.mxu1 %v21924_v25 }
0x3f1f   : > { %17431 = vmatmul.mubr.msk.bf16.vlgmr.msra.gmra.mxu1 %vm1237_vm1, %v12497_v11 }
0x3f20   : > { %17442 = vmatprep.mubr.msk.bf16.mxu1 %vm18390_vm0, %v21924_v25 }
0x3f29   : > { %12390 = vrot.lane.b32.xlu0 %v21149_v49, %s18392_s18 }
0x3f2d   : > { %12546 = vrot.lane.b32.xlu0 %v21121_v34, %s18393_s21 }
0x3f9c   : > { %v12335_v14 = vpop.xlane.xlu0 %12334 }
0x3f9d   : > { %18239 = vrcp.f32 %v12335_v14 }
0x3fa0   : > { %v12391_v29 = vpop.permute.xlu0 %12390 }
0x3fa1   : > { %v12396_v45 = vsel %vm3098_vm7, %v12391_v29, 0 }
0x3fa2   : > { %17423 = vmatpush3.bf16.msra.mxu0 %v12396_v45 }
0x3fa3   : > { %17434 = vmatprep.subr.bf16.mxu0 %v21924_v25 }
0x3fa4   : > { %v12547_v34 = vpop.permute.xlu0 %12546 }
0x3faa   : > { %v18240_v46 = vpop.eup %18239 }
0x3fab   : > { %v12339_v19 = vmul.f32 %v18240_v46, %v18236_v8 }
0x3fad   : > { %v12341_v26 = vpack.c.bf16 %v12339_v19, %v12339_v19 }
0x3faf   : > { %17425 = vmatmul.mubr.msk.bf16.vlgmr.msra.gmra.mxu0 %vm3047_vm8, %v12341_v26 }
0x3fb0   : > { %17435 = vmatpush3.bf16.xpose.msra.mxu0 %v12554_v41  ;;  %17436 = vmatprep.mubr.msk.bf16.mxu0 %vm18390_vm0, %v21924_v25 }
0x3fb1   : > { %17446 = vmatprep.subr.bf16.mxu0 %v21924_v25 }
0x3fb7   : > { %17437 = vmatmul.mubr.msk.bf16.vlgmr.msra.gmra.mxu0 %vm1237_vm1, %v12547_v34 }
0x3fb8   : > { %17448 = vmatprep.mubr.msk.bf16.mxu0 %vm18390_vm0, %v21924_v25 }
0x3fd7   : > { %v21245_v15 = vpop.f32.mrf.mxu1 }
0x3fd8   : > { %v12447_v36 = vrot.slane %v21245_v15, %v18632_v13 }
0x3fd9   : > { %v17420_v60 = vpop.f32.mrf.mxu1 }
0x3fda   : > { %v12455_v45 = vcombine.high %v12447_v36, %v12447_v36 }
0x3fdb   : > { %v12387_v28 = vpop.f32.mrf.mxu1 }
0x3fdc   : > { %v12440_v28 = vcombine.high %v21245_v15, %v21245_v15  ;;  %v12176_v15 = vcombine.high %v21216_v30, %v21216_v30 }
0x3fdd   : > { %v17421_v33 = vpop.f32.mrf.mxu1 }
0x3fde   : > { %v12190_v6 = vrot.slane %v12176_v15, %v18632_v13 }
0x3fdf   : > { %v12540_v16 = vpop.f32.mrf.mxu1 }
0x3fe0   : > { %v12596_v17 = vmul.f32 0.088388346, %v12540_v16 }
0x3fe1   : > { %v17432_v55 = vpop.f32.mrf.mxu1 }
0x3fe2   : > { %v12598_v9 = vsel %vm3051_vm9, %v12596_v17, -inf }
0x3fe3   : > { %12599 = vmax.xlane.f32.xlu1 %v12598_v9  ;;  %v12543_v54 = vpop.f32.mrf.mxu1  ;;  %v12454_v9 = vrot.slane %v12440_v28, %v18632_v13 }
0x3fe5   : > { %v17433_v52 = vpop.f32.mrf.mxu1 }
0x3ff4   : > { %12622 = vrot.lane.b32.xlu1 %v21119_v1, %s18393_s21  ;;  %v12183_v1 = vrot.slane %v21216_v30, %v18632_v13  ;;  %v17937_v30 = vld [vmem:[%s18608_s24 + $0x178] sm:$0xff]  }
0x3ff6   : > { %v12191_v24 = vcombine.high %v12183_v1, %v12183_v1 }
0x3ff8   : > { %12192 = vrot.lane.b32.xlu1 %v12167_v10, %s18393_s21 }
0x3ffc   : > { %12194 = vrot.lane.b32.xlu1 %v12175_v0, %s18393_s21 }
0x4000   : > { %12472 = vrot.lane.b32.xlu1 %v12447_v36, %s18392_s18 }
0x4004   : > { %12196 = vrot.lane.b32.xlu1 %v12174_v2, %s18393_s21  ;;  %v17938_v2 = vld [vmem:[%s18608_s24 + $0x170] sm:$0xff]  }
0x4008   : > { %12200 = vrot.lane.b32.xlu1 %v12191_v24, %s18393_s21  ;;  %v17940_v24 = vld [vmem:[%s18608_s24 + $0x160] sm:$0xff]  }
0x406c   : > { %v12600_v32 = vpop.xlane.xlu1 %12599 }
0x406d   : > { %v12604_v53 = vsub.f32 %v12596_v17, %v12600_v32 }
0x406f   : > { %v12606_v39 = vmul.f32 1.442695, %v12604_v53  ;;  %v21264_v44 = vpop.f32.mrf.mxu0 }
0x4070   : > { %v12623_v37 = vpop.permute.xlu1 %12622  ;;  %v12463_v54 = vrot.slane %v21264_v44, %v18632_v13  ;;  %v12456_v53 = vcombine.high %v21264_v44, %v21264_v44  ;;  %v17942_v44 = vld [vmem:[%s18608_s24 + $0x150] sm:$0xff]  }
0x4071   : > { %18241 = vpow2.f32 %v12606_v39  ;;  %v12628_v58 = vsel %vm3098_vm7, %v12623_v37, 0  ;;  %v17426_v59 = vpop.f32.mrf.mxu0  ;;  %v17941_v37 = vld [vmem:[%s18608_s24 + $0x158] sm:$0xff]  }
0x4072   : > { %17441 = vmatpush3.bf16.msra.mxu1 %v12628_v58  ;;  %v12471_v10 = vcombine.high %v12463_v54, %v12463_v54 }
0x4073   : > { %v12435_v40 = vpop.f32.mrf.mxu0  ;;  %17452 = vmatprep.subr.bf16.mxu1 %v21924_v25 }
0x4075   : > { %v17427_v31 = vpop.f32.mrf.mxu0 }
0x4077   : > { %v12590_v18 = vpop.f32.mrf.mxu0 }
0x4078   : > { %v12597_v4 = vmul.f32 0.088388346, %v12590_v18  ;;  %v12470_v18 = vrot.slane %v12456_v53, %v18632_v13 }
0x4079   : > { %v17438_v27 = vpop.f32.mrf.mxu0 }
0x407a   : > { %v12601_v56 = vsel %vm3051_vm9, %v12597_v4, -inf }
0x407b   : > { %12602 = vmax.xlane.f32.xlu0 %v12601_v56  ;;  %v12593_v21 = vpop.f32.mrf.mxu0  ;;  %v17943_v56 = vld [vmem:[%s18608_s24 + $0x148] sm:$0xff]  }
0x407c   : > { %v17944_v21 = vld [vmem:[%s18608_s24 + $0x140] sm:$0xff]  }
0x407d   : > { %v17439_v12 = vpop.f32.mrf.mxu0 }
0x407e   : > { %v18242_v8 = vpop.eup %18241  ;;  %v17947_v12 = vld [vmem:[%s18602_s25 + $0x374] ss:$8 sps:$4 sm:$0xff]  }
0x407f   : > { %v12610_v7 = vsel %vm3051_vm9, %v18242_v8, 0.0 }
0x4080   : > { %12611 = vadd.xlane.f32.xlu0 %v12610_v7  ;;  %v17952_v7 = vld [vmem:[%s18648_s20 + $0x1b0] sm:$0xff]  }
0x4104   : > { %v12603_v22 = vpop.xlane.xlu0 %12602 }
0x4105   : > { %v12605_v62 = vsub.f32 %v12597_v4, %v12603_v22  ;;  %v17956_v22 = vld [vmem:[%s18648_s20 + $0x1a8] sm:$0xff]  }
0x4107   : > { %v12608_v47 = vmul.f32 1.442695, %v12605_v62  ;;  %v12193_v62 = vpop.permute.xlu1 %12192 }
0x4109   : > { %18243 = vpow2.f32 %v12608_v47  ;;  %v12612_v50 = vpop.xlane.xlu0 %12611 }
0x410a   : > { %18245 = vrcp.f32 %v12612_v50 }
0x410b   : > { %v12195_v50 = vpop.permute.xlu1 %12194 }
0x4116   : > { %v18244_v48 = vpop.eup %18243 }
0x4117   : > { %v18246_v20 = vpop.eup %18245  ;;  %v12613_v11 = vsel %vm3051_vm9, %v18244_v48, 0.0 }
0x4118   : > { %v12618_v14 = vmul.f32 %v18246_v20, %v18242_v8  ;;  %12614 = vadd.xlane.f32.xlu0 %v12613_v11  ;;  %v17948_v8 = vld [vmem:[%s18648_s20 + $0x1b8] sm:$0xff]   ;;  %v12473_v20 = vpop.permute.xlu1 %12472 }
0x4119   : > { %v12490_v15 = vadd.f32 %v12473_v20, %v21057_v63 }
0x411a   : > { %v12620_v29 = vpack.c.bf16 %v12618_v14, %v12618_v14 }
0x411c   : > { %17443 = vmatmul.mubr.msk.bf16.vlgmr.msra.gmra.mxu1 %vm3047_vm8, %v12620_v29  ;;  %v12197_v14 = vpop.permute.xlu1 %12196 }
0x411d   : > { %17468 = vmatprep.mubr.msk.bf16.mxu1 %vm18390_vm0, %v21924_v25  ;;  %17453 = vmatpush3.bf16.msra.mxu1 %v17937_v30 }
0x411e   : > { %17454 = vmatprep.subr.bf16.mxu1 %v21924_v25 }
0x4121   : > { %17455 = vmatpush3.bf16.msra.mxu1 %v17938_v2 }
0x4122   : > { %17456 = vmatprep.subr.bf16.mxu1 %v21924_v25 }
0x412e   : > { %12670 = vrot.lane.b32.xlu0 %v21149_v49, %s18393_s21 }
0x4132   : > { %12474 = vrot.lane.b32.xlu0 %v12455_v45, %s18392_s18  ;;  %v11893_v45 = vrot.slane %v21176_v51, %v18632_v13 }
0x4136   : > { %12198 = vrot.lane.b32.xlu0 %v12183_v1, %s18393_s21  ;;  %v17939_v1 = vld [vmem:[%s18608_s24 + $0x168] sm:$0xff]  }
0x4137   : > { %17457 = vmatpush3.bf16.msra.mxu1 %v17939_v1 }
0x4138   : > { %17458 = vmatprep.subr.bf16.mxu1 %v21924_v25 }
0x413b   : > { %17459 = vmatpush3.bf16.msra.mxu1 %v17940_v24 }
0x413c   : > { %17460 = vmatprep.subr.bf16.mxu1 %v21924_v25 }
0x413f   : > { %17461 = vmatpush3.bf16.msra.mxu1 %v17941_v37 }
0x4140   : > { %17462 = vmatprep.subr.bf16.mxu1 %v21924_v25 }
0x4143   : > { %17463 = vmatpush3.bf16.msra.mxu1 %v17942_v44 }
0x4144   : > { %17464 = vmatprep.subr.bf16.mxu1 %v21924_v25 }
0x4147   : > { %17465 = vmatpush3.bf16.msra.mxu1 %v17943_v56 }
0x4148   : > { %17466 = vmatprep.subr.bf16.mxu1 %v21924_v25 }
0x414b   : > { %17467 = vmatpush3.bf16.msra.mxu1 %v17944_v21 }
0x414c   : > { %13456 = vmatprep.subr.bf16.mxu1 %v17947_v12 }
0x41a1   : > { %v12615_v46 = vpop.xlane.xlu0 %12614 }
0x41a2   : > { %18247 = vrcp.f32 %v12615_v46  ;;  %v12201_v46 = vpop.permute.xlu1 %12200 }
0x41a3   : > { %v12214_v56 = vadd.f32 %v12201_v46, %v21080_v38 }
0x41a5   : > { %v12671_v19 = vpop.permute.xlu0 %12670 }
0x41a6   : > { %v12676_v26 = vsel %vm3098_vm7, %v12671_v19, 0 }
0x41a7   : > { %17447 = vmatpush3.bf16.msra.mxu0 %v12676_v26  ;;  %v11901_v26 = vcombine.high %v11893_v45, %v11893_v45 }
0x41a8   : > { %17472 = vmatprep.subr.bf16.mxu0 %v21924_v25 }
0x41a9   : > { %v12475_v47 = vpop.permute.xlu0 %12474 }
0x41af   : > { %v18248_v41 = vpop.eup %18247 }
0x41b0   : > { %v12619_v34 = vmul.f32 %v18248_v41, %v18244_v48  ;;  %v12199_v48 = vpop.permute.xlu0 %12198 }
0x41b2   : > { %v12621_v60 = vpack.c.bf16 %v12619_v34, %v12619_v34  ;;  %v11886_v34 = vcombine.high %v21176_v51, %v21176_v51 }
0x41b4   : > { %17449 = vmatmul.mubr.msk.bf16.vlgmr.msra.gmra.mxu0 %vm3047_vm8, %v12621_v60  ;;  %v11925_v60 = vadd.f32 %v11901_v26, %v21062_v42  ;;  %v11900_v28 = vrot.slane %v11886_v34, %v18632_v13 }
0x41b5   : > { %17488 = vmatprep.mubr.msk.bf16.mxu0 %vm18390_vm0, %v21924_v25  ;;  %17473 = vmatpush3.bf16.msra.mxu0 %v17948_v8 }
0x41b6   : > { %17474 = vmatprep.subr.bf16.mxu0 %v21924_v25  ;;  %v11926_v24 = vadd.f32 %v11900_v28, %v21067_v35 }
0x41b9   : > { %17475 = vmatpush3.bf16.msra.mxu0 %v17952_v7 }
0x41ba   : > { %17476 = vmatprep.subr.bf16.mxu0 %v21924_v25 }
0x41bd   : > { %17477 = vmatpush3.bf16.msra.mxu0 %v17956_v22 }
0x41be   : > { %17478 = vmatprep.subr.bf16.mxu0 %v21924_v25 }
0x41dc   : > { %v12664_v49 = vpop.f32.mrf.mxu1 }
0x41dd   : > { %v12727_v33 = vrot.slane %v12664_v49, %v18632_v13  ;;  %v12720_v0 = vcombine.high %v12664_v49, %v12664_v49  ;;  %v12211_v49 = vadd.f32 %v12195_v50, %v21062_v42 }
0x41de   : > { %v17444_v16 = vpop.f32.mrf.mxu1 }
0x41df   : > { %v12735_v17 = vcombine.high %v12727_v33, %v12727_v33  ;;  %12752 = vrot.lane.b32.xlu0 %v12727_v33, %s18391_s28  ;;  %v12734_v36 = vrot.slane %v12720_v0, %v18632_v13  ;;  %v11909_v33 = vrot.slane %v21178_v61, %v18632_v13  ;;  %v12491_v16 = vadd.f32 %v12475_v47, %v21062_v42 }
0x41e0   : > { %v12667_v55 = vpop.f32.mrf.mxu1 }
0x41e1   : > { %12754 = vrot.lane.b32.xlu1 %v12735_v17, %s18391_s28  ;;  %v11924_v55 = vadd.f32 %v11893_v45, %v21057_v63  ;;  %v11917_v2 = vcombine.high %v11909_v33, %v11909_v33  ;;  %v12862_v1 = vcombine.low %v12490_v15, %v12491_v16 }
0x41e2   : > { %v17445_v52 = vpop.f32.mrf.mxu1 }
0x41e3   : > { %12476 = vrot.lane.b32.xlu0 %v12454_v9, %s18392_s18  ;;  %v12210_v9 = vadd.f32 %v12193_v62, %v21057_v63  ;;  %v12782_v0 = vcombine.low %v11924_v55, %v11925_v60 }
0x41e5   : > { %12478 = vrot.lane.b32.xlu1 %v12463_v54, %s18392_s18  ;;  %v12212_v54 = vadd.f32 %v12197_v14, %v21067_v35  ;;  %v12789_v37 = vrot.slane %v12782_v0, %v18632_v13 }
0x41e7   : > { %12480 = vrot.lane.b32.xlu0 %v12471_v10, %s18392_s18 }
0x41e9   : > { %12202 = vrot.lane.b32.xlu1 %v12190_v6, %s18393_s21  ;;  %v12822_v6 = vcombine.low %v12210_v9, %v12211_v49 }
0x41eb   : > { %12756 = vrot.lane.b32.xlu0 %v12734_v36, %s18391_s28 }
0x4251   : > { %v12753_v11 = vpop.permute.xlu0 %12752 }
0x4252   : > { %v12770_v36 = vadd.f32 %v12753_v11, %v21057_v63 }
0x4253   : > { %v12755_v41 = vpop.permute.xlu1 %12754 }
0x4254   : > { %v12771_v51 = vadd.f32 %v12755_v41, %v21062_v42  ;;  %v12836_v42 = vrot.slane %v12212_v54, %v18632_v13 }
0x4255   : > { %v12477_v29 = vpop.permute.xlu0 %12476 }
0x4256   : > { %v12492_v10 = vadd.f32 %v12477_v29, %v21067_v35  ;;  %v12902_v53 = vcombine.low %v12770_v36, %v12771_v51 }
0x4257   : > { %v12479_v52 = vpop.permute.xlu1 %12478 }
0x4258   : > { %v12493_v20 = vadd.f32 %v12479_v52, %v21077_v23 }
0x4259   : > { %v12481_v19 = vpop.permute.xlu0 %12480 }
0x425a   : > { %v12494_v7 = vadd.f32 %v12481_v19, %v21080_v38 }
0x425c   : > { %v12878_v46 = vcombine.low %v12493_v20, %v12494_v7  ;;  %v17964_v7 = vld [vmem:[%s18648_s20 + $0x198] sm:$0xff]   ;;  %v17972_v20 = vld [vmem:[%s18648_s20 + $0x188] sm:$0xff]  }
0x425d   : > { %v12757_v17 = vpop.permute.xlu0 %12756 }
0x425e   : > { %v12772_v30 = vadd.f32 %v12757_v17, %v21067_v35  ;;  %v12213_v35 = vadd.f32 %v12199_v48, %v21077_v23  ;;  %v12885_v54 = vrot.slane %v12878_v46, %v18632_v13 }
0x4260   : > { %v12916_v63 = vrot.slane %v12772_v30, %v18632_v13  ;;  %v12838_v47 = vcombine.low %v12213_v35, %v12214_v56  ;;  %v17945_v35 = vld [vmem:[%s18602_s25 + $0x370] ss:$8 sps:$4 sm:$0xff]   ;;  %v17959_v56 = vld [vmem:[%s18602_s25 + $0x344] ss:$8 sps:$4 sm:$0xff]  }
0x4262   : > { %v12845_v60 = vrot.slane %v12838_v47, %v18632_v13  ;;  %v17968_v47 = vld [vmem:[%s18648_s20 + $0x190] sm:$0xff]  }
0x4274   : > { %v12712_v32 = vpop.f32.mrf.mxu0 }
0x4275   : > { %v12743_v39 = vrot.slane %v12712_v32, %v18632_v13  ;;  %v12736_v59 = vcombine.high %v12712_v32, %v12712_v32  ;;  %v11902_v32 = vcombine.high %v21178_v61, %v21178_v61  ;;  %v12796_v61 = vrot.slane %v11926_v24, %v18632_v13 }
0x4276   : > { %v17450_v58 = vpop.f32.mrf.mxu0 }
0x4277   : > { %v12751_v40 = vcombine.high %v12743_v39, %v12743_v39  ;;  %12758 = vrot.lane.b32.xlu1 %v12743_v39, %s18391_s28  ;;  %v12750_v27 = vrot.slane %v12736_v59, %v18632_v13  ;;  %v12876_v39 = vrot.slane %v12492_v10, %v18632_v13  ;;  %v12829_v58 = vrot.slane %v12822_v6, %v18632_v13  ;;  %v12203_v59 = vpop.permute.xlu1 %12202 }
0x4278   : > { %v12715_v31 = vpop.f32.mrf.mxu0  ;;  %v12215_v12 = vadd.f32 %v12203_v59, %v21096_v43  ;;  %v12797_v8 = vcombine.low %v12789_v37, %v12796_v61 }
0x4279   : > { %12760 = vrot.lane.b32.xlu0 %v12751_v40, %s18391_s28  ;;  %v11928_v40 = vadd.f32 %v11917_v2, %v21080_v38  ;;  %v12869_v31 = vrot.slane %v12862_v1, %v18632_v13  ;;  %v12837_v44 = vcombine.low %v12829_v58, %v12836_v42 }
0x427a   : > { %v17451_v4 = vpop.f32.mrf.mxu0  ;;  %v12852_v29 = vrot.slane %v12215_v12, %v18632_v13  ;;  %v17960_v12 = vld [vmem:[%s18648_s20 + $0x1a0] sm:$0xff]  }
0x427b   : > { %12482 = vrot.lane.b32.xlu1 %v12470_v18, %s18392_s18  ;;  %v11916_v18 = vrot.slane %v11902_v32, %v18632_v13  ;;  %v12909_v4 = vrot.slane %v12902_v53, %v18632_v13  ;;  %v12877_v21 = vcombine.low %v12869_v31, %v12876_v39  ;;  %v12936_v48 = vsel %vm1237_vm1, %v12797_v8, %v12837_v44  ;;  %v17949_v44 = vld [vmem:[%s18602_s25 + $0x360] ss:$8 sps:$4 sm:$0xff]   ;;  %v17961_v8 = vld [vmem:[%s18602_s25 + $0x330] ss:$8 sps:$4 sm:$0xff]  }
0x427c   : > { %v12853_v17 = vcombine.low %v12845_v60, %v12852_v29  ;;  %17479 = vmatpush3.bf16.msra.mxu0 %v17960_v12  ;;  %v17976_v29 = vld [vmem:[%s18648_s20 + $0x180] sm:$0xff]   ;;  %s659_s20 = scalar_lea.vmem %s21896_s9, %s18618_s14 }
0x427d   : > { %12762 = vrot.lane.b32.xlu0 %v12750_v27, %s18391_s28  ;;  %v11927_v27 = vadd.f32 %v11909_v33, %v21077_v23  ;;  %v12917_v22 = vcombine.low %v12909_v4, %v12916_v63  ;;  %v11929_v11 = vadd.f32 %v11916_v18, %v21096_v43  ;;  %v12938_v14 = vsel %vm2138_vm5, %v12936_v48, %v12877_v21  ;;  %v17951_v18 = vld [vmem:[%s18602_s25 + $0x364] ss:$8 sps:$4 sm:$0xff]   ;;  %v17955_v4 = vld [vmem:[%s18602_s25 + $0x354] ss:$8 sps:$4 sm:$0xff]   ;;  %v17957_v21 = vld [vmem:[%s18602_s25 + $0x340] ss:$8 sps:$4 sm:$0xff]  }
0x427e   : > { %17480 = vmatprep.subr.bf16.mxu0 %v21924_v25  ;;  %v17969_v48 = vld [vmem:[%s18602_s25 + $0x310] ss:$8 sps:$4 sm:$0xff]  }
0x427f   : > { %v12798_v62 = vcombine.low %v11927_v27, %v11928_v40  ;;  %v12940_v26 = vsel %vm2141_vm6, %v12938_v14, %v12917_v22  ;;  %v12812_v16 = vrot.slane %v11929_v11, %v18632_v13  ;;  %v17953_v27 = vld [vmem:[%s18602_s25 + $0x350] ss:$8 sps:$4 sm:$0xff]   ;;  %v17967_v22 = vld [vmem:[%s18602_s25 + $0x324] ss:$8 sps:$4 sm:$0xff]   ;;  %v17973_v11 = vld [vmem:[%s18602_s25 + $0x300] ss:$8 sps:$4 sm:$0xff]  }
0x4280   : > { %v21380_v55 = vrot.slane %v12940_v26, %v18632_v13  ;;  %v12944_v6 = vcombine.high %v12940_v26, %v12940_v26  ;;  %17481 = vmatpush3.bf16.msra.mxu0 %v17964_v7  ;;  %v17975_v14 = vld [vmem:[%s18602_s25 + $0x304] ss:$8 sps:$4 sm:$0xff]  }
0x4281   : > { %v12805_v34 = vrot.slane %v12798_v62, %v18632_v13  ;;  %17482 = vmatprep.subr.bf16.mxu0 %v21924_v25  ;;  %v17965_v62 = vld [vmem:[%s18602_s25 + $0x320] ss:$8 sps:$4 sm:$0xff]  }
0x4282   : > { %v21390_v36 = vcombine.high %v21380_v55, %v21380_v55  ;;  %v21395_v1 = vrot.slane %v12944_v6, %v18632_v13 }
0x4283   : > { %v12813_v51 = vcombine.low %v12805_v34, %v12812_v16 }
0x4284   : > { %v12982_v24 = vcombine.low %v21380_v55, %v21390_v36  ;;  %17483 = vmatpush3.bf16.msra.mxu0 %v17968_v47 }
0x4285   : > { %v12937_v0 = vsel %vm1237_vm1, %v12813_v51, %v12853_v17  ;;  %17484 = vmatprep.subr.bf16.mxu0 %v21924_v25 }
0x4286   : > { %v12990_v59 = vrot.slane %v12982_v24, %v18632_v13 }
0x4288   : > { %17485 = vmatpush3.bf16.msra.mxu0 %v17972_v20 }
0x4289   : > { %17486 = vmatprep.subr.bf16.mxu0 %v21924_v25 }
0x428c   : > { %17487 = vmatpush3.bf16.msra.mxu0 %v17976_v29 }
0x428d   : > { %17492 = vmatprep.subr.bf16.mxu0 %v21924_v25 }
0x42e9   : > { %v12759_v50 = vpop.permute.xlu1 %12758 }
0x42ea   : > { %v12773_v19 = vadd.f32 %v12759_v50, %v21077_v23  ;;  %v17971_v50 = vld [vmem:[%s18602_s25 + $0x314] ss:$8 sps:$4 sm:$0xff]  }
0x42eb   : > { %v12761_v45 = vpop.permute.xlu0 %12760 }
0x42ec   : > { %v12774_v41 = vadd.f32 %v12761_v45, %v21080_v38  ;;  %v16236_v45 = vld [vmem:[%s19002_s23 + $0x5] ss:$0 sm:$0xff] }
0x42ed   : > { %v12483_v49 = vpop.permute.xlu1 %12482 }
0x42ee   : > { %v12918_v28 = vcombine.low %v12773_v19, %v12774_v41  ;;  %v12495_v33 = vadd.f32 %v12483_v49, %v21096_v43 }
0x42ef   : > { %v12763_v9 = vpop.permute.xlu0 %12762 }
0x42f0   : > { %v12892_v23 = vrot.slane %v12495_v33, %v18632_v13  ;;  %v12775_v38 = vadd.f32 %v12763_v9, %v21096_v43  ;;  %v12925_v52 = vrot.slane %v12918_v28, %v18632_v13 }
0x42f2   : > { %v12893_v15 = vcombine.low %v12885_v54, %v12892_v23  ;;  %v12932_v10 = vrot.slane %v12775_v38, %v18632_v13 }
0x42f4   : > { %v12939_v30 = vsel %vm2138_vm5, %v12937_v0, %v12893_v15  ;;  %v12933_v2 = vcombine.low %v12925_v52, %v12932_v10 }
0x42f6   : > { %v12941_v43 = vsel %vm2141_vm6, %v12939_v30, %v12933_v2 }
0x42f7   : > { %v12960_v32 = vcombine.high %v12941_v43, %v12941_v43  ;;  %v21400_v42 = vrot.slane %v12941_v43, %v18632_v13 }
0x42f9   : > { %v21403_v53 = vrot.slane %v12960_v32, %v18632_v13  ;;  %v21407_v39 = vcombine.high %v21400_v42, %v21400_v42  ;;  %v12983_v37 = vcombine.low %v21395_v1, %v21400_v42 }
0x42fb   : > { %v12999_v58 = vcombine.low %v21407_v39, %v21403_v53  ;;  %v12997_v63 = vrot.slane %v12983_v37, %v18632_v13 }
0x42fd   : > { %v12998_v40 = vcombine.low %v12990_v59, %v12997_v63  ;;  %v13006_v31 = vrot.slane %v12999_v58, %v18632_v13 }
0x42ff   : > { %v13009_v61 = vpack.c.bf16 %v13006_v31, %v12998_v40 }
0x4301   : > { %17469 = vmatmul.mubr.bf16.vlgmr.msra.gmra.mxu1 %v13009_v61 }
0x4302   : > { %13457 = vmatpush1.bf16.msra.mxu1 %v17945_v35  ;;  %13488 = vmatprep.mubr.bf16.mxu1 %v21925_v57  ;;  %v17963_v57 = vld [vmem:[%s18602_s25 + $0x334] ss:$8 sps:$4 sm:$0xff]  }
0x4303   : > { %13458 = vmatprep.subr.bf16.mxu1 %v17951_v18 }
0x4306   : > { %13459 = vmatpush1.bf16.msra.mxu1 %v17949_v44 }
0x4307   : > { %13460 = vmatprep.subr.bf16.mxu1 %v17955_v4 }
0x430a   : > { %13461 = vmatpush1.bf16.msra.mxu1 %v17953_v27 }
0x430b   : > { %13462 = vmatprep.subr.bf16.mxu1 %v17959_v56 }
0x430e   : > { %13463 = vmatpush1.bf16.msra.mxu1 %v17957_v21 }
0x430f   : > { %13464 = vmatprep.subr.bf16.mxu1 %v17963_v57 }
0x4312   : > { %13465 = vmatpush1.bf16.msra.mxu1 %v17961_v8 }
0x4313   : > { %13466 = vmatprep.subr.bf16.mxu1 %v17967_v22 }
0x4316   : > { %13467 = vmatpush1.bf16.msra.mxu1 %v17965_v62 }
0x4317   : > { %13468 = vmatprep.subr.bf16.mxu1 %v17971_v50 }
0x431a   : > { %13469 = vmatpush1.bf16.msra.mxu1 %v17969_v48 }
0x431b   : > { %13470 = vmatprep.subr.bf16.mxu1 %v17975_v14 }
0x431e   : > { %13471 = vmatpush1.bf16.msra.mxu1 %v17973_v11 }
0x431f   : > { %17516 = vmatprep.subr.bf16.mxu1 %v21924_v25 }
0x43c1   : > { %v13117_v46 = vpop.f32.mrf.mxu1 }
0x43c2   : > { %v13118_v26 = vadd.f32 %v16236_v45, %v13117_v46 }
0x43c3   : > { %v17470_v19 = vpop.f32.mrf.mxu1 }
0x43c4   : > { %v13124_v41 = vmax.f32 %v13118_v26, 0.0 }
0x43c5   : > { %v13120_v34 = vpop.f32.mrf.mxu1 }
0x43c6   : > { %v13128_v60 = vcombine.high %v13124_v41, %v13124_v41  ;;  %v13135_v49 = vrot.slane %v13124_v41, %v18632_v13  ;;  %v13121_v28 = vadd.f32 %v16236_v45, %v13120_v34 }
0x43c7   : > { %v17471_v33 = vpop.f32.mrf.mxu1 }
0x43c8   : > { %v13142_v16 = vrot.slane %v13128_v60, %v18632_v13  ;;  %v13143_v17 = vcombine.high %v13135_v49, %v13135_v49  ;;  %v13125_v9 = vmax.f32 %v13121_v28, 0.0  ;;  %v13159_v23 = vadd.f32 %v13135_v49, %v21380_v55 }
0x43ca   : > { %v13144_v54 = vcombine.high %v13142_v16, %v13142_v16  ;;  %v13160_v38 = vadd.f32 %v13143_v17, %v21390_v36  ;;  %v13151_v51 = vrot.slane %v13125_v9, %v18632_v13  ;;  %v13161_v52 = vadd.f32 %v13142_v16, %v21395_v1 }
0x43cc   : > { %v13162_v15 = vadd.f32 %v13144_v54, %v21400_v42  ;;  %v13171_v10 = vcombine.low %v13159_v23, %v13160_v38  ;;  %v13152_v0 = vcombine.high %v13151_v51, %v13151_v51  ;;  %v13163_v30 = vadd.f32 %v13151_v51, %v21407_v39  ;;  %v16287_v42 = vld [vmem:[%s18688_s29 + $0xc] sm:$0x3]  ;;  %v16262_v39 = vld [vmem:[%s19024_s22 + $0x6] ss:$0 sm:$0xff] }
0x43cd   : > { %v13373_v59 = vrot.slane %v16287_v42, %v21927_v5 }
0x43ce   : > { %v13172_v6 = vcombine.low %v13161_v52, %v13162_v15  ;;  %v13164_v2 = vadd.f32 %v13152_v0, %v21403_v53  ;;  %v13179_v43 = vrot.slane %v13171_v10, %v18632_v13  ;;  %v13369_v53 = vrot.slane %v16287_v42, %v18691_v3 }
0x43d0   : > { %v13186_v55 = vrot.slane %v13172_v6, %v18632_v13  ;;  %v13188_v36 = vcombine.low %v13163_v30, %v13164_v2 }
0x43d2   : > { %v13187_v24 = vcombine.low %v13179_v43, %v13186_v55  ;;  %v13195_v32 = vrot.slane %v13188_v36, %v18632_v13 }
0x43d4   : > { %v13198_v1 = vpack.c.bf16 %v13195_v32, %v13187_v24 }
0x43d6   : > { %17489 = vmatmul.mubr.bf16.vlgmr.msra.gmra.mxu0 %v13198_v1  ;;  %13489 = vmatmul.mubr.bf16.vlgmr.msra.gmra.mxu1 %v13198_v1 }
0x43d7   : > { %17494 = vmatprep.mubr.msk.bf16.mxu0 %vm18390_vm0, %v21924_v25  ;;  %17518 = vmatprep.mubr.msk.bf16.mxu1 %vm18390_vm0, %v21924_v25 }
0x4496   : > { %v13306_v37 = vpop.f32.mrf.mxu0  ;;  %v13490_v58 = vpop.f32.mrf.mxu1 }
0x4497   : > { %v13307_v63 = vadd.f32 %v16262_v39, %v13306_v37  ;;  %v13491_v40 = vadd.f32 %v13490_v58, %v13369_v53 }
0x4498   : > { %v17490_v31 = vpop.f32.mrf.mxu0  ;;  %v13492_v35 = vpop.f32.mrf.mxu1 }
0x4499   : > { %v13315_v61 = vcombine.high %v13307_v63, %v13307_v63  ;;  %v21465_v18 = vrot.slane %v13307_v63, %v18632_v13  ;;  %v13501_v44 = vcombine.high %v13491_v40, %v13491_v40  ;;  %v13508_v4 = vrot.slane %v13491_v40, %v18632_v13 }
0x449a   : > { %v13493_v27 = vadd.f32 %v13492_v35, %v13373_v59  ;;  %v13309_v56 = vpop.f32.mrf.mxu0  ;;  %v13494_v21 = vpop.f32.mrf.mxu1 }
0x449b   : > { %v21470_v3 = vcombine.high %v21465_v18, %v21465_v18  ;;  %v13515_v5 = vrot.slane %v13501_v44, %v18632_v13  ;;  %v13516_v12 = vcombine.high %v13508_v4, %v13508_v4  ;;  %v13495_v7 = vadd.f32 %v13494_v21, %v13369_v53 }
0x449c   : > { %v13528_v57 = vcombine.high %v13493_v27, %v13493_v27  ;;  %v13535_v8 = vrot.slane %v13493_v27, %v18632_v13  ;;  %v17491_v22 = vpop.f32.mrf.mxu0  ;;  %v13496_v62 = vpop.f32.mrf.mxu1  ;;  %v21475_v47 = vrot.slane %v13315_v61, %v18632_v13  ;;  %v13310_v11 = vadd.f32 %v16262_v39, %v13309_v56 }
0x449d   : > { %v13589_v50 = vcombine.low %v13508_v4, %v13516_v12  ;;  %v13553_v48 = vcombine.low %v21465_v18, %v21470_v3  ;;  %v13517_v14 = vcombine.high %v13515_v5, %v13515_v5  ;;  %v13603_v45 = vrot.slane %v13515_v5, %v18632_v13 }
0x449e   : > { %v13542_v20 = vrot.slane %v13528_v57, %v18632_v13  ;;  %v13524_v46 = vrot.slane %v13495_v7, %v18632_v13  ;;  %v13497_v26 = vadd.f32 %v13496_v62, %v13373_v59  ;;  %v13543_v19 = vcombine.high %v13535_v8, %v13535_v8 }
0x449f   : > { %v13596_v29 = vrot.slane %v13589_v50, %v18632_v13  ;;  %v21485_v28 = vcombine.high %v21475_v47, %v21475_v47  ;;  %v21488_v33 = vrot.slane %v13310_v11, %v18632_v13  ;;  %v13560_v23 = vrot.slane %v13553_v48, %v18632_v13 }
0x44a0   : > { %v13525_v34 = vcombine.high %v13524_v46, %v13524_v46  ;;  %v13605_v60 = vcombine.low %v13517_v14, %v13524_v46  ;;  %v13544_v49 = vcombine.high %v13542_v20, %v13542_v20  ;;  %v13551_v16 = vrot.slane %v13497_v26, %v18632_v13 }
0x44a1   : > { %v13604_v41 = vcombine.low %v13596_v29, %v13603_v45  ;;  %v13625_v52 = vcombine.low %v13535_v8, %v13543_v19  ;;  %v13567_v0 = vrot.slane %v21475_v47, %v18632_v13  ;;  %v21504_v2 = vcombine.high %v21488_v33, %v21488_v33 }
0x44a2   : > { %v13612_v9 = vrot.slane %v13605_v60, %v18632_v13  ;;  %v13619_v54 = vrot.slane %v13525_v34, %v18632_v13  ;;  %v13552_v38 = vcombine.high %v13551_v16, %v13551_v16  ;;  %v13641_v51 = vcombine.low %v13544_v49, %v13551_v16 }
0x44a3   : > { %v21491_v17 = vpack.c.bf16 %v13604_v41, %v13604_v41  ;;  %v13569_v43 = vcombine.low %v21485_v28, %v21488_v33  ;;  %v13568_v55 = vcombine.low %v13560_v23, %v13567_v0  ;;  %v13632_v24 = vrot.slane %v13625_v52, %v18632_v13 }
0x44a4   : > { %v13620_v15 = vcombine.low %v13612_v9, %v13619_v54  ;;  %v13648_v6 = vrot.slane %v13641_v51, %v18632_v13  ;;  %v13655_v30 = vrot.slane %v13552_v38, %v18632_v13  ;;  %v13639_v1 = vrot.slane %v13542_v20, %v18632_v13 }
0x44a5   : > { %v13665_v10 = vsel %vm1237_vm1, %v21491_v17, 0  ;;  %v21515_v42 = vpack.c.bf16 %v13568_v55, %v13568_v55  ;;  %v13576_v53 = vrot.slane %v13569_v43, %v18632_v13  ;;  %v13583_v39 = vrot.slane %v21504_v2, %v18632_v13 }
0x44a6   : > { %17493 = vmatpush3.bf16.xpose.msra.mxu0 %v13665_v10  ;;  %v21509_v36 = vcombine.low %v13648_v6, %v13655_v30  ;;  %v21512_v32 = vpack.c.bf16 %v13620_v15, %v13620_v15  ;;  %v13640_v37 = vcombine.low %v13632_v24, %v13639_v1 }
0x44a7   : > { %17498 = vmatprep.subr.bf16.mxu0 %v21924_v25  ;;  %v13584_v59 = vcombine.low %v13576_v53, %v13583_v39 }
0x44a8   : > { %v13711_v58 = vsel %vm1237_vm1, %v21512_v32, 0  ;;  %v21527_v63 = vpack.c.bf16 %v13640_v37, %v13640_v37  ;;  %v21557_v16 = vpack.c.bf16 %v21509_v36, %v21509_v36 }
0x44a9   : > { %v21529_v40 = vpack.c.bf16 %v13584_v59, %v13584_v59 }
0x44aa   : > { %v13783_v31 = vsel %vm3098_vm7, %v21527_v63, 0  ;;  %v13829_v23 = vsel %vm3098_vm7, %v21557_v16, 0 }
0x44ad   : > { %17495 = vmatmul.mubr.msk.bf16.vlgmr.msra.gmra.mxu0 %vm1237_vm1, %v21515_v42 }
0x44ae   : > { %17499 = vmatpush3.bf16.xpose.msra.mxu0 %v13711_v58  ;;  %17500 = vmatprep.mubr.msk.bf16.mxu0 %vm18390_vm0, %v21924_v25 }
0x44af   : > { %17504 = vmatprep.subr.bf16.mxu0 %v21924_v25 }
0x44b5   : > { %17501 = vmatmul.mubr.msk.bf16.vlgmr.msra.gmra.mxu0 %vm1237_vm1, %v21529_v40 }
0x44b6   : > { %17505 = vmatpush3.bf16.msra.mxu0 %v13783_v31  ;;  %17506 = vmatprep.mubr.msk.bf16.mxu0 %vm18390_vm0, %v21924_v25 }
0x44b7   : > { %17510 = vmatprep.subr.bf16.mxu0 %v21924_v25 }
0x456d   : > { %v13701_v35 = vpop.f32.mrf.mxu0 }
0x456e   : > { %v13753_v61 = vmul.f32 0.088388346, %v13701_v35 }
0x456f   : > { %v17496_v44 = vpop.f32.mrf.mxu0 }
0x4570   : > { %v13755_v4 = vsel %vm3051_vm9, %v13753_v61, -inf }
0x4571   : > { %13756 = vmax.xlane.f32.xlu1 %v13755_v4  ;;  %v13704_v27 = vpop.f32.mrf.mxu0 }
0x4573   : > { %v17497_v56 = vpop.f32.mrf.mxu0 }
0x4575   : > { %v13747_v21 = vpop.f32.mrf.mxu0 }
0x4576   : > { %v13754_v5 = vmul.f32 0.088388346, %v13747_v21 }
0x4577   : > { %v17502_v12 = vpop.f32.mrf.mxu0 }
0x4578   : > { %v13758_v57 = vsel %vm3051_vm9, %v13754_v5, -inf }
0x4579   : > { %13759 = vmax.xlane.f32.xlu0 %v13758_v57  ;;  %v13750_v8 = vpop.f32.mrf.mxu0 }
0x457b   : > { %v17503_v7 = vpop.f32.mrf.mxu0 }
0x4582   : > { %13921 = vrot.lane.b32.xlu1 %v21491_v17, %s18391_s28 }
0x4586   : > { %13918 = vrot.lane.b32.xlu1 %v21515_v42, %s18391_s28 }
0x458a   : > { %13970 = vrot.lane.b32.xlu1 %v21529_v40, %s18391_s28 }
0x45fa   : > { %v13757_v22 = vpop.xlane.xlu1 %13756 }
0x45fb   : > { %v13761_v62 = vsub.f32 %v13753_v61, %v13757_v22 }
0x45fd   : > { %v13763_v50 = vmul.f32 1.442695, %v13761_v62 }
0x45fe   : > { %v13922_v48 = vpop.permute.xlu1 %13921 }
0x45ff   : > { %18249 = vpow2.f32 %v13763_v50  ;;  %v13927_v20 = vsel %vm1237_vm1, %v13922_v48, 0 }
0x4600   : > { %17517 = vmatpush3.bf16.xpose.msra.mxu1 %v13927_v20 }
0x4601   : > { %17528 = vmatprep.subr.bf16.mxu1 %v21924_v25 }
0x4602   : > { %v13760_v11 = vpop.xlane.xlu0 %13759  ;;  %v13919_v45 = vpop.permute.xlu1 %13918 }
0x4603   : > { %v13762_v14 = vsub.f32 %v13754_v5, %v13760_v11 }
0x4605   : > { %v13765_v29 = vmul.f32 1.442695, %v13762_v14 }
0x4606   : > { %v13971_v0 = vpop.permute.xlu1 %13970 }
0x4607   : > { %18251 = vpow2.f32 %v13765_v29  ;;  %17519 = vmatmul.mubr.msk.bf16.vlgmr.msra.gmra.mxu1 %vm1237_vm1, %v13919_v45 }
0x4608   : > { %17530 = vmatprep.mubr.msk.bf16.mxu1 %vm18390_vm0, %v21924_v25 }
0x460c   : > { %v18250_v46 = vpop.eup %18249 }
0x460d   : > { %v13767_v26 = vsel %vm3051_vm9, %v18250_v46, 0.0 }
0x460e   : > { %13768 = vadd.xlane.f32.xlu0 %v13767_v26 }
0x4614   : > { %v18252_v19 = vpop.eup %18251 }
0x4615   : > { %v13770_v41 = vsel %vm3051_vm9, %v18252_v19, 0.0 }
0x4616   : > { %13771 = vadd.xlane.f32.xlu0 %v13770_v41 }
0x462c   : > { %13973 = vrot.lane.b32.xlu0 %v21512_v32, %s18391_s28 }
0x4697   : > { %v13769_v34 = vpop.xlane.xlu0 %13768 }
0x4698   : > { %18253 = vrcp.f32 %v13769_v34 }
0x469f   : > { %v13772_v60 = vpop.xlane.xlu0 %13771 }
0x46a0   : > { %18255 = vrcp.f32 %v13772_v60 }
0x46a3   : > { %v13974_v52 = vpop.permute.xlu0 %13973 }
0x46a4   : > { %v13979_v10 = vsel %vm1237_vm1, %v13974_v52, 0 }
0x46a5   : > { %v18254_v49 = vpop.eup %18253 }
0x46a6   : > { %v13775_v9 = vmul.f32 %v18254_v49, %v18250_v46 }
0x46a8   : > { %v13777_v54 = vpack.c.bf16 %v13775_v9, %v13775_v9 }
0x46aa   : > { %17507 = vmatmul.mubr.msk.bf16.vlgmr.msra.gmra.mxu0 %vm3047_vm8, %v13777_v54 }
0x46ab   : > { %17511 = vmatpush3.bf16.msra.mxu0 %v13829_v23  ;;  %17512 = vmatprep.mubr.msk.bf16.mxu0 %vm18390_vm0, %v21924_v25 }
0x46ac   : > { %17522 = vmatprep.subr.bf16.mxu0 %v21924_v25 }
0x46ad   : > { %v18256_v38 = vpop.eup %18255 }
0x46ae   : > { %v13776_v51 = vmul.f32 %v18256_v38, %v18252_v19 }
0x46b0   : > { %v13778_v15 = vpack.c.bf16 %v13776_v51, %v13776_v51 }
0x46b2   : > { %17513 = vmatmul.mubr.msk.bf16.vlgmr.msra.gmra.mxu0 %vm3047_vm8, %v13778_v15 }
0x46b3   : > { %17523 = vmatpush3.bf16.xpose.msra.mxu0 %v13979_v10  ;;  %17524 = vmatprep.mubr.msk.bf16.mxu0 %vm18390_vm0, %v21924_v25 }
0x46b4   : > { %17534 = vmatprep.subr.bf16.mxu0 %v21924_v25 }
0x46ba   : > { %17525 = vmatmul.mubr.msk.bf16.vlgmr.msra.gmra.mxu0 %vm1237_vm1, %v13971_v0 }
0x46bb   : > { %17536 = vmatprep.mubr.msk.bf16.mxu0 %vm18390_vm0, %v21924_v25 }
0x46c7   : > { %v13963_v6 = vpop.f32.mrf.mxu1 }
0x46c8   : > { %v14021_v30 = vmul.f32 0.088388346, %v13963_v6 }
0x46c9   : > { %v17520_v43 = vpop.f32.mrf.mxu1 }
0x46ca   : > { %v14023_v55 = vsel %vm3051_vm9, %v14021_v30, -inf }
0x46cb   : > { %14024 = vmax.xlane.f32.xlu1 %v14023_v55  ;;  %v13966_v36 = vpop.f32.mrf.mxu1 }
0x46cd   : > { %v17521_v24 = vpop.f32.mrf.mxu1 }
0x46dc   : > { %14048 = vrot.lane.b32.xlu1 %v21527_v63, %s18391_s28 }
0x46e0   : > { %14205 = vrot.lane.b32.xlu1 %v21491_v17, %s18392_s18 }
0x46e4   : > { %14255 = vrot.lane.b32.xlu1 %v21512_v32, %s18392_s18 }
0x46e8   : > { %14203 = vrot.lane.b32.xlu1 %v21515_v42, %s18392_s18 }
0x4754   : > { %v14025_v1 = vpop.xlane.xlu1 %14024 }
0x4755   : > { %v14029_v37 = vsub.f32 %v14021_v30, %v14025_v1 }
0x4757   : > { %v14031_v31 = vmul.f32 1.442695, %v14029_v37 }
0x4758   : > { %v14049_v53 = vpop.permute.xlu1 %14048 }
0x4759   : > { %v14054_v39 = vsel %vm3098_vm7, %v14049_v53, 0  ;;  %18257 = vpow2.f32 %v14031_v31 }
0x475a   : > { %17529 = vmatpush3.bf16.msra.mxu1 %v14054_v39 }
0x475b   : > { %17540 = vmatprep.subr.bf16.mxu1 %v21924_v25 }
0x475c   : > { %v14206_v45 = vpop.permute.xlu1 %14205 }
0x475d   : > { %v14211_v41 = vsel %vm1237_vm1, %v14206_v45, 0 }
0x4760   : > { %v14256_v34 = vpop.permute.xlu1 %14255 }
0x4761   : > { %v14261_v52 = vsel %vm1237_vm1, %v14256_v34, 0 }
0x4764   : > { %v14204_v60 = vpop.permute.xlu1 %14203 }
0x4766   : > { %v18258_v8 = vpop.eup %18257 }
0x4767   : > { %v14035_v62 = vsel %vm3051_vm9, %v18258_v8, 0.0 }
0x476a   : > { %v21584_v58 = vpop.f32.mrf.mxu0 }
0x476c   : > { %v17508_v59 = vpop.f32.mrf.mxu0 }
0x476e   : > { %v13822_v35 = vpop.f32.mrf.mxu0 }
0x4770   : > { %v17509_v61 = vpop.f32.mrf.mxu0 }
0x4772   : > { %v21586_v44 = vpop.f32.mrf.mxu0 }
0x4774   : > { %v17514_v4 = vpop.f32.mrf.mxu0 }
0x4776   : > { %v13868_v27 = vpop.f32.mrf.mxu0 }
0x4778   : > { %v17515_v56 = vpop.f32.mrf.mxu0 }
0x477a   : > { %v14015_v21 = vpop.f32.mrf.mxu0 }
0x477b   : > { %v14022_v5 = vmul.f32 0.088388346, %v14015_v21 }
0x477c   : > { %v17526_v12 = vpop.f32.mrf.mxu0 }
0x477d   : > { %v14026_v57 = vsel %vm3051_vm9, %v14022_v5, -inf }
0x477e   : > { %14027 = vmax.xlane.f32.xlu0 %v14026_v57  ;;  %v14018_v7 = vpop.f32.mrf.mxu0 }
0x4780   : > { %v17527_v22 = vpop.f32.mrf.mxu0 }
0x4782   : > { %14036 = vadd.xlane.f32.xlu0 %v14035_v62 }
0x4807   : > { %v14028_v50 = vpop.xlane.xlu0 %14027 }
0x4808   : > { %v14030_v48 = vsub.f32 %v14022_v5, %v14028_v50 }
0x480a   : > { %v14033_v20 = vmul.f32 1.442695, %v14030_v48 }
0x480b   : > { %v14037_v11 = vpop.xlane.xlu0 %14036 }
0x480c   : > { %18259 = vpow2.f32 %v14033_v20 }
0x480d   : > { %18261 = vrcp.f32 %v14037_v11 }
0x4819   : > { %v18260_v14 = vpop.eup %18259 }
0x481a   : > { %v18262_v29 = vpop.eup %18261  ;;  %v14038_v46 = vsel %vm3051_vm9, %v18260_v14, 0.0 }
0x481b   : > { %v14043_v26 = vmul.f32 %v18262_v29, %v18258_v8  ;;  %14039 = vadd.xlane.f32.xlu0 %v14038_v46 }
0x481d   : > { %v14045_v19 = vpack.c.bf16 %v14043_v26, %v14043_v26 }
0x481f   : > { %17531 = vmatmul.mubr.msk.bf16.vlgmr.msra.gmra.mxu1 %vm3047_vm8, %v14045_v19 }
0x4820   : > { %17541 = vmatpush3.bf16.xpose.msra.mxu1 %v14211_v41  ;;  %17542 = vmatprep.mubr.msk.bf16.mxu1 %vm18390_vm0, %v21924_v25 }
0x4821   : > { %17552 = vmatprep.subr.bf16.mxu1 %v21924_v25 }
0x4827   : > { %17543 = vmatmul.mubr.msk.bf16.vlgmr.msra.gmra.mxu1 %vm1237_vm1, %v14204_v60 }
0x4828   : > { %17554 = vmatprep.mubr.msk.bf16.mxu1 %vm18390_vm0, %v21924_v25 }
0x4831   : > { %14097 = vrot.lane.b32.xlu0 %v21557_v16, %s18391_s28 }
0x4835   : > { %14253 = vrot.lane.b32.xlu0 %v21529_v40, %s18392_s18 }
0x48a4   : > { %v14040_v49 = vpop.xlane.xlu0 %14039 }
0x48a5   : > { %18263 = vrcp.f32 %v14040_v49 }
0x48a8   : > { %v14098_v9 = vpop.permute.xlu0 %14097 }
0x48a9   : > { %v14103_v54 = vsel %vm3098_vm7, %v14098_v9, 0 }
0x48aa   : > { %17535 = vmatpush3.bf16.msra.mxu0 %v14103_v54 }
0x48ab   : > { %17546 = vmatprep.subr.bf16.mxu0 %v21924_v25 }
0x48ac   : > { %v14254_v15 = vpop.permute.xlu0 %14253 }
0x48b2   : > { %v18264_v23 = vpop.eup %18263 }
0x48b3   : > { %v14044_v38 = vmul.f32 %v18264_v23, %v18260_v14 }
0x48b5   : > { %v14046_v51 = vpack.c.bf16 %v14044_v38, %v14044_v38 }
0x48b7   : > { %17537 = vmatmul.mubr.msk.bf16.vlgmr.msra.gmra.mxu0 %vm3047_vm8, %v14046_v51 }
0x48b8   : > { %17547 = vmatpush3.bf16.xpose.msra.mxu0 %v14261_v52  ;;  %17548 = vmatprep.mubr.msk.bf16.mxu0 %vm18390_vm0, %v21924_v25 }
0x48b9   : > { %17558 = vmatprep.subr.bf16.mxu0 %v21924_v25 }
0x48bf   : > { %17549 = vmatmul.mubr.msk.bf16.vlgmr.msra.gmra.mxu0 %vm1237_vm1, %v14254_v15 }
0x48c0   : > { %17560 = vmatprep.mubr.msk.bf16.mxu0 %vm18390_vm0, %v21924_v25 }
0x48df   : > { %v21613_v10 = vpop.f32.mrf.mxu1 }
0x48e1   : > { %v17532_v0 = vpop.f32.mrf.mxu1 }
0x48e3   : > { %v14093_v6 = vpop.f32.mrf.mxu1 }
0x48e5   : > { %v17533_v30 = vpop.f32.mrf.mxu1 }
0x48e7   : > { %v14247_v43 = vpop.f32.mrf.mxu1 }
0x48e8   : > { %v14303_v55 = vmul.f32 0.088388346, %v14247_v43 }
0x48e9   : > { %v17544_v36 = vpop.f32.mrf.mxu1 }
0x48ea   : > { %v14305_v24 = vsel %vm3051_vm9, %v14303_v55, -inf }
0x48eb   : > { %14306 = vmax.xlane.f32.xlu1 %v14305_v24  ;;  %v14250_v1 = vpop.f32.mrf.mxu1  ;;  %v14154_v24 = vrot.slane %v21613_v10, %v18632_v13 }
0x48ed   : > { %v17545_v53 = vpop.f32.mrf.mxu1  ;;  %v14162_v1 = vcombine.high %v14154_v24, %v14154_v24 }
0x48ee   : > { %v14147_v53 = vcombine.high %v21613_v10, %v21613_v10 }
0x48fc   : > { %14329 = vrot.lane.b32.xlu1 %v21527_v63, %s18392_s18 }
0x4900   : > { %14485 = vrot.lane.b32.xlu1 %v21491_v17, %s18393_s21 }
0x4904   : > { %14535 = vrot.lane.b32.xlu1 %v21512_v32, %s18393_s21 }
0x4908   : > { %14483 = vrot.lane.b32.xlu1 %v21515_v42, %s18393_s21 }
0x4974   : > { %v14307_v39 = vpop.xlane.xlu1 %14306 }
0x4975   : > { %v14311_v37 = vsub.f32 %v14303_v55, %v14307_v39 }
0x4977   : > { %v14313_v59 = vmul.f32 1.442695, %v14311_v37  ;;  %v21624_v31 = vpop.f32.mrf.mxu0  ;;  %v14161_v37 = vrot.slane %v14147_v53, %v18632_v13  ;;  %v17979_v53 = vld [vmem:[%s18608_s24 + $0x1a8] sm:$0xff]  }
0x4978   : > { %v14330_v35 = vpop.permute.xlu1 %14329 }
0x4979   : > { %18265 = vpow2.f32 %v14313_v59  ;;  %v14335_v61 = vsel %vm3098_vm7, %v14330_v35, 0  ;;  %v17538_v4 = vpop.f32.mrf.mxu0 }
0x497a   : > { %17553 = vmatpush3.bf16.msra.mxu1 %v14335_v61 }
0x497b   : > { %v14142_v27 = vpop.f32.mrf.mxu0  ;;  %17564 = vmatprep.subr.bf16.mxu1 %v21924_v25 }
0x497c   : > { %v14486_v11 = vpop.permute.xlu1 %14485 }
0x497d   : > { %v17539_v17 = vpop.f32.mrf.mxu0  ;;  %v14491_v46 = vsel %vm1237_vm1, %v14486_v11, 0 }
0x497f   : > { %v14297_v56 = vpop.f32.mrf.mxu0 }
0x4980   : > { %v14304_v32 = vmul.f32 0.088388346, %v14297_v56  ;;  %v14536_v26 = vpop.permute.xlu1 %14535 }
0x4981   : > { %v17550_v21 = vpop.f32.mrf.mxu0  ;;  %v14541_v23 = vsel %vm1237_vm1, %v14536_v26, 0 }
0x4982   : > { %v14308_v42 = vsel %vm3051_vm9, %v14304_v32, -inf }
0x4983   : > { %14309 = vmax.xlane.f32.xlu0 %v14308_v42  ;;  %v14300_v5 = vpop.f32.mrf.mxu0 }
0x4984   : > { %v14484_v19 = vpop.permute.xlu1 %14483 }
0x4985   : > { %v17551_v12 = vpop.f32.mrf.mxu0 }
0x4986   : > { %v18266_v57 = vpop.eup %18265 }
0x4987   : > { %v14317_v8 = vsel %vm3051_vm9, %v18266_v57, 0.0 }
0x4988   : > { %14318 = vadd.xlane.f32.xlu0 %v14317_v8 }
0x4a0c   : > { %v14310_v7 = vpop.xlane.xlu0 %14309 }
0x4a0d   : > { %v14312_v22 = vsub.f32 %v14304_v32, %v14310_v7 }
0x4a0f   : > { %v14315_v62 = vmul.f32 1.442695, %v14312_v22 }
0x4a11   : > { %18267 = vpow2.f32 %v14315_v62  ;;  %v14319_v50 = vpop.xlane.xlu0 %14318 }
0x4a12   : > { %18269 = vrcp.f32 %v14319_v50 }
0x4a1e   : > { %v18268_v48 = vpop.eup %18267 }
0x4a1f   : > { %v18270_v20 = vpop.eup %18269  ;;  %v14320_v14 = vsel %vm3051_vm9, %v18268_v48, 0.0 }
0x4a20   : > { %v14325_v29 = vmul.f32 %v18270_v20, %v18266_v57  ;;  %14321 = vadd.xlane.f32.xlu0 %v14320_v14 }
0x4a22   : > { %v14327_v45 = vpack.c.bf16 %v14325_v29, %v14325_v29 }
0x4a24   : > { %17555 = vmatmul.mubr.msk.bf16.vlgmr.msra.gmra.mxu1 %vm3047_vm8, %v14327_v45 }
0x4a25   : > { %17565 = vmatpush3.bf16.xpose.msra.mxu1 %v14491_v46  ;;  %17566 = vmatprep.mubr.msk.bf16.mxu1 %vm18390_vm0, %v21924_v25 }
0x4a26   : > { %17576 = vmatprep.subr.bf16.mxu1 %v21924_v25 }
0x4a2c   : > { %17567 = vmatmul.mubr.msk.bf16.vlgmr.msra.gmra.mxu1 %vm1237_vm1, %v14484_v19 }
0x4a2d   : > { %17578 = vmatprep.mubr.msk.bf16.mxu1 %vm18390_vm0, %v21924_v25 }
0x4a36   : > { %14377 = vrot.lane.b32.xlu0 %v21557_v16, %s18392_s18 }
0x4a3a   : > { %14533 = vrot.lane.b32.xlu0 %v21529_v40, %s18393_s21 }
0x4aa9   : > { %v14322_v41 = vpop.xlane.xlu0 %14321 }
0x4aaa   : > { %18271 = vrcp.f32 %v14322_v41 }
0x4aad   : > { %v14378_v34 = vpop.permute.xlu0 %14377 }
0x4aae   : > { %v14383_v60 = vsel %vm3098_vm7, %v14378_v34, 0 }
0x4aaf   : > { %17559 = vmatpush3.bf16.msra.mxu0 %v14383_v60 }
0x4ab0   : > { %17570 = vmatprep.subr.bf16.mxu0 %v21924_v25 }
0x4ab1   : > { %v14534_v40 = vpop.permute.xlu0 %14533 }
0x4ab7   : > { %v18272_v49 = vpop.eup %18271 }
0x4ab8   : > { %v14326_v9 = vmul.f32 %v18272_v49, %v18268_v48 }
0x4aba   : > { %v14328_v54 = vpack.c.bf16 %v14326_v9, %v14326_v9 }
0x4abc   : > { %17561 = vmatmul.mubr.msk.bf16.vlgmr.msra.gmra.mxu0 %vm3047_vm8, %v14328_v54 }
0x4abd   : > { %17571 = vmatpush3.bf16.xpose.msra.mxu0 %v14541_v23  ;;  %17572 = vmatprep.mubr.msk.bf16.mxu0 %vm18390_vm0, %v21924_v25 }
0x4abe   : > { %17582 = vmatprep.subr.bf16.mxu0 %v21924_v25 }
0x4ac4   : > { %17573 = vmatmul.mubr.msk.bf16.vlgmr.msra.gmra.mxu0 %vm1237_vm1, %v14534_v40 }
0x4ac5   : > { %17584 = vmatprep.mubr.msk.bf16.mxu0 %vm18390_vm0, %v21924_v25 }
0x4ae4   : > { %v21653_v38 = vpop.f32.mrf.mxu1 }
0x4ae5   : > { %v14434_v39 = vrot.slane %v21653_v38, %v18632_v13  ;;  %v14427_v23 = vcombine.high %v21653_v38, %v21653_v38  ;;  %v14163_v38 = vcombine.high %v21624_v31, %v21624_v31 }
0x4ae6   : > { %v17556_v51 = vpop.f32.mrf.mxu1 }
0x4ae7   : > { %v14442_v19 = vcombine.high %v14434_v39, %v14434_v39 }
0x4ae8   : > { %v14374_v52 = vpop.f32.mrf.mxu1 }
0x4aea   : > { %v17557_v15 = vpop.f32.mrf.mxu1 }
0x4aec   : > { %v14527_v0 = vpop.f32.mrf.mxu1 }
0x4aed   : > { %v14583_v6 = vmul.f32 0.088388346, %v14527_v0  ;;  %v14441_v0 = vrot.slane %v14427_v23, %v18632_v13 }
0x4aee   : > { %v17568_v30 = vpop.f32.mrf.mxu1 }
0x4aef   : > { %v14585_v43 = vsel %vm3051_vm9, %v14583_v6, -inf }
0x4af0   : > { %14586 = vmax.xlane.f32.xlu1 %v14585_v43  ;;  %v14530_v55 = vpop.f32.mrf.mxu1 }
0x4af2   : > { %v17569_v36 = vpop.f32.mrf.mxu1 }
0x4af3   : > { %v14177_v36 = vrot.slane %v14163_v38, %v18632_v13 }
0x4b01   : > { %14609 = vrot.lane.b32.xlu1 %v21527_v63, %s18393_s21  ;;  %v14170_v63 = vrot.slane %v21624_v31, %v18632_v13  ;;  %v17977_v31 = vld [vmem:[%s18608_s24 + $0x1b8] sm:$0xff]  }
0x4b03   : > { %v14178_v59 = vcombine.high %v14170_v63, %v14170_v63 }
0x4b05   : > { %14179 = vrot.lane.b32.xlu1 %v14154_v24, %s18393_s21 }
0x4b09   : > { %14181 = vrot.lane.b32.xlu1 %v14162_v1, %s18393_s21  ;;  %v17978_v1 = vld [vmem:[%s18608_s24 + $0x1b0] sm:$0xff]  }
0x4b0d   : > { %14459 = vrot.lane.b32.xlu1 %v14434_v39, %s18392_s18  ;;  %v17980_v39 = vld [vmem:[%s18608_s24 + $0x1a0] sm:$0xff]  }
0x4b11   : > { %14183 = vrot.lane.b32.xlu1 %v14161_v37, %s18393_s21 }
0x4b15   : > { %14187 = vrot.lane.b32.xlu1 %v14178_v59, %s18393_s21 }
0x4b79   : > { %v14587_v35 = vpop.xlane.xlu1 %14586 }
0x4b7a   : > { %v14591_v61 = vsub.f32 %v14583_v6, %v14587_v35  ;;  %v17981_v35 = vld [vmem:[%s18608_s24 + $0x198] sm:$0xff]  }
0x4b7c   : > { %v14593_v4 = vmul.f32 1.442695, %v14591_v61  ;;  %v21672_v27 = vpop.f32.mrf.mxu0 }
0x4b7d   : > { %v14610_v10 = vpop.permute.xlu1 %14609  ;;  %v14450_v6 = vrot.slane %v21672_v27, %v18632_v13 }
0x4b7e   : > { %18273 = vpow2.f32 %v14593_v4  ;;  %v14615_v17 = vsel %vm3098_vm7, %v14610_v10, 0  ;;  %v17562_v56 = vpop.f32.mrf.mxu0 }
0x4b7f   : > { %17577 = vmatpush3.bf16.msra.mxu1 %v14615_v17  ;;  %v14458_v43 = vcombine.high %v14450_v6, %v14450_v6 }
0x4b80   : > { %v14422_v32 = vpop.f32.mrf.mxu0  ;;  %17588 = vmatprep.subr.bf16.mxu1 %v21924_v25 }
0x4b82   : > { %v17563_v21 = vpop.f32.mrf.mxu0 }
0x4b84   : > { %v14577_v42 = vpop.f32.mrf.mxu0 }
0x4b85   : > { %v14584_v5 = vmul.f32 0.088388346, %v14577_v42  ;;  %v17983_v42 = vld [vmem:[%s18608_s24 + $0x188] sm:$0xff]  }
0x4b86   : > { %v17574_v12 = vpop.f32.mrf.mxu0 }
0x4b87   : > { %v14588_v57 = vsel %vm3051_vm9, %v14584_v5, -inf  ;;  %v17985_v12 = vld [vmem:[%s18676_s19 + $0x38] sm:$0xff]  }
0x4b88   : > { %14589 = vmax.xlane.f32.xlu0 %v14588_v57  ;;  %v14580_v8 = vpop.f32.mrf.mxu0  ;;  %v17986_v57 = vld [vmem:[%s18676_s19 + $0x30] sm:$0xff]  }
0x4b89   : > { %v17987_v8 = vld [vmem:[%s18676_s19 + $0x28] sm:$0xff]  }
0x4b8a   : > { %v17575_v7 = vpop.f32.mrf.mxu0 }
0x4b8b   : > { %v18274_v22 = vpop.eup %18273  ;;  %v14180_v7 = vpop.permute.xlu1 %14179 }
0x4b8c   : > { %v14597_v62 = vsel %vm3051_vm9, %v18274_v22, 0.0 }
0x4b8d   : > { %14598 = vadd.xlane.f32.xlu0 %v14597_v62 }
0x4b8f   : > { %v14182_v62 = vpop.permute.xlu1 %14181 }
0x4c11   : > { %v14590_v50 = vpop.xlane.xlu0 %14589 }
0x4c12   : > { %v14592_v48 = vsub.f32 %v14584_v5, %v14590_v50  ;;  %v17984_v5 = vld [vmem:[%s18608_s24 + $0x180] sm:$0xff]  }
0x4c14   : > { %v14595_v20 = vmul.f32 1.442695, %v14592_v48  ;;  %v14460_v48 = vpop.permute.xlu1 %14459 }
0x4c16   : > { %18275 = vpow2.f32 %v14595_v20  ;;  %v14599_v11 = vpop.xlane.xlu0 %14598 }
0x4c17   : > { %18277 = vrcp.f32 %v14599_v11 }
0x4c18   : > { %v14184_v11 = vpop.permute.xlu1 %14183 }
0x4c23   : > { %v18276_v14 = vpop.eup %18275 }
0x4c24   : > { %v18278_v29 = vpop.eup %18277  ;;  %v14600_v45 = vsel %vm3051_vm9, %v18276_v14, 0.0 }
0x4c25   : > { %v14605_v46 = vmul.f32 %v18278_v29, %v18274_v22  ;;  %14601 = vadd.xlane.f32.xlu0 %v14600_v45  ;;  %v13880_v29 = vrot.slane %v21584_v58, %v18632_v13  ;;  %v14188_v45 = vpop.permute.xlu1 %14187 }
0x4c27   : > { %v14607_v26 = vpack.c.bf16 %v14605_v46, %v14605_v46  ;;  %v13911_v23 = vadd.f32 %v13880_v29, %v21465_v18 }
0x4c29   : > { %17579 = vmatmul.mubr.msk.bf16.vlgmr.msra.gmra.mxu1 %vm3047_vm8, %v14607_v26  ;;  %v13888_v26 = vcombine.high %v13880_v29, %v13880_v29 }
0x4c2a   : > { %17604 = vmatprep.mubr.msk.bf16.mxu1 %vm18390_vm0, %v21924_v25  ;;  %17589 = vmatpush3.bf16.msra.mxu1 %v17977_v31  ;;  %v13889_v31 = vcombine.high %v21586_v44, %v21586_v44 }
0x4c2b   : > { %17590 = vmatprep.subr.bf16.mxu1 %v21924_v25 }
0x4c2e   : > { %17591 = vmatpush3.bf16.msra.mxu1 %v17978_v1 }
0x4c2f   : > { %17592 = vmatprep.subr.bf16.mxu1 %v21924_v25 }
0x4c32   : > { %17593 = vmatpush3.bf16.msra.mxu1 %v17979_v53 }
0x4c33   : > { %17594 = vmatprep.subr.bf16.mxu1 %v21924_v25 }
0x4c36   : > { %17595 = vmatpush3.bf16.msra.mxu1 %v17980_v39 }
0x4c37   : > { %17596 = vmatprep.subr.bf16.mxu1 %v21924_v25 }
0x4c3a   : > { %17597 = vmatpush3.bf16.msra.mxu1 %v17981_v35 }
0x4c3b   : > { %14657 = vrot.lane.b32.xlu0 %v21557_v16, %s18393_s21  ;;  %17598 = vmatprep.subr.bf16.mxu1 %v21924_v25 }
0x4c3f   : > { %14461 = vrot.lane.b32.xlu0 %v14442_v19, %s18392_s18 }
0x4c43   : > { %14185 = vrot.lane.b32.xlu0 %v14170_v63, %s18393_s21  ;;  %v14443_v63 = vcombine.high %v21672_v27, %v21672_v27  ;;  %v17982_v27 = vld [vmem:[%s18608_s24 + $0x190] sm:$0xff]  }
0x4c44   : > { %17599 = vmatpush3.bf16.msra.mxu1 %v17982_v27 }
0x4c45   : > { %v14457_v56 = vrot.slane %v14443_v63, %v18632_v13  ;;  %17600 = vmatprep.subr.bf16.mxu1 %v21924_v25 }
0x4c48   : > { %17601 = vmatpush3.bf16.msra.mxu1 %v17983_v42 }
0x4c49   : > { %17602 = vmatprep.subr.bf16.mxu1 %v21924_v25 }
0x4c4c   : > { %17603 = vmatpush3.bf16.msra.mxu1 %v17984_v5 }
0x4cae   : > { %v14602_v41 = vpop.xlane.xlu0 %14601 }
0x4caf   : > { %18279 = vrcp.f32 %v14602_v41  ;;  %v13873_v41 = vcombine.high %v21584_v58, %v21584_v58 }
0x4cb2   : > { %v14658_v34 = vpop.permute.xlu0 %14657 }
0x4cb3   : > { %v14663_v60 = vsel %vm3098_vm7, %v14658_v34, 0  ;;  %v13912_v34 = vadd.f32 %v13888_v26, %v21470_v3 }
0x4cb4   : > { %17583 = vmatpush3.bf16.msra.mxu0 %v14663_v60  ;;  %v14198_v60 = vadd.f32 %v14182_v62, %v21470_v3 }
0x4cb5   : > { %17608 = vmatprep.subr.bf16.mxu0 %v21924_v25 }
0x4cb6   : > { %v14462_v22 = vpop.permute.xlu0 %14461 }
0x4cba   : > { %v14186_v50 = vpop.permute.xlu0 %14185 }
0x4cbc   : > { %v18280_v49 = vpop.eup %18279 }
0x4cbd   : > { %v14606_v9 = vmul.f32 %v18280_v49, %v18276_v14  ;;  %v13887_v49 = vrot.slane %v13873_v41, %v18632_v13 }
0x4cbf   : > { %v14608_v54 = vpack.c.bf16 %v14606_v9, %v14606_v9  ;;  %v13896_v9 = vrot.slane %v21586_v44, %v18632_v13 }
0x4cc1   : > { %17585 = vmatmul.mubr.msk.bf16.vlgmr.msra.gmra.mxu0 %vm3047_vm8, %v14608_v54  ;;  %v14478_v54 = vadd.f32 %v14462_v22, %v21470_v3 }
0x4cc2   : > { %17624 = vmatprep.mubr.msk.bf16.mxu0 %vm18390_vm0, %v21924_v25  ;;  %17609 = vmatpush3.bf16.msra.mxu0 %v17985_v12 }
0x4cc3   : > { %17610 = vmatprep.subr.bf16.mxu0 %v21924_v25 }
0x4cc6   : > { %17611 = vmatpush3.bf16.msra.mxu0 %v17986_v57 }
0x4cc7   : > { %17612 = vmatprep.subr.bf16.mxu0 %v21924_v25 }
0x4cca   : > { %17613 = vmatpush3.bf16.msra.mxu0 %v17987_v8 }
0x4ccb   : > { %17614 = vmatprep.subr.bf16.mxu0 %v21924_v25 }
0x4ce9   : > { %v14651_v16 = vpop.f32.mrf.mxu1 }
0x4cea   : > { %v14714_v40 = vrot.slane %v14651_v16, %v18632_v13  ;;  %v14707_v55 = vcombine.high %v14651_v16, %v14651_v16 }
0x4ceb   : > { %v17580_v51 = vpop.f32.mrf.mxu1 }
0x4cec   : > { %v14722_v52 = vcombine.high %v14714_v40, %v14714_v40  ;;  %14739 = vrot.lane.b32.xlu0 %v14714_v40, %s18391_s28  ;;  %v14721_v24 = vrot.slane %v14707_v55, %v18632_v13  ;;  %v14197_v40 = vadd.f32 %v14180_v7, %v21465_v18  ;;  %v14199_v51 = vadd.f32 %v14184_v11, %v21475_v47 }
0x4ced   : > { %v14654_v15 = vpop.f32.mrf.mxu1  ;;  %v13904_v55 = vcombine.high %v13896_v9, %v13896_v9 }
0x4cee   : > { %14741 = vrot.lane.b32.xlu1 %v14722_v52, %s18391_s28  ;;  %v14477_v15 = vadd.f32 %v14460_v48, %v21465_v18 }
0x4cef   : > { %v17581_v30 = vpop.f32.mrf.mxu1 }
0x4cf0   : > { %14463 = vrot.lane.b32.xlu0 %v14441_v0, %s18392_s18  ;;  %v14809_v30 = vcombine.low %v14197_v40, %v14198_v60 }
0x4cf2   : > { %14465 = vrot.lane.b32.xlu1 %v14450_v6, %s18392_s18  ;;  %v14769_v6 = vcombine.low %v13911_v23, %v13912_v34 }
0x4cf4   : > { %14467 = vrot.lane.b32.xlu0 %v14458_v43, %s18392_s18  ;;  %v14776_v39 = vrot.slane %v14769_v6, %v18632_v13 }
0x4cf6   : > { %14189 = vrot.lane.b32.xlu1 %v14177_v36, %s18393_s21  ;;  %v14849_v36 = vcombine.low %v14477_v15, %v14478_v54 }
0x4cf8   : > { %14743 = vrot.lane.b32.xlu0 %v14721_v24, %s18391_s28  ;;  %v13913_v24 = vadd.f32 %v13887_v49, %v21475_v47  ;;  %v14856_v35 = vrot.slane %v14849_v36, %v18632_v13 }
0x4cfa   : > { %v14783_v44 = vrot.slane %v13913_v24, %v18632_v13 }
0x4d5e   : > { %v14740_v20 = vpop.permute.xlu0 %14739 }
0x4d5f   : > { %v14757_v38 = vadd.f32 %v14740_v20, %v21465_v18 }
0x4d60   : > { %v14742_v19 = vpop.permute.xlu1 %14741 }
0x4d61   : > { %v14758_v58 = vadd.f32 %v14742_v19, %v21470_v3  ;;  %v14823_v3 = vrot.slane %v14199_v51, %v18632_v13 }
0x4d62   : > { %v14464_v14 = vpop.permute.xlu0 %14463 }
0x4d63   : > { %v14479_v0 = vadd.f32 %v14464_v14, %v21475_v47  ;;  %v14889_v1 = vcombine.low %v14757_v38, %v14758_v58 }
0x4d64   : > { %v14466_v52 = vpop.permute.xlu1 %14465 }
0x4d65   : > { %v14863_v53 = vrot.slane %v14479_v0, %v18632_v13  ;;  %v14480_v22 = vadd.f32 %v14466_v52, %v21485_v28 }
0x4d66   : > { %v14468_v46 = vpop.permute.xlu0 %14467 }
0x4d67   : > { %v14864_v27 = vcombine.low %v14856_v35, %v14863_v53  ;;  %v14481_v42 = vadd.f32 %v14468_v46, %v21488_v33  ;;  %v17989_v35 = vld [vmem:[%s18676_s19 + $0x18] sm:$0xff]  }
0x4d68   : > { %v14190_v63 = vpop.permute.xlu1 %14189 }
0x4d69   : > { %v14865_v11 = vcombine.low %v14480_v22, %v14481_v42 }
0x4d6a   : > { %v14744_v16 = vpop.permute.xlu0 %14743 }
0x4d6b   : > { %v14759_v43 = vadd.f32 %v14744_v16, %v21475_v47  ;;  %v14200_v47 = vadd.f32 %v14186_v50, %v21485_v28  ;;  %v14872_v16 = vrot.slane %v14865_v11, %v18632_v13 }
0x4d6d   : > { %v14903_v18 = vrot.slane %v14759_v43, %v18632_v13 }
0x4d81   : > { %v14699_v37 = vpop.f32.mrf.mxu0 }
0x4d82   : > { %v14730_v59 = vrot.slane %v14699_v37, %v18632_v13  ;;  %v14723_v4 = vcombine.high %v14699_v37, %v14699_v37  ;;  %v14816_v37 = vrot.slane %v14809_v30, %v18632_v13 }
0x4d83   : > { %v17586_v61 = vpop.f32.mrf.mxu0 }
0x4d84   : > { %v14738_v10 = vcombine.high %v14730_v59, %v14730_v59  ;;  %14745 = vrot.lane.b32.xlu1 %v14730_v59, %s18391_s28  ;;  %v14737_v21 = vrot.slane %v14723_v4, %v18632_v13  ;;  %v13915_v59 = vadd.f32 %v13904_v55, %v21488_v33  ;;  %v13903_v61 = vrot.slane %v13889_v31, %v18632_v13 }
0x4d85   : > { %v14702_v17 = vpop.f32.mrf.mxu0  ;;  %v14824_v4 = vcombine.low %v14816_v37, %v14823_v3 }
0x4d86   : > { %14747 = vrot.lane.b32.xlu0 %v14738_v10, %s18391_s28  ;;  %v14896_v10 = vrot.slane %v14889_v1, %v18632_v13  ;;  %v13914_v17 = vadd.f32 %v13896_v9, %v21485_v28  ;;  %v13916_v62 = vadd.f32 %v13903_v61, %v21504_v2  ;;  %v17992_v61 = vld [vmem:[%s18676_s19] sm:$0xff]  }
0x4d87   : > { %v17587_v32 = vpop.f32.mrf.mxu0 }
0x4d88   : > { %14469 = vrot.lane.b32.xlu1 %v14457_v56, %s18392_s18  ;;  %v14201_v56 = vadd.f32 %v14188_v45, %v21488_v33  ;;  %v14202_v32 = vadd.f32 %v14190_v63, %v21504_v2  ;;  %v14904_v5 = vcombine.low %v14896_v10, %v14903_v18  ;;  %v14785_v12 = vcombine.low %v13914_v17, %v13915_v59  ;;  %v17988_v59 = vld [vmem:[%s18676_s19 + $0x20] sm:$0xff]  }
0x4d89   : > { %v14799_v60 = vrot.slane %v13916_v62, %v18632_v13  ;;  %17615 = vmatpush3.bf16.msra.mxu0 %v17988_v59 }
0x4d8a   : > { %14749 = vrot.lane.b32.xlu0 %v14737_v21, %s18391_s28  ;;  %v14784_v21 = vcombine.low %v14776_v39, %v14783_v44  ;;  %v14825_v57 = vcombine.low %v14200_v47, %v14201_v56  ;;  %v14839_v48 = vrot.slane %v14202_v32, %v18632_v13  ;;  %v14792_v46 = vrot.slane %v14785_v12, %v18632_v13  ;;  %v17990_v47 = vld [vmem:[%s18676_s19 + $0x10] sm:$0xff]   ;;  %v17991_v44 = vld [vmem:[%s18676_s19 + $0x8] sm:$0xff]  }
0x4d8b   : > { %17616 = vmatprep.subr.bf16.mxu0 %v21924_v25 }
0x4d8c   : > { %v14923_v7 = vsel %vm1237_vm1, %v14784_v21, %v14824_v4  ;;  %v14832_v26 = vrot.slane %v14825_v57, %v18632_v13  ;;  %v14800_v23 = vcombine.low %v14792_v46, %v14799_v60  ;;  %v16337_v4 = vld [vmem:[%s19002_s23 + $0x6] ss:$0 sm:$0xff] }
0x4d8d   : > { %v14925_v50 = vsel %vm2138_vm5, %v14923_v7, %v14864_v27  ;;  %17617 = vmatpush3.bf16.msra.mxu0 %v17989_v35 }
0x4d8e   : > { %v14927_v14 = vsel %vm2141_vm6, %v14925_v50, %v14904_v5  ;;  %v14840_v49 = vcombine.low %v14832_v26, %v14839_v48  ;;  %17618 = vmatprep.subr.bf16.mxu0 %v21924_v25 }
0x4d8f   : > { %v14938_v9 = vrot.slane %v14927_v14, %v18632_v13  ;;  %v14931_v15 = vcombine.high %v14927_v14, %v14927_v14 }
0x4d90   : > { %v14924_v52 = vsel %vm1237_vm1, %v14800_v23, %v14840_v49 }
0x4d91   : > { %v14946_v0 = vcombine.high %v14938_v9, %v14938_v9  ;;  %v14945_v43 = vrot.slane %v14931_v15, %v18632_v13  ;;  %17619 = vmatpush3.bf16.msra.mxu0 %v17990_v47 }
0x4d92   : > { %17620 = vmatprep.subr.bf16.mxu0 %v21924_v25 }
0x4d93   : > { %v14969_v55 = vcombine.low %v14938_v9, %v14946_v0 }
0x4d95   : > { %v14977_v53 = vrot.slane %v14969_v55, %v18632_v13  ;;  %17621 = vmatpush3.bf16.msra.mxu0 %v17991_v44 }
0x4d96   : > { %17622 = vmatprep.subr.bf16.mxu0 %v21924_v25 }
0x4d99   : > { %17623 = vmatpush3.bf16.msra.mxu0 %v17992_v61 }
0x4df6   : > { %v14746_v8 = vpop.permute.xlu1 %14745 }
0x4df7   : > { %v14760_v29 = vadd.f32 %v14746_v8, %v21485_v28 }
0x4df8   : > { %v14748_v20 = vpop.permute.xlu0 %14747 }
0x4df9   : > { %v14761_v45 = vadd.f32 %v14748_v20, %v21488_v33 }
0x4dfa   : > { %v14470_v19 = vpop.permute.xlu1 %14469 }
0x4dfb   : > { %v14905_v41 = vcombine.low %v14760_v29, %v14761_v45  ;;  %v14482_v34 = vadd.f32 %v14470_v19, %v21504_v2 }
0x4dfc   : > { %v14750_v54 = vpop.permute.xlu0 %14749 }
0x4dfd   : > { %v14879_v28 = vrot.slane %v14482_v34, %v18632_v13  ;;  %v14762_v33 = vadd.f32 %v14750_v54, %v21504_v2  ;;  %v14912_v40 = vrot.slane %v14905_v41, %v18632_v13 }
0x4dff   : > { %v14880_v51 = vcombine.low %v14872_v16, %v14879_v28  ;;  %v14919_v58 = vrot.slane %v14762_v33, %v18632_v13 }
0x4e01   : > { %v14926_v6 = vsel %vm2138_vm5, %v14924_v52, %v14880_v51  ;;  %v14920_v30 = vcombine.low %v14912_v40, %v14919_v58 }
0x4e03   : > { %v14928_v38 = vsel %vm2141_vm6, %v14926_v6, %v14920_v30 }
0x4e04   : > { %v14947_v2 = vcombine.high %v14928_v38, %v14928_v38  ;;  %v14954_v36 = vrot.slane %v14928_v38, %v18632_v13 }
0x4e06   : > { %v14961_v24 = vrot.slane %v14947_v2, %v18632_v13  ;;  %v14962_v31 = vcombine.high %v14954_v36, %v14954_v36  ;;  %v14970_v3 = vcombine.low %v14945_v43, %v14954_v36 }
0x4e08   : > { %v14986_v1 = vcombine.low %v14962_v31, %v14961_v24  ;;  %v14984_v39 = vrot.slane %v14970_v3, %v18632_v13 }
0x4e0a   : > { %v14985_v37 = vcombine.low %v14977_v53, %v14984_v39  ;;  %v14993_v63 = vrot.slane %v14986_v1, %v18632_v13 }
0x4e0c   : > { %v14996_v18 = vpack.c.bf16 %v14993_v63, %v14985_v37 }
0x4e0e   : > { %17605 = vmatmul.mubr.bf16.vlgmr.msra.gmra.mxu1 %v14996_v18 }
0x4ece   : > { %v15104_v10 = vpop.f32.mrf.mxu1 }
0x4ecf   : > { %v15105_v17 = vadd.f32 %v16337_v4, %v15104_v10 }
0x4ed0   : > { %v17606_v56 = vpop.f32.mrf.mxu1 }
0x4ed1   : > { %v15111_v27 = vmax.f32 %v15105_v17, 0.0 }
0x4ed2   : > { %v15107_v32 = vpop.f32.mrf.mxu1 }
0x4ed3   : > { %v15115_v21 = vcombine.high %v15111_v27, %v15111_v27  ;;  %v15122_v42 = vrot.slane %v15111_v27, %v18632_v13  ;;  %v15108_v5 = vadd.f32 %v16337_v4, %v15107_v32 }
0x4ed4   : > { %v17607_v12 = vpop.f32.mrf.mxu1 }
0x4ed5   : > { %v15129_v57 = vrot.slane %v15115_v21, %v18632_v13  ;;  %v15130_v8 = vcombine.high %v15122_v42, %v15122_v42  ;;  %v15112_v7 = vmax.f32 %v15108_v5, 0.0  ;;  %v15146_v62 = vadd.f32 %v15122_v42, %v14938_v9  ;;  %v16346_v9 = vld [vmem:[%s659_s20] ss:$0 sm:$0xff] }
0x4ed7   : > { %v15131_v22 = vcombine.high %v15129_v57, %v15129_v57  ;;  %v15147_v50 = vadd.f32 %v15130_v8, %v14946_v0  ;;  %v15138_v25 = vrot.slane %v15112_v7, %v18632_v13  ;;  %v15148_v48 = vadd.f32 %v15129_v57, %v14945_v43 }
0x4ed9   : > { %v15149_v20 = vadd.f32 %v15131_v22, %v14954_v36  ;;  %v15158_v11 = vcombine.low %v15146_v62, %v15147_v50  ;;  %v15139_v14 = vcombine.high %v15138_v25, %v15138_v25  ;;  %v15150_v45 = vadd.f32 %v15138_v25, %v14962_v31 }
0x4edb   : > { %v15159_v29 = vcombine.low %v15148_v48, %v15149_v20  ;;  %v15151_v46 = vadd.f32 %v15139_v14, %v14961_v24  ;;  %v15166_v26 = vrot.slane %v15158_v11, %v18632_v13 }
0x4edd   : > { %v15173_v19 = vrot.slane %v15159_v29, %v18632_v13  ;;  %v15175_v41 = vcombine.low %v15150_v45, %v15151_v46 }
0x4edf   : > { %v15174_v34 = vcombine.low %v15166_v26, %v15173_v19  ;;  %v15182_v60 = vrot.slane %v15175_v41, %v18632_v13 }
0x4ee1   : > { %v15185_v49 = vpack.c.bf16 %v15182_v60, %v15174_v34 }
0x4ee3   : > { %17625 = vmatmul.mubr.bf16.vlgmr.msra.gmra.mxu0 %v15185_v49 }
0x4fa3   : > { %v15291_v54 = vpop.f32.mrf.mxu0 }
0x4fa4   : > { %v15292_v16 = vadd.f32 %v16346_v9, %v15291_v54 }
0x4fa5   : > { %v17626_v28 = vpop.f32.mrf.mxu0 }
0x4fa6   : > { %v15300_v33 = vcombine.high %v15292_v16, %v15292_v16  ;;  %v15307_v23 = vrot.slane %v15292_v16, %v18632_v13 }
0x4fa7   : > { %v15294_v40 = vpop.f32.mrf.mxu0 }
0x4fa8   : > { %v15314_v51 = vrot.slane %v15300_v33, %v18632_v13  ;;  %v15315_v58 = vcombine.high %v15307_v23, %v15307_v23  ;;  %v15295_v52 = vadd.f32 %v16346_v9, %v15294_v40 }
0x4fa9   : > { %v17627_v15 = vpop.f32.mrf.mxu0 }
0x4faa   : > { %v15325_v0 = vcombine.low %v15307_v23, %v15315_v58  ;;  %v15316_v6 = vcombine.high %v15314_v51, %v15314_v51  ;;  %v15323_v30 = vrot.slane %v15295_v52, %v18632_v13  ;;  %v15339_v43 = vrot.slane %v15314_v51, %v18632_v13 }
0x4fac   : > { %v15332_v38 = vrot.slane %v15325_v0, %v18632_v13  ;;  %v15324_v55 = vcombine.high %v15323_v30, %v15323_v30  ;;  %v15341_v2 = vcombine.low %v15316_v6, %v15323_v30 }
0x4fae   : > { %v15340_v36 = vcombine.low %v15332_v38, %v15339_v43  ;;  %v15348_v24 = vrot.slane %v15341_v2, %v18632_v13  ;;  %v15355_v31 = vrot.slane %v15324_v55, %v18632_v13 }
0x4fb0   : > { %v15360_v3 = vsel %vm15359_vm10, %v15340_v36, 0.0  ;;  %v15356_v1 = vcombine.low %v15348_v24, %v15355_v31 }
0x4fb1   : > { %v15361_v53 = vrot.slane %v15360_v3, 4 }
0x4fb2   : > { %v15367_v39 = vsel %vm15359_vm10, %v15356_v1, 0.0 }
0x4fb3   : > { %v15362_v37 = vadd.f32 %v15361_v53, %v15360_v3  ;;  %v15368_v63 = vrot.slane %v15367_v39, 4 }
0x4fb5   : > { %v15363_v18 = vrot.slane %v15362_v37, 2  ;;  %v15369_v59 = vadd.f32 %v15368_v63, %v15367_v39 }
0x4fb7   : > { %v15364_v35 = vadd.f32 %v15363_v18, %v15362_v37  ;;  %v15370_v47 = vrot.slane %v15369_v59, 2 }
0x4fb9   : > { %v15365_v44 = vrot.slane %v15364_v35, 1  ;;  %v15371_v61 = vadd.f32 %v15370_v47, %v15369_v59 }
0x4fbb   : > { %v15366_v4 = vadd.f32 %v15365_v44, %v15364_v35  ;;  %v15372_v10 = vrot.slane %v15371_v61, 1  ;;  %15380 = sbr.rel (%p16355_p11) target bundleno = 20419 (0x4fc3), region = 88 }
0x4fbd   : > { %v15375_v17 = vmul.f32 0.16666667, %v15366_v4  ;;  %v15373_v56 = vadd.f32 %v15372_v10, %v15371_v61 }
0x4fbf   : > { %v15376_v27 = vmul.f32 0.16666667, %v15373_v56 }
0x4fc0   : > { %vm15383_vm11 = vcmask 1041409   ;;  %vm15386_vm12 = vcmask 517120  }
0x4fc1   : > { %v15384_v13 = vsel %vm15383_vm11, %v15376_v27, %v15375_v17 }
0x4fc2   : > { %15387 = vst.msk [vmem:[#allocation2] sm:$0x3] %vm15386_vm12, %v15384_v13 }
0x4fc3 PF: > { %p16356_p9 = scmp.ne.s32.totalorder %s18493_s13, 1 }
0x4fc4   : > { %s21928_s27 = sld [smem:[#allocation15_spill]] (!%p16356_p9) }
0x4fc5   : > { %15391 = sbr.rel (%p16356_p9) target bundleno = 20869 (0x5185), region = 92 }
0x4fca   : > { %v15406_v32 = vld [vmem:[%s21897_s10 + $0x38] sm:$0xff]  ;;  %v18394_v21 = vmov 0.0   ;;  %v15405_v42 = vld [vmem:[%s21897_s10 + $0x30] sm:$0xff]  ;;  %vm18395_vm13 = vmmov 0   ;;  %v15404_v5 = vld [vmem:[%s21897_s10 + $0x28] sm:$0xff]  ;;  %vm15395_vm14 = vcmask 1041409  }
0x4fcb   : > { %17628 = vmatprep.subr.mxu0 %v18394_v21  ;;  %17644 = vmatprep.mubr.msk.f32.mxu0 %vm18395_vm13, %v18394_v21  ;;  %v15493_v12 = vld [vmem:[%s21899_s12 + $0x18] sm:$0xff]  ;;  %v15403_v57 = vld [vmem:[%s21897_s10 + $0x20] sm:$0xff]  ;;  %v15401_v7 = vld [vmem:[%s21897_s10 + $0x10] sm:$0xff]  ;;  %v15396_v62 = vsel %vm15395_vm14, %v15376_v27, %v15375_v17  ;;  %vm15580_vm0 = vcmask 1024  }
0x4fcc   : > { %17629 = vmatpush3.msra.mxu0 %v15406_v32  ;;  %17647 = vmatprep.subr.mxu1 %v18394_v21  ;;  %v15402_v8 = vld [vmem:[%s21897_s10 + $0x18] sm:$0xff]  ;;  %v15392_v22 = vld [vmem:[#allocation2] sm:$0x3]  ;;  %v15400_v50 = vld [vmem:[%s21897_s10 + $0x8] sm:$0xff] }
0x4fcd   : > { %17630 = vmatprep.subr.mxu0 %v18394_v21  ;;  %17655 = vmatprep.mubr.msk.f32.mxu1 %vm18395_vm13, %v18394_v21  ;;  %v15399_v25 = vld [vmem:[%s21897_s10] sm:$0xff]  ;;  %v15398_v48 = vmul.f32 %v15396_v62, %v15392_v22  ;;  %v15492_v20 = vld [vmem:[%s21899_s12 + $0x10] sm:$0xff]  ;;  %v15491_v11 = vld [vmem:[%s21899_s12 + $0x8] sm:$0xff] }
0x4fce   : > { %17631 = vmatpush3.msra.mxu0 %v15405_v42  ;;  %17648 = vmatpush3.msra.mxu1 %v15493_v12  ;;  %v15490_v14 = vld [vmem:[%s21899_s12] sm:$0xff] }
0x4fcf   : > { %17632 = vmatprep.subr.mxu0 %v18394_v21  ;;  %17649 = vmatprep.subr.mxu1 %v18394_v21  ;;  %v16357_v29 = vld [vmem:[%s21898_s11] ss:$0 sm:$0xff]  ;;  %v16359_v34 = vld [vmem:[#allocation3] ss:$0 sm:$0xff] }
0x4fd0   : > { %17633 = vmatpush3.msra.mxu0 %v15404_v5  ;;  %17650 = vmatpush3.msra.mxu1 %v15492_v20 }
0x4fd1   : > { %17634 = vmatprep.subr.mxu0 %v18394_v21  ;;  %17651 = vmatprep.subr.mxu1 %v18394_v21 }
0x4fd2   : > { %17635 = vmatpush3.msra.mxu0 %v15403_v57  ;;  %17652 = vmatpush3.msra.mxu1 %v15491_v11 }
0x4fd3   : > { %17636 = vmatprep.subr.mxu0 %v18394_v21  ;;  %17653 = vmatprep.subr.mxu1 %v18394_v21 }
0x4fd4   : > { %17637 = vmatpush3.msra.mxu0 %v15402_v8  ;;  %17654 = vmatpush3.msra.mxu1 %v15490_v14 }
0x4fd5   : > { %17638 = vmatprep.subr.mxu0 %v18394_v21 }
0x4fd6   : > { %17639 = vmatpush3.msra.mxu0 %v15401_v7 }
0x4fd7   : > { %17640 = vmatprep.subr.mxu0 %v18394_v21 }
0x4fd8   : > { %17641 = vmatpush3.msra.mxu0 %v15400_v50 }
0x4fd9   : > { %17642 = vmatprep.subr.mxu0 %v18394_v21 }
0x4fda   : > { %17643 = vmatpush3.msra.mxu0 %v15399_v25 }
0x4fdb   : > { %17645 = vmatmul.mubr.msk.f32.vlgmr.msra.gmra.mxu0 %vm2138_vm5, %v15398_v48 }
0x509b   : > { %v15483_v45 = vpop.f32.mrf.mxu0 }
0x509c   : > { %v15484_v46 = vadd.f32 %v16357_v29, %v15483_v45 }
0x509d   : > { %v17646_v26 = vpop.f32.mrf.mxu0 }
0x509e   : > { %v15488_v19 = vmul.f32 0.01, %v15484_v46  ;;  %vm15487_vm15 = vcmp.gt.f32.partialorder %v15484_v46, 0.0 }
0x50a0   : > { %v15489_v41 = vsel %vm15487_vm15, %v15484_v46, %v15488_v19 }
0x50a1   : > { %17656 = vmatmul.mubr.msk.f32.vlgmr.msra.gmra.mxu1 %vm1237_vm1, %v15489_v41 }
0x5161   : > { %v15570_v60 = vpop.f32.mrf.mxu1 }
0x5162   : > { %v15571_v49 = vadd.f32 %v16359_v34, %v15570_v60 }
0x5163   : > { %v17657_v9 = vpop.f32.mrf.mxu1 }
0x5164   : > { %v16361_v54 = vmul.f32 -1.442695, %v15571_v49 }
0x5166   : > { %18281 = vpow2.f32 %v16361_v54 }
0x5173   : > { %v18282_v16 = vpop.eup %18281 }
0x5174   : > { %v15577_v28 = vadd.f32 1.0, %v18282_v16 }
0x5176   : > { %18283 = vrcp.f32 %v15577_v28 }
0x5183   : > { %v18284_v33 = vpop.eup %18283 }
0x5184   : > { %15581 = vst.msk [vmem:[%s21928_s27] sm:$0x3] %vm15580_vm0, %v18284_v33 }
0x5185 PF: > { %s21929_s18 = sld [smem:[#allocation11_spill]]  ;;  %s21932_s15 = smov %s18371_s16 }
0x5186   : > { %s21930_s23 = sld [smem:[#allocation10_spill]] }
0x5187   : > { %s21931_s17 = sld [smem:[#allocation12_spill]] }
0x518b   : > { %p29_p4 = scmp.ge.s32.totalorder %s21929_s18, 4  }
0x518c   : > { %s21933_s16 = smov %s21930_s23 }
0x518d   :  { %31 = sbr.rel (!%p29_p4) target bundleno = 8 (0x8), region = 191 }
0x5192   :  { %15593 = vsyncpa [#allocation5], 1 }
0x5193   :  { %15595 = vsyncpa [#allocation5 + $0x1], 1 }
0x5194   :  { %15596 = vsyncpa [#allocation7], 1 }
0x5195   :  { %15598 = vsyncpa [#allocation7 + $0x1], 1 }

</bundles_post_ra>
